<compile_context>
chip_gen: v7x
topology: tpu7x:2x2x1
jax: 0.10.0
libtpu: 0.0.40
codegen_flags: <defaults>
</compile_context>

<pallas_src>
import jax
import jax.numpy as jnp
from jax.experimental import pallas as pl
from jax.experimental.pallas import tpu as pltpu

RADIUS = 1.0
Z_DIM = 3
SIZE = (16, 16)                    # small (H, W); must be divisible by 8 (3x maxpool2)
H8, W8 = SIZE[0] // 8, SIZE[1] // 8
FLAT = 32 * H8 * W8                # 32 * 2 * 2 = 128
HEAD_W = 128                       # lane-dense packed head output width
NREC = SIZE[0] * SIZE[1]           # flattened reconstruction length (C=1)

# encoder conv configs: (Hin, Win, Cin, Cout, K), stride-1 'same' conv + 2x2 pool
def _enc_cfgs():
    H, W, cin = SIZE[0], SIZE[1], 1
    cfgs = []
    for cout, k in ((8, 3), (16, 3), (32, 5)):
        cfgs.append((H, W, cin, cout, k))
        H, W, cin = H // 2, W // 2, cout
    return tuple(cfgs)

_ENC = _enc_cfgs()

_W_ORDER = [
    "w_en0", "b_en0", "w_en1", "b_en1", "w_en2", "b_en2",
    "w_en3", "b_en3", "w_mean", "b_mean", "w_var", "b_var", "w_cls", "b_cls",
    "w_de0", "b_de0", "w_de1", "b_de1",
    "w_de2", "b_de2", "w_de3", "b_de3", "w_de4", "b_de4",
]


# --------------------------- fused Pallas kernel -----------------------------

def _vae_kernel(
    # per-sample data blocks
    x_ref, xid_ref, u_ref, v_ref,
    # encoder conv weights (im2col layout) + biases
    w_en0, b_en0, w_en1, b_en1, w_en2, b_en2,
    # encoder head
    w_en3, b_en3, w_mean, b_mean, w_var, b_var, w_cls, b_cls,
    # decoder weights (transposed convs pre-folded to dense matrices)
    w_de0, b_de0, w_de1, b_de1, w_de2, b_de2, w_de3, b_de3, w_de4, b_de4,
    # outputs
    head_ref, rec_ref,
    # scratch: flattened padded image + im2col buffer per encoder conv
    xp0, col0, xp1, col1, xp2, col2,
):
    f32 = jnp.float32

    def conv_relu_pool(x3, xp, col, wref, bref, cfg):
        Hin, Win, Cin, Cout, K = cfg
        p = (K - 1) // 2
        Wp = Win + 2 * p
        M = Hin * Wp                     # rows computed (includes phantom pad columns)
        # in-kernel 'same' padding: zero the flattened padded buffer, copy interior rows
        xp[...] = jnp.zeros_like(xp)
        for i in range(Hin):
            r = (i + p) * Wp + p
            xp[r:r + Win, :] = x3[i]
        # im2col: tap (dh, dw) of the padded image == a contiguous row-slice of xp
        for dh in range(K):
            for dw in range(K):
                t = dh * K + dw
                off = dh * Wp + dw
                col[:, t * Cin:(t + 1) * Cin] = xp[off:off + M, :]
        # one MXU matmul per conv layer, bias + ReLU on the VPU
        acc = jnp.dot(col[...], wref[...], preferred_element_type=f32) + bref[...]
        acc = jnp.maximum(acc, 0.0)
        # drop phantom columns, 2x2 max-pool
        y = acc.reshape(Hin, Wp, Cout)[:, :Win, :]
        y = jnp.max(y.reshape(Hin, Win // 2, 2, Cout), axis=2)
        y = jnp.max(y.reshape(Hin // 2, 2, Win // 2, Cout), axis=1)
        return y

    # ------------------------------ encoder ------------------------------
    a = x_ref[0]                                             # (H, W, 1)
    a = conv_relu_pool(a, xp0, col0, w_en0, b_en0, _ENC[0])
    a = conv_relu_pool(a, xp1, col1, w_en1, b_en1, _ENC[1])
    a = conv_relu_pool(a, xp2, col2, w_en2, b_en2, _ENC[2])  # (H8, W8, 32)

    # fc_en3 as a blocked contraction (weights pre-permuted for NHWC order, so no
    # in-kernel flatten/transpose).  No activation on fc_en3 (matches reference).
    # TODO(synk): nn.Dropout(0.7) before/after fc_en3 is identity in eval mode; omitted.
    x34 = a.reshape(H8 * W8, 32)
    h = b_en3[...]
    for r in range(H8 * W8):
        h = h + jnp.dot(x34[r:r + 1, :], w_en3[r], preferred_element_type=f32)

    # vMF mean direction (radius-normalised, eps-guarded) + softplus concentration
    m = jnp.dot(h, w_mean[...], preferred_element_type=f32) + b_mean[...]
    inv_norm = jax.lax.rsqrt(jnp.maximum(jnp.sum(m * m, axis=-1, keepdims=True), 1e-24))
    z_mean = RADIUS * m * inv_norm                           # (1, 3)
    vraw = jnp.dot(h, w_var[...], preferred_element_type=f32) + b_var[...]
    z_var = jnp.maximum(vraw, 0.0) + jnp.log(1.0 + jnp.exp(-jnp.abs(vraw)))  # stable softplus

    # classifier on z_mean (softmax with EUP approx reciprocal)
    logits = jnp.dot(z_mean, w_cls[...], preferred_element_type=f32) + b_cls[...]
    e = jnp.exp(logits - jnp.max(logits, axis=-1, keepdims=True))
    cla = e * pl.reciprocal(jnp.sum(e, axis=-1, keepdims=True), approx=True)

    # ------------------ vMF reparameterisation (dim = 3) ------------------
    # TODO(synk): reference VonMisesFisher(k=kappa, radius) source is unavailable; this
    # is the standard S-VAE dim-3 rsample (w sample + Householder), scaled by radius,
    # driven by pre-drawn uniform/normal noise passed into the kernel.
    uu = u_ref[0]                                            # (1, 1) uniform in (0, 1)
    vv = v_ref[0]                                            # (1, 2) standard normal
    kap = z_var
    w_s = 1.0 + jnp.log(uu + (1.0 - uu) * jnp.exp(-2.0 * kap)) / kap
    vn = vv * jax.lax.rsqrt(jnp.maximum(jnp.sum(vv * vv, axis=-1, keepdims=True), 1e-24))
    s = jnp.sqrt(jnp.maximum(1.0 - w_s * w_s, 0.0))
    zp0, zp1, zp2 = w_s, s * vn[:, 0:1], s * vn[:, 1:2]
    inv_r = 1.0 / RADIUS
    h0 = 1.0 - z_mean[:, 0:1] * inv_r
    h1 = -z_mean[:, 1:2] * inv_r
    h2 = -z_mean[:, 2:3] * inv_r
    hinv = jax.lax.rsqrt(jnp.maximum(h0 * h0 + h1 * h1 + h2 * h2, 1e-16))
    h0, h1, h2 = h0 * hinv, h1 * hinv, h2 * hinv
    d = zp0 * h0 + zp1 * h1 + zp2 * h2
    z0 = RADIUS * (zp0 - 2.0 * d * h0)
    z1 = RADIUS * (zp1 - 2.0 * d * h1)
    z2 = RADIUS * (zp2 - 2.0 * d * h2)

    # lane-dense packed head output: [mean(3) | var(1) | z(3) | class(7) | 0-pad]
    head_ref[...] = jnp.zeros_like(head_ref)
    head_ref[0, :, 0:3] = z_mean
    head_ref[0, :, 3:4] = z_var
    head_ref[0, :, 4:5] = z0
    head_ref[0, :, 5:6] = z1
    head_ref[0, :, 6:7] = z2
    head_ref[0, :, 7:14] = cla

    # ------------------------------ decoder ------------------------------
    wd0 = w_de0[...]                                         # (4, 16), rows = [x_id, z0, z1, z2]
    hdec = (xid_ref[0] * wd0[0:1, :] + z0 * wd0[1:2, :] +
            z1 * wd0[2:3, :] + z2 * wd0[3:4, :] + b_de0[...])
    hdec = jnp.maximum(hdec, 0.0)
    g = jnp.maximum(jnp.dot(hdec, w_de1[...], preferred_element_type=f32) + b_de1[...], 0.0)
    # transposed convs as dense matmuls over NCHW-flat vectors (built at init)
    g = jnp.maximum(jnp.dot(g, w_de2[...], preferred_element_type=f32) + b_de2[...], 0.0)
    g = jnp.maximum(jnp.dot(g, w_de3[...], preferred_element_type=f32) + b_de3[...], 0.0)
    g = jnp.dot(g, w_de4[...], preferred_element_type=f32) + b_de4[...]
    g = 0.5 * (jnp.tanh(0.5 * g) + 1.0)                      # numerically-stable sigmoid
    rec_ref[0] = g                                           # (1, 256) NCHW-flat (C=1)


# --------------------------- pallas_call plumbing ----------------------------

def _bspec(shape):
    nd = len(shape)

    def imap(b):
        return (b,) + (0,) * (nd - 1)

    return pl.BlockSpec((1,) + tuple(shape[1:]), imap)


def _wspec(shape):
    nd = len(shape)

    def imap(b):
        return (0,) * nd

    return pl.BlockSpec(tuple(shape), imap)


def _scratch_shapes():
    shapes = []
    for (Hin, Win, Cin, Cout, K) in _ENC:
        p = (K - 1) // 2
        Wp, Hp = Win + 2 * p, Hin + 2 * p
        shapes.append(pltpu.VMEM((Hp * Wp + 2 * p, Cin), jnp.float32))      # padded image
        shapes.append(pltpu.VMEM((Hin * Wp, K * K * Cin), jnp.float32))     # im2col buffer
    return shapes


def conditional_vae_forward(prep, x_id, x_nchw, key):
    B = x_nchw.shape[0]
    x_nhwc = jnp.transpose(x_nchw, (0, 2, 3, 1)).astype(jnp.float32)        # NCHW -> NHWC (C=1)
    ku, kv = jax.random.split(key)
    u = jax.random.uniform(ku, (B, 1, 1), jnp.float32, 1e-6, 1.0 - 1e-6)
    v = jax.random.normal(kv, (B, 1, Z_DIM - 1), jnp.float32)
    xid3 = x_id.reshape(B, 1, 1).astype(jnp.float32)

    weights = [prep[k] for k in _W_ORDER]
    in_specs = ([_bspec(x_nhwc.shape), _bspec(xid3.shape), _bspec(u.shape), _bspec(v.shape)]
                + [_wspec(w.shape) for w in weights])
    grid_spec = pltpu.PrefetchScalarGridSpec(
        num_scalar_prefetch=0,
        grid=(B,),
        in_specs=in_specs,
        out_specs=(_bspec((B, 1, HEAD_W)), _bspec((B, 1, NREC))),
        scratch_shapes=_scratch_shapes(),
    )
    head, rec = pl.pallas_call(
        _vae_kernel,
        out_shape=(jax.ShapeDtypeStruct((B, 1, HEAD_W), jnp.float32),
                   jax.ShapeDtypeStruct((B, 1, NREC), jnp.float32)),
        grid_spec=grid_spec,
        compiler_params=pltpu.CompilerParams(dimension_semantics=("parallel",)),
    )(x_nhwc, xid3, u, v, *weights)

    z_mean = head[:, 0, 0:Z_DIM]
    z_var = head[:, 0, Z_DIM:Z_DIM + 1]
    z_emo = head[:, 0, Z_DIM + 1:2 * Z_DIM + 1]
    x_cla = head[:, 0, 2 * Z_DIM + 1:2 * Z_DIM + 8]
    x_rec = rec.reshape(B, 1, SIZE[0], SIZE[1])
    # q_z / p_z are distribution objects in the reference; return their parameters.
    q_z_params = (z_mean, z_var)
    p_z_params = (jnp.float32(Z_DIM - 1), jnp.float32(RADIUS))
    return (z_mean, z_var), (q_z_params, p_z_params), z_emo, (x_rec, x_cla)


# --------------------- parameter init (PyTorch layout) -----------------------

def init_params(key):
    def rnd(k, shape, scale):
        return scale * jax.random.normal(k, shape, jnp.float32)

    ks = iter(jax.random.split(key, 32))
    p = {}
    # Conv2d: (Cout, Cin, KH, KW); Linear: (out, in); ConvTranspose2d: (Cin, Cout, KH, KW)
    p["w_en0"] = rnd(next(ks), (8, 1, 3, 3), 0.3);     p["b_en0"] = rnd(next(ks), (8,), 0.05)
    p["w_en1"] = rnd(next(ks), (16, 8, 3, 3), 0.1);    p["b_en1"] = rnd(next(ks), (16,), 0.05)
    p["w_en2"] = rnd(next(ks), (32, 16, 5, 5), 0.05);  p["b_en2"] = rnd(next(ks), (32,), 0.05)
    p["w_en3"] = rnd(next(ks), (16, FLAT), 0.05);      p["b_en3"] = rnd(next(ks), (16,), 0.05)
    p["w_mean"] = rnd(next(ks), (Z_DIM, 16), 0.2);     p["b_mean"] = rnd(next(ks), (Z_DIM,), 0.05)
    p["w_var"] = rnd(next(ks), (1, 16), 0.2);          p["b_var"] = rnd(next(ks), (1,), 0.05)
    p["w_cls"] = rnd(next(ks), (7, Z_DIM), 0.2);       p["b_cls"] = rnd(next(ks), (7,), 0.05)
    p["w_de0"] = rnd(next(ks), (16, 1 + Z_DIM), 0.2);  p["b_de0"] = rnd(next(ks), (16,), 0.05)
    p["w_de1"] = rnd(next(ks), (FLAT, 16), 0.1);       p["b_de1"] = rnd(next(ks), (FLAT,), 0.05)
    p["w_de2"] = rnd(next(ks), (32, 16, 5, 5), 0.05);  p["b_de2"] = rnd(next(ks), (16,), 0.05)
    p["w_de3"] = rnd(next(ks), (16, 8, 3, 3), 0.1);    p["b_de3"] = rnd(next(ks), (8,), 0.05)
    p["w_de4"] = rnd(next(ks), (8, 1, 3, 3), 0.2);     p["b_de4"] = rnd(next(ks), (1,), 0.05)
    return p


# ------------- one-time parameter prep (all layout work hoisted) -------------

def _tconv_dense(wt, b, stride, pad, out_pad, Hi, Wi):
    """Fold a PyTorch ConvTranspose2d (weight (Cin,Cout,KH,KW)) into a dense matrix
    acting on NCHW-flat vectors: y_flat = x_flat @ dense + b_exp."""
    Cin, Cout, KH, KW = wt.shape
    nin = Cin * Hi * Wi
    eye = jnp.eye(nin, dtype=jnp.float32).reshape(nin, Cin, Hi, Wi)
    w_oihw = jnp.transpose(wt[:, :, ::-1, ::-1], (1, 0, 2, 3))   # flip + (Cout,Cin,KH,KW)
    out = jax.lax.conv_general_dilated(
        eye, w_oihw, window_strides=(1, 1),
        padding=[(KH - 1 - pad, KH - 1 - pad + out_pad),
                 (KW - 1 - pad, KW - 1 - pad + out_pad)],
        lhs_dilation=(stride, stride), rhs_dilation=(1, 1),
        dimension_numbers=("NCHW", "OIHW", "NCHW"))
    _, Co, Ho, Wo = out.shape
    dense = out.reshape(nin, Co * Ho * Wo)
    b_exp = jnp.repeat(b, Ho * Wo).reshape(1, Co * Ho * Wo)
    return dense, b_exp


def prepare_params(p):
    """Convert PyTorch-layout parameters to the fused-kernel layout (one-time)."""
    out = {}
    # encoder convs: (Cout,Cin,KH,KW) -> im2col weight (KH*KW*Cin, Cout)
    for name in ("en0", "en1", "en2"):
        w = p[f"w_{name}"]
        Cout, Cin, KH, KW = w.shape
        out[f"w_{name}"] = jnp.transpose(w, (2, 3, 1, 0)).reshape(KH * KW * Cin, Cout)
        out[f"b_{name}"] = p[f"b_{name}"].reshape(1, Cout)
    # fc_en3: rows reordered from NCHW-flat to per-(h,w) channel blocks
    w3t = jnp.transpose(p["w_en3"])                                   # (FLAT, 16), NCHW rows
    out["w_en3"] = (w3t.reshape(32, H8, W8, 16)
                        .transpose(1, 2, 0, 3)
                        .reshape(H8 * W8, 32, 16))
    out["b_en3"] = p["b_en3"].reshape(1, 16)
    # small linear heads (Linear weight (out,in) -> (in,out))
    out["w_mean"] = jnp.transpose(p["w_mean"]);  out["b_mean"] = p["b_mean"].reshape(1, -1)
    out["w_var"] = jnp.transpose(p["w_var"]);    out["b_var"] = p["b_var"].reshape(1, -1)
    out["w_cls"] = jnp.transpose(p["w_cls"]);    out["b_cls"] = p["b_cls"].reshape(1, -1)
    out["w_de0"] = jnp.transpose(p["w_de0"]);    out["b_de0"] = p["b_de0"].reshape(1, -1)
    out["w_de1"] = jnp.transpose(p["w_de1"]);    out["b_de1"] = p["b_de1"].reshape(1, -1)
    # transposed convs folded to dense matrices over NCHW-flat activations
    out["w_de2"], out["b_de2"] = _tconv_dense(p["w_de2"], p["b_de2"], 2, 2, 1, H8, W8)
    out["w_de3"], out["b_de3"] = _tconv_dense(p["w_de3"], p["b_de3"], 2, 1, 1, 2 * H8, 2 * W8)
    out["w_de4"], out["b_de4"] = _tconv_dense(p["w_de4"], p["b_de4"], 2, 1, 1, 4 * H8, 4 * W8)
    return out


if __name__ == "__main__":
    key = jax.random.PRNGKey(0)
    kp, kx, kid, ksamp = jax.random.split(key, 4)
    params_pt = init_params(kp)
    prep = prepare_params(params_pt)                 # one-time, hoisted out of the forward
    x = jax.random.uniform(kx, (2, 1, SIZE[0], SIZE[1]), jnp.float32)   # NCHW, like PyTorch
    x_id = jax.random.uniform(kid, (2,), jnp.float32)

    fwd = jax.jit(conditional_vae_forward)
    out = fwd(prep, x_id, x, ksamp)
    jax.block_until_ready(out)

    (zm, zv), _, z, (x_rec, x_cla) = out
    assert zm.shape == (2, Z_DIM) and zv.shape == (2, 1)
    assert z.shape == (2, Z_DIM)
    assert x_rec.shape == (2, 1, SIZE[0], SIZE[1]) and x_cla.shape == (2, 7)
    # sanity: z_mean lies on the radius-R sphere, class probs ~sum to 1, outputs finite
    assert bool(jnp.all(jnp.abs(jnp.linalg.norm(zm, axis=-1) - RADIUS) < 1e-3))
    assert bool(jnp.all(jnp.abs(jnp.sum(x_cla, axis=-1) - 1.0) < 1e-2))
    assert bool(jnp.all(jnp.isfinite(x_rec))) and bool(jnp.all(jnp.isfinite(z)))
    print("KERNEL_OK")
</pallas_src>

<mosaic_0001>
module attributes {stable_mosaic.version = 11 : i64} {
  func.func @_vae_kernel(%arg0: i32, %arg1: memref<1x16x16x1xf32, #tpu.memory_space<vmem>>, %arg2: memref<1x1x1xf32, #tpu.memory_space<vmem>>, %arg3: memref<1x1x1xf32, #tpu.memory_space<vmem>>, %arg4: memref<1x1x2xf32, #tpu.memory_space<vmem>>, %arg5: memref<9x8xf32, #tpu.memory_space<vmem>>, %arg6: memref<1x8xf32, #tpu.memory_space<vmem>>, %arg7: memref<72x16xf32, #tpu.memory_space<vmem>>, %arg8: memref<1x16xf32, #tpu.memory_space<vmem>>, %arg9: memref<400x32xf32, #tpu.memory_space<vmem>>, %arg10: memref<1x32xf32, #tpu.memory_space<vmem>>, %arg11: memref<4x32x16xf32, #tpu.memory_space<vmem>>, %arg12: memref<1x16xf32, #tpu.memory_space<vmem>>, %arg13: memref<16x3xf32, #tpu.memory_space<vmem>>, %arg14: memref<1x3xf32, #tpu.memory_space<vmem>>, %arg15: memref<16x1xf32, #tpu.memory_space<vmem>>, %arg16: memref<1x1xf32, #tpu.memory_space<vmem>>, %arg17: memref<3x7xf32, #tpu.memory_space<vmem>>, %arg18: memref<1x7xf32, #tpu.memory_space<vmem>>, %arg19: memref<4x16xf32, #tpu.memory_space<vmem>>, %arg20: memref<1x16xf32, #tpu.memory_space<vmem>>, %arg21: memref<16x128xf32, #tpu.memory_space<vmem>>, %arg22: memref<1x128xf32, #tpu.memory_space<vmem>>, %arg23: memref<128x256xf32, #tpu.memory_space<vmem>>, %arg24: memref<1x256xf32, #tpu.memory_space<vmem>>, %arg25: memref<256x512xf32, #tpu.memory_space<vmem>>, %arg26: memref<1x512xf32, #tpu.memory_space<vmem>>, %arg27: memref<512x256xf32, #tpu.memory_space<vmem>>, %arg28: memref<1x256xf32, #tpu.memory_space<vmem>>, %arg29: memref<1x1x128xf32, #tpu.memory_space<vmem>>, %arg30: memref<1x1x256xf32, #tpu.memory_space<vmem>>, %arg31: memref<326x1xf32, #tpu.memory_space<vmem>>, %arg32: memref<288x9xf32, #tpu.memory_space<vmem>>, %arg33: memref<102x8xf32, #tpu.memory_space<vmem>>, %arg34: memref<80x72xf32, #tpu.memory_space<vmem>>, %arg35: memref<68x16xf32, #tpu.memory_space<vmem>>, %arg36: memref<32x400xf32, #tpu.memory_space<vmem>>) attributes {dimension_semantics = [#tpu.dimension_semantics<parallel>], iteration_bounds = array<i64: 2>, scalar_prefetch = 0 : i64, scratch_operands = 6 : i64, tpu.core_type = #tpu.core_type<tc>, window_params = [{transform_indices = @transform_0, window_bounds = array<i64: 1, 16, 16, 1>}, {transform_indices = @transform_1, window_bounds = array<i64: 1, 1, 1>}, {transform_indices = @transform_2, window_bounds = array<i64: 1, 1, 1>}, {transform_indices = @transform_3, window_bounds = array<i64: 1, 1, 2>}, {pipeline_mode = #tpu.pipeline_mode<synchronous>, transform_indices = @transform_4, window_bounds = array<i64: 9, 8>}, {pipeline_mode = #tpu.pipeline_mode<synchronous>, transform_indices = @transform_5, window_bounds = array<i64: 1, 8>}, {pipeline_mode = #tpu.pipeline_mode<synchronous>, transform_indices = @transform_6, window_bounds = array<i64: 72, 16>}, {pipeline_mode = #tpu.pipeline_mode<synchronous>, transform_indices = @transform_7, window_bounds = array<i64: 1, 16>}, {pipeline_mode = #tpu.pipeline_mode<synchronous>, transform_indices = @transform_8, window_bounds = array<i64: 400, 32>}, {pipeline_mode = #tpu.pipeline_mode<synchronous>, transform_indices = @transform_9, window_bounds = array<i64: 1, 32>}, {pipeline_mode = #tpu.pipeline_mode<synchronous>, transform_indices = @transform_10, window_bounds = array<i64: 4, 32, 16>}, {pipeline_mode = #tpu.pipeline_mode<synchronous>, transform_indices = @transform_11, window_bounds = array<i64: 1, 16>}, {pipeline_mode = #tpu.pipeline_mode<synchronous>, transform_indices = @transform_12, window_bounds = array<i64: 16, 3>}, {pipeline_mode = #tpu.pipeline_mode<synchronous>, transform_indices = @transform_13, window_bounds = array<i64: 1, 3>}, {pipeline_mode = #tpu.pipeline_mode<synchronous>, transform_indices = @transform_14, window_bounds = array<i64: 16, 1>}, {pipeline_mode = #tpu.pipeline_mode<synchronous>, transform_indices = @transform_15, window_bounds = array<i64: 1, 1>}, {pipeline_mode = #tpu.pipeline_mode<synchronous>, transform_indices = @transform_16, window_bounds = array<i64: 3, 7>}, {pipeline_mode = #tpu.pipeline_mode<synchronous>, transform_indices = @transform_17, window_bounds = array<i64: 1, 7>}, {pipeline_mode = #tpu.pipeline_mode<synchronous>, transform_indices = @transform_18, window_bounds = array<i64: 4, 16>}, {pipeline_mode = #tpu.pipeline_mode<synchronous>, transform_indices = @transform_19, window_bounds = array<i64: 1, 16>}, {pipeline_mode = #tpu.pipeline_mode<synchronous>, transform_indices = @transform_20, window_bounds = array<i64: 16, 128>}, {pipeline_mode = #tpu.pipeline_mode<synchronous>, transform_indices = @transform_21, window_bounds = array<i64: 1, 128>}, {pipeline_mode = #tpu.pipeline_mode<synchronous>, transform_indices = @transform_22, window_bounds = array<i64: 128, 256>}, {pipeline_mode = #tpu.pipeline_mode<synchronous>, transform_indices = @transform_23, window_bounds = array<i64: 1, 256>}, {pipeline_mode = #tpu.pipeline_mode<synchronous>, transform_indices = @transform_24, window_bounds = array<i64: 256, 512>}, {pipeline_mode = #tpu.pipeline_mode<synchronous>, transform_indices = @transform_25, window_bounds = array<i64: 1, 512>}, {pipeline_mode = #tpu.pipeline_mode<synchronous>, transform_indices = @transform_26, window_bounds = array<i64: 512, 256>}, {pipeline_mode = #tpu.pipeline_mode<synchronous>, transform_indices = @transform_27, window_bounds = array<i64: 1, 256>}, {transform_indices = @transform_28, window_bounds = array<i64: 1, 1, 128>}, {transform_indices = @transform_29, window_bounds = array<i64: 1, 1, 256>}]} {
    %c0 = arith.constant 0 : index
    %c0_0 = arith.constant 0 : index
    %c0_1 = arith.constant 0 : index
    %c0_2 = arith.constant 0 : index
    %0 = vector.load %arg1[%c0, %c0_0, %c0_1, %c0_2] : memref<1x16x16x1xf32, #tpu.memory_space<vmem>>, vector<1x16x16x1xf32>
    %1 = vector.shape_cast %0 : vector<1x16x16x1xf32> to vector<16x16x1xf32>
    %cst = arith.constant 0.000000e+00 : f32
    %2 = vector.broadcast %cst : f32 to vector<326x1xf32>
    %c0_3 = arith.constant 0 : index
    %c0_4 = arith.constant 0 : index
    %3 = vector.load %arg31[%c0_3, %c0_4] : memref<326x1xf32, #tpu.memory_space<vmem>>, vector<326x1xf32>
    tpu.vector_store %arg31[%c0_3, %c0_4], %2 {strides = array<i32>} : memref<326x1xf32, #tpu.memory_space<vmem>>, vector<326x1xf32>,
    %4 = vector.extract_strided_slice %1 {offsets = [0, 0, 0], sizes = [1, 16, 1], strides = [1, 1, 1]} : vector<16x16x1xf32> to vector<1x16x1xf32>
    %5 = vector.shape_cast %4 : vector<1x16x1xf32> to vector<16x1xf32>
    %c19 = arith.constant 19 : index
    %c0_5 = arith.constant 0 : index
    %6 = vector.load %arg31[%c19, %c0_5] : memref<326x1xf32, #tpu.memory_space<vmem>>, vector<16x1xf32>
    tpu.vector_store %arg31[%c19, %c0_5], %5 {strides = array<i32>} : memref<326x1xf32, #tpu.memory_space<vmem>>, vector<16x1xf32>,
    %7 = vector.extract_strided_slice %1 {offsets = [1, 0, 0], sizes = [1, 16, 1], strides = [1, 1, 1]} : vector<16x16x1xf32> to vector<1x16x1xf32>
    %8 = vector.shape_cast %7 : vector<1x16x1xf32> to vector<16x1xf32>
    %c37 = arith.constant 37 : index
    %c0_6 = arith.constant 0 : index
    %9 = vector.load %arg31[%c37, %c0_6] : memref<326x1xf32, #tpu.memory_space<vmem>>, vector<16x1xf32>
    tpu.vector_store %arg31[%c37, %c0_6], %8 {strides = array<i32>} : memref<326x1xf32, #tpu.memory_space<vmem>>, vector<16x1xf32>,
    %10 = vector.extract_strided_slice %1 {offsets = [2, 0, 0], sizes = [1, 16, 1], strides = [1, 1, 1]} : vector<16x16x1xf32> to vector<1x16x1xf32>
    %11 = vector.shape_cast %10 : vector<1x16x1xf32> to vector<16x1xf32>
    %c55 = arith.constant 55 : index
    %c0_7 = arith.constant 0 : index
    %12 = vector.load %arg31[%c55, %c0_7] : memref<326x1xf32, #tpu.memory_space<vmem>>, vector<16x1xf32>
    tpu.vector_store %arg31[%c55, %c0_7], %11 {strides = array<i32>} : memref<326x1xf32, #tpu.memory_space<vmem>>, vector<16x1xf32>,
    %13 = vector.extract_strided_slice %1 {offsets = [3, 0, 0], sizes = [1, 16, 1], strides = [1, 1, 1]} : vector<16x16x1xf32> to vector<1x16x1xf32>
    %14 = vector.shape_cast %13 : vector<1x16x1xf32> to vector<16x1xf32>
    %c73 = arith.constant 73 : index
    %c0_8 = arith.constant 0 : index
    %15 = vector.load %arg31[%c73, %c0_8] : memref<326x1xf32, #tpu.memory_space<vmem>>, vector<16x1xf32>
    tpu.vector_store %arg31[%c73, %c0_8], %14 {strides = array<i32>} : memref<326x1xf32, #tpu.memory_space<vmem>>, vector<16x1xf32>,
    %16 = vector.extract_strided_slice %1 {offsets = [4, 0, 0], sizes = [1, 16, 1], strides = [1, 1, 1]} : vector<16x16x1xf32> to vector<1x16x1xf32>
    %17 = vector.shape_cast %16 : vector<1x16x1xf32> to vector<16x1xf32>
    %c91 = arith.constant 91 : index
    %c0_9 = arith.constant 0 : index
    %18 = vector.load %arg31[%c91, %c0_9] : memref<326x1xf32, #tpu.memory_space<vmem>>, vector<16x1xf32>
    tpu.vector_store %arg31[%c91, %c0_9], %17 {strides = array<i32>} : memref<326x1xf32, #tpu.memory_space<vmem>>, vector<16x1xf32>,
    %19 = vector.extract_strided_slice %1 {offsets = [5, 0, 0], sizes = [1, 16, 1], strides = [1, 1, 1]} : vector<16x16x1xf32> to vector<1x16x1xf32>
    %20 = vector.shape_cast %19 : vector<1x16x1xf32> to vector<16x1xf32>
    %c109 = arith.constant 109 : index
    %c0_10 = arith.constant 0 : index
    %21 = vector.load %arg31[%c109, %c0_10] : memref<326x1xf32, #tpu.memory_space<vmem>>, vector<16x1xf32>
    tpu.vector_store %arg31[%c109, %c0_10], %20 {strides = array<i32>} : memref<326x1xf32, #tpu.memory_space<vmem>>, vector<16x1xf32>,
    %22 = vector.extract_strided_slice %1 {offsets = [6, 0, 0], sizes = [1, 16, 1], strides = [1, 1, 1]} : vector<16x16x1xf32> to vector<1x16x1xf32>
    %23 = vector.shape_cast %22 : vector<1x16x1xf32> to vector<16x1xf32>
    %c127 = arith.constant 127 : index
    %c0_11 = arith.constant 0 : index
    %24 = vector.load %arg31[%c127, %c0_11] : memref<326x1xf32, #tpu.memory_space<vmem>>, vector<16x1xf32>
    tpu.vector_store %arg31[%c127, %c0_11], %23 {strides = array<i32>} : memref<326x1xf32, #tpu.memory_space<vmem>>, vector<16x1xf32>,
    %25 = vector.extract_strided_slice %1 {offsets = [7, 0, 0], sizes = [1, 16, 1], strides = [1, 1, 1]} : vector<16x16x1xf32> to vector<1x16x1xf32>
    %26 = vector.shape_cast %25 : vector<1x16x1xf32> to vector<16x1xf32>
    %c145 = arith.constant 145 : index
    %c0_12 = arith.constant 0 : index
    %27 = vector.load %arg31[%c145, %c0_12] : memref<326x1xf32, #tpu.memory_space<vmem>>, vector<16x1xf32>
    tpu.vector_store %arg31[%c145, %c0_12], %26 {strides = array<i32>} : memref<326x1xf32, #tpu.memory_space<vmem>>, vector<16x1xf32>,
    %28 = vector.extract_strided_slice %1 {offsets = [8, 0, 0], sizes = [1, 16, 1], strides = [1, 1, 1]} : vector<16x16x1xf32> to vector<1x16x1xf32>
    %29 = vector.shape_cast %28 : vector<1x16x1xf32> to vector<16x1xf32>
    %c163 = arith.constant 163 : index
    %c0_13 = arith.constant 0 : index
    %30 = vector.load %arg31[%c163, %c0_13] : memref<326x1xf32, #tpu.memory_space<vmem>>, vector<16x1xf32>
    tpu.vector_store %arg31[%c163, %c0_13], %29 {strides = array<i32>} : memref<326x1xf32, #tpu.memory_space<vmem>>, vector<16x1xf32>,
    %31 = vector.extract_strided_slice %1 {offsets = [9, 0, 0], sizes = [1, 16, 1], strides = [1, 1, 1]} : vector<16x16x1xf32> to vector<1x16x1xf32>
    %32 = vector.shape_cast %31 : vector<1x16x1xf32> to vector<16x1xf32>
    %c181 = arith.constant 181 : index
    %c0_14 = arith.constant 0 : index
    %33 = vector.load %arg31[%c181, %c0_14] : memref<326x1xf32, #tpu.memory_space<vmem>>, vector<16x1xf32>
    tpu.vector_store %arg31[%c181, %c0_14], %32 {strides = array<i32>} : memref<326x1xf32, #tpu.memory_space<vmem>>, vector<16x1xf32>,
    %34 = vector.extract_strided_slice %1 {offsets = [10, 0, 0], sizes = [1, 16, 1], strides = [1, 1, 1]} : vector<16x16x1xf32> to vector<1x16x1xf32>
    %35 = vector.shape_cast %34 : vector<1x16x1xf32> to vector<16x1xf32>
    %c199 = arith.constant 199 : index
    %c0_15 = arith.constant 0 : index
    %36 = vector.load %arg31[%c199, %c0_15] : memref<326x1xf32, #tpu.memory_space<vmem>>, vector<16x1xf32>
    tpu.vector_store %arg31[%c199, %c0_15], %35 {strides = array<i32>} : memref<326x1xf32, #tpu.memory_space<vmem>>, vector<16x1xf32>,
    %37 = vector.extract_strided_slice %1 {offsets = [11, 0, 0], sizes = [1, 16, 1], strides = [1, 1, 1]} : vector<16x16x1xf32> to vector<1x16x1xf32>
    %38 = vector.shape_cast %37 : vector<1x16x1xf32> to vector<16x1xf32>
    %c217 = arith.constant 217 : index
    %c0_16 = arith.constant 0 : index
    %39 = vector.load %arg31[%c217, %c0_16] : memref<326x1xf32, #tpu.memory_space<vmem>>, vector<16x1xf32>
    tpu.vector_store %arg31[%c217, %c0_16], %38 {strides = array<i32>} : memref<326x1xf32, #tpu.memory_space<vmem>>, vector<16x1xf32>,
    %40 = vector.extract_strided_slice %1 {offsets = [12, 0, 0], sizes = [1, 16, 1], strides = [1, 1, 1]} : vector<16x16x1xf32> to vector<1x16x1xf32>
    %41 = vector.shape_cast %40 : vector<1x16x1xf32> to vector<16x1xf32>
    %c235 = arith.constant 235 : index
    %c0_17 = arith.constant 0 : index
    %42 = vector.load %arg31[%c235, %c0_17] : memref<326x1xf32, #tpu.memory_space<vmem>>, vector<16x1xf32>
    tpu.vector_store %arg31[%c235, %c0_17], %41 {strides = array<i32>} : memref<326x1xf32, #tpu.memory_space<vmem>>, vector<16x1xf32>,
    %43 = vector.extract_strided_slice %1 {offsets = [13, 0, 0], sizes = [1, 16, 1], strides = [1, 1, 1]} : vector<16x16x1xf32> to vector<1x16x1xf32>
    %44 = vector.shape_cast %43 : vector<1x16x1xf32> to vector<16x1xf32>
    %c253 = arith.constant 253 : index
    %c0_18 = arith.constant 0 : index
    %45 = vector.load %arg31[%c253, %c0_18] : memref<326x1xf32, #tpu.memory_space<vmem>>, vector<16x1xf32>
    tpu.vector_store %arg31[%c253, %c0_18], %44 {strides = array<i32>} : memref<326x1xf32, #tpu.memory_space<vmem>>, vector<16x1xf32>,
    %46 = vector.extract_strided_slice %1 {offsets = [14, 0, 0], sizes = [1, 16, 1], strides = [1, 1, 1]} : vector<16x16x1xf32> to vector<1x16x1xf32>
    %47 = vector.shape_cast %46 : vector<1x16x1xf32> to vector<16x1xf32>
    %c271 = arith.constant 271 : index
    %c0_19 = arith.constant 0 : index
    %48 = vector.load %arg31[%c271, %c0_19] : memref<326x1xf32, #tpu.memory_space<vmem>>, vector<16x1xf32>
    tpu.vector_store %arg31[%c271, %c0_19], %47 {strides = array<i32>} : memref<326x1xf32, #tpu.memory_space<vmem>>, vector<16x1xf32>,
    %49 = vector.extract_strided_slice %1 {offsets = [15, 0, 0], sizes = [1, 16, 1], strides = [1, 1, 1]} : vector<16x16x1xf32> to vector<1x16x1xf32>
    %50 = vector.shape_cast %49 : vector<1x16x1xf32> to vector<16x1xf32>
    %c289 = arith.constant 289 : index
    %c0_20 = arith.constant 0 : index
    %51 = vector.load %arg31[%c289, %c0_20] : memref<326x1xf32, #tpu.memory_space<vmem>>, vector<16x1xf32>
    tpu.vector_store %arg31[%c289, %c0_20], %50 {strides = array<i32>} : memref<326x1xf32, #tpu.memory_space<vmem>>, vector<16x1xf32>,
    %c0_21 = arith.constant 0 : index
    %c0_22 = arith.constant 0 : index
    %52 = vector.load %arg31[%c0_21, %c0_22] : memref<326x1xf32, #tpu.memory_space<vmem>>, vector<288x1xf32>
    %c0_23 = arith.constant 0 : index
    %c0_24 = arith.constant 0 : index
    %53 = vector.load %arg32[%c0_23, %c0_24] : memref<288x9xf32, #tpu.memory_space<vmem>>, vector<288x1xf32>
    tpu.vector_store %arg32[%c0_23, %c0_24], %52 {strides = array<i32>} : memref<288x9xf32, #tpu.memory_space<vmem>>, vector<288x1xf32>,
    %c1 = arith.constant 1 : index
    %c0_25 = arith.constant 0 : index
    %54 = vector.load %arg31[%c1, %c0_25] : memref<326x1xf32, #tpu.memory_space<vmem>>, vector<288x1xf32>
    %c0_26 = arith.constant 0 : index
    %c1_27 = arith.constant 1 : index
    %55 = vector.load %arg32[%c0_26, %c1_27] : memref<288x9xf32, #tpu.memory_space<vmem>>, vector<288x1xf32>
    tpu.vector_store %arg32[%c0_26, %c1_27], %54 {strides = array<i32>} : memref<288x9xf32, #tpu.memory_space<vmem>>, vector<288x1xf32>,
    %c2 = arith.constant 2 : index
    %c0_28 = arith.constant 0 : index
    %56 = vector.load %arg31[%c2, %c0_28] : memref<326x1xf32, #tpu.memory_space<vmem>>, vector<288x1xf32>
    %c0_29 = arith.constant 0 : index
    %c2_30 = arith.constant 2 : index
    %57 = vector.load %arg32[%c0_29, %c2_30] : memref<288x9xf32, #tpu.memory_space<vmem>>, vector<288x1xf32>
    tpu.vector_store %arg32[%c0_29, %c2_30], %56 {strides = array<i32>} : memref<288x9xf32, #tpu.memory_space<vmem>>, vector<288x1xf32>,
    %c18 = arith.constant 18 : index
    %c0_31 = arith.constant 0 : index
    %58 = vector.load %arg31[%c18, %c0_31] : memref<326x1xf32, #tpu.memory_space<vmem>>, vector<288x1xf32>
    %c0_32 = arith.constant 0 : index
    %c3 = arith.constant 3 : index
    %59 = vector.load %arg32[%c0_32, %c3] : memref<288x9xf32, #tpu.memory_space<vmem>>, vector<288x1xf32>
    tpu.vector_store %arg32[%c0_32, %c3], %58 {strides = array<i32>} : memref<288x9xf32, #tpu.memory_space<vmem>>, vector<288x1xf32>,
    %c19_33 = arith.constant 19 : index
    %c0_34 = arith.constant 0 : index
    %60 = vector.load %arg31[%c19_33, %c0_34] : memref<326x1xf32, #tpu.memory_space<vmem>>, vector<288x1xf32>
    %c0_35 = arith.constant 0 : index
    %c4 = arith.constant 4 : index
    %61 = vector.load %arg32[%c0_35, %c4] : memref<288x9xf32, #tpu.memory_space<vmem>>, vector<288x1xf32>
    tpu.vector_store %arg32[%c0_35, %c4], %60 {strides = array<i32>} : memref<288x9xf32, #tpu.memory_space<vmem>>, vector<288x1xf32>,
    %c20 = arith.constant 20 : index
    %c0_36 = arith.constant 0 : index
    %62 = vector.load %arg31[%c20, %c0_36] : memref<326x1xf32, #tpu.memory_space<vmem>>, vector<288x1xf32>
    %c0_37 = arith.constant 0 : index
    %c5 = arith.constant 5 : index
    %63 = vector.load %arg32[%c0_37, %c5] : memref<288x9xf32, #tpu.memory_space<vmem>>, vector<288x1xf32>
    tpu.vector_store %arg32[%c0_37, %c5], %62 {strides = array<i32>} : memref<288x9xf32, #tpu.memory_space<vmem>>, vector<288x1xf32>,
    %c36 = arith.constant 36 : index
    %c0_38 = arith.constant 0 : index
    %64 = vector.load %arg31[%c36, %c0_38] : memref<326x1xf32, #tpu.memory_space<vmem>>, vector<288x1xf32>
    %c0_39 = arith.constant 0 : index
    %c6 = arith.constant 6 : index
    %65 = vector.load %arg32[%c0_39, %c6] : memref<288x9xf32, #tpu.memory_space<vmem>>, vector<288x1xf32>
    tpu.vector_store %arg32[%c0_39, %c6], %64 {strides = array<i32>} : memref<288x9xf32, #tpu.memory_space<vmem>>, vector<288x1xf32>,
    %c37_40 = arith.constant 37 : index
    %c0_41 = arith.constant 0 : index
    %66 = vector.load %arg31[%c37_40, %c0_41] : memref<326x1xf32, #tpu.memory_space<vmem>>, vector<288x1xf32>
    %c0_42 = arith.constant 0 : index
    %c7 = arith.constant 7 : index
    %67 = vector.load %arg32[%c0_42, %c7] : memref<288x9xf32, #tpu.memory_space<vmem>>, vector<288x1xf32>
    tpu.vector_store %arg32[%c0_42, %c7], %66 {strides = array<i32>} : memref<288x9xf32, #tpu.memory_space<vmem>>, vector<288x1xf32>,
    %c38 = arith.constant 38 : index
    %c0_43 = arith.constant 0 : index
    %68 = vector.load %arg31[%c38, %c0_43] : memref<326x1xf32, #tpu.memory_space<vmem>>, vector<288x1xf32>
    %c0_44 = arith.constant 0 : index
    %c8 = arith.constant 8 : index
    %69 = vector.load %arg32[%c0_44, %c8] : memref<288x9xf32, #tpu.memory_space<vmem>>, vector<288x1xf32>
    tpu.vector_store %arg32[%c0_44, %c8], %68 {strides = array<i32>} : memref<288x9xf32, #tpu.memory_space<vmem>>, vector<288x1xf32>,
    %c0_45 = arith.constant 0 : index
    %c0_46 = arith.constant 0 : index
    %70 = vector.load %arg32[%c0_45, %c0_46] : memref<288x9xf32, #tpu.memory_space<vmem>>, vector<288x9xf32>
    %c0_47 = arith.constant 0 : index
    %c0_48 = arith.constant 0 : index
    %71 = vector.load %arg5[%c0_47, %c0_48] : memref<9x8xf32, #tpu.memory_space<vmem>>, vector<9x8xf32>
    %cst_49 = arith.constant dense<0.000000e+00> : vector<288x8xf32>
    %72 = tpu.matmul %70, %71, %cst_49 {dimension_numbers = #tpu.dot_dimension_numbers<[1], [0], [0], [1], [0, 0, 1, 1], [], []>} : vector<288x9xf32>, vector<9x8xf32>, vector<288x8xf32> -> vector<288x8xf32>
    %c0_50 = arith.constant 0 : index
    %c0_51 = arith.constant 0 : index
    %73 = vector.load %arg6[%c0_50, %c0_51] : memref<1x8xf32, #tpu.memory_space<vmem>>, vector<1x8xf32>
    %74 = vector.broadcast %73 : vector<1x8xf32> to vector<288x8xf32>
    %75 = arith.addf %72, %74 : vector<288x8xf32>
    %cst_52 = arith.constant 0.000000e+00 : f32
    %76 = vector.broadcast %cst_52 : f32 to vector<288x8xf32>
    %77 = arith.maximumf %75, %76 : vector<288x8xf32>
    %78 = vector.shape_cast %77 : vector<288x8xf32> to vector<16x18x8xf32>
    %79 = vector.extract_strided_slice %78 {offsets = [0, 0, 0], sizes = [16, 16, 8], strides = [1, 1, 1]} : vector<16x18x8xf32> to vector<16x16x8xf32>
    %80 = vector.shape_cast %79 : vector<16x16x8xf32> to vector<16x8x2x8xf32>
    %cst_53 = arith.constant dense<0xFF800000> : vector<16x8x8xf32>
    %81 = vector.multi_reduction <maximumf>, %80, %cst_53 [2] : vector<16x8x2x8xf32> to vector<16x8x8xf32>
    %82 = vector.shape_cast %81 : vector<16x8x8xf32> to vector<8x2x8x8xf32>
    %cst_54 = arith.constant dense<0xFF800000> : vector<8x8x8xf32>
    %83 = vector.multi_reduction <maximumf>, %82, %cst_54 [1] : vector<8x2x8x8xf32> to vector<8x8x8xf32>
    %cst_55 = arith.constant 0.000000e+00 : f32
    %84 = vector.broadcast %cst_55 : f32 to vector<102x8xf32>
    %c0_56 = arith.constant 0 : index
    %c0_57 = arith.constant 0 : index
    %85 = vector.load %arg33[%c0_56, %c0_57] : memref<102x8xf32, #tpu.memory_space<vmem>>, vector<102x8xf32>
    tpu.vector_store %arg33[%c0_56, %c0_57], %84 {strides = array<i32>} : memref<102x8xf32, #tpu.memory_space<vmem>>, vector<102x8xf32>,
    %86 = vector.extract_strided_slice %83 {offsets = [0, 0, 0], sizes = [1, 8, 8], strides = [1, 1, 1]} : vector<8x8x8xf32> to vector<1x8x8xf32>
    %87 = vector.shape_cast %86 : vector<1x8x8xf32> to vector<8x8xf32>
    %c11 = arith.constant 11 : index
    %c0_58 = arith.constant 0 : index
    %88 = vector.load %arg33[%c11, %c0_58] : memref<102x8xf32, #tpu.memory_space<vmem>>, vector<8x8xf32>
    tpu.vector_store %arg33[%c11, %c0_58], %87 {strides = array<i32>} : memref<102x8xf32, #tpu.memory_space<vmem>>, vector<8x8xf32>,
    %89 = vector.extract_strided_slice %83 {offsets = [1, 0, 0], sizes = [1, 8, 8], strides = [1, 1, 1]} : vector<8x8x8xf32> to vector<1x8x8xf32>
    %90 = vector.shape_cast %89 : vector<1x8x8xf32> to vector<8x8xf32>
    %c21 = arith.constant 21 : index
    %c0_59 = arith.constant 0 : index
    %91 = vector.load %arg33[%c21, %c0_59] : memref<102x8xf32, #tpu.memory_space<vmem>>, vector<8x8xf32>
    tpu.vector_store %arg33[%c21, %c0_59], %90 {strides = array<i32>} : memref<102x8xf32, #tpu.memory_space<vmem>>, vector<8x8xf32>,
    %92 = vector.extract_strided_slice %83 {offsets = [2, 0, 0], sizes = [1, 8, 8], strides = [1, 1, 1]} : vector<8x8x8xf32> to vector<1x8x8xf32>
    %93 = vector.shape_cast %92 : vector<1x8x8xf32> to vector<8x8xf32>
    %c31 = arith.constant 31 : index
    %c0_60 = arith.constant 0 : index
    %94 = vector.load %arg33[%c31, %c0_60] : memref<102x8xf32, #tpu.memory_space<vmem>>, vector<8x8xf32>
    tpu.vector_store %arg33[%c31, %c0_60], %93 {strides = array<i32>} : memref<102x8xf32, #tpu.memory_space<vmem>>, vector<8x8xf32>,
    %95 = vector.extract_strided_slice %83 {offsets = [3, 0, 0], sizes = [1, 8, 8], strides = [1, 1, 1]} : vector<8x8x8xf32> to vector<1x8x8xf32>
    %96 = vector.shape_cast %95 : vector<1x8x8xf32> to vector<8x8xf32>
    %c41 = arith.constant 41 : index
    %c0_61 = arith.constant 0 : index
    %97 = vector.load %arg33[%c41, %c0_61] : memref<102x8xf32, #tpu.memory_space<vmem>>, vector<8x8xf32>
    tpu.vector_store %arg33[%c41, %c0_61], %96 {strides = array<i32>} : memref<102x8xf32, #tpu.memory_space<vmem>>, vector<8x8xf32>,
    %98 = vector.extract_strided_slice %83 {offsets = [4, 0, 0], sizes = [1, 8, 8], strides = [1, 1, 1]} : vector<8x8x8xf32> to vector<1x8x8xf32>
    %99 = vector.shape_cast %98 : vector<1x8x8xf32> to vector<8x8xf32>
    %c51 = arith.constant 51 : index
    %c0_62 = arith.constant 0 : index
    %100 = vector.load %arg33[%c51, %c0_62] : memref<102x8xf32, #tpu.memory_space<vmem>>, vector<8x8xf32>
    tpu.vector_store %arg33[%c51, %c0_62], %99 {strides = array<i32>} : memref<102x8xf32, #tpu.memory_space<vmem>>, vector<8x8xf32>,
    %101 = vector.extract_strided_slice %83 {offsets = [5, 0, 0], sizes = [1, 8, 8], strides = [1, 1, 1]} : vector<8x8x8xf32> to vector<1x8x8xf32>
    %102 = vector.shape_cast %101 : vector<1x8x8xf32> to vector<8x8xf32>
    %c61 = arith.constant 61 : index
    %c0_63 = arith.constant 0 : index
    %103 = vector.load %arg33[%c61, %c0_63] : memref<102x8xf32, #tpu.memory_space<vmem>>, vector<8x8xf32>
    tpu.vector_store %arg33[%c61, %c0_63], %102 {strides = array<i32>} : memref<102x8xf32, #tpu.memory_space<vmem>>, vector<8x8xf32>,
    %104 = vector.extract_strided_slice %83 {offsets = [6, 0, 0], sizes = [1, 8, 8], strides = [1, 1, 1]} : vector<8x8x8xf32> to vector<1x8x8xf32>
    %105 = vector.shape_cast %104 : vector<1x8x8xf32> to vector<8x8xf32>
    %c71 = arith.constant 71 : index
    %c0_64 = arith.constant 0 : index
    %106 = vector.load %arg33[%c71, %c0_64] : memref<102x8xf32, #tpu.memory_space<vmem>>, vector<8x8xf32>
    tpu.vector_store %arg33[%c71, %c0_64], %105 {strides = array<i32>} : memref<102x8xf32, #tpu.memory_space<vmem>>, vector<8x8xf32>,
    %107 = vector.extract_strided_slice %83 {offsets = [7, 0, 0], sizes = [1, 8, 8], strides = [1, 1, 1]} : vector<8x8x8xf32> to vector<1x8x8xf32>
    %108 = vector.shape_cast %107 : vector<1x8x8xf32> to vector<8x8xf32>
    %c81 = arith.constant 81 : index
    %c0_65 = arith.constant 0 : index
    %109 = vector.load %arg33[%c81, %c0_65] : memref<102x8xf32, #tpu.memory_space<vmem>>, vector<8x8xf32>
    tpu.vector_store %arg33[%c81, %c0_65], %108 {strides = array<i32>} : memref<102x8xf32, #tpu.memory_space<vmem>>, vector<8x8xf32>,
    %c0_66 = arith.constant 0 : index
    %c0_67 = arith.constant 0 : index
    %110 = vector.load %arg33[%c0_66, %c0_67] : memref<102x8xf32, #tpu.memory_space<vmem>>, vector<80x8xf32>
    %c0_68 = arith.constant 0 : index
    %c0_69 = arith.constant 0 : index
    %111 = vector.load %arg34[%c0_68, %c0_69] : memref<80x72xf32, #tpu.memory_space<vmem>>, vector<80x8xf32>
    tpu.vector_store %arg34[%c0_68, %c0_69], %110 {strides = array<i32>} : memref<80x72xf32, #tpu.memory_space<vmem>>, vector<80x8xf32>,
    %c1_70 = arith.constant 1 : index
    %c0_71 = arith.constant 0 : index
    %112 = vector.load %arg33[%c1_70, %c0_71] : memref<102x8xf32, #tpu.memory_space<vmem>>, vector<80x8xf32>
    %c0_72 = arith.constant 0 : index
    %c8_73 = arith.constant 8 : index
    %113 = vector.load %arg34[%c0_72, %c8_73] : memref<80x72xf32, #tpu.memory_space<vmem>>, vector<80x8xf32>
    tpu.vector_store %arg34[%c0_72, %c8_73], %112 {strides = array<i32>} : memref<80x72xf32, #tpu.memory_space<vmem>>, vector<80x8xf32>,
    %c2_74 = arith.constant 2 : index
    %c0_75 = arith.constant 0 : index
    %114 = vector.load %arg33[%c2_74, %c0_75] : memref<102x8xf32, #tpu.memory_space<vmem>>, vector<80x8xf32>
    %c0_76 = arith.constant 0 : index
    %c16 = arith.constant 16 : index
    %115 = vector.load %arg34[%c0_76, %c16] : memref<80x72xf32, #tpu.memory_space<vmem>>, vector<80x8xf32>
    tpu.vector_store %arg34[%c0_76, %c16], %114 {strides = array<i32>} : memref<80x72xf32, #tpu.memory_space<vmem>>, vector<80x8xf32>,
    %c10 = arith.constant 10 : index
    %c0_77 = arith.constant 0 : index
    %116 = vector.load %arg33[%c10, %c0_77] : memref<102x8xf32, #tpu.memory_space<vmem>>, vector<80x8xf32>
    %c0_78 = arith.constant 0 : index
    %c24 = arith.constant 24 : index
    %117 = vector.load %arg34[%c0_78, %c24] : memref<80x72xf32, #tpu.memory_space<vmem>>, vector<80x8xf32>
    tpu.vector_store %arg34[%c0_78, %c24], %116 {strides = array<i32>} : memref<80x72xf32, #tpu.memory_space<vmem>>, vector<80x8xf32>,
    %c11_79 = arith.constant 11 : index
    %c0_80 = arith.constant 0 : index
    %118 = vector.load %arg33[%c11_79, %c0_80] : memref<102x8xf32, #tpu.memory_space<vmem>>, vector<80x8xf32>
    %c0_81 = arith.constant 0 : index
    %c32 = arith.constant 32 : index
    %119 = vector.load %arg34[%c0_81, %c32] : memref<80x72xf32, #tpu.memory_space<vmem>>, vector<80x8xf32>
    tpu.vector_store %arg34[%c0_81, %c32], %118 {strides = array<i32>} : memref<80x72xf32, #tpu.memory_space<vmem>>, vector<80x8xf32>,
    %c12 = arith.constant 12 : index
    %c0_82 = arith.constant 0 : index
    %120 = vector.load %arg33[%c12, %c0_82] : memref<102x8xf32, #tpu.memory_space<vmem>>, vector<80x8xf32>
    %c0_83 = arith.constant 0 : index
    %c40 = arith.constant 40 : index
    %121 = vector.load %arg34[%c0_83, %c40] : memref<80x72xf32, #tpu.memory_space<vmem>>, vector<80x8xf32>
    tpu.vector_store %arg34[%c0_83, %c40], %120 {strides = array<i32>} : memref<80x72xf32, #tpu.memory_space<vmem>>, vector<80x8xf32>,
    %c20_84 = arith.constant 20 : index
    %c0_85 = arith.constant 0 : index
    %122 = vector.load %arg33[%c20_84, %c0_85] : memref<102x8xf32, #tpu.memory_space<vmem>>, vector<80x8xf32>
    %c0_86 = arith.constant 0 : index
    %c48 = arith.constant 48 : index
    %123 = vector.load %arg34[%c0_86, %c48] : memref<80x72xf32, #tpu.memory_space<vmem>>, vector<80x8xf32>
    tpu.vector_store %arg34[%c0_86, %c48], %122 {strides = array<i32>} : memref<80x72xf32, #tpu.memory_space<vmem>>, vector<80x8xf32>,
    %c21_87 = arith.constant 21 : index
    %c0_88 = arith.constant 0 : index
    %124 = vector.load %arg33[%c21_87, %c0_88] : memref<102x8xf32, #tpu.memory_space<vmem>>, vector<80x8xf32>
    %c0_89 = arith.constant 0 : index
    %c56 = arith.constant 56 : index
    %125 = vector.load %arg34[%c0_89, %c56] : memref<80x72xf32, #tpu.memory_space<vmem>>, vector<80x8xf32>
    tpu.vector_store %arg34[%c0_89, %c56], %124 {strides = array<i32>} : memref<80x72xf32, #tpu.memory_space<vmem>>, vector<80x8xf32>,
    %c22 = arith.constant 22 : index
    %c0_90 = arith.constant 0 : index
    %126 = vector.load %arg33[%c22, %c0_90] : memref<102x8xf32, #tpu.memory_space<vmem>>, vector<80x8xf32>
    %c0_91 = arith.constant 0 : index
    %c64 = arith.constant 64 : index
    %127 = vector.load %arg34[%c0_91, %c64] : memref<80x72xf32, #tpu.memory_space<vmem>>, vector<80x8xf32>
    tpu.vector_store %arg34[%c0_91, %c64], %126 {strides = array<i32>} : memref<80x72xf32, #tpu.memory_space<vmem>>, vector<80x8xf32>,
    %c0_92 = arith.constant 0 : index
    %c0_93 = arith.constant 0 : index
    %128 = vector.load %arg34[%c0_92, %c0_93] : memref<80x72xf32, #tpu.memory_space<vmem>>, vector<80x72xf32>
    %c0_94 = arith.constant 0 : index
    %c0_95 = arith.constant 0 : index
    %129 = vector.load %arg7[%c0_94, %c0_95] : memref<72x16xf32, #tpu.memory_space<vmem>>, vector<72x16xf32>
    %cst_96 = arith.constant dense<0.000000e+00> : vector<80x16xf32>
    %130 = tpu.matmul %128, %129, %cst_96 {dimension_numbers = #tpu.dot_dimension_numbers<[1], [0], [0], [1], [0, 0, 1, 1], [], []>} : vector<80x72xf32>, vector<72x16xf32>, vector<80x16xf32> -> vector<80x16xf32>
    %c0_97 = arith.constant 0 : index
    %c0_98 = arith.constant 0 : index
    %131 = vector.load %arg8[%c0_97, %c0_98] : memref<1x16xf32, #tpu.memory_space<vmem>>, vector<1x16xf32>
    %132 = vector.broadcast %131 : vector<1x16xf32> to vector<80x16xf32>
    %133 = arith.addf %130, %132 : vector<80x16xf32>
    %cst_99 = arith.constant 0.000000e+00 : f32
    %134 = vector.broadcast %cst_99 : f32 to vector<80x16xf32>
    %135 = arith.maximumf %133, %134 : vector<80x16xf32>
    %136 = vector.shape_cast %135 : vector<80x16xf32> to vector<8x10x16xf32>
    %137 = vector.extract_strided_slice %136 {offsets = [0, 0, 0], sizes = [8, 8, 16], strides = [1, 1, 1]} : vector<8x10x16xf32> to vector<8x8x16xf32>
    %138 = vector.shape_cast %137 : vector<8x8x16xf32> to vector<8x4x2x16xf32>
    %cst_100 = arith.constant dense<0xFF800000> : vector<8x4x16xf32>
    %139 = vector.multi_reduction <maximumf>, %138, %cst_100 [2] : vector<8x4x2x16xf32> to vector<8x4x16xf32>
    %140 = vector.shape_cast %139 : vector<8x4x16xf32> to vector<4x2x4x16xf32>
    %cst_101 = arith.constant dense<0xFF800000> : vector<4x4x16xf32>
    %141 = vector.multi_reduction <maximumf>, %140, %cst_101 [1] : vector<4x2x4x16xf32> to vector<4x4x16xf32>
    %cst_102 = arith.constant 0.000000e+00 : f32
    %142 = vector.broadcast %cst_102 : f32 to vector<68x16xf32>
    %c0_103 = arith.constant 0 : index
    %c0_104 = arith.constant 0 : index
    %143 = vector.load %arg35[%c0_103, %c0_104] : memref<68x16xf32, #tpu.memory_space<vmem>>, vector<68x16xf32>
    tpu.vector_store %arg35[%c0_103, %c0_104], %142 {strides = array<i32>} : memref<68x16xf32, #tpu.memory_space<vmem>>, vector<68x16xf32>,
    %144 = vector.extract_strided_slice %141 {offsets = [0, 0, 0], sizes = [1, 4, 16], strides = [1, 1, 1]} : vector<4x4x16xf32> to vector<1x4x16xf32>
    %145 = vector.shape_cast %144 : vector<1x4x16xf32> to vector<4x16xf32>
    %c18_105 = arith.constant 18 : index
    %c0_106 = arith.constant 0 : index
    %146 = vector.load %arg35[%c18_105, %c0_106] : memref<68x16xf32, #tpu.memory_space<vmem>>, vector<4x16xf32>
    tpu.vector_store %arg35[%c18_105, %c0_106], %145 {strides = array<i32>} : memref<68x16xf32, #tpu.memory_space<vmem>>, vector<4x16xf32>,
    %147 = vector.extract_strided_slice %141 {offsets = [1, 0, 0], sizes = [1, 4, 16], strides = [1, 1, 1]} : vector<4x4x16xf32> to vector<1x4x16xf32>
    %148 = vector.shape_cast %147 : vector<1x4x16xf32> to vector<4x16xf32>
    %c26 = arith.constant 26 : index
    %c0_107 = arith.constant 0 : index
    %149 = vector.load %arg35[%c26, %c0_107] : memref<68x16xf32, #tpu.memory_space<vmem>>, vector<4x16xf32>
    tpu.vector_store %arg35[%c26, %c0_107], %148 {strides = array<i32>} : memref<68x16xf32, #tpu.memory_space<vmem>>, vector<4x16xf32>,
    %150 = vector.extract_strided_slice %141 {offsets = [2, 0, 0], sizes = [1, 4, 16], strides = [1, 1, 1]} : vector<4x4x16xf32> to vector<1x4x16xf32>
    %151 = vector.shape_cast %150 : vector<1x4x16xf32> to vector<4x16xf32>
    %c34 = arith.constant 34 : index
    %c0_108 = arith.constant 0 : index
    %152 = vector.load %arg35[%c34, %c0_108] : memref<68x16xf32, #tpu.memory_space<vmem>>, vector<4x16xf32>
    tpu.vector_store %arg35[%c34, %c0_108], %151 {strides = array<i32>} : memref<68x16xf32, #tpu.memory_space<vmem>>, vector<4x16xf32>,
    %153 = vector.extract_strided_slice %141 {offsets = [3, 0, 0], sizes = [1, 4, 16], strides = [1, 1, 1]} : vector<4x4x16xf32> to vector<1x4x16xf32>
    %154 = vector.shape_cast %153 : vector<1x4x16xf32> to vector<4x16xf32>
    %c42 = arith.constant 42 : index
    %c0_109 = arith.constant 0 : index
    %155 = vector.load %arg35[%c42, %c0_109] : memref<68x16xf32, #tpu.memory_space<vmem>>, vector<4x16xf32>
    tpu.vector_store %arg35[%c42, %c0_109], %154 {strides = array<i32>} : memref<68x16xf32, #tpu.memory_space<vmem>>, vector<4x16xf32>,
    %c0_110 = arith.constant 0 : index
    %c0_111 = arith.constant 0 : index
    %156 = vector.load %arg35[%c0_110, %c0_111] : memref<68x16xf32, #tpu.memory_space<vmem>>, vector<32x16xf32>
    %c0_112 = arith.constant 0 : index
    %c0_113 = arith.constant 0 : index
    %157 = vector.load %arg36[%c0_112, %c0_113] : memref<32x400xf32, #tpu.memory_space<vmem>>, vector<32x16xf32>
    tpu.vector_store %arg36[%c0_112, %c0_113], %156 {strides = array<i32>} : memref<32x400xf32, #tpu.memory_space<vmem>>, vector<32x16xf32>,
    %c1_114 = arith.constant 1 : index
    %c0_115 = arith.constant 0 : index
    %158 = vector.load %arg35[%c1_114, %c0_115] : memref<68x16xf32, #tpu.memory_space<vmem>>, vector<32x16xf32>
    %c0_116 = arith.constant 0 : index
    %c16_117 = arith.constant 16 : index
    %159 = vector.load %arg36[%c0_116, %c16_117] : memref<32x400xf32, #tpu.memory_space<vmem>>, vector<32x16xf32>
    tpu.vector_store %arg36[%c0_116, %c16_117], %158 {strides = array<i32>} : memref<32x400xf32, #tpu.memory_space<vmem>>, vector<32x16xf32>,
    %c2_118 = arith.constant 2 : index
    %c0_119 = arith.constant 0 : index
    %160 = vector.load %arg35[%c2_118, %c0_119] : memref<68x16xf32, #tpu.memory_space<vmem>>, vector<32x16xf32>
    %c0_120 = arith.constant 0 : index
    %c32_121 = arith.constant 32 : index
    %161 = vector.load %arg36[%c0_120, %c32_121] : memref<32x400xf32, #tpu.memory_space<vmem>>, vector<32x16xf32>
    tpu.vector_store %arg36[%c0_120, %c32_121], %160 {strides = array<i32>} : memref<32x400xf32, #tpu.memory_space<vmem>>, vector<32x16xf32>,
    %c3_122 = arith.constant 3 : index
    %c0_123 = arith.constant 0 : index
    %162 = vector.load %arg35[%c3_122, %c0_123] : memref<68x16xf32, #tpu.memory_space<vmem>>, vector<32x16xf32>
    %c0_124 = arith.constant 0 : index
    %c48_125 = arith.constant 48 : index
    %163 = vector.load %arg36[%c0_124, %c48_125] : memref<32x400xf32, #tpu.memory_space<vmem>>, vector<32x16xf32>
    tpu.vector_store %arg36[%c0_124, %c48_125], %162 {strides = array<i32>} : memref<32x400xf32, #tpu.memory_space<vmem>>, vector<32x16xf32>,
    %c4_126 = arith.constant 4 : index
    %c0_127 = arith.constant 0 : index
    %164 = vector.load %arg35[%c4_126, %c0_127] : memref<68x16xf32, #tpu.memory_space<vmem>>, vector<32x16xf32>
    %c0_128 = arith.constant 0 : index
    %c64_129 = arith.constant 64 : index
    %165 = vector.load %arg36[%c0_128, %c64_129] : memref<32x400xf32, #tpu.memory_space<vmem>>, vector<32x16xf32>
    tpu.vector_store %arg36[%c0_128, %c64_129], %164 {strides = array<i32>} : memref<32x400xf32, #tpu.memory_space<vmem>>, vector<32x16xf32>,
    %c8_130 = arith.constant 8 : index
    %c0_131 = arith.constant 0 : index
    %166 = vector.load %arg35[%c8_130, %c0_131] : memref<68x16xf32, #tpu.memory_space<vmem>>, vector<32x16xf32>
    %c0_132 = arith.constant 0 : index
    %c80 = arith.constant 80 : index
    %167 = vector.load %arg36[%c0_132, %c80] : memref<32x400xf32, #tpu.memory_space<vmem>>, vector<32x16xf32>
    tpu.vector_store %arg36[%c0_132, %c80], %166 {strides = array<i32>} : memref<32x400xf32, #tpu.memory_space<vmem>>, vector<32x16xf32>,
    %c9 = arith.constant 9 : index
    %c0_133 = arith.constant 0 : index
    %168 = vector.load %arg35[%c9, %c0_133] : memref<68x16xf32, #tpu.memory_space<vmem>>, vector<32x16xf32>
    %c0_134 = arith.constant 0 : index
    %c96 = arith.constant 96 : index
    %169 = vector.load %arg36[%c0_134, %c96] : memref<32x400xf32, #tpu.memory_space<vmem>>, vector<32x16xf32>
    tpu.vector_store %arg36[%c0_134, %c96], %168 {strides = array<i32>} : memref<32x400xf32, #tpu.memory_space<vmem>>, vector<32x16xf32>,
    %c10_135 = arith.constant 10 : index
    %c0_136 = arith.constant 0 : index
    %170 = vector.load %arg35[%c10_135, %c0_136] : memref<68x16xf32, #tpu.memory_space<vmem>>, vector<32x16xf32>
    %c0_137 = arith.constant 0 : index
    %c112 = arith.constant 112 : index
    %171 = vector.load %arg36[%c0_137, %c112] : memref<32x400xf32, #tpu.memory_space<vmem>>, vector<32x16xf32>
    tpu.vector_store %arg36[%c0_137, %c112], %170 {strides = array<i32>} : memref<32x400xf32, #tpu.memory_space<vmem>>, vector<32x16xf32>,
    %c11_138 = arith.constant 11 : index
    %c0_139 = arith.constant 0 : index
    %172 = vector.load %arg35[%c11_138, %c0_139] : memref<68x16xf32, #tpu.memory_space<vmem>>, vector<32x16xf32>
    %c0_140 = arith.constant 0 : index
    %c128 = arith.constant 128 : index
    %173 = vector.load %arg36[%c0_140, %c128] : memref<32x400xf32, #tpu.memory_space<vmem>>, vector<32x16xf32>
    tpu.vector_store %arg36[%c0_140, %c128], %172 {strides = array<i32>} : memref<32x400xf32, #tpu.memory_space<vmem>>, vector<32x16xf32>,
    %c12_141 = arith.constant 12 : index
    %c0_142 = arith.constant 0 : index
    %174 = vector.load %arg35[%c12_141, %c0_142] : memref<68x16xf32, #tpu.memory_space<vmem>>, vector<32x16xf32>
    %c0_143 = arith.constant 0 : index
    %c144 = arith.constant 144 : index
    %175 = vector.load %arg36[%c0_143, %c144] : memref<32x400xf32, #tpu.memory_space<vmem>>, vector<32x16xf32>
    tpu.vector_store %arg36[%c0_143, %c144], %174 {strides = array<i32>} : memref<32x400xf32, #tpu.memory_space<vmem>>, vector<32x16xf32>,
    %c16_144 = arith.constant 16 : index
    %c0_145 = arith.constant 0 : index
    %176 = vector.load %arg35[%c16_144, %c0_145] : memref<68x16xf32, #tpu.memory_space<vmem>>, vector<32x16xf32>
    %c0_146 = arith.constant 0 : index
    %c160 = arith.constant 160 : index
    %177 = vector.load %arg36[%c0_146, %c160] : memref<32x400xf32, #tpu.memory_space<vmem>>, vector<32x16xf32>
    tpu.vector_store %arg36[%c0_146, %c160], %176 {strides = array<i32>} : memref<32x400xf32, #tpu.memory_space<vmem>>, vector<32x16xf32>,
    %c17 = arith.constant 17 : index
    %c0_147 = arith.constant 0 : index
    %178 = vector.load %arg35[%c17, %c0_147] : memref<68x16xf32, #tpu.memory_space<vmem>>, vector<32x16xf32>
    %c0_148 = arith.constant 0 : index
    %c176 = arith.constant 176 : index
    %179 = vector.load %arg36[%c0_148, %c176] : memref<32x400xf32, #tpu.memory_space<vmem>>, vector<32x16xf32>
    tpu.vector_store %arg36[%c0_148, %c176], %178 {strides = array<i32>} : memref<32x400xf32, #tpu.memory_space<vmem>>, vector<32x16xf32>,
    %c18_149 = arith.constant 18 : index
    %c0_150 = arith.constant 0 : index
    %180 = vector.load %arg35[%c18_149, %c0_150] : memref<68x16xf32, #tpu.memory_space<vmem>>, vector<32x16xf32>
    %c0_151 = arith.constant 0 : index
    %c192 = arith.constant 192 : index
    %181 = vector.load %arg36[%c0_151, %c192] : memref<32x400xf32, #tpu.memory_space<vmem>>, vector<32x16xf32>
    tpu.vector_store %arg36[%c0_151, %c192], %180 {strides = array<i32>} : memref<32x400xf32, #tpu.memory_space<vmem>>, vector<32x16xf32>,
    %c19_152 = arith.constant 19 : index
    %c0_153 = arith.constant 0 : index
    %182 = vector.load %arg35[%c19_152, %c0_153] : memref<68x16xf32, #tpu.memory_space<vmem>>, vector<32x16xf32>
    %c0_154 = arith.constant 0 : index
    %c208 = arith.constant 208 : index
    %183 = vector.load %arg36[%c0_154, %c208] : memref<32x400xf32, #tpu.memory_space<vmem>>, vector<32x16xf32>
    tpu.vector_store %arg36[%c0_154, %c208], %182 {strides = array<i32>} : memref<32x400xf32, #tpu.memory_space<vmem>>, vector<32x16xf32>,
    %c20_155 = arith.constant 20 : index
    %c0_156 = arith.constant 0 : index
    %184 = vector.load %arg35[%c20_155, %c0_156] : memref<68x16xf32, #tpu.memory_space<vmem>>, vector<32x16xf32>
    %c0_157 = arith.constant 0 : index
    %c224 = arith.constant 224 : index
    %185 = vector.load %arg36[%c0_157, %c224] : memref<32x400xf32, #tpu.memory_space<vmem>>, vector<32x16xf32>
    tpu.vector_store %arg36[%c0_157, %c224], %184 {strides = array<i32>} : memref<32x400xf32, #tpu.memory_space<vmem>>, vector<32x16xf32>,
    %c24_158 = arith.constant 24 : index
    %c0_159 = arith.constant 0 : index
    %186 = vector.load %arg35[%c24_158, %c0_159] : memref<68x16xf32, #tpu.memory_space<vmem>>, vector<32x16xf32>
    %c0_160 = arith.constant 0 : index
    %c240 = arith.constant 240 : index
    %187 = vector.load %arg36[%c0_160, %c240] : memref<32x400xf32, #tpu.memory_space<vmem>>, vector<32x16xf32>
    tpu.vector_store %arg36[%c0_160, %c240], %186 {strides = array<i32>} : memref<32x400xf32, #tpu.memory_space<vmem>>, vector<32x16xf32>,
    %c25 = arith.constant 25 : index
    %c0_161 = arith.constant 0 : index
    %188 = vector.load %arg35[%c25, %c0_161] : memref<68x16xf32, #tpu.memory_space<vmem>>, vector<32x16xf32>
    %c0_162 = arith.constant 0 : index
    %c256 = arith.constant 256 : index
    %189 = vector.load %arg36[%c0_162, %c256] : memref<32x400xf32, #tpu.memory_space<vmem>>, vector<32x16xf32>
    tpu.vector_store %arg36[%c0_162, %c256], %188 {strides = array<i32>} : memref<32x400xf32, #tpu.memory_space<vmem>>, vector<32x16xf32>,
    %c26_163 = arith.constant 26 : index
    %c0_164 = arith.constant 0 : index
    %190 = vector.load %arg35[%c26_163, %c0_164] : memref<68x16xf32, #tpu.memory_space<vmem>>, vector<32x16xf32>
    %c0_165 = arith.constant 0 : index
    %c272 = arith.constant 272 : index
    %191 = vector.load %arg36[%c0_165, %c272] : memref<32x400xf32, #tpu.memory_space<vmem>>, vector<32x16xf32>
    tpu.vector_store %arg36[%c0_165, %c272], %190 {strides = array<i32>} : memref<32x400xf32, #tpu.memory_space<vmem>>, vector<32x16xf32>,
    %c27 = arith.constant 27 : index
    %c0_166 = arith.constant 0 : index
    %192 = vector.load %arg35[%c27, %c0_166] : memref<68x16xf32, #tpu.memory_space<vmem>>, vector<32x16xf32>
    %c0_167 = arith.constant 0 : index
    %c288 = arith.constant 288 : index
    %193 = vector.load %arg36[%c0_167, %c288] : memref<32x400xf32, #tpu.memory_space<vmem>>, vector<32x16xf32>
    tpu.vector_store %arg36[%c0_167, %c288], %192 {strides = array<i32>} : memref<32x400xf32, #tpu.memory_space<vmem>>, vector<32x16xf32>,
    %c28 = arith.constant 28 : index
    %c0_168 = arith.constant 0 : index
    %194 = vector.load %arg35[%c28, %c0_168] : memref<68x16xf32, #tpu.memory_space<vmem>>, vector<32x16xf32>
    %c0_169 = arith.constant 0 : index
    %c304 = arith.constant 304 : index
    %195 = vector.load %arg36[%c0_169, %c304] : memref<32x400xf32, #tpu.memory_space<vmem>>, vector<32x16xf32>
    tpu.vector_store %arg36[%c0_169, %c304], %194 {strides = array<i32>} : memref<32x400xf32, #tpu.memory_space<vmem>>, vector<32x16xf32>,
    %c32_170 = arith.constant 32 : index
    %c0_171 = arith.constant 0 : index
    %196 = vector.load %arg35[%c32_170, %c0_171] : memref<68x16xf32, #tpu.memory_space<vmem>>, vector<32x16xf32>
    %c0_172 = arith.constant 0 : index
    %c320 = arith.constant 320 : index
    %197 = vector.load %arg36[%c0_172, %c320] : memref<32x400xf32, #tpu.memory_space<vmem>>, vector<32x16xf32>
    tpu.vector_store %arg36[%c0_172, %c320], %196 {strides = array<i32>} : memref<32x400xf32, #tpu.memory_space<vmem>>, vector<32x16xf32>,
    %c33 = arith.constant 33 : index
    %c0_173 = arith.constant 0 : index
    %198 = vector.load %arg35[%c33, %c0_173] : memref<68x16xf32, #tpu.memory_space<vmem>>, vector<32x16xf32>
    %c0_174 = arith.constant 0 : index
    %c336 = arith.constant 336 : index
    %199 = vector.load %arg36[%c0_174, %c336] : memref<32x400xf32, #tpu.memory_space<vmem>>, vector<32x16xf32>
    tpu.vector_store %arg36[%c0_174, %c336], %198 {strides = array<i32>} : memref<32x400xf32, #tpu.memory_space<vmem>>, vector<32x16xf32>,
    %c34_175 = arith.constant 34 : index
    %c0_176 = arith.constant 0 : index
    %200 = vector.load %arg35[%c34_175, %c0_176] : memref<68x16xf32, #tpu.memory_space<vmem>>, vector<32x16xf32>
    %c0_177 = arith.constant 0 : index
    %c352 = arith.constant 352 : index
    %201 = vector.load %arg36[%c0_177, %c352] : memref<32x400xf32, #tpu.memory_space<vmem>>, vector<32x16xf32>
    tpu.vector_store %arg36[%c0_177, %c352], %200 {strides = array<i32>} : memref<32x400xf32, #tpu.memory_space<vmem>>, vector<32x16xf32>,
    %c35 = arith.constant 35 : index
    %c0_178 = arith.constant 0 : index
    %202 = vector.load %arg35[%c35, %c0_178] : memref<68x16xf32, #tpu.memory_space<vmem>>, vector<32x16xf32>
    %c0_179 = arith.constant 0 : index
    %c368 = arith.constant 368 : index
    %203 = vector.load %arg36[%c0_179, %c368] : memref<32x400xf32, #tpu.memory_space<vmem>>, vector<32x16xf32>
    tpu.vector_store %arg36[%c0_179, %c368], %202 {strides = array<i32>} : memref<32x400xf32, #tpu.memory_space<vmem>>, vector<32x16xf32>,
    %c36_180 = arith.constant 36 : index
    %c0_181 = arith.constant 0 : index
    %204 = vector.load %arg35[%c36_180, %c0_181] : memref<68x16xf32, #tpu.memory_space<vmem>>, vector<32x16xf32>
    %c0_182 = arith.constant 0 : index
    %c384 = arith.constant 384 : index
    %205 = vector.load %arg36[%c0_182, %c384] : memref<32x400xf32, #tpu.memory_space<vmem>>, vector<32x16xf32>
    tpu.vector_store %arg36[%c0_182, %c384], %204 {strides = array<i32>} : memref<32x400xf32, #tpu.memory_space<vmem>>, vector<32x16xf32>,
    %c0_183 = arith.constant 0 : index
    %c0_184 = arith.constant 0 : index
    %206 = vector.load %arg36[%c0_183, %c0_184] : memref<32x400xf32, #tpu.memory_space<vmem>>, vector<32x400xf32>
    %c0_185 = arith.constant 0 : index
    %c0_186 = arith.constant 0 : index
    %207 = vector.load %arg9[%c0_185, %c0_186] : memref<400x32xf32, #tpu.memory_space<vmem>>, vector<400x32xf32>
    %cst_187 = arith.constant dense<0.000000e+00> : vector<32x32xf32>
    %208 = tpu.matmul %206, %207, %cst_187 {dimension_numbers = #tpu.dot_dimension_numbers<[1], [0], [0], [1], [0, 0, 1, 1], [], []>} : vector<32x400xf32>, vector<400x32xf32>, vector<32x32xf32> -> vector<32x32xf32>
    %c0_188 = arith.constant 0 : index
    %c0_189 = arith.constant 0 : index
    %209 = vector.load %arg10[%c0_188, %c0_189] : memref<1x32xf32, #tpu.memory_space<vmem>>, vector<1x32xf32>
    %210 = vector.broadcast %209 : vector<1x32xf32> to vector<32x32xf32>
    %211 = arith.addf %208, %210 : vector<32x32xf32>
    %cst_190 = arith.constant 0.000000e+00 : f32
    %212 = vector.broadcast %cst_190 : f32 to vector<32x32xf32>
    %213 = arith.maximumf %211, %212 : vector<32x32xf32>
    %214 = vector.shape_cast %213 : vector<32x32xf32> to vector<4x8x32xf32>
    %215 = vector.extract_strided_slice %214 {offsets = [0, 0, 0], sizes = [4, 4, 32], strides = [1, 1, 1]} : vector<4x8x32xf32> to vector<4x4x32xf32>
    %216 = vector.shape_cast %215 : vector<4x4x32xf32> to vector<4x2x2x32xf32>
    %cst_191 = arith.constant dense<0xFF800000> : vector<4x2x32xf32>
    %217 = vector.multi_reduction <maximumf>, %216, %cst_191 [2] : vector<4x2x2x32xf32> to vector<4x2x32xf32>
    %218 = vector.shape_cast %217 : vector<4x2x32xf32> to vector<2x2x2x32xf32>
    %cst_192 = arith.constant dense<0xFF800000> : vector<2x2x32xf32>
    %219 = vector.multi_reduction <maximumf>, %218, %cst_192 [1] : vector<2x2x2x32xf32> to vector<2x2x32xf32>
    %220 = vector.shape_cast %219 : vector<2x2x32xf32> to vector<4x32xf32>
    %c0_193 = arith.constant 0 : index
    %c0_194 = arith.constant 0 : index
    %221 = vector.load %arg12[%c0_193, %c0_194] : memref<1x16xf32, #tpu.memory_space<vmem>>, vector<1x16xf32>
    %222 = vector.extract_strided_slice %220 {offsets = [0, 0], sizes = [1, 32], strides = [1, 1]} : vector<4x32xf32> to vector<1x32xf32>
    %c0_195 = arith.constant 0 : index
    %c0_196 = arith.constant 0 : index
    %c0_197 = arith.constant 0 : index
    %223 = vector.load %arg11[%c0_195, %c0_196, %c0_197] : memref<4x32x16xf32, #tpu.memory_space<vmem>>, vector<1x32x16xf32>
    %224 = vector.shape_cast %223 : vector<1x32x16xf32> to vector<32x16xf32>
    %cst_198 = arith.constant dense<0.000000e+00> : vector<1x16xf32>
    %225 = tpu.matmul %222, %224, %cst_198 {dimension_numbers = #tpu.dot_dimension_numbers<[1], [0], [0], [1], [0, 0, 1, 1], [], []>} : vector<1x32xf32>, vector<32x16xf32>, vector<1x16xf32> -> vector<1x16xf32>
    %226 = arith.addf %221, %225 : vector<1x16xf32>
    %227 = vector.extract_strided_slice %220 {offsets = [1, 0], sizes = [1, 32], strides = [1, 1]} : vector<4x32xf32> to vector<1x32xf32>
    %c1_199 = arith.constant 1 : index
    %c0_200 = arith.constant 0 : index
    %c0_201 = arith.constant 0 : index
    %228 = vector.load %arg11[%c1_199, %c0_200, %c0_201] : memref<4x32x16xf32, #tpu.memory_space<vmem>>, vector<1x32x16xf32>
    %229 = vector.shape_cast %228 : vector<1x32x16xf32> to vector<32x16xf32>
    %cst_202 = arith.constant dense<0.000000e+00> : vector<1x16xf32>
    %230 = tpu.matmul %227, %229, %cst_202 {dimension_numbers = #tpu.dot_dimension_numbers<[1], [0], [0], [1], [0, 0, 1, 1], [], []>} : vector<1x32xf32>, vector<32x16xf32>, vector<1x16xf32> -> vector<1x16xf32>
    %231 = arith.addf %226, %230 : vector<1x16xf32>
    %232 = vector.extract_strided_slice %220 {offsets = [2, 0], sizes = [1, 32], strides = [1, 1]} : vector<4x32xf32> to vector<1x32xf32>
    %c2_203 = arith.constant 2 : index
    %c0_204 = arith.constant 0 : index
    %c0_205 = arith.constant 0 : index
    %233 = vector.load %arg11[%c2_203, %c0_204, %c0_205] : memref<4x32x16xf32, #tpu.memory_space<vmem>>, vector<1x32x16xf32>
    %234 = vector.shape_cast %233 : vector<1x32x16xf32> to vector<32x16xf32>
    %cst_206 = arith.constant dense<0.000000e+00> : vector<1x16xf32>
    %235 = tpu.matmul %232, %234, %cst_206 {dimension_numbers = #tpu.dot_dimension_numbers<[1], [0], [0], [1], [0, 0, 1, 1], [], []>} : vector<1x32xf32>, vector<32x16xf32>, vector<1x16xf32> -> vector<1x16xf32>
    %236 = arith.addf %231, %235 : vector<1x16xf32>
    %237 = vector.extract_strided_slice %220 {offsets = [3, 0], sizes = [1, 32], strides = [1, 1]} : vector<4x32xf32> to vector<1x32xf32>
    %c3_207 = arith.constant 3 : index
    %c0_208 = arith.constant 0 : index
    %c0_209 = arith.constant 0 : index
    %238 = vector.load %arg11[%c3_207, %c0_208, %c0_209] : memref<4x32x16xf32, #tpu.memory_space<vmem>>, vector<1x32x16xf32>
    %239 = vector.shape_cast %238 : vector<1x32x16xf32> to vector<32x16xf32>
    %cst_210 = arith.constant dense<0.000000e+00> : vector<1x16xf32>
    %240 = tpu.matmul %237, %239, %cst_210 {dimension_numbers = #tpu.dot_dimension_numbers<[1], [0], [0], [1], [0, 0, 1, 1], [], []>} : vector<1x32xf32>, vector<32x16xf32>, vector<1x16xf32> -> vector<1x16xf32>
    %241 = arith.addf %236, %240 : vector<1x16xf32>
    %c0_211 = arith.constant 0 : index
    %c0_212 = arith.constant 0 : index
    %242 = vector.load %arg13[%c0_211, %c0_212] : memref<16x3xf32, #tpu.memory_space<vmem>>, vector<16x3xf32>
    %cst_213 = arith.constant dense<0.000000e+00> : vector<1x3xf32>
    %243 = tpu.matmul %241, %242, %cst_213 {dimension_numbers = #tpu.dot_dimension_numbers<[1], [0], [0], [1], [0, 0, 1, 1], [], []>} : vector<1x16xf32>, vector<16x3xf32>, vector<1x3xf32> -> vector<1x3xf32>
    %c0_214 = arith.constant 0 : index
    %c0_215 = arith.constant 0 : index
    %244 = vector.load %arg14[%c0_214, %c0_215] : memref<1x3xf32, #tpu.memory_space<vmem>>, vector<1x3xf32>
    %245 = arith.addf %243, %244 : vector<1x3xf32>
    %246 = arith.mulf %245, %245 : vector<1x3xf32>
    %cst_216 = arith.constant dense<0.000000e+00> : vector<1xf32>
    %247 = vector.multi_reduction <add>, %246, %cst_216 [1] : vector<1x3xf32> to vector<1xf32>
    %248 = vector.shape_cast %247 : vector<1xf32> to vector<1x1xf32>
    %cst_217 = arith.constant 1.000000e-24 : f32
    %249 = vector.broadcast %cst_217 : f32 to vector<1x1xf32>
    %250 = arith.maximumf %248, %249 : vector<1x1xf32>
    %251 = math.rsqrt %250 : vector<1x1xf32>
    %cst_218 = arith.constant 1.000000e+00 : f32
    %252 = vector.broadcast %cst_218 : f32 to vector<1x3xf32>
    %253 = arith.mulf %252, %245 : vector<1x3xf32>
    %254 = vector.broadcast %251 : vector<1x1xf32> to vector<1x3xf32>
    %255 = arith.mulf %253, %254 : vector<1x3xf32>
    %c0_219 = arith.constant 0 : index
    %c0_220 = arith.constant 0 : index
    %256 = vector.load %arg15[%c0_219, %c0_220] : memref<16x1xf32, #tpu.memory_space<vmem>>, vector<16x1xf32>
    %cst_221 = arith.constant dense<0.000000e+00> : vector<1x1xf32>
    %257 = tpu.matmul %241, %256, %cst_221 {dimension_numbers = #tpu.dot_dimension_numbers<[1], [0], [0], [1], [0, 0, 1, 1], [], []>} : vector<1x16xf32>, vector<16x1xf32>, vector<1x1xf32> -> vector<1x1xf32>
    %c0_222 = arith.constant 0 : index
    %c0_223 = arith.constant 0 : index
    %258 = vector.load %arg16[%c0_222, %c0_223] : memref<1x1xf32, #tpu.memory_space<vmem>>, vector<1x1xf32>
    %259 = arith.addf %257, %258 : vector<1x1xf32>
    %cst_224 = arith.constant 0.000000e+00 : f32
    %260 = vector.broadcast %cst_224 : f32 to vector<1x1xf32>
    %261 = arith.maximumf %259, %260 : vector<1x1xf32>
    %262 = math.absf %259 : vector<1x1xf32>
    %cst_225 = arith.constant 0.000000e+00 : f32
    %263 = vector.broadcast %cst_225 : f32 to vector<1x1xf32>
    %264 = arith.subf %263, %262 : vector<1x1xf32>
    %265 = math.exp %264 : vector<1x1xf32>
    %cst_226 = arith.constant 1.000000e+00 : f32
    %266 = vector.broadcast %cst_226 : f32 to vector<1x1xf32>
    %267 = arith.addf %266, %265 : vector<1x1xf32>
    %268 = math.log %267 : vector<1x1xf32>
    %269 = arith.addf %261, %268 : vector<1x1xf32>
    %c0_227 = arith.constant 0 : index
    %c0_228 = arith.constant 0 : index
    %270 = vector.load %arg17[%c0_227, %c0_228] : memref<3x7xf32, #tpu.memory_space<vmem>>, vector<3x7xf32>
    %cst_229 = arith.constant dense<0.000000e+00> : vector<1x7xf32>
    %271 = tpu.matmul %255, %270, %cst_229 {dimension_numbers = #tpu.dot_dimension_numbers<[1], [0], [0], [1], [0, 0, 1, 1], [], []>} : vector<1x3xf32>, vector<3x7xf32>, vector<1x7xf32> -> vector<1x7xf32>
    %c0_230 = arith.constant 0 : index
    %c0_231 = arith.constant 0 : index
    %272 = vector.load %arg18[%c0_230, %c0_231] : memref<1x7xf32, #tpu.memory_space<vmem>>, vector<1x7xf32>
    %273 = arith.addf %271, %272 : vector<1x7xf32>
    %cst_232 = arith.constant dense<0xFF800000> : vector<1xf32>
    %274 = vector.multi_reduction <maximumf>, %273, %cst_232 [1] : vector<1x7xf32> to vector<1xf32>
    %275 = vector.shape_cast %274 : vector<1xf32> to vector<1x1xf32>
    %276 = vector.broadcast %275 : vector<1x1xf32> to vector<1x7xf32>
    %277 = arith.subf %273, %276 : vector<1x7xf32>
    %278 = math.exp %277 : vector<1x7xf32>
    %cst_233 = arith.constant dense<0.000000e+00> : vector<1xf32>
    %279 = vector.multi_reduction <add>, %278, %cst_233 [1] : vector<1x7xf32> to vector<1xf32>
    %280 = vector.shape_cast %279 : vector<1xf32> to vector<1x1xf32>
    %281 = tpu.reciprocal %280 {approx = true} : vector<1x1xf32> -> vector<1x1xf32>
    %282 = vector.broadcast %281 : vector<1x1xf32> to vector<1x7xf32>
    %283 = arith.mulf %278, %282 : vector<1x7xf32>
    %c0_234 = arith.constant 0 : index
    %c0_235 = arith.constant 0 : index
    %c0_236 = arith.constant 0 : index
    %284 = vector.load %arg3[%c0_234, %c0_235, %c0_236] : memref<1x1x1xf32, #tpu.memory_space<vmem>>, vector<1x1x1xf32>
    %285 = vector.shape_cast %284 : vector<1x1x1xf32> to vector<1x1xf32>
    %c0_237 = arith.constant 0 : index
    %c0_238 = arith.constant 0 : index
    %c0_239 = arith.constant 0 : index
    %286 = vector.load %arg4[%c0_237, %c0_238, %c0_239] : memref<1x1x2xf32, #tpu.memory_space<vmem>>, vector<1x1x2xf32>
    %287 = vector.shape_cast %286 : vector<1x1x2xf32> to vector<1x2xf32>
    %cst_240 = arith.constant 1.000000e+00 : f32
    %288 = vector.broadcast %cst_240 : f32 to vector<1x1xf32>
    %289 = arith.subf %288, %285 : vector<1x1xf32>
    %cst_241 = arith.constant -2.000000e+00 : f32
    %290 = vector.broadcast %cst_241 : f32 to vector<1x1xf32>
    %291 = arith.mulf %290, %269 : vector<1x1xf32>
    %292 = math.exp %291 : vector<1x1xf32>
    %293 = arith.mulf %289, %292 : vector<1x1xf32>
    %294 = arith.addf %285, %293 : vector<1x1xf32>
    %295 = math.log %294 : vector<1x1xf32>
    %296 = arith.divf %295, %269 : vector<1x1xf32>
    %cst_242 = arith.constant 1.000000e+00 : f32
    %297 = vector.broadcast %cst_242 : f32 to vector<1x1xf32>
    %298 = arith.addf %297, %296 : vector<1x1xf32>
    %299 = arith.mulf %287, %287 : vector<1x2xf32>
    %cst_243 = arith.constant dense<0.000000e+00> : vector<1xf32>
    %300 = vector.multi_reduction <add>, %299, %cst_243 [1] : vector<1x2xf32> to vector<1xf32>
    %301 = vector.shape_cast %300 : vector<1xf32> to vector<1x1xf32>
    %cst_244 = arith.constant 1.000000e-24 : f32
    %302 = vector.broadcast %cst_244 : f32 to vector<1x1xf32>
    %303 = arith.maximumf %301, %302 : vector<1x1xf32>
    %304 = math.rsqrt %303 : vector<1x1xf32>
    %305 = vector.broadcast %304 : vector<1x1xf32> to vector<1x2xf32>
    %306 = arith.mulf %287, %305 : vector<1x2xf32>
    %307 = arith.mulf %298, %298 : vector<1x1xf32>
    %cst_245 = arith.constant 1.000000e+00 : f32
    %308 = vector.broadcast %cst_245 : f32 to vector<1x1xf32>
    %309 = arith.subf %308, %307 : vector<1x1xf32>
    %cst_246 = arith.constant 0.000000e+00 : f32
    %310 = vector.broadcast %cst_246 : f32 to vector<1x1xf32>
    %311 = arith.maximumf %309, %310 : vector<1x1xf32>
    %312 = math.sqrt %311 : vector<1x1xf32>
    %313 = vector.extract_strided_slice %306 {offsets = [0, 0], sizes = [1, 1], strides = [1, 1]} : vector<1x2xf32> to vector<1x1xf32>
    %314 = arith.mulf %312, %313 : vector<1x1xf32>
    %315 = vector.extract_strided_slice %306 {offsets = [0, 1], sizes = [1, 1], strides = [1, 1]} : vector<1x2xf32> to vector<1x1xf32>
    %316 = arith.mulf %312, %315 : vector<1x1xf32>
    %317 = vector.extract_strided_slice %255 {offsets = [0, 0], sizes = [1, 1], strides = [1, 1]} : vector<1x3xf32> to vector<1x1xf32>
    %cst_247 = arith.constant 1.000000e+00 : f32
    %318 = vector.broadcast %cst_247 : f32 to vector<1x1xf32>
    %319 = arith.mulf %317, %318 : vector<1x1xf32>
    %cst_248 = arith.constant 1.000000e+00 : f32
    %320 = vector.broadcast %cst_248 : f32 to vector<1x1xf32>
    %321 = arith.subf %320, %319 : vector<1x1xf32>
    %322 = vector.extract_strided_slice %255 {offsets = [0, 1], sizes = [1, 1], strides = [1, 1]} : vector<1x3xf32> to vector<1x1xf32>
    %cst_249 = arith.constant 0.000000e+00 : f32
    %323 = vector.broadcast %cst_249 : f32 to vector<1x1xf32>
    %324 = arith.subf %323, %322 : vector<1x1xf32>
    %cst_250 = arith.constant 1.000000e+00 : f32
    %325 = vector.broadcast %cst_250 : f32 to vector<1x1xf32>
    %326 = arith.mulf %324, %325 : vector<1x1xf32>
    %327 = vector.extract_strided_slice %255 {offsets = [0, 2], sizes = [1, 1], strides = [1, 1]} : vector<1x3xf32> to vector<1x1xf32>
    %cst_251 = arith.constant 0.000000e+00 : f32
    %328 = vector.broadcast %cst_251 : f32 to vector<1x1xf32>
    %329 = arith.subf %328, %327 : vector<1x1xf32>
    %cst_252 = arith.constant 1.000000e+00 : f32
    %330 = vector.broadcast %cst_252 : f32 to vector<1x1xf32>
    %331 = arith.mulf %329, %330 : vector<1x1xf32>
    %332 = arith.mulf %321, %321 : vector<1x1xf32>
    %333 = arith.mulf %326, %326 : vector<1x1xf32>
    %334 = arith.addf %332, %333 : vector<1x1xf32>
    %335 = arith.mulf %331, %331 : vector<1x1xf32>
    %336 = arith.addf %334, %335 : vector<1x1xf32>
    %cst_253 = arith.constant 1.000000e-16 : f32
    %337 = vector.broadcast %cst_253 : f32 to vector<1x1xf32>
    %338 = arith.maximumf %336, %337 : vector<1x1xf32>
    %339 = math.rsqrt %338 : vector<1x1xf32>
    %340 = arith.mulf %321, %339 : vector<1x1xf32>
    %341 = arith.mulf %326, %339 : vector<1x1xf32>
    %342 = arith.mulf %331, %339 : vector<1x1xf32>
    %343 = arith.mulf %298, %340 : vector<1x1xf32>
    %344 = arith.mulf %314, %341 : vector<1x1xf32>
    %345 = arith.addf %343, %344 : vector<1x1xf32>
    %346 = arith.mulf %316, %342 : vector<1x1xf32>
    %347 = arith.addf %345, %346 : vector<1x1xf32>
    %cst_254 = arith.constant 2.000000e+00 : f32
    %348 = vector.broadcast %cst_254 : f32 to vector<1x1xf32>
    %349 = arith.mulf %348, %347 : vector<1x1xf32>
    %350 = arith.mulf %349, %340 : vector<1x1xf32>
    %351 = arith.subf %298, %350 : vector<1x1xf32>
    %cst_255 = arith.constant 1.000000e+00 : f32
    %352 = vector.broadcast %cst_255 : f32 to vector<1x1xf32>
    %353 = arith.mulf %352, %351 : vector<1x1xf32>
    %cst_256 = arith.constant 2.000000e+00 : f32
    %354 = vector.broadcast %cst_256 : f32 to vector<1x1xf32>
    %355 = arith.mulf %354, %347 : vector<1x1xf32>
    %356 = arith.mulf %355, %341 : vector<1x1xf32>
    %357 = arith.subf %314, %356 : vector<1x1xf32>
    %cst_257 = arith.constant 1.000000e+00 : f32
    %358 = vector.broadcast %cst_257 : f32 to vector<1x1xf32>
    %359 = arith.mulf %358, %357 : vector<1x1xf32>
    %cst_258 = arith.constant 2.000000e+00 : f32
    %360 = vector.broadcast %cst_258 : f32 to vector<1x1xf32>
    %361 = arith.mulf %360, %347 : vector<1x1xf32>
    %362 = arith.mulf %361, %342 : vector<1x1xf32>
    %363 = arith.subf %316, %362 : vector<1x1xf32>
    %cst_259 = arith.constant 1.000000e+00 : f32
    %364 = vector.broadcast %cst_259 : f32 to vector<1x1xf32>
    %365 = arith.mulf %364, %363 : vector<1x1xf32>
    %cst_260 = arith.constant 0.000000e+00 : f32
    %366 = vector.broadcast %cst_260 : f32 to vector<1x1x128xf32>
    %c0_261 = arith.constant 0 : index
    %c0_262 = arith.constant 0 : index
    %c0_263 = arith.constant 0 : index
    %367 = vector.load %arg29[%c0_261, %c0_262, %c0_263] : memref<1x1x128xf32, #tpu.memory_space<vmem>>, vector<1x1x128xf32>
    tpu.vector_store %arg29[%c0_261, %c0_262, %c0_263], %366 {strides = array<i32>} : memref<1x1x128xf32, #tpu.memory_space<vmem>>, vector<1x1x128xf32>,
    %c0_264 = arith.constant 0 : index
    %c0_265 = arith.constant 0 : index
    %c0_266 = arith.constant 0 : index
    %368 = vector.load %arg29[%c0_264, %c0_265, %c0_266] : memref<1x1x128xf32, #tpu.memory_space<vmem>>, vector<1x1x3xf32>
    %369 = vector.shape_cast %368 : vector<1x1x3xf32> to vector<1x3xf32>
    %370 = vector.shape_cast %255 : vector<1x3xf32> to vector<1x1x3xf32>
    tpu.vector_store %arg29[%c0_264, %c0_265, %c0_266], %370 {strides = array<i32>} : memref<1x1x128xf32, #tpu.memory_space<vmem>>, vector<1x1x3xf32>,
    %c0_267 = arith.constant 0 : index
    %c0_268 = arith.constant 0 : index
    %c3_269 = arith.constant 3 : index
    %371 = vector.load %arg29[%c0_267, %c0_268, %c3_269] : memref<1x1x128xf32, #tpu.memory_space<vmem>>, vector<1x1x1xf32>
    %372 = vector.shape_cast %371 : vector<1x1x1xf32> to vector<1x1xf32>
    %373 = vector.shape_cast %269 : vector<1x1xf32> to vector<1x1x1xf32>
    tpu.vector_store %arg29[%c0_267, %c0_268, %c3_269], %373 {strides = array<i32>} : memref<1x1x128xf32, #tpu.memory_space<vmem>>, vector<1x1x1xf32>,
    %c0_270 = arith.constant 0 : index
    %c0_271 = arith.constant 0 : index
    %c4_272 = arith.constant 4 : index
    %374 = vector.load %arg29[%c0_270, %c0_271, %c4_272] : memref<1x1x128xf32, #tpu.memory_space<vmem>>, vector<1x1x1xf32>
    %375 = vector.shape_cast %374 : vector<1x1x1xf32> to vector<1x1xf32>
    %376 = vector.shape_cast %353 : vector<1x1xf32> to vector<1x1x1xf32>
    tpu.vector_store %arg29[%c0_270, %c0_271, %c4_272], %376 {strides = array<i32>} : memref<1x1x128xf32, #tpu.memory_space<vmem>>, vector<1x1x1xf32>,
    %c0_273 = arith.constant 0 : index
    %c0_274 = arith.constant 0 : index
    %c5_275 = arith.constant 5 : index
    %377 = vector.load %arg29[%c0_273, %c0_274, %c5_275] : memref<1x1x128xf32, #tpu.memory_space<vmem>>, vector<1x1x1xf32>
    %378 = vector.shape_cast %377 : vector<1x1x1xf32> to vector<1x1xf32>
    %379 = vector.shape_cast %359 : vector<1x1xf32> to vector<1x1x1xf32>
    tpu.vector_store %arg29[%c0_273, %c0_274, %c5_275], %379 {strides = array<i32>} : memref<1x1x128xf32, #tpu.memory_space<vmem>>, vector<1x1x1xf32>,
    %c0_276 = arith.constant 0 : index
    %c0_277 = arith.constant 0 : index
    %c6_278 = arith.constant 6 : index
    %380 = vector.load %arg29[%c0_276, %c0_277, %c6_278] : memref<1x1x128xf32, #tpu.memory_space<vmem>>, vector<1x1x1xf32>
    %381 = vector.shape_cast %380 : vector<1x1x1xf32> to vector<1x1xf32>
    %382 = vector.shape_cast %365 : vector<1x1xf32> to vector<1x1x1xf32>
    tpu.vector_store %arg29[%c0_276, %c0_277, %c6_278], %382 {strides = array<i32>} : memref<1x1x128xf32, #tpu.memory_space<vmem>>, vector<1x1x1xf32>,
    %c0_279 = arith.constant 0 : index
    %c0_280 = arith.constant 0 : index
    %c7_281 = arith.constant 7 : index
    %383 = vector.load %arg29[%c0_279, %c0_280, %c7_281] : memref<1x1x128xf32, #tpu.memory_space<vmem>>, vector<1x1x7xf32>
    %384 = vector.shape_cast %383 : vector<1x1x7xf32> to vector<1x7xf32>
    %385 = vector.shape_cast %283 : vector<1x7xf32> to vector<1x1x7xf32>
    tpu.vector_store %arg29[%c0_279, %c0_280, %c7_281], %385 {strides = array<i32>} : memref<1x1x128xf32, #tpu.memory_space<vmem>>, vector<1x1x7xf32>,
    %c0_282 = arith.constant 0 : index
    %c0_283 = arith.constant 0 : index
    %386 = vector.load %arg19[%c0_282, %c0_283] : memref<4x16xf32, #tpu.memory_space<vmem>>, vector<4x16xf32>
    %c0_284 = arith.constant 0 : index
    %c0_285 = arith.constant 0 : index
    %c0_286 = arith.constant 0 : index
    %387 = vector.load %arg2[%c0_284, %c0_285, %c0_286] : memref<1x1x1xf32, #tpu.memory_space<vmem>>, vector<1x1x1xf32>
    %388 = vector.shape_cast %387 : vector<1x1x1xf32> to vector<1x1xf32>
    %389 = vector.extract_strided_slice %386 {offsets = [0, 0], sizes = [1, 16], strides = [1, 1]} : vector<4x16xf32> to vector<1x16xf32>
    %390 = vector.broadcast %388 : vector<1x1xf32> to vector<1x16xf32>
    %391 = arith.mulf %390, %389 : vector<1x16xf32>
    %392 = vector.extract_strided_slice %386 {offsets = [1, 0], sizes = [1, 16], strides = [1, 1]} : vector<4x16xf32> to vector<1x16xf32>
    %393 = vector.broadcast %353 : vector<1x1xf32> to vector<1x16xf32>
    %394 = arith.mulf %393, %392 : vector<1x16xf32>
    %395 = arith.addf %391, %394 : vector<1x16xf32>
    %396 = vector.extract_strided_slice %386 {offsets = [2, 0], sizes = [1, 16], strides = [1, 1]} : vector<4x16xf32> to vector<1x16xf32>
    %397 = vector.broadcast %359 : vector<1x1xf32> to vector<1x16xf32>
    %398 = arith.mulf %397, %396 : vector<1x16xf32>
    %399 = arith.addf %395, %398 : vector<1x16xf32>
    %400 = vector.extract_strided_slice %386 {offsets = [3, 0], sizes = [1, 16], strides = [1, 1]} : vector<4x16xf32> to vector<1x16xf32>
    %401 = vector.broadcast %365 : vector<1x1xf32> to vector<1x16xf32>
    %402 = arith.mulf %401, %400 : vector<1x16xf32>
    %403 = arith.addf %399, %402 : vector<1x16xf32>
    %c0_287 = arith.constant 0 : index
    %c0_288 = arith.constant 0 : index
    %404 = vector.load %arg20[%c0_287, %c0_288] : memref<1x16xf32, #tpu.memory_space<vmem>>, vector<1x16xf32>
    %405 = arith.addf %403, %404 : vector<1x16xf32>
    %cst_289 = arith.constant 0.000000e+00 : f32
    %406 = vector.broadcast %cst_289 : f32 to vector<1x16xf32>
    %407 = arith.maximumf %405, %406 : vector<1x16xf32>
    %c0_290 = arith.constant 0 : index
    %c0_291 = arith.constant 0 : index
    %408 = vector.load %arg21[%c0_290, %c0_291] : memref<16x128xf32, #tpu.memory_space<vmem>>, vector<16x128xf32>
    %cst_292 = arith.constant dense<0.000000e+00> : vector<1x128xf32>
    %409 = tpu.matmul %407, %408, %cst_292 {dimension_numbers = #tpu.dot_dimension_numbers<[1], [0], [0], [1], [0, 0, 1, 1], [], []>} : vector<1x16xf32>, vector<16x128xf32>, vector<1x128xf32> -> vector<1x128xf32>
    %c0_293 = arith.constant 0 : index
    %c0_294 = arith.constant 0 : index
    %410 = vector.load %arg22[%c0_293, %c0_294] : memref<1x128xf32, #tpu.memory_space<vmem>>, vector<1x128xf32>
    %411 = arith.addf %409, %410 : vector<1x128xf32>
    %cst_295 = arith.constant 0.000000e+00 : f32
    %412 = vector.broadcast %cst_295 : f32 to vector<1x128xf32>
    %413 = arith.maximumf %411, %412 : vector<1x128xf32>
    %c0_296 = arith.constant 0 : index
    %c0_297 = arith.constant 0 : index
    %414 = vector.load %arg23[%c0_296, %c0_297] : memref<128x256xf32, #tpu.memory_space<vmem>>, vector<128x256xf32>
    %cst_298 = arith.constant dense<0.000000e+00> : vector<1x256xf32>
    %415 = tpu.matmul %413, %414, %cst_298 {dimension_numbers = #tpu.dot_dimension_numbers<[1], [0], [0], [1], [0, 0, 1, 1], [], []>} : vector<1x128xf32>, vector<128x256xf32>, vector<1x256xf32> -> vector<1x256xf32>
    %c0_299 = arith.constant 0 : index
    %c0_300 = arith.constant 0 : index
    %416 = vector.load %arg24[%c0_299, %c0_300] : memref<1x256xf32, #tpu.memory_space<vmem>>, vector<1x256xf32>
    %417 = arith.addf %415, %416 : vector<1x256xf32>
    %cst_301 = arith.constant 0.000000e+00 : f32
    %418 = vector.broadcast %cst_301 : f32 to vector<1x256xf32>
    %419 = arith.maximumf %417, %418 : vector<1x256xf32>
    %c0_302 = arith.constant 0 : index
    %c0_303 = arith.constant 0 : index
    %420 = vector.load %arg25[%c0_302, %c0_303] : memref<256x512xf32, #tpu.memory_space<vmem>>, vector<256x512xf32>
    %cst_304 = arith.constant dense<0.000000e+00> : vector<1x512xf32>
    %421 = tpu.matmul %419, %420, %cst_304 {dimension_numbers = #tpu.dot_dimension_numbers<[1], [0], [0], [1], [0, 0, 1, 1], [], []>} : vector<1x256xf32>, vector<256x512xf32>, vector<1x512xf32> -> vector<1x512xf32>
    %c0_305 = arith.constant 0 : index
    %c0_306 = arith.constant 0 : index
    %422 = vector.load %arg26[%c0_305, %c0_306] : memref<1x512xf32, #tpu.memory_space<vmem>>, vector<1x512xf32>
    %423 = arith.addf %421, %422 : vector<1x512xf32>
    %cst_307 = arith.constant 0.000000e+00 : f32
    %424 = vector.broadcast %cst_307 : f32 to vector<1x512xf32>
    %425 = arith.maximumf %423, %424 : vector<1x512xf32>
    %c0_308 = arith.constant 0 : index
    %c0_309 = arith.constant 0 : index
    %426 = vector.load %arg27[%c0_308, %c0_309] : memref<512x256xf32, #tpu.memory_space<vmem>>, vector<512x256xf32>
    %cst_310 = arith.constant dense<0.000000e+00> : vector<1x256xf32>
    %427 = tpu.matmul %425, %426, %cst_310 {dimension_numbers = #tpu.dot_dimension_numbers<[1], [0], [0], [1], [0, 0, 1, 1], [], []>} : vector<1x512xf32>, vector<512x256xf32>, vector<1x256xf32> -> vector<1x256xf32>
    %c0_311 = arith.constant 0 : index
    %c0_312 = arith.constant 0 : index
    %428 = vector.load %arg28[%c0_311, %c0_312] : memref<1x256xf32, #tpu.memory_space<vmem>>, vector<1x256xf32>
    %429 = arith.addf %427, %428 : vector<1x256xf32>
    %cst_313 = arith.constant 5.000000e-01 : f32
    %430 = vector.broadcast %cst_313 : f32 to vector<1x256xf32>
    %431 = arith.mulf %430, %429 : vector<1x256xf32>
    %432 = math.tanh %431 : vector<1x256xf32>
    %cst_314 = arith.constant 1.000000e+00 : f32
    %433 = vector.broadcast %cst_314 : f32 to vector<1x256xf32>
    %434 = arith.addf %432, %433 : vector<1x256xf32>
    %cst_315 = arith.constant 5.000000e-01 : f32
    %435 = vector.broadcast %cst_315 : f32 to vector<1x256xf32>
    %436 = arith.mulf %435, %434 : vector<1x256xf32>
    %c0_316 = arith.constant 0 : index
    %c0_317 = arith.constant 0 : index
    %c0_318 = arith.constant 0 : index
    %437 = vector.load %arg30[%c0_316, %c0_317, %c0_318] : memref<1x1x256xf32, #tpu.memory_space<vmem>>, vector<1x1x256xf32>
    %438 = vector.shape_cast %437 : vector<1x1x256xf32> to vector<1x256xf32>
    %439 = vector.shape_cast %436 : vector<1x256xf32> to vector<1x1x256xf32>
    tpu.vector_store %arg30[%c0_316, %c0_317, %c0_318], %439 {strides = array<i32>} : memref<1x1x256xf32, #tpu.memory_space<vmem>>, vector<1x1x256xf32>,
    return
  }
  func.func @transform_0(%arg0: i32) -> (i32, i32, i32, i32) {
    %c0_i32 = arith.constant 0 : i32
    %c0_i32_0 = arith.constant 0 : i32
    %c0_i32_1 = arith.constant 0 : i32
    %c0_i32_2 = arith.constant 0 : i32
    return %arg0, %c0_i32, %c0_i32_0, %c0_i32_1 : i32, i32, i32, i32
  }
  func.func @transform_1(%arg0: i32) -> (i32, i32, i32) {
    %c0_i32 = arith.constant 0 : i32
    %c0_i32_0 = arith.constant 0 : i32
    %c0_i32_1 = arith.constant 0 : i32
    return %arg0, %c0_i32, %c0_i32_0 : i32, i32, i32
  }
  func.func @transform_2(%arg0: i32) -> (i32, i32, i32) {
    %c0_i32 = arith.constant 0 : i32
    %c0_i32_0 = arith.constant 0 : i32
    %c0_i32_1 = arith.constant 0 : i32
    return %arg0, %c0_i32, %c0_i32_0 : i32, i32, i32
  }
  func.func @transform_3(%arg0: i32) -> (i32, i32, i32) {
    %c0_i32 = arith.constant 0 : i32
    %c0_i32_0 = arith.constant 0 : i32
    %c0_i32_1 = arith.constant 0 : i32
    return %arg0, %c0_i32, %c0_i32_0 : i32, i32, i32
  }
  func.func @transform_4(%arg0: i32) -> (i32, i32) {
    %c0_i32 = arith.constant 0 : i32
    %c0_i32_0 = arith.constant 0 : i32
    %c0_i32_1 = arith.constant 0 : i32
    return %c0_i32, %c0_i32_0 : i32, i32
  }
  func.func @transform_5(%arg0: i32) -> (i32, i32) {
    %c0_i32 = arith.constant 0 : i32
    %c0_i32_0 = arith.constant 0 : i32
    %c0_i32_1 = arith.constant 0 : i32
    return %c0_i32, %c0_i32_0 : i32, i32
  }
  func.func @transform_6(%arg0: i32) -> (i32, i32) {
    %c0_i32 = arith.constant 0 : i32
    %c0_i32_0 = arith.constant 0 : i32
    %c0_i32_1 = arith.constant 0 : i32
    return %c0_i32, %c0_i32_0 : i32, i32
  }
  func.func @transform_7(%arg0: i32) -> (i32, i32) {
    %c0_i32 = arith.constant 0 : i32
    %c0_i32_0 = arith.constant 0 : i32
    %c0_i32_1 = arith.constant 0 : i32
    return %c0_i32, %c0_i32_0 : i32, i32
  }
  func.func @transform_8(%arg0: i32) -> (i32, i32) {
    %c0_i32 = arith.constant 0 : i32
    %c0_i32_0 = arith.constant 0 : i32
    %c0_i32_1 = arith.constant 0 : i32
    return %c0_i32, %c0_i32_0 : i32, i32
  }
  func.func @transform_9(%arg0: i32) -> (i32, i32) {
    %c0_i32 = arith.constant 0 : i32
    %c0_i32_0 = arith.constant 0 : i32
    %c0_i32_1 = arith.constant 0 : i32
    return %c0_i32, %c0_i32_0 : i32, i32
  }
  func.func @transform_10(%arg0: i32) -> (i32, i32, i32) {
    %c0_i32 = arith.constant 0 : i32
    %c0_i32_0 = arith.constant 0 : i32
    %c0_i32_1 = arith.constant 0 : i32
    %c0_i32_2 = arith.constant 0 : i32
    return %c0_i32, %c0_i32_0, %c0_i32_1 : i32, i32, i32
  }
  func.func @transform_11(%arg0: i32) -> (i32, i32) {
    %c0_i32 = arith.constant 0 : i32
    %c0_i32_0 = arith.constant 0 : i32
    %c0_i32_1 = arith.constant 0 : i32
    return %c0_i32, %c0_i32_0 : i32, i32
  }
  func.func @transform_12(%arg0: i32) -> (i32, i32) {
    %c0_i32 = arith.constant 0 : i32
    %c0_i32_0 = arith.constant 0 : i32
    %c0_i32_1 = arith.constant 0 : i32
    return %c0_i32, %c0_i32_0 : i32, i32
  }
  func.func @transform_13(%arg0: i32) -> (i32, i32) {
    %c0_i32 = arith.constant 0 : i32
    %c0_i32_0 = arith.constant 0 : i32
    %c0_i32_1 = arith.constant 0 : i32
    return %c0_i32, %c0_i32_0 : i32, i32
  }
  func.func @transform_14(%arg0: i32) -> (i32, i32) {
    %c0_i32 = arith.constant 0 : i32
    %c0_i32_0 = arith.constant 0 : i32
    %c0_i32_1 = arith.constant 0 : i32
    return %c0_i32, %c0_i32_0 : i32, i32
  }
  func.func @transform_15(%arg0: i32) -> (i32, i32) {
    %c0_i32 = arith.constant 0 : i32
    %c0_i32_0 = arith.constant 0 : i32
    %c0_i32_1 = arith.constant 0 : i32
    return %c0_i32, %c0_i32_0 : i32, i32
  }
  func.func @transform_16(%arg0: i32) -> (i32, i32) {
    %c0_i32 = arith.constant 0 : i32
    %c0_i32_0 = arith.constant 0 : i32
    %c0_i32_1 = arith.constant 0 : i32
    return %c0_i32, %c0_i32_0 : i32, i32
  }
  func.func @transform_17(%arg0: i32) -> (i32, i32) {
    %c0_i32 = arith.constant 0 : i32
    %c0_i32_0 = arith.constant 0 : i32
    %c0_i32_1 = arith.constant 0 : i32
    return %c0_i32, %c0_i32_0 : i32, i32
  }
  func.func @transform_18(%arg0: i32) -> (i32, i32) {
    %c0_i32 = arith.constant 0 : i32
    %c0_i32_0 = arith.constant 0 : i32
    %c0_i32_1 = arith.constant 0 : i32
    return %c0_i32, %c0_i32_0 : i32, i32
  }
  func.func @transform_19(%arg0: i32) -> (i32, i32) {
    %c0_i32 = arith.constant 0 : i32
    %c0_i32_0 = arith.constant 0 : i32
    %c0_i32_1 = arith.constant 0 : i32
    return %c0_i32, %c0_i32_0 : i32, i32
  }
  func.func @transform_20(%arg0: i32) -> (i32, i32) {
    %c0_i32 = arith.constant 0 : i32
    %c0_i32_0 = arith.constant 0 : i32
    %c0_i32_1 = arith.constant 0 : i32
    return %c0_i32, %c0_i32_0 : i32, i32
  }
  func.func @transform_21(%arg0: i32) -> (i32, i32) {
    %c0_i32 = arith.constant 0 : i32
    %c0_i32_0 = arith.constant 0 : i32
    %c0_i32_1 = arith.constant 0 : i32
    return %c0_i32, %c0_i32_0 : i32, i32
  }
  func.func @transform_22(%arg0: i32) -> (i32, i32) {
    %c0_i32 = arith.constant 0 : i32
    %c0_i32_0 = arith.constant 0 : i32
    %c0_i32_1 = arith.constant 0 : i32
    return %c0_i32, %c0_i32_0 : i32, i32
  }
  func.func @transform_23(%arg0: i32) -> (i32, i32) {
    %c0_i32 = arith.constant 0 : i32
    %c0_i32_0 = arith.constant 0 : i32
    %c0_i32_1 = arith.constant 0 : i32
    return %c0_i32, %c0_i32_0 : i32, i32
  }
  func.func @transform_24(%arg0: i32) -> (i32, i32) {
    %c0_i32 = arith.constant 0 : i32
    %c0_i32_0 = arith.constant 0 : i32
    %c0_i32_1 = arith.constant 0 : i32
    return %c0_i32, %c0_i32_0 : i32, i32
  }
  func.func @transform_25(%arg0: i32) -> (i32, i32) {
    %c0_i32 = arith.constant 0 : i32
    %c0_i32_0 = arith.constant 0 : i32
    %c0_i32_1 = arith.constant 0 : i32
    return %c0_i32, %c0_i32_0 : i32, i32
  }
  func.func @transform_26(%arg0: i32) -> (i32, i32) {
    %c0_i32 = arith.constant 0 : i32
    %c0_i32_0 = arith.constant 0 : i32
    %c0_i32_1 = arith.constant 0 : i32
    return %c0_i32, %c0_i32_0 : i32, i32
  }
  func.func @transform_27(%arg0: i32) -> (i32, i32) {
    %c0_i32 = arith.constant 0 : i32
    %c0_i32_0 = arith.constant 0 : i32
    %c0_i32_1 = arith.constant 0 : i32
    return %c0_i32, %c0_i32_0 : i32, i32
  }
  func.func @transform_28(%arg0: i32) -> (i32, i32, i32) {
    %c0_i32 = arith.constant 0 : i32
    %c0_i32_0 = arith.constant 0 : i32
    %c0_i32_1 = arith.constant 0 : i32
    return %arg0, %c0_i32, %c0_i32_0 : i32, i32, i32
  }
  func.func @transform_29(%arg0: i32) -> (i32, i32, i32) {
    %c0_i32 = arith.constant 0 : i32
    %c0_i32_0 = arith.constant 0 : i32
    %c0_i32_1 = arith.constant 0 : i32
    return %arg0, %c0_i32, %c0_i32_0 : i32, i32, i32
  }
}

</mosaic_0001>

<bundles_post_ra>
// kernel: conditional_vae_forward.3
= control target key start
LH: loop header
LB: loop body
LE: loop exit
PB: predicated region body
PF: predicated region fallthrough
CT: control target
= control target key end

     0   :  { %s10147_s6 = smov 1   ;;  %s10148_s10 = smov 2   ;;  %s13204_s0 = inlined_call_operand.smem [shape: u32[30], index: -1, kind: input, shape index: {}] }
   0x1   :  { %s10214_s5 = sld [smem:[%s13204_s0]]   ;;  %s10149_s14 = smov 3  }
   0x2   :  { %s10219_s9 = sld [smem:[%s13204_s0 + %s10147_s6]]   ;;  %s10150_s18 = smov 4  }
   0x3   :  { %s10224_s13 = sld [smem:[%s13204_s0 + %s10148_s10]]   ;;  %s10151_s22 = smov 5  }
   0x4   :  { %s10229_s17 = sld [smem:[%s13204_s0 + %s10149_s14]]   ;;  %s10152_s26 = smov 6  }
   0x5   :  { %s10234_s21 = sld [smem:[%s13204_s0 + %s10150_s18]]   ;;  %s10153_s30 = smov 7  }
   0x6   :  { %s10239_s25 = sld [smem:[%s13204_s0 + %s10151_s22]]   ;;  %s10154_s4 = smov 8  }
   0x7   :  { %s10244_s29 = sld [smem:[%s13204_s0 + %s10152_s26]]   ;;  %s10155_s10 = smov 9  }
   0x8   :  { %13220 = sst [smem:[#allocation12_spill]] %s10219_s9  ;;  %s10156_s15 = smov 10  }
   0x9   :  { %13221 = sst [smem:[#allocation13_spill]] %s10224_s13  ;;  %s10157_s20 = smov 11  }
   0xa   :  { %13222 = sst [smem:[#allocation14_spill]] %s10229_s17  ;;  %s10158_s26 = smov 12  }
   0xb   :  { %s10249_s3 = sld [smem:[%s13204_s0 + %s10153_s30]]   ;;  %s10159_s1 = smov 13  }
   0xc   :  { %s10254_s8 = sld [smem:[%s13204_s0 + %s10154_s4]]   ;;  %s10160_s7 = smov 14  }
   0xd   :  { %s10259_s14 = sld [smem:[%s13204_s0 + %s10155_s10]]   ;;  %s10162_s22 = smov 16  }
   0xe   :  { %s10264_s19 = sld [smem:[%s13204_s0 + %s10156_s15]]   ;;  %s10161_s15 = smov 15  }
   0xf   :  { %s10269_s24 = sld [smem:[%s13204_s0 + %s10157_s20]]   ;;  %s10163_s28 = smov 17  }
  0x10   :  { %s10274_s30 = sld [smem:[%s13204_s0 + %s10158_s26]]   ;;  %s10164_s10 = smov 18  }
  0x11   :  { %s10279_s6 = sld [smem:[%s13204_s0 + %s10159_s1]]   ;;  %s10165_s16 = smov 19  }
  0x12   :  { %s10284_s12 = sld [smem:[%s13204_s0 + %s10160_s7]]   ;;  %s10170_s23 = smov 24  }
  0x13   :  { %s9188_s20 = sld [smem:[%s13204_s0 + %s10161_s15]]  }
  0x14   :  { %s10292_s27 = sld [smem:[%s13204_s0 + %s10162_s22]]   ;;  %s10166_s22 = smov 20  }
  0x15   :  { %s10297_s4 = sld [smem:[%s13204_s0 + %s10163_s28]]   ;;  %s10167_s28 = smov 21  }
  0x16   :  { %s10302_s9 = sld [smem:[%s13204_s0 + %s10164_s10]]   ;;  %s10168_s10 = smov 22  }
  0x17   :  { %s10307_s13 = sld [smem:[%s13204_s0 + %s10165_s16]]   ;;  %s10169_s16 = smov 23  }
  0x18   :  { %s10312_s17 = sld [smem:[%s13204_s0 + %s10166_s22]]  }
  0x19   :  { %v65_v0 = vstv %s9188_s20  ;;  %s10322_s15 = sld [smem:[%s13204_s0 + %s10168_s10]]   ;;  %s10171_s20 = smov 25  }
  0x1a   :  { %66 = vst [vmem:[#allocation8] sm:$0x1] %v65_v0  ;;  %s10327_s22 = sld [smem:[%s13204_s0 + %s10169_s16]]   ;;  %s10172_s10 = smov 26  }
  0x1b   :  { %13223 = sst [smem:[#allocation15_spill]] %s10297_s4 }
  0x1c   :  { %13224 = sst [smem:[#allocation16_spill]] %s10302_s9  ;;  %s10174_s9 = smov 28  }
  0x1d   :  { %13225 = sst [smem:[#allocation17_spill]] %s10307_s13  ;;  %s10173_s13 = smov 27  }
  0x1e   :  { %s10317_s4 = sld [smem:[%s13204_s0 + %s10167_s28]]  }
  0x1f   :  { %13227 = sst [smem:[#allocation19_spill]] %s10322_s15 }
  0x20   :  { %13228 = sst [smem:[#allocation20_spill]] %s10327_s22 }
  0x21   :  { %s10332_s28 = sld [smem:[%s13204_s0 + %s10170_s23]]  }
  0x22   :  { %s10337_s7 = sld [smem:[%s13204_s0 + %s10171_s20]]   ;;  %s10175_s20 = smov 29  }
  0x23   :  { %s10342_s15 = sld [smem:[%s13204_s0 + %s10172_s10]]  }
  0x24   :  { %13226 = sst [smem:[#allocation18_spill]] %s10317_s4 }
  0x25   :  { %s10347_s22 = sld [smem:[%s13204_s0 + %s10173_s13]]  }
  0x27   :  { %13229 = sst [smem:[#allocation21_spill]] %s10332_s28 }
  0x28   :  { %13230 = sst [smem:[#allocation22_spill]] %s10337_s7 }
  0x29   :  { %s10352_s28 = sld [smem:[%s13204_s0 + %s10174_s9]]  }
  0x2a   :  { %s10357_s7 = sld [smem:[%s13204_s0 + %s10175_s20]]  }
  0x2b   :  { %67 = vsyncpa [#allocation10], 0  ;;  %s10359_s4 = smov 0  }
  0x2c LB: > { %s10365_s10 = sadd.s32 4294967295, %s10145_s4   ;;  %p9205_p0 = scmp.ge.s32.totalorder %s10145_s4, 1  ;;  %s10145_s4 = sphi %s10359_s4, %s73_s4  }
  0x2d   : > { %p738_p1 = scmp.lt.s32.totalorder %s10145_s4, 3  ;;  %s10176_s0 = smov [#allocation9]  }
  0x2e   : > { %s816_s11 = sshll.u32 %s10176_s0, 4  ;;  %p13208_p3 = scmp.eq.s32.totalorder %s10365_s10, 0  ;;  %s817_s11 = int_to_ptr.vmem [resolvable:$true] %s816_s11 }
  0x2f   : > { %p10369_p2 = pnand %p9205_p0, %p738_p1  ;;  %s10107_s18 = scalar_lea.hbm %s10342_s15, 16384 }
  0x30   : > { %p10108_p6 = scmp.ne.s32.totalorder %s10342_s15, %s10107_s18  ;;  %p10114_p10 = scmp.lt.u32.totalorder %s10107_s18, %s10342_s15 }
  0x31   : > { %s13231_s13 = scalar_select %p10369_p2, 1, 0 }
  0x32   : > { %p10003_p4 = pneg %p10369_p2 }
  0x34   : > { %p10378_p5 = pnand %p13208_p3, %p10003_p4 }
  0x36   : > { %p10109_p7 = pneg %p10378_p5 }
  0x38   : > { %p10110_p8 = pnand %p10109_p7, %p10108_p6 }
  0x3a   : > { %p10111_p9 = pneg %p10110_p8 }
  0x3c   : > { %p10116_p11 = pnand %p10114_p10, %p10111_p9 }
  0x3e   : > { %10119 = shalt.err (!%p10116_p11)
}
  0x3f   : > { %s10120_s9 = scalar_lea.vmem %s817_s11, 16384  ;;  %p10128_p1 = scmp.lt.s32.totalorder %s817_s11, %s817_s11 }
  0x40   : > { %p10121_p12 = scmp.ne.s32.totalorder %s817_s11, %s10120_s9  ;;  %p10129_p2 = scmp.lt.s32.totalorder %s10120_s9, %s10120_s9 }
  0x42   : > { %p10123_p13 = pnand %p10121_p12, %p10109_p7  ;;  %p10130_p4 = por %p10129_p2, %p10128_p1 }
  0x44   : > { %p10124_p0 = pneg %p10123_p13 }
  0x46   : > { %p10131_p3 = pnand %p10130_p4, %p10124_p0 }
  0x48   : > { %10134 = shalt.err (!%p10131_p3)
}
  0x49   : > { %s10177_s23 = smov 256   ;;  %s10178_s26 = smov 16  }
  0x4a   : > { %10006 = dma.hbm_to_vmem [thread:$0]  (!%p10378_p5), %s10342_s15, 16384, %s817_s11, [#allocation10], %s10177_s23, %s10177_s23, %s10178_s26  }
  0x4b   : > { %p13233_p6 = scmp.ne.s32.totalorder %s13231_s13, 0 }
  0x4c   : > { %p13234_p8 = scmp.eq.s32.totalorder (!%p13233_p6), %s10365_s10, 0 }
  0x4d   : > { %861 = sbr.rel (%p13233_p6) target bundleno = 4023 (0xfb7), region = 132 }
  0x54   : > { %10140 = dma.done.wait (%p13234_p8), [#allocation10], 16384   ;;  %p13235_p7 = pmov %p13234_p8 }
  0x55   : > { %vm1001_vm0 = vcmask 7168   ;;  %v10179_v1 = vmov 0.0   ;;  %p948_p2 = scmp.lt.s32.totalorder %s10365_s10, 1  ;;  %s10180_s2 = smov 2   ;;  %v2920_v37 = vld [vmem:[%s10234_s21] sm:$0xff]  ;;  %vm3038_vm1 = vcmask 1040384  }
  0x56   : > { %10142 = vsyncadd (%p13235_p7), [#allocation10], 4294950912  ;;  %1002 = vst.msk [vmem:[#allocation2] sm:$0xff] %vm1001_vm0, %v10179_v1  ;;  %s10181_s0 = smov 1   ;;  %s10182_s11 = smov 3   ;;  %vm10187_vm2 = vmmov 1  }
  0x57   : > { %1003 = vst.msk [vmem:[#allocation2 + $0x8] sm:$0xff] %vm1001_vm0, %v10179_v1  ;;  %1004 = vst.msk [vmem:[#allocation2 + $0x10] sm:$0xff] %vm1001_vm0, %v10179_v1  ;;  %s13303_s10 = smov (!%p948_p2, %s10365_s10), 1  ;;  %s13217_s13 = smov 4   ;;  %v2921_v38 = vld [vmem:[%s10234_s21 + $0x8] sm:$0x1] }
  0x58   : > { %1005 = vst.msk [vmem:[#allocation2 + $0x18] sm:$0xff] %vm1001_vm0, %v10179_v1  ;;  %1006 = vst.msk [vmem:[#allocation2 + $0x20] sm:$0xff] %vm1001_vm0, %v10179_v1  ;;  %s9290_s20 = sshll.u32 %s13303_s10, 8  ;;  %s13218_s16 = smov 5   ;;  %v9584_v41 = vpack.c.bf16 %v2921_v38, %v2920_v37  ;;  %vm1328_vm4 = vcmask 15368   ;;  %vm13210_vm5 = vcmask 23568  }
  0x59   : > { %1007 = vst.msk [vmem:[#allocation2 + $0x28] sm:$0xff] %vm1001_vm0, %v10179_v1  ;;  %1008 = vst.msk [vmem:[#allocation2 + $0x30] sm:$0xff] %vm1001_vm0, %v10179_v1  ;;  %s10482_s1 = scalar_lea.vmem %s10214_s5, %s9290_s20  ;;  %s13215_s18 = smov 6   ;;  %vm1762_vm6 = vcmask 31768   ;;  %vm1979_vm7 = vcmask 39968   ;;  %vm2196_vm8 = vcmask 48168  }
  0x5a   : > { %1009 = vst.msk [vmem:[#allocation2 + $0x38] sm:$0xff] %vm1001_vm0, %v10179_v1  ;;  %1010 = vst.msk [vmem:[#allocation2 + $0x40] sm:$0xff] %vm1001_vm0, %v10179_v1  ;;  %v969_v2 = vld [vmem:[%s10482_s1] sm:$0xff]  ;;  %v970_v3 = vld [vmem:[%s10482_s1 + $0x8] sm:$0xff]  ;;  %s13214_s9 = smov 7   ;;  %s10188_s23 = smov 8  }
  0x5b   : > { %1011 = vst.msk [vmem:[#allocation2 + $0x48] sm:$0xff] %vm1001_vm0, %v10179_v1  ;;  %1012 = vst.msk [vmem:[#allocation2 + $0x50] sm:$0xff] %vm1001_vm0, %v10179_v1  ;;  %v971_v4 = vld [vmem:[%s10482_s1 + $0x10] sm:$0xff]  ;;  %v972_v9 = vld [vmem:[%s10482_s1 + $0x18] sm:$0xff]  ;;  %vm2413_vm9 = vcmask 56368   ;;  %vm2630_vm10 = vcmask 64568  }
  0x5c   : > { %1013 = vst.msk [vmem:[#allocation2 + $0x58] sm:$0xff] %vm1001_vm0, %v10179_v1  ;;  %1014 = vst.msk [vmem:[#allocation2 + $0x60] sm:$0xff] %vm1001_vm0, %v10179_v1  ;;  %v973_v10 = vld [vmem:[%s10482_s1 + $0x20] sm:$0xff]  ;;  %v974_v11 = vld [vmem:[%s10482_s1 + $0x28] sm:$0xff]  ;;  %vm2847_vm11 = vcmask 72768   ;;  %vm2929_vm12 = vcmask 72704  }
  0x5d   : > { %1015 = vst.msk [vmem:[#allocation2 + $0x68] sm:$0xff] %vm1001_vm0, %v10179_v1  ;;  %1016 = vst.msk [vmem:[#allocation2 + $0x70] sm:$0xff] %vm1001_vm0, %v10179_v1  ;;  %v975_v12 = vld [vmem:[%s10482_s1 + $0x30] sm:$0xff]  ;;  %v976_v13 = vld [vmem:[%s10482_s1 + $0x38] sm:$0xff]  ;;  %vm4988_vm13 = vcmask 64512   ;;  %vm4091_vm14 = vcmask 58368  }
  0x5e   : > { %1017 = vst.msk [vmem:[#allocation2 + $0x78] sm:$0xff] %vm1001_vm0, %v10179_v1  ;;  %1018 = vst.msk [vmem:[#allocation2 + $0x80] sm:$0xff] %vm1001_vm0, %v10179_v1  ;;  %v1365_v5 = vld [vmem:[#allocation2 + $0x2] sm:$0xff]  ;;  %v1366_v7 = vld [vmem:[#allocation2 + $0xa] sm:$0xff]  ;;  %vm13209_vm15 = vcmask 1041409   ;;  %s10190_s26 = smov 16  }
  0x5f   : > { %1019 = vst.msk [vmem:[#allocation2 + $0x88] sm:$0xff] %vm1001_vm0, %v10179_v1  ;;  %1020 = vst.msk [vmem:[#allocation2 + $0x90] sm:$0xff] %vm1001_vm0, %v10179_v1  ;;  %v1148_v6 = vld [vmem:[#allocation2 + $0x1] sm:$0xff]  ;;  %1437 = vrot.lane.b32.xlu1 %v1365_v5, %s10180_s2  ;;  %v1149_v8 = vld [vmem:[#allocation2 + $0x9] sm:$0xff]  ;;  %s10191_s20 = smov 24  }
  0x60   : > { %1021 = vst.msk [vmem:[#allocation2 + $0x98] sm:$0xff] %vm1001_vm0, %v10179_v1  ;;  %1022 = vst.msk [vmem:[#allocation2 + $0xa0] sm:$0xff] %vm1001_vm0, %v10179_v1  ;;  %1220 = vrot.lane.b32.xlu0 %v1148_v6, %s10181_s0  ;;  %v1076_v14 = vld [vmem:[#allocation2] sm:$0xff]  ;;  %v1077_v15 = vld [vmem:[#allocation2 + $0x8] sm:$0xff] }
  0x61   : > { %1023 = vst.msk [vmem:[#allocation2 + $0xa8] sm:$0xff] %vm1001_vm0, %v10179_v1  ;;  %1024 = vst.msk [vmem:[#allocation2 + $0xb0] sm:$0xff] %vm1001_vm0, %v10179_v1  ;;  %v977_v16 = vld [vmem:[%s10482_s1 + $0x40] sm:$0xff]  ;;  %v978_v17 = vld [vmem:[%s10482_s1 + $0x48] sm:$0xff] }
  0x62   : > { %1025 = vst.msk [vmem:[#allocation2 + $0xb8] sm:$0xff] %vm1001_vm0, %v10179_v1  ;;  %1026 = vst.msk [vmem:[#allocation2 + $0xc0] sm:$0xff] %vm1001_vm0, %v10179_v1  ;;  %v979_v30 = vld [vmem:[%s10482_s1 + $0x50] sm:$0xff]  ;;  %v980_v42 = vld [vmem:[%s10482_s1 + $0x58] sm:$0xff] }
  0x63   : > { %1027 = vst.msk [vmem:[#allocation2 + $0xc8] sm:$0xff] %vm1001_vm0, %v10179_v1  ;;  %1028 = vst.msk [vmem:[#allocation2 + $0xd0] sm:$0xff] %vm1001_vm0, %v10179_v1  ;;  %1439 = vrot.lane.b32.xlu1 %v1366_v7, %s10180_s2  ;;  %v981_v48 = vld [vmem:[%s10482_s1 + $0x60] sm:$0xff]  ;;  %v982_v61 = vld [vmem:[%s10482_s1 + $0x68] sm:$0xff] }
  0x64   : > { %1029 = vst.msk [vmem:[#allocation2 + $0xd8] sm:$0xff] %vm1001_vm0, %v10179_v1  ;;  %1030 = vst.msk [vmem:[#allocation2 + $0xe0] sm:$0xff] %vm1001_vm0, %v10179_v1  ;;  %1222 = vrot.lane.b32.xlu0 %v1149_v8, %s10181_s0  ;;  %v983_v0 = vld [vmem:[%s10482_s1 + $0x70] sm:$0xff] }
  0x65   : > { %1031 = vst.msk [vmem:[#allocation2 + $0xe8] sm:$0xff] %vm1001_vm0, %v10179_v1  ;;  %1032 = vst.msk [vmem:[#allocation2 + $0xf0] sm:$0xff] %vm1001_vm0, %v10179_v1 }
  0x66   : > { %1033 = vst.msk [vmem:[#allocation2 + $0xf8] sm:$0xff] %vm1001_vm0, %v10179_v1  ;;  %1034 = vst.msk [vmem:[#allocation2 + $0x100] sm:$0xff] %vm1001_vm0, %v10179_v1 }
  0x67   : > { %1035 = vst.msk [vmem:[#allocation2 + $0x108] sm:$0xff] %vm1001_vm0, %v10179_v1  ;;  %1036 = vst.msk [vmem:[#allocation2 + $0x110] sm:$0xff] %vm1001_vm0, %v10179_v1 }
  0x68   : > { %1037 = vst.msk [vmem:[#allocation2 + $0x118] sm:$0xff] %vm1001_vm0, %v10179_v1  ;;  %1038 = vst.msk [vmem:[#allocation2 + $0x120] sm:$0xff] %vm1001_vm0, %v10179_v1 }
  0x69   : > { %1039 = vst.msk [vmem:[#allocation2 + $0x128] sm:$0xff] %vm1001_vm0, %v10179_v1  ;;  %1040 = vst.msk [vmem:[#allocation2 + $0x130] sm:$0xff] %vm1001_vm0, %v10179_v1 }
  0x6a   : > { %1041 = vst.msk [vmem:[#allocation2 + $0x138] sm:$0xff] %vm1001_vm0, %v10179_v1  ;;  %1044 = vst.msk [vmem:[#allocation2 + $0x13] sm:$0xff] %vm1001_vm0, %v969_v2 }
  0x6b   : > { %1045 = vst.msk [vmem:[#allocation2 + $0x1b] sm:$0xff] %vm1001_vm0, %v970_v3  ;;  %1046 = vst.msk [vmem:[#allocation2 + $0x25] sm:$0xff] %vm1001_vm0, %v971_v4 }
  0x6c   : > { %1047 = vst.msk [vmem:[#allocation2 + $0x2d] sm:$0xff] %vm1001_vm0, %v972_v9  ;;  %1048 = vst.msk [vmem:[#allocation2 + $0x37] sm:$0xff] %vm1001_vm0, %v973_v10 }
  0x6d   : > { %1049 = vst.msk [vmem:[#allocation2 + $0x3f] sm:$0xff] %vm1001_vm0, %v974_v11  ;;  %1050 = vst.msk [vmem:[#allocation2 + $0x49] sm:$0xff] %vm1001_vm0, %v975_v12 }
  0x6e   : > { %1051 = vst.msk [vmem:[#allocation2 + $0x51] sm:$0xff] %vm1001_vm0, %v976_v13  ;;  %1112 = vst.msk [vmem:[#allocation3] sm:$0xff] %vm1001_vm0, %v1076_v14  ;;  %v984_v14 = vld [vmem:[%s10482_s1 + $0x78] sm:$0xff] }
  0x6f   : > { %1113 = vst.msk [vmem:[#allocation3 + $0x8] sm:$0xff] %vm1001_vm0, %v1077_v15  ;;  %1052 = vst.msk [vmem:[#allocation2 + $0x5b] sm:$0xff] %vm1001_vm0, %v977_v16 }
  0x70   : > { %1053 = vst.msk [vmem:[#allocation2 + $0x63] sm:$0xff] %vm1001_vm0, %v978_v17  ;;  %1054 = vst.msk [vmem:[#allocation2 + $0x6d] sm:$0xff] %vm1001_vm0, %v979_v30 }
  0x71   : > { %v1582_v19 = vld [vmem:[#allocation2 + $0x12] sm:$0xff]  ;;  %vm9585_vm3 = vmpackc.low %vm3038_vm1, %vm10187_vm2  ;;  %1055 = vst.msk [vmem:[#allocation2 + $0x75] sm:$0xff] %vm1001_vm0, %v980_v42  ;;  %vm1042_vm1 = vcmask 5120   ;;  %vm5205_vm2 = vcmask 1042434  }
  0x72   : > { %v1583_v18 = vld [vmem:[#allocation2 + $0x1a] sm:$0xff]  ;;  %1654 = vrot.lane.b32.xlu0 %v1582_v19, %s10182_s11  ;;  %v1150_v21 = vld [vmem:[#allocation2 + $0x11] sm:$0xff]  ;;  %v2233_v26 = vld [vmem:[#allocation2 + $0x24] sm:$0xff]  ;;  %9586 = vmatprep.subr.msk.bf16.mxu0 %vm9585_vm3, %v9584_v41  ;;  %1056 = vst.msk [vmem:[#allocation2 + $0x7f] sm:$0xff] %vm1001_vm0, %v981_v48 }
  0x73   : > { %1656 = vrot.lane.b32.xlu1 %v1583_v18, %s10182_s11  ;;  %v1799_v20 = vld [vmem:[#allocation2 + $0x13] sm:$0xff]  ;;  %v1800_v22 = vld [vmem:[#allocation2 + $0x1b] sm:$0xff]  ;;  %v2450_v33 = vld [vmem:[#allocation2 + $0x25] sm:$0xff]  ;;  %9986 = vmatprep.subr.msk.bf16.mxu1 %vm9585_vm3, %v9584_v41  ;;  %1057 = vst.msk [vmem:[#allocation2 + $0x87] sm:$0xff] %vm1001_vm0, %v982_v61 }
  0x74   : > { %v2016_v23 = vld [vmem:[#allocation2 + $0x14] sm:$0xff]  ;;  %v2017_v25 = vld [vmem:[#allocation2 + $0x1c] sm:$0xff]  ;;  %v2234_v32 = vld [vmem:[#allocation2 + $0x2c] sm:$0xff]  ;;  %9589 = vmatpush3.bf16.msk.msra.mxu0 %vm9585_vm3, %v9584_v41  ;;  %9987 = vmatpush3.bf16.msk.msra.mxu1 %vm9585_vm3, %v9584_v41  ;;  %1058 = vst.msk [vmem:[#allocation2 + $0x91] sm:$0xff] %vm1001_vm0, %v983_v0  ;;  %vm5207_vm3 = vcmask 1043459  }
  0x75   : > { %v1151_v24 = vld [vmem:[#allocation2 + $0x19] sm:$0xff]  ;;  %v1078_v27 = vld [vmem:[#allocation2 + $0x10] sm:$0xff]  ;;  %v1584_v29 = vld [vmem:[#allocation2 + $0x22] sm:$0xff]  ;;  %1059 = vst.msk [vmem:[#allocation2 + $0x99] sm:$0xff] %vm1001_vm0, %v984_v14 }
  0x76   : > { %1871 = vrot.lane.b32.xlu0 %v1799_v20, %s13217_s13  ;;  %1114 = vst.msk [vmem:[#allocation3 + $0x10] sm:$0xff] %vm1001_vm0, %v1078_v27  ;;  %v1079_v28 = vld [vmem:[#allocation2 + $0x18] sm:$0xff]  ;;  %v1080_v31 = vld [vmem:[#allocation2 + $0x20] sm:$0xff]  ;;  %v1585_v34 = vld [vmem:[#allocation2 + $0x2a] sm:$0xff] }
  0x77   : > { %1224 = vrot.lane.b32.xlu1 %v1150_v21, %s10181_s0  ;;  %1115 = vst.msk [vmem:[#allocation3 + $0x18] sm:$0xff] %vm1001_vm0, %v1079_v28  ;;  %1116 = vst.msk [vmem:[#allocation3 + $0x20] sm:$0xff] %vm1001_vm0, %v1080_v31  ;;  %v1801_v35 = vld [vmem:[#allocation2 + $0x23] sm:$0xff]  ;;  %v2451_v39 = vld [vmem:[#allocation2 + $0x2d] sm:$0xff] }
  0x78   : > { %v1081_v36 = vld [vmem:[#allocation2 + $0x28] sm:$0xff]  ;;  %v2235_v47 = vld [vmem:[#allocation2 + $0x34] sm:$0xff]  ;;  %v2236_v51 = vld [vmem:[#allocation2 + $0x3c] sm:$0xff]  ;;  %5181 = vst.msk [vmem:[#allocation4] sm:$0xff] %vm4988_vm13, %v10179_v1 }
  0x79   : > { %v2667_v40 = vld [vmem:[#allocation2 + $0x26] sm:$0xff]  ;;  %1117 = vst.msk [vmem:[#allocation3 + $0x28] sm:$0xff] %vm1001_vm0, %v1081_v36  ;;  %v2668_v45 = vld [vmem:[#allocation2 + $0x2e] sm:$0xff]  ;;  %v1587_v53 = vld [vmem:[#allocation2 + $0x3a] sm:$0xff] }
  0x7a   : > { %1873 = vrot.lane.b32.xlu0 %v1800_v22, %s13217_s13  ;;  %v1152_v43 = vld [vmem:[#allocation2 + $0x21] sm:$0xff]  ;;  %v1802_v44 = vld [vmem:[#allocation2 + $0x2b] sm:$0xff]  ;;  %v2452_v52 = vld [vmem:[#allocation2 + $0x35] sm:$0xff]  ;;  %5182 = vst.msk [vmem:[#allocation4 + $0x8] sm:$0xff] %vm4988_vm13, %v10179_v1 }
  0x7b   : > { %2088 = vrot.lane.b32.xlu1 %v2016_v23, %s13218_s16  ;;  %v1153_v46 = vld [vmem:[#allocation2 + $0x29] sm:$0xff]  ;;  %v1586_v49 = vld [vmem:[#allocation2 + $0x32] sm:$0xff]  ;;  %v2453_v56 = vld [vmem:[#allocation2 + $0x3d] sm:$0xff]  ;;  %5183 = vst.msk [vmem:[#allocation4 + $0x10] sm:$0xff] %vm4988_vm13, %v10179_v1 }
  0x7c   : > { %v1082_v50 = vld [vmem:[#allocation2 + $0x30] sm:$0xff]  ;;  %v1083_v55 = vld [vmem:[#allocation2 + $0x38] sm:$0xff]  ;;  %v2237_v63 = vld [vmem:[#allocation2 + $0x44] sm:$0xff]  ;;  %5184 = vst.msk [vmem:[#allocation4 + $0x18] sm:$0xff] %vm4988_vm13, %v10179_v1 }
  0x7d   : > { %1118 = vst.msk [vmem:[#allocation3 + $0x30] sm:$0xff] %vm1001_vm0, %v1082_v50  ;;  %v1803_v54 = vld [vmem:[#allocation2 + $0x33] sm:$0xff]  ;;  %1119 = vst.msk [vmem:[#allocation3 + $0x38] sm:$0xff] %vm1001_vm0, %v1083_v55  ;;  %v1804_v59 = vld [vmem:[#allocation2 + $0x3b] sm:$0xff] }
  0x7e   : > { %1226 = vrot.lane.b32.xlu0 %v1151_v24, %s10181_s0  ;;  %v2669_v57 = vld [vmem:[#allocation2 + $0x36] sm:$0xff]  ;;  %v2670_v60 = vld [vmem:[#allocation2 + $0x3e] sm:$0xff]  ;;  %v2238_v4 = vld [vmem:[#allocation2 + $0x4c] sm:$0xff]  ;;  %5185 = vst.msk [vmem:[#allocation4 + $0x20] sm:$0xff] %vm4988_vm13, %v10179_v1 }
  0x7f   : > { %1441 = vrot.lane.b32.xlu1 %v1582_v19, %s10180_s2  ;;  %v1154_v58 = vld [vmem:[#allocation2 + $0x31] sm:$0xff]  ;;  %v1155_v62 = vld [vmem:[#allocation2 + $0x39] sm:$0xff]  ;;  %v1588_v2 = vld [vmem:[#allocation2 + $0x42] sm:$0xff]  ;;  %5186 = vst.msk [vmem:[#allocation4 + $0x28] sm:$0xff] %vm4988_vm13, %v10179_v1 }
  0x80   : > { %v1084_v3 = vld [vmem:[#allocation2 + $0x40] sm:$0xff]  ;;  %v1589_v6 = vld [vmem:[#allocation2 + $0x4a] sm:$0xff]  ;;  %v1590_v22 = vld [vmem:[#allocation2 + $0x52] sm:$0xff]  ;;  %5187 = vst.msk [vmem:[#allocation4 + $0x30] sm:$0xff] %vm4988_vm13, %v10179_v1 }
  0x81   : > { %v2454_v5 = vld [vmem:[#allocation2 + $0x45] sm:$0xff]  ;;  %1120 = vst.msk [vmem:[#allocation3 + $0x40] sm:$0xff] %vm1001_vm0, %v1084_v3  ;;  %v2455_v9 = vld [vmem:[#allocation2 + $0x4d] sm:$0xff]  ;;  %v2456_v27 = vld [vmem:[#allocation2 + $0x55] sm:$0xff] }
  0x82   : > { %2090 = vrot.lane.b32.xlu0 %v2017_v25, %s13218_s16  ;;  %v1805_v7 = vld [vmem:[#allocation2 + $0x43] sm:$0xff]  ;;  %v1806_v12 = vld [vmem:[#allocation2 + $0x4b] sm:$0xff]  ;;  %v1591_v30 = vld [vmem:[#allocation2 + $0x5a] sm:$0xff]  ;;  %5188 = vst.msk [vmem:[#allocation4 + $0x38] sm:$0xff] %vm4988_vm13, %v10179_v1 }
  0x83   : > { %2305 = vrot.lane.b32.xlu1 %v2233_v26, %s13215_s18  ;;  %v1085_v8 = vld [vmem:[#allocation2 + $0x48] sm:$0xff]  ;;  %v985_v21 = vld [vmem:[%s10482_s1 + $0x80] sm:$0xff]  ;;  %v1086_v25 = vld [vmem:[#allocation2 + $0x50] sm:$0xff]  ;;  %5189 = vst.msk [vmem:[#allocation4 + $0x40] sm:$0xff] %vm4988_vm13, %v10179_v1 }
  0x84   : > { %v2671_v10 = vld [vmem:[#allocation2 + $0x46] sm:$0xff]  ;;  %1121 = vst.msk [vmem:[#allocation3 + $0x48] sm:$0xff] %vm1001_vm0, %v1085_v8  ;;  %v2672_v13 = vld [vmem:[#allocation2 + $0x4e] sm:$0xff]  ;;  %1060 = vst.msk [vmem:[#allocation2 + $0xa3] sm:$0xff] %vm1001_vm0, %v985_v21 }
  0x85   : > { %v1156_v11 = vld [vmem:[#allocation2 + $0x41] sm:$0xff]  ;;  %v1157_v15 = vld [vmem:[#allocation2 + $0x49] sm:$0xff]  ;;  %1122 = vst.msk [vmem:[#allocation3 + $0x50] sm:$0xff] %vm1001_vm0, %v1086_v25  ;;  %v1807_v31 = vld [vmem:[#allocation2 + $0x53] sm:$0xff] }
  0x86   : > { %1443 = vrot.lane.b32.xlu0 %v1583_v18, %s10180_s2  ;;  %v2239_v18 = vld [vmem:[#allocation2 + $0x54] sm:$0xff]  ;;  %v10628_v50 = vld [vmem:[#allocation2 + $0x64] sm:$0xff]  ;;  %5190 = vst.msk [vmem:[#allocation4 + $0x48] sm:$0xff] %vm4988_vm13, %v10179_v1  ;;  %5191 = vst.msk [vmem:[#allocation4 + $0x50] sm:$0xff] %vm4988_vm13, %v10179_v1 }
  0x87   : > { %1658 = vrot.lane.b32.xlu1 %v1584_v29, %s10182_s11  ;;  %v2673_v36 = vld [vmem:[#allocation2 + $0x56] sm:$0xff]  ;;  %v1593_v61 = vld [vmem:[#allocation2 + $0x6a] sm:$0xff]  ;;  %5192 = vst.msk [vmem:[#allocation4 + $0x58] sm:$0xff] %vm4988_vm13, %v10179_v1 }
  0x88   : > { %v990_v3 = vld [vmem:[%s10482_s1 + $0xa8] sm:$0xff]  ;;  %v987_v14 = vld [vmem:[%s10482_s1 + $0x90] sm:$0xff]  ;;  %1043 = vst.msk [vmem:[#allocation2 + $0x140] sm:$0x3f] %vm1042_vm1, %v10179_v1  ;;  %vm13216_vm1 = vcmask 1044484  }
  0x89   : > { %1065 = vst.msk [vmem:[#allocation2 + $0xcf] sm:$0xff] %vm1001_vm0, %v990_v3  ;;  %1062 = vst.msk [vmem:[#allocation2 + $0xb5] sm:$0xff] %vm1001_vm0, %v987_v14  ;;  %v10689_v25 = vld [vmem:[#allocation2 + $0x72] sm:$0xff] }
  0x8a   : > { %2307 = vrot.lane.b32.xlu0 %v2234_v32, %s13215_s18 }
  0x8b   : > { %2522 = vrot.lane.b32.xlu1 %v2450_v33, %s13214_s9 }
  0x8e   : > { %1660 = vrot.lane.b32.xlu0 %v1585_v34, %s10182_s11 }
  0x8f   : > { %1875 = vrot.lane.b32.xlu1 %v1801_v35, %s13217_s13  ;;  %v2457_v35 = vld [vmem:[#allocation2 + $0x5d] sm:$0xff] }
  0x92   : > { %2524 = vrot.lane.b32.xlu0 %v2451_v39, %s13214_s9  ;;  %v1158_v39 = vld [vmem:[#allocation2 + $0x51] sm:$0xff] }
  0x93   : > { %2739 = vrot.lane.b32.xlu1 %v2667_v40, %s10188_s23  ;;  %v1808_v40 = vld [vmem:[#allocation2 + $0x5b] sm:$0xff] }
  0x96   : > { %1228 = vrot.lane.b32.xlu0 %v1152_v43, %s10181_s0  ;;  %v2674_v43 = vld [vmem:[#allocation2 + $0x5e] sm:$0xff] }
  0x97   : > { %1877 = vrot.lane.b32.xlu1 %v1802_v44, %s13217_s13 }
  0x9a   : > { %2092 = vrot.lane.b32.xlu0 %v2233_v26, %s13218_s16  ;;  %v2240_v26 = vld [vmem:[#allocation2 + $0x5c] sm:$0xff] }
  0x9b   : > { %2741 = vrot.lane.b32.xlu1 %v2668_v45, %s10188_s23 }
  0x9e   : > { %1230 = vrot.lane.b32.xlu0 %v1153_v46, %s10181_s0  ;;  %v986_v46 = vld [vmem:[%s10482_s1 + $0x88] sm:$0xff] }
  0x9f   : > { %1445 = vrot.lane.b32.xlu1 %v1584_v29, %s10180_s2  ;;  %1061 = vst.msk [vmem:[#allocation2 + $0xab] sm:$0xff] %vm1001_vm0, %v986_v46  ;;  %v1162_v46 = vld [vmem:[#allocation2 + $0x71] sm:$0xff] }
  0xa2   : > { %2094 = vrot.lane.b32.xlu0 %v2234_v32, %s13218_s16 }
  0xa3   : > { %2309 = vrot.lane.b32.xlu1 %v2235_v47, %s13215_s18 }
  0xa6   : > { %1447 = vrot.lane.b32.xlu0 %v1585_v34, %s10180_s2  ;;  %v1087_v34 = vld [vmem:[#allocation2 + $0x58] sm:$0xff] }
  0xa7   : > { %1662 = vrot.lane.b32.xlu1 %v1586_v49, %s10182_s11  ;;  %1123 = vst.msk [vmem:[#allocation3 + $0x58] sm:$0xff] %vm1001_vm0, %v1087_v34  ;;  %v988_v34 = vld [vmem:[%s10482_s1 + $0x98] sm:$0xff] }
  0xa8   : > { %1063 = vst.msk [vmem:[#allocation2 + $0xbd] sm:$0xff] %vm1001_vm0, %v988_v34 }
  0xaa   : > { %2311 = vrot.lane.b32.xlu0 %v2236_v51, %s13215_s18 }
  0xab   : > { %2526 = vrot.lane.b32.xlu1 %v2452_v52, %s13214_s9 }
  0xae   : > { %1664 = vrot.lane.b32.xlu0 %v1587_v53, %s10182_s11 }
  0xaf   : > { %1879 = vrot.lane.b32.xlu1 %v1803_v54, %s13217_s13 }
  0xb2   : > { %2528 = vrot.lane.b32.xlu0 %v2453_v56, %s13214_s9  ;;  %v1088_v56 = vld [vmem:[#allocation2 + $0x60] sm:$0xff] }
  0xb3   : > { %2743 = vrot.lane.b32.xlu1 %v2669_v57, %s10188_s23  ;;  %v10642_v57 = vld [vmem:[#allocation2 + $0x6c] sm:$0xff]  ;;  %1124 = vst.msk [vmem:[#allocation3 + $0x60] sm:$0xff] %vm1001_vm0, %v1088_v56 }
  0xb6   : > { %1232 = vrot.lane.b32.xlu0 %v1154_v58, %s10181_s0  ;;  %v2458_v58 = vld [vmem:[#allocation2 + $0x65] sm:$0xff] }
  0xb7   : > { %1881 = vrot.lane.b32.xlu1 %v1804_v59, %s13217_s13 }
  0xba   : > { %2096 = vrot.lane.b32.xlu0 %v2235_v47, %s13218_s16  ;;  %v1159_v47 = vld [vmem:[#allocation2 + $0x59] sm:$0xff] }
  0xbb   : > { %2745 = vrot.lane.b32.xlu1 %v2670_v60, %s10188_s23 }
  0xbe   : > { %1234 = vrot.lane.b32.xlu0 %v1155_v62, %s10181_s0  ;;  %v1809_v62 = vld [vmem:[#allocation2 + $0x63] sm:$0xff] }
  0xbf   : > { %1449 = vrot.lane.b32.xlu1 %v1586_v49, %s10180_s2 }
  0xc2   : > { %2098 = vrot.lane.b32.xlu0 %v2236_v51, %s13218_s16 }
  0xc3   : > { %2313 = vrot.lane.b32.xlu1 %v2237_v63, %s13215_s18 }
  0xc6   : > { %1451 = vrot.lane.b32.xlu0 %v1587_v53, %s10180_s2  ;;  %v10635_v53 = vld [vmem:[#allocation2 + $0x62] sm:$0xff] }
  0xc7   : > { %1666 = vrot.lane.b32.xlu1 %v1588_v2, %s10182_s11 }
  0xca   : > { %2315 = vrot.lane.b32.xlu0 %v2238_v4, %s13215_s18 }
  0xcb   : > { %2530 = vrot.lane.b32.xlu1 %v2454_v5, %s13214_s9  ;;  %v2459_v5 = vld [vmem:[#allocation2 + $0x6d] sm:$0xff] }
  0xce   : > { %1668 = vrot.lane.b32.xlu0 %v1589_v6, %s10182_s11 }
  0xcf   : > { %1883 = vrot.lane.b32.xlu1 %v1805_v7, %s13217_s13 }
  0xd1   : > { %v1438_v16 = vpop.permute.xlu1 %1437 }
  0xd2   : > { %2532 = vrot.lane.b32.xlu0 %v2455_v9, %s13214_s9  ;;  %v1221_v17 = vpop.permute.xlu0 %1220  ;;  %v1160_v9 = vld [vmem:[#allocation2 + $0x61] sm:$0xff] }
  0xd3   : > { %2747 = vrot.lane.b32.xlu1 %v2671_v10, %s10188_s23  ;;  %1329 = vst.msk [vmem:[#allocation3] sm:$0xff] %vm1328_vm4, %v1221_v17  ;;  %v1810_v10 = vld [vmem:[#allocation2 + $0x6b] sm:$0xff] }
  0xd4   : > { %1546 = vst.msk [vmem:[#allocation3] sm:$0xff] %vm13210_vm5, %v1438_v16 }
  0xd5   : > { %v1440_v19 = vpop.permute.xlu1 %1439 }
  0xd6   : > { %1236 = vrot.lane.b32.xlu0 %v1156_v11, %s10181_s0  ;;  %v1223_v20 = vpop.permute.xlu0 %1222 }
  0xd7   : > { %1885 = vrot.lane.b32.xlu1 %v1806_v12, %s13217_s13  ;;  %1330 = vst.msk [vmem:[#allocation3 + $0x8] sm:$0xff] %vm1328_vm4, %v1223_v20 }
  0xd8   : > { %1547 = vst.msk [vmem:[#allocation3 + $0x8] sm:$0xff] %vm13210_vm5, %v1440_v19  ;;  %v1161_v19 = vld [vmem:[#allocation2 + $0x69] sm:$0xff] }
  0xda   : > { %2100 = vrot.lane.b32.xlu0 %v2237_v63, %s13218_s16 }
  0xdb   : > { %2749 = vrot.lane.b32.xlu1 %v2672_v13, %s10188_s23 }
  0xde   : > { %1238 = vrot.lane.b32.xlu0 %v1157_v15, %s10181_s0  ;;  %v2676_v15 = vld [vmem:[#allocation2 + $0x6e] sm:$0xff] }
  0xdf   : > { %1453 = vrot.lane.b32.xlu1 %v1588_v2, %s10180_s2 }
  0xe2   : > { %2102 = vrot.lane.b32.xlu0 %v2238_v4, %s13218_s16  ;;  %v1089_v4 = vld [vmem:[#allocation2 + $0x68] sm:$0xff] }
  0xe3   : > { %2317 = vrot.lane.b32.xlu1 %v2239_v18, %s13215_s18  ;;  %1125 = vst.msk [vmem:[#allocation3 + $0x68] sm:$0xff] %vm1001_vm0, %v1089_v4 }
  0xe4   : > { %v1655_v24 = vpop.permute.xlu0 %1654 }
  0xe5   : > { %v1657_v23 = vpop.permute.xlu1 %1656  ;;  %1763 = vst.msk [vmem:[#allocation3] sm:$0xff] %vm1762_vm6, %v1655_v24 }
  0xe6   : > { %1764 = vst.msk [vmem:[#allocation3 + $0x8] sm:$0xff] %vm1762_vm6, %v1657_v23  ;;  %1455 = vrot.lane.b32.xlu0 %v1589_v6, %s10180_s2  ;;  %v2675_v6 = vld [vmem:[#allocation2 + $0x66] sm:$0xff] }
  0xe7   : > { %1670 = vrot.lane.b32.xlu1 %v1590_v22, %s10182_s11 }
  0xe8   : > { %v1872_v28 = vpop.permute.xlu0 %1871 }
  0xe9   : > { %v1225_v29 = vpop.permute.xlu1 %1224  ;;  %1980 = vst.msk [vmem:[#allocation3] sm:$0xff] %vm1979_vm7, %v1872_v28  ;;  %v992_v28 = vld [vmem:[%s10482_s1 + $0xb8] sm:$0xff] }
  0xea   : > { %1331 = vst.msk [vmem:[#allocation3 + $0x10] sm:$0xff] %vm1328_vm4, %v1225_v29  ;;  %2319 = vrot.lane.b32.xlu0 %v2240_v26, %s13215_s18  ;;  %v1090_v29 = vld [vmem:[#allocation2 + $0x70] sm:$0xff] }
  0xeb   : > { %2534 = vrot.lane.b32.xlu1 %v2456_v27, %s13214_s9  ;;  %1067 = vst.msk [vmem:[#allocation2 + $0xe1] sm:$0xff] %vm1001_vm0, %v992_v28  ;;  %1126 = vst.msk [vmem:[#allocation3 + $0x70] sm:$0xff] %vm1001_vm0, %v1090_v29  ;;  %v2247_v28 = vld [vmem:[#allocation2 + $0x94] sm:$0xff] }
  0xec   : > { %v1874_v32 = vpop.permute.xlu0 %1873 }
  0xed   : > { %v2089_v33 = vpop.permute.xlu1 %2088  ;;  %1981 = vst.msk [vmem:[#allocation3 + $0x8] sm:$0xff] %vm1979_vm7, %v1874_v32 }
  0xee   : > { %2197 = vst.msk [vmem:[#allocation3] sm:$0xff] %vm2196_vm8, %v2089_v33  ;;  %1672 = vrot.lane.b32.xlu0 %v1591_v30, %s10182_s11 }
  0xef   : > { %1887 = vrot.lane.b32.xlu1 %v1807_v31, %s13217_s13  ;;  %v2460_v31 = vld [vmem:[#allocation2 + $0x75] sm:$0xff] }
  0xf0   : > { %v1227_v37 = vpop.permute.xlu0 %1226 }
  0xf1   : > { %v1442_v38 = vpop.permute.xlu1 %1441  ;;  %1332 = vst.msk [vmem:[#allocation3 + $0x18] sm:$0xff] %vm1328_vm4, %v1227_v37 }
  0xf2   : > { %1548 = vst.msk [vmem:[#allocation3 + $0x10] sm:$0xff] %vm13210_vm5, %v1442_v38  ;;  %2536 = vrot.lane.b32.xlu0 %v2457_v35, %s13214_s9  ;;  %v1595_v35 = vld [vmem:[#allocation2 + $0x7a] sm:$0xff] }
  0xf3   : > { %2751 = vrot.lane.b32.xlu1 %v2673_v36, %s10188_s23  ;;  %v1811_v36 = vld [vmem:[#allocation2 + $0x73] sm:$0xff] }
  0xf4   : > { %v2091_v41 = vpop.permute.xlu0 %2090 }
  0xf5   : > { %v2306_v42 = vpop.permute.xlu1 %2305  ;;  %2198 = vst.msk [vmem:[#allocation3 + $0x8] sm:$0xff] %vm2196_vm8, %v2091_v41  ;;  %v2461_v41 = vld [vmem:[#allocation2 + $0x7d] sm:$0xff] }
  0xf6   : > { %2414 = vst.msk [vmem:[#allocation3] sm:$0xff] %vm2413_vm9, %v2306_v42  ;;  %1240 = vrot.lane.b32.xlu0 %v1158_v39, %s10181_s0  ;;  %v2677_v42 = vld [vmem:[#allocation2 + $0x76] sm:$0xff] }
  0xf7   : > { %1889 = vrot.lane.b32.xlu1 %v1808_v40, %s13217_s13  ;;  %v1091_v40 = vld [vmem:[#allocation2 + $0x78] sm:$0xff] }
  0xf8   : > { %v1444_v44 = vpop.permute.xlu0 %1443  ;;  %1127 = vst.msk [vmem:[#allocation3 + $0x78] sm:$0xff] %vm1001_vm0, %v1091_v40  ;;  %v10801_v40 = vld [vmem:[#allocation2 + $0x9a] sm:$0xff] }
  0xf9   : > { %v1659_v45 = vpop.permute.xlu1 %1658  ;;  %1549 = vst.msk [vmem:[#allocation3 + $0x18] sm:$0xff] %vm13210_vm5, %v1444_v44 }
  0xfa   : > { %1765 = vst.msk [vmem:[#allocation3 + $0x10] sm:$0xff] %vm1762_vm6, %v1659_v45  ;;  %2104 = vrot.lane.b32.xlu0 %v2239_v18, %s13218_s16  ;;  %v991_v18 = vld [vmem:[%s10482_s1 + $0xb0] sm:$0xff]  ;;  %v993_v45 = vld [vmem:[%s10482_s1 + $0xc0] sm:$0xff] }
  0xfb   : > { %2753 = vrot.lane.b32.xlu1 %v2674_v43, %s10188_s23  ;;  %1066 = vst.msk [vmem:[#allocation2 + $0xd9] sm:$0xff] %vm1001_vm0, %v991_v18  ;;  %1068 = vst.msk [vmem:[#allocation2 + $0xeb] sm:$0xff] %vm1001_vm0, %v993_v45  ;;  %v2465_v45 = vld [vmem:[#allocation2 + $0x9d] sm:$0xff] }
  0xfc   : > { %v2308_v48 = vpop.permute.xlu0 %2307 }
  0xfd   : > { %v2523_v49 = vpop.permute.xlu1 %2522  ;;  %2415 = vst.msk [vmem:[#allocation3 + $0x8] sm:$0xff] %vm2413_vm9, %v2308_v48 }
  0xfe   : > { %2631 = vst.msk [vmem:[#allocation3] sm:$0xff] %vm2630_vm10, %v2523_v49  ;;  %1242 = vrot.lane.b32.xlu0 %v1159_v47, %s10181_s0  ;;  %v1812_v47 = vld [vmem:[#allocation2 + $0x7b] sm:$0xff] }
  0xff   : > { %1457 = vrot.lane.b32.xlu1 %v1590_v22, %s10180_s2  ;;  %v10681_v22 = vld [vmem:[#allocation2 + $0x74] sm:$0xff] }
 0x100   : > { %v1661_v51 = vpop.permute.xlu0 %1660 }
 0x101   : > { %v1876_v52 = vpop.permute.xlu1 %1875  ;;  %1766 = vst.msk [vmem:[#allocation3 + $0x18] sm:$0xff] %vm1762_vm6, %v1661_v51  ;;  %v2678_v51 = vld [vmem:[#allocation2 + $0x7e] sm:$0xff] }
 0x102   : > { %1982 = vst.msk [vmem:[#allocation3 + $0x10] sm:$0xff] %vm1979_vm7, %v1876_v52  ;;  %2106 = vrot.lane.b32.xlu0 %v2240_v26, %s13218_s16 }
 0x103   : > { %2321 = vrot.lane.b32.xlu1 %v10628_v50, %s13215_s18 }
 0x104   : > { %v2525_v54 = vpop.permute.xlu0 %2524 }
 0x105   : > { %v2740_v55 = vpop.permute.xlu1 %2739  ;;  %2632 = vst.msk [vmem:[#allocation3 + $0x8] sm:$0xff] %vm2630_vm10, %v2525_v54  ;;  %v1163_v54 = vld [vmem:[#allocation2 + $0x79] sm:$0xff] }
 0x106   : > { %2848 = vst.msk [vmem:[#allocation3] sm:$0xff] %vm2847_vm11, %v2740_v55  ;;  %1459 = vrot.lane.b32.xlu0 %v1591_v30, %s10180_s2  ;;  %v2244_v30 = vld [vmem:[#allocation2 + $0x7c] sm:$0xff] }
 0x107   : > { %1674 = vrot.lane.b32.xlu1 %v10635_v53, %s10182_s11 }
 0x108   : > { %v1229_v59 = vpop.permute.xlu0 %1228 }
 0x109   : > { %v1878_v60 = vpop.permute.xlu1 %1877  ;;  %1333 = vst.msk [vmem:[#allocation3 + $0x20] sm:$0xff] %vm1328_vm4, %v1229_v59 }
 0x10a   : > { %1983 = vst.msk [vmem:[#allocation3 + $0x18] sm:$0xff] %vm1979_vm7, %v1878_v60  ;;  %2323 = vrot.lane.b32.xlu0 %v10642_v57, %s13215_s18  ;;  %v10739_v60 = vld [vmem:[#allocation2 + $0x82] sm:$0xff] }
 0x10b   : > { %2538 = vrot.lane.b32.xlu1 %v2458_v58, %s13214_s9 }
 0x10c   : > { %v2093_v63 = vpop.permute.xlu0 %2092 }
 0x10d   : > { %v2742_v0 = vpop.permute.xlu1 %2741  ;;  %v2884_v2 = vld [vmem:[#allocation3] sm:$0xff]  ;;  %2199 = vst.msk [vmem:[#allocation3 + $0x10] sm:$0xff] %vm2196_vm8, %v2093_v63  ;;  %v1092_v63 = vld [vmem:[#allocation2 + $0x80] sm:$0xff] }
 0x10e   : > { %2849 = vst.msk [vmem:[#allocation3 + $0x8] sm:$0xff] %vm2847_vm11, %v2742_v0  ;;  %9427 = vmatprep.mubr.msk.f32.mxu0 %vm2929_vm12, %v2884_v2  ;;  %1676 = vrot.lane.b32.xlu0 %v1593_v61, %s10182_s11  ;;  %v2246_v0 = vld [vmem:[#allocation2 + $0x8c] sm:$0xff] }
 0x10f   : > { %1891 = vrot.lane.b32.xlu1 %v1809_v62, %s13217_s13  ;;  %v2462_v2 = vld [vmem:[#allocation2 + $0x85] sm:$0xff]  ;;  %1128 = vst.msk [vmem:[#allocation3 + $0x80] sm:$0xff] %vm1001_vm0, %v1092_v63 }
 0x110   : > { %v1231_v7 = vpop.permute.xlu0 %1230 }
 0x111   : > { %v1446_v8 = vpop.permute.xlu1 %1445  ;;  %1334 = vst.msk [vmem:[#allocation3 + $0x28] sm:$0xff] %vm1328_vm4, %v1231_v7 }
 0x112   : > { %1550 = vst.msk [vmem:[#allocation3 + $0x20] sm:$0xff] %vm13210_vm5, %v1446_v8  ;;  %2540 = vrot.lane.b32.xlu0 %v2459_v5, %s13214_s9  ;;  %v1597_v5 = vld [vmem:[#allocation2 + $0x8a] sm:$0xff] }
 0x113   : > { %2755 = vrot.lane.b32.xlu1 %v2675_v6, %s10188_s23  ;;  %v1813_v6 = vld [vmem:[#allocation2 + $0x83] sm:$0xff] }
 0x114   : > { %v2095_v11 = vpop.permute.xlu0 %2094 }
 0x115   : > { %v2310_v12 = vpop.permute.xlu1 %2309  ;;  %v2885_v13 = vld [vmem:[#allocation3 + $0x8] sm:$0xff]  ;;  %2200 = vst.msk [vmem:[#allocation3 + $0x18] sm:$0xff] %vm2196_vm8, %v2095_v11 }
 0x116   : > { %2416 = vst.msk [vmem:[#allocation3 + $0x10] sm:$0xff] %vm2413_vm9, %v2310_v12  ;;  %9428 = vmatmul.mubr.msk.f32.vlgmr.msra.gmra.mrb[0].mxu0 %vm2929_vm12, %v2885_v13  ;;  %1244 = vrot.lane.b32.xlu0 %v1160_v9, %s10181_s0  ;;  %v2463_v11 = vld [vmem:[#allocation2 + $0x8d] sm:$0xff] }
 0x117   : > { %1893 = vrot.lane.b32.xlu1 %v1810_v10, %s13217_s13  ;;  %v1093_v10 = vld [vmem:[#allocation2 + $0x88] sm:$0xff] }
 0x118   : > { %v1448_v16 = vpop.permute.xlu0 %1447  ;;  %v2679_v12 = vld [vmem:[#allocation2 + $0x86] sm:$0xff]  ;;  %1129 = vst.msk [vmem:[#allocation3 + $0x88] sm:$0xff] %vm1001_vm0, %v1093_v10  ;;  %v1102_v10 = vld [vmem:[#allocation2 + $0xd0] sm:$0xff] }
 0x119   : > { %v1663_v17 = vpop.permute.xlu1 %1662  ;;  %1551 = vst.msk [vmem:[#allocation3 + $0x28] sm:$0xff] %vm13210_vm5, %v1448_v16  ;;  %v1164_v16 = vld [vmem:[#allocation2 + $0x81] sm:$0xff] }
 0x11a   : > { %1767 = vst.msk [vmem:[#allocation3 + $0x20] sm:$0xff] %vm1762_vm6, %v1663_v17  ;;  %2108 = vrot.lane.b32.xlu0 %v10628_v50, %s13218_s16  ;;  %v1814_v17 = vld [vmem:[#allocation2 + $0x8b] sm:$0xff] }
 0x11b   : > { %2757 = vrot.lane.b32.xlu1 %v2676_v15, %s10188_s23  ;;  %v994_v15 = vld [vmem:[%s10482_s1 + $0xc8] sm:$0xff]  ;;  %1138 = vst.msk [vmem:[#allocation3 + $0xd0] sm:$0xff] %vm1001_vm0, %v1102_v10  ;;  %v1820_v10 = vld [vmem:[#allocation2 + $0xbb] sm:$0xff] }
 0x11c   : > { %v2312_v20 = vpop.permute.xlu0 %2311  ;;  %1069 = vst.msk [vmem:[#allocation2 + $0xf3] sm:$0xff] %vm1001_vm0, %v994_v15 }
 0x11d   : > { %v2527_v21 = vpop.permute.xlu1 %2526  ;;  %2417 = vst.msk [vmem:[#allocation3 + $0x18] sm:$0xff] %vm2413_vm9, %v2312_v20 }
 0x11e   : > { %2633 = vst.msk [vmem:[#allocation3 + $0x10] sm:$0xff] %vm2630_vm10, %v2527_v21  ;;  %1246 = vrot.lane.b32.xlu0 %v1161_v19, %s10181_s0  ;;  %v989_v21 = vld [vmem:[%s10482_s1 + $0xa0] sm:$0xff] }
 0x11f   : > { %1461 = vrot.lane.b32.xlu1 %v10635_v53, %s10180_s2  ;;  %1064 = vst.msk [vmem:[#allocation2 + $0xc7] sm:$0xff] %vm1001_vm0, %v989_v21  ;;  %v1174_v21 = vld [vmem:[#allocation2 + $0xd1] sm:$0xff] }
 0x120   : > { %v1665_v23 = vpop.permute.xlu0 %1664 }
 0x121   : > { %v1880_v24 = vpop.permute.xlu1 %1879  ;;  %1768 = vst.msk [vmem:[#allocation3 + $0x28] sm:$0xff] %vm1762_vm6, %v1665_v23 }
 0x122   : > { %1984 = vst.msk [vmem:[#allocation3 + $0x20] sm:$0xff] %vm1979_vm7, %v1880_v24  ;;  %2110 = vrot.lane.b32.xlu0 %v10642_v57, %s13218_s16  ;;  %v10732_v57 = vld [vmem:[#allocation2 + $0x84] sm:$0xff] }
 0x123   : > { %2325 = vrot.lane.b32.xlu1 %v10681_v22, %s13215_s18 }
 0x124   : > { %v2529_v26 = vpop.permute.xlu0 %2528 }
 0x125   : > { %v2744_v27 = vpop.permute.xlu1 %2743  ;;  %2634 = vst.msk [vmem:[#allocation3 + $0x18] sm:$0xff] %vm2630_vm10, %v2529_v26 }
 0x126   : > { %2850 = vst.msk [vmem:[#allocation3 + $0x10] sm:$0xff] %vm2847_vm11, %v2744_v27  ;;  %1463 = vrot.lane.b32.xlu0 %v1593_v61, %s10180_s2 }
 0x127   : > { %1678 = vrot.lane.b32.xlu1 %v10689_v25, %s10182_s11 }
 0x128   : > { %v1233_v32 = vpop.permute.xlu0 %1232 }
 0x129   : > { %v1882_v33 = vpop.permute.xlu1 %1881  ;;  %1335 = vst.msk [vmem:[#allocation3 + $0x30] sm:$0xff] %vm1328_vm4, %v1233_v32  ;;  %v995_v32 = vld [vmem:[%s10482_s1 + $0xd0] sm:$0xff] }
 0x12a   : > { %1985 = vst.msk [vmem:[#allocation3 + $0x28] sm:$0xff] %vm1979_vm7, %v1882_v33  ;;  %2327 = vrot.lane.b32.xlu0 %v2244_v30, %s13215_s18 }
 0x12b   : > { %2542 = vrot.lane.b32.xlu1 %v2460_v31, %s13214_s9  ;;  %v10784_v31 = vld [vmem:[#allocation2 + $0x92] sm:$0xff]  ;;  %1070 = vst.msk [vmem:[#allocation2 + $0xfd] sm:$0xff] %vm1001_vm0, %v995_v32 }
 0x12c   : > { %v2097_v37 = vpop.permute.xlu0 %2096 }
 0x12d   : > { %v2746_v38 = vpop.permute.xlu1 %2745  ;;  %v2886_v39 = vld [vmem:[#allocation3 + $0x10] sm:$0xff]  ;;  %2201 = vst.msk [vmem:[#allocation3 + $0x20] sm:$0xff] %vm2196_vm8, %v2097_v37 }
 0x12e   : > { %2851 = vst.msk [vmem:[#allocation3 + $0x18] sm:$0xff] %vm2847_vm11, %v2746_v38  ;;  %9430 = vmatprep.mubr.msk.f32.mxu0 %vm2929_vm12, %v2886_v39  ;;  %1680 = vrot.lane.b32.xlu0 %v1595_v35, %s10182_s11  ;;  %v2464_v37 = vld [vmem:[#allocation2 + $0x95] sm:$0xff] }
 0x12f   : > { %1895 = vrot.lane.b32.xlu1 %v1811_v36, %s13217_s13  ;;  %v10793_v36 = vld [vmem:[#allocation2 + $0x9c] sm:$0xff] }
 0x130   : > { %v1235_v43 = vpop.permute.xlu0 %1234 }
 0x131   : > { %v1450_v44 = vpop.permute.xlu1 %1449  ;;  %1336 = vst.msk [vmem:[#allocation3 + $0x38] sm:$0xff] %vm1328_vm4, %v1235_v43 }
 0x132   : > { %1552 = vst.msk [vmem:[#allocation3 + $0x30] sm:$0xff] %vm13210_vm5, %v1450_v44  ;;  %2544 = vrot.lane.b32.xlu0 %v2461_v41, %s13214_s9  ;;  %v1815_v41 = vld [vmem:[#allocation2 + $0x93] sm:$0xff] }
 0x133   : > { %2759 = vrot.lane.b32.xlu1 %v2677_v42, %s10188_s23 }
 0x134   : > { %v2099_v48 = vpop.permute.xlu0 %2098 }
 0x135   : > { %v2314_v49 = vpop.permute.xlu1 %2313  ;;  %v2887_v50 = vld [vmem:[#allocation3 + $0x18] sm:$0xff]  ;;  %2202 = vst.msk [vmem:[#allocation3 + $0x28] sm:$0xff] %vm2196_vm8, %v2099_v48 }
 0x136   : > { %2418 = vst.msk [vmem:[#allocation3 + $0x20] sm:$0xff] %vm2413_vm9, %v2314_v49  ;;  %9431 = vmatmul.mubr.msk.f32.gmra.mrb[2].mxu0 %vm2929_vm12, %v2887_v50  ;;  %1248 = vrot.lane.b32.xlu0 %v1162_v46, %s10181_s0  ;;  %v2681_v46 = vld [vmem:[#allocation2 + $0x96] sm:$0xff] }
 0x137   : > { %1897 = vrot.lane.b32.xlu1 %v1812_v47, %s13217_s13  ;;  %v1095_v49 = vld [vmem:[#allocation2 + $0x98] sm:$0xff] }
 0x138   : > { %v1452_v52 = vpop.permute.xlu0 %1451  ;;  %1131 = vst.msk [vmem:[#allocation3 + $0x98] sm:$0xff] %vm1001_vm0, %v1095_v49  ;;  %v1166_v50 = vld [vmem:[#allocation2 + $0x91] sm:$0xff]  ;;  %v10938_v49 = vld [vmem:[#allocation2 + $0xe2] sm:$0xff] }
 0x139   : > { %v1667_v53 = vpop.permute.xlu1 %1666  ;;  %1553 = vst.msk [vmem:[#allocation3 + $0x38] sm:$0xff] %vm13210_vm5, %v1452_v52 }
 0x13a   : > { %1769 = vst.msk [vmem:[#allocation3 + $0x30] sm:$0xff] %vm1762_vm6, %v1667_v53  ;;  %2112 = vrot.lane.b32.xlu0 %v10681_v22, %s13218_s16  ;;  %v2680_v22 = vld [vmem:[#allocation2 + $0x8e] sm:$0xff] }
 0x13b   : > { %2761 = vrot.lane.b32.xlu1 %v2678_v51, %s10188_s23  ;;  %v1816_v51 = vld [vmem:[#allocation2 + $0x9b] sm:$0xff] }
 0x13c   : > { %v2316_v55 = vpop.permute.xlu0 %2315 }
 0x13d   : > { %v2531_v56 = vpop.permute.xlu1 %2530  ;;  %2419 = vst.msk [vmem:[#allocation3 + $0x28] sm:$0xff] %vm2413_vm9, %v2316_v55  ;;  %v2682_v55 = vld [vmem:[#allocation2 + $0x9e] sm:$0xff] }
 0x13e   : > { %2635 = vst.msk [vmem:[#allocation3 + $0x20] sm:$0xff] %vm2630_vm10, %v2531_v56  ;;  %1250 = vrot.lane.b32.xlu0 %v1163_v54, %s10181_s0 }
 0x13f   : > { %1465 = vrot.lane.b32.xlu1 %v10689_v25, %s10180_s2  ;;  %v1165_v25 = vld [vmem:[#allocation2 + $0x89] sm:$0xff] }
 0x140   : > { %v1669_v58 = vpop.permute.xlu0 %1668 }
 0x141   : > { %v1884_v59 = vpop.permute.xlu1 %1883  ;;  %1770 = vst.msk [vmem:[#allocation3 + $0x38] sm:$0xff] %vm1762_vm6, %v1669_v58  ;;  %v1167_v58 = vld [vmem:[#allocation2 + $0x99] sm:$0xff] }
 0x142   : > { %1986 = vst.msk [vmem:[#allocation3 + $0x30] sm:$0xff] %vm1979_vm7, %v1884_v59  ;;  %2114 = vrot.lane.b32.xlu0 %v2244_v30, %s13218_s16 }
 0x143   : > { %2329 = vrot.lane.b32.xlu1 %v10732_v57, %s13215_s18 }
 0x144   : > { %v2533_v61 = vpop.permute.xlu0 %2532 }
 0x145   : > { %v2748_v62 = vpop.permute.xlu1 %2747  ;;  %2636 = vst.msk [vmem:[#allocation3 + $0x28] sm:$0xff] %vm2630_vm10, %v2533_v61  ;;  %v10852_v61 = vld [vmem:[#allocation2 + $0xa4] sm:$0xff] }
 0x146   : > { %2852 = vst.msk [vmem:[#allocation3 + $0x20] sm:$0xff] %vm2847_vm11, %v2748_v62  ;;  %1467 = vrot.lane.b32.xlu0 %v1595_v35, %s10180_s2  ;;  %v1094_v35 = vld [vmem:[#allocation2 + $0x90] sm:$0xff] }
 0x147   : > { %1682 = vrot.lane.b32.xlu1 %v10739_v60, %s10182_s11  ;;  %1130 = vst.msk [vmem:[#allocation3 + $0x90] sm:$0xff] %vm1001_vm0, %v1094_v35 }
 0x148   : > { %v1237_v3 = vpop.permute.xlu0 %1236 }
 0x149   : > { %v1886_v4 = vpop.permute.xlu1 %1885  ;;  %1337 = vst.msk [vmem:[#allocation3 + $0x40] sm:$0xff] %vm1328_vm4, %v1237_v3 }
 0x14a   : > { %1987 = vst.msk [vmem:[#allocation3 + $0x38] sm:$0xff] %vm1979_vm7, %v1886_v4  ;;  %2331 = vrot.lane.b32.xlu0 %v2246_v0, %s13215_s18  ;;  %v10868_v4 = vld [vmem:[#allocation2 + $0xac] sm:$0xff] }
 0x14b   : > { %2546 = vrot.lane.b32.xlu1 %v2462_v2, %s13214_s9 }
 0x14c   : > { %v2101_v7 = vpop.permute.xlu0 %2100 }
 0x14d   : > { %v2750_v8 = vpop.permute.xlu1 %2749  ;;  %v2888_v9 = vld [vmem:[#allocation3 + $0x20] sm:$0xff]  ;;  %2203 = vst.msk [vmem:[#allocation3 + $0x30] sm:$0xff] %vm2196_vm8, %v2101_v7 }
 0x14e   : > { %2853 = vst.msk [vmem:[#allocation3 + $0x28] sm:$0xff] %vm2847_vm11, %v2750_v8  ;;  %9433 = vmatprep.mubr.msk.f32.mxu0 %vm2929_vm12, %v2888_v9  ;;  %1684 = vrot.lane.b32.xlu0 %v1597_v5, %s10182_s11  ;;  %v996_v9 = vld [vmem:[%s10482_s1 + $0xd8] sm:$0xff] }
 0x14f   : > { %1899 = vrot.lane.b32.xlu1 %v1813_v6, %s13217_s13  ;;  %v1096_v6 = vld [vmem:[#allocation2 + $0xa0] sm:$0xff]  ;;  %1071 = vst.msk [vmem:[#allocation2 + $0x105] sm:$0xff] %vm1001_vm0, %v996_v9 }
 0x150   : > { %v1239_v13 = vpop.permute.xlu0 %1238  ;;  %1132 = vst.msk [vmem:[#allocation3 + $0xa0] sm:$0xff] %vm1001_vm0, %v1096_v6  ;;  %v1170_v6 = vld [vmem:[#allocation2 + $0xb1] sm:$0xff]  ;;  %v1176_v9 = vld [vmem:[#allocation2 + $0xe1] sm:$0xff] }
 0x151   : > { %v1454_v14 = vpop.permute.xlu1 %1453  ;;  %1338 = vst.msk [vmem:[#allocation3 + $0x48] sm:$0xff] %vm1328_vm4, %v1239_v13 }
 0x152   : > { %1554 = vst.msk [vmem:[#allocation3 + $0x40] sm:$0xff] %vm13210_vm5, %v1454_v14  ;;  %2548 = vrot.lane.b32.xlu0 %v2463_v11, %s13214_s9  ;;  %v10879_v11 = vld [vmem:[#allocation2 + $0xaa] sm:$0xff] }
 0x153   : > { %2763 = vrot.lane.b32.xlu1 %v2679_v12, %s10188_s23  ;;  %v1817_v12 = vld [vmem:[#allocation2 + $0xa3] sm:$0xff] }
 0x154   : > { %v2103_v18 = vpop.permute.xlu0 %2102 }
 0x155   : > { %v2318_v19 = vpop.permute.xlu1 %2317  ;;  %v2889_v20 = vld [vmem:[#allocation3 + $0x28] sm:$0xff]  ;;  %2204 = vst.msk [vmem:[#allocation3 + $0x38] sm:$0xff] %vm2196_vm8, %v2103_v18 }
 0x156   : > { %2420 = vst.msk [vmem:[#allocation3 + $0x30] sm:$0xff] %vm2413_vm9, %v2318_v19  ;;  %9434 = vmatmul.mubr.msk.f32.gmra.mrb[4].mxu0 %vm2929_vm12, %v2889_v20  ;;  %1252 = vrot.lane.b32.xlu0 %v1164_v16, %s10181_s0  ;;  %v2467_v16 = vld [vmem:[#allocation2 + $0xad] sm:$0xff]  ;;  %v1168_v20 = vld [vmem:[#allocation2 + $0xa1] sm:$0xff] }
 0x157   : > { %1901 = vrot.lane.b32.xlu1 %v1814_v17, %s13217_s13  ;;  %v2683_v17 = vld [vmem:[#allocation2 + $0xa6] sm:$0xff] }
 0x158   : > { %v1456_v23 = vpop.permute.xlu0 %1455 }
 0x159   : > { %v1671_v24 = vpop.permute.xlu1 %1670  ;;  %1555 = vst.msk [vmem:[#allocation3 + $0x48] sm:$0xff] %vm13210_vm5, %v1456_v23 }
 0x15a   : > { %1771 = vst.msk [vmem:[#allocation3 + $0x40] sm:$0xff] %vm1762_vm6, %v1671_v24  ;;  %2116 = vrot.lane.b32.xlu0 %v10732_v57, %s13218_s16 }
 0x15b   : > { %2765 = vrot.lane.b32.xlu1 %v2680_v22, %s10188_s23  ;;  %v1097_v22 = vld [vmem:[#allocation2 + $0xa8] sm:$0xff] }
 0x15c   : > { %v2320_v26 = vpop.permute.xlu0 %2319  ;;  %1133 = vst.msk [vmem:[#allocation3 + $0xa8] sm:$0xff] %vm1001_vm0, %v1097_v22 }
 0x15d   : > { %v2535_v27 = vpop.permute.xlu1 %2534  ;;  %2421 = vst.msk [vmem:[#allocation3 + $0x38] sm:$0xff] %vm2413_vm9, %v2320_v26  ;;  %v1103_v26 = vld [vmem:[#allocation2 + $0xd8] sm:$0xff] }
 0x15e   : > { %2637 = vst.msk [vmem:[#allocation3 + $0x30] sm:$0xff] %vm2630_vm10, %v2535_v27  ;;  %1254 = vrot.lane.b32.xlu0 %v1165_v25, %s10181_s0  ;;  %v1818_v27 = vld [vmem:[#allocation2 + $0xab] sm:$0xff] }
 0x15f   : > { %1469 = vrot.lane.b32.xlu1 %v10739_v60, %s10180_s2  ;;  %1139 = vst.msk [vmem:[#allocation3 + $0xd8] sm:$0xff] %vm1001_vm0, %v1103_v26 }
 0x160   : > { %v1673_v29 = vpop.permute.xlu0 %1672 }
 0x161   : > { %v1888_v30 = vpop.permute.xlu1 %1887  ;;  %1772 = vst.msk [vmem:[#allocation3 + $0x48] sm:$0xff] %vm1762_vm6, %v1673_v29 }
 0x162   : > { %1988 = vst.msk [vmem:[#allocation3 + $0x40] sm:$0xff] %vm1979_vm7, %v1888_v30  ;;  %2118 = vrot.lane.b32.xlu0 %v2246_v0, %s13218_s16  ;;  %v10860_v0 = vld [vmem:[#allocation2 + $0xa2] sm:$0xff]  ;;  %v2684_v30 = vld [vmem:[#allocation2 + $0xae] sm:$0xff] }
 0x163   : > { %2333 = vrot.lane.b32.xlu1 %v2247_v28, %s13215_s18 }
 0x164   : > { %v2537_v33 = vpop.permute.xlu0 %2536 }
 0x165   : > { %v2752_v34 = vpop.permute.xlu1 %2751  ;;  %2638 = vst.msk [vmem:[#allocation3 + $0x38] sm:$0xff] %vm2630_vm10, %v2537_v33 }
 0x166   : > { %2854 = vst.msk [vmem:[#allocation3 + $0x30] sm:$0xff] %vm2847_vm11, %v2752_v34  ;;  %1471 = vrot.lane.b32.xlu0 %v1597_v5, %s10180_s2  ;;  %v2466_v5 = vld [vmem:[#allocation2 + $0xa5] sm:$0xff]  ;;  %v1175_v34 = vld [vmem:[#allocation2 + $0xd9] sm:$0xff] }
 0x167   : > { %1686 = vrot.lane.b32.xlu1 %v10784_v31, %s10182_s11 }
 0x168   : > { %v1241_v38 = vpop.permute.xlu0 %1240 }
 0x169   : > { %v1890_v39 = vpop.permute.xlu1 %1889  ;;  %1339 = vst.msk [vmem:[#allocation3 + $0x50] sm:$0xff] %vm1328_vm4, %v1241_v38 }
 0x16a   : > { %1989 = vst.msk [vmem:[#allocation3 + $0x48] sm:$0xff] %vm1979_vm7, %v1890_v39  ;;  %2335 = vrot.lane.b32.xlu0 %v10793_v36, %s13215_s18 }
 0x16b   : > { %2550 = vrot.lane.b32.xlu1 %v2464_v37, %s13214_s9  ;;  %v10912_v37 = vld [vmem:[#allocation2 + $0xd2] sm:$0xff] }
 0x16c   : > { %v2105_v42 = vpop.permute.xlu0 %2104 }
 0x16d   : > { %v2754_v43 = vpop.permute.xlu1 %2753  ;;  %v2890_v44 = vld [vmem:[#allocation3 + $0x30] sm:$0xff]  ;;  %2205 = vst.msk [vmem:[#allocation3 + $0x40] sm:$0xff] %vm2196_vm8, %v2105_v42 }
 0x16e   : > { %2855 = vst.msk [vmem:[#allocation3 + $0x38] sm:$0xff] %vm2847_vm11, %v2754_v43  ;;  %9436 = vmatprep.mubr.msk.f32.mxu0 %vm2929_vm12, %v2890_v44  ;;  %1688 = vrot.lane.b32.xlu0 %v10801_v40, %s10182_s11  ;;  %v1392_v44 = vld [vmem:[#allocation2 + $0xda] sm:$0xff] }
 0x16f   : > { %1903 = vrot.lane.b32.xlu1 %v1815_v41, %s13217_s13  ;;  %v10922_v41 = vld [vmem:[#allocation2 + $0xb4] sm:$0xff] }
 0x170   : > { %v1243_v47 = vpop.permute.xlu0 %1242 }
 0x171   : > { %v1458_v48 = vpop.permute.xlu1 %1457  ;;  %1340 = vst.msk [vmem:[#allocation3 + $0x58] sm:$0xff] %vm1328_vm4, %v1243_v47 }
 0x172   : > { %1556 = vst.msk [vmem:[#allocation3 + $0x50] sm:$0xff] %vm13210_vm5, %v1458_v48  ;;  %2552 = vrot.lane.b32.xlu0 %v2465_v45, %s13214_s9  ;;  %v10930_v45 = vld [vmem:[#allocation2 + $0xb2] sm:$0xff] }
 0x173   : > { %2767 = vrot.lane.b32.xlu1 %v2681_v46, %s10188_s23 }
 0x174   : > { %v2107_v52 = vpop.permute.xlu0 %2106 }
 0x175   : > { %v2322_v53 = vpop.permute.xlu1 %2321  ;;  %v2891_v54 = vld [vmem:[#allocation3 + $0x38] sm:$0xff]  ;;  %2206 = vst.msk [vmem:[#allocation3 + $0x48] sm:$0xff] %vm2196_vm8, %v2107_v52 }
 0x176   : > { %2422 = vst.msk [vmem:[#allocation3 + $0x40] sm:$0xff] %vm2413_vm9, %v2322_v53  ;;  %9437 = vmatmul.mubr.msk.f32.gmra.mrb[6].mxu0 %vm2929_vm12, %v2891_v54  ;;  %1256 = vrot.lane.b32.xlu0 %v1166_v50, %s10181_s0  ;;  %v10940_v50 = vld [vmem:[#allocation2 + $0xbc] sm:$0xff] }
 0x177   : > { %1905 = vrot.lane.b32.xlu1 %v1816_v51, %s13217_s13  ;;  %v2468_v53 = vld [vmem:[#allocation2 + $0xb5] sm:$0xff] }
 0x178   : > { %v1460_v56 = vpop.permute.xlu0 %1459  ;;  %v10948_v54 = vld [vmem:[#allocation2 + $0xba] sm:$0xff] }
 0x179   : > { %v1675_v57 = vpop.permute.xlu1 %1674  ;;  %1557 = vst.msk [vmem:[#allocation3 + $0x58] sm:$0xff] %vm13210_vm5, %v1460_v56 }
 0x17a   : > { %1773 = vst.msk [vmem:[#allocation3 + $0x50] sm:$0xff] %vm1762_vm6, %v1675_v57  ;;  %2120 = vrot.lane.b32.xlu0 %v2247_v28, %s13218_s16 }
 0x17b   : > { %2769 = vrot.lane.b32.xlu1 %v2682_v55, %s10188_s23 }
 0x17c   : > { %v2324_v59 = vpop.permute.xlu0 %2323 }
 0x17d   : > { %v2539_v60 = vpop.permute.xlu1 %2538  ;;  %2423 = vst.msk [vmem:[#allocation3 + $0x48] sm:$0xff] %vm2413_vm9, %v2324_v59  ;;  %v1819_v59 = vld [vmem:[#allocation2 + $0xb3] sm:$0xff] }
 0x17e   : > { %2639 = vst.msk [vmem:[#allocation3 + $0x40] sm:$0xff] %vm2630_vm10, %v2539_v60  ;;  %1258 = vrot.lane.b32.xlu0 %v1167_v58, %s10181_s0  ;;  %v10956_v58 = vld [vmem:[#allocation2 + $0xea] sm:$0xff] }
 0x17f   : > { %1473 = vrot.lane.b32.xlu1 %v10784_v31, %s10180_s2  ;;  %v1169_v31 = vld [vmem:[#allocation2 + $0xa9] sm:$0xff] }
 0x180   : > { %v1677_v62 = vpop.permute.xlu0 %1676  ;;  %v1098_v60 = vld [vmem:[#allocation2 + $0xb0] sm:$0xff] }
 0x181   : > { %v1892_v63 = vpop.permute.xlu1 %1891  ;;  %1774 = vst.msk [vmem:[#allocation3 + $0x58] sm:$0xff] %vm1762_vm6, %v1677_v62 }
 0x182   : > { %1990 = vst.msk [vmem:[#allocation3 + $0x50] sm:$0xff] %vm1979_vm7, %v1892_v63  ;;  %2122 = vrot.lane.b32.xlu0 %v10793_v36, %s13218_s16  ;;  %v1104_v63 = vld [vmem:[#allocation2 + $0xe0] sm:$0xff] }
 0x183   : > { %2337 = vrot.lane.b32.xlu1 %v10852_v61, %s13215_s18  ;;  %1134 = vst.msk [vmem:[#allocation3 + $0xb0] sm:$0xff] %vm1001_vm0, %v1098_v60  ;;  %1140 = vst.msk [vmem:[#allocation3 + $0xe0] sm:$0xff] %vm1001_vm0, %v1104_v63  ;;  %v2476_v63 = vld [vmem:[#allocation2 + $0xf5] sm:$0xff] }
 0x184   : > { %v2541_v2 = vpop.permute.xlu0 %2540 }
 0x185   : > { %v2756_v3 = vpop.permute.xlu1 %2755  ;;  %2640 = vst.msk [vmem:[#allocation3 + $0x48] sm:$0xff] %vm2630_vm10, %v2541_v2  ;;  %v2469_v2 = vld [vmem:[#allocation2 + $0xbd] sm:$0xff] }
 0x186   : > { %2856 = vst.msk [vmem:[#allocation3 + $0x40] sm:$0xff] %vm2847_vm11, %v2756_v3  ;;  %1475 = vrot.lane.b32.xlu0 %v10801_v40, %s10180_s2  ;;  %v997_v40 = vld [vmem:[%s10482_s1 + $0xe0] sm:$0xff] }
 0x187   : > { %1690 = vrot.lane.b32.xlu1 %v10860_v0, %s10182_s11  ;;  %1072 = vst.msk [vmem:[#allocation2 + $0x10f] sm:$0xff] %vm1001_vm0, %v997_v40 }
 0x188   : > { %v1245_v7 = vpop.permute.xlu0 %1244 }
 0x189   : > { %v1894_v8 = vpop.permute.xlu1 %1893  ;;  %1341 = vst.msk [vmem:[#allocation3 + $0x60] sm:$0xff] %vm1328_vm4, %v1245_v7 }
 0x18a   : > { %1991 = vst.msk [vmem:[#allocation3 + $0x58] sm:$0xff] %vm1979_vm7, %v1894_v8  ;;  %2339 = vrot.lane.b32.xlu0 %v10868_v4, %s13215_s18 }
 0x18b   : > { %2554 = vrot.lane.b32.xlu1 %v2466_v5, %s13214_s9  ;;  %v2685_v5 = vld [vmem:[#allocation2 + $0xb6] sm:$0xff] }
 0x18c   : > { %v2109_v13 = vpop.permute.xlu0 %2108 }
 0x18d   : > { %v2758_v14 = vpop.permute.xlu1 %2757  ;;  %v2892_v15 = vld [vmem:[#allocation3 + $0x40] sm:$0xff]  ;;  %2207 = vst.msk [vmem:[#allocation3 + $0x50] sm:$0xff] %vm2196_vm8, %v2109_v13 }
 0x18e   : > { %2857 = vst.msk [vmem:[#allocation3 + $0x48] sm:$0xff] %vm2847_vm11, %v2758_v14  ;;  %9439 = vmatprep.mubr.msk.f32.mxu0 %vm2929_vm12, %v2892_v15  ;;  %1692 = vrot.lane.b32.xlu0 %v10879_v11, %s10182_s11  ;;  %v1105_v14 = vld [vmem:[#allocation2 + $0xe8] sm:$0xff] }
 0x18f   : > { %1907 = vrot.lane.b32.xlu1 %v1817_v12, %s13217_s13  ;;  %1141 = vst.msk [vmem:[#allocation3 + $0xe8] sm:$0xff] %vm1001_vm0, %v1105_v14  ;;  %v1826_v15 = vld [vmem:[#allocation2 + $0xeb] sm:$0xff] }
 0x190   : > { %v1247_v18 = vpop.permute.xlu0 %1246 }
 0x191   : > { %v1462_v19 = vpop.permute.xlu1 %1461  ;;  %1342 = vst.msk [vmem:[#allocation3 + $0x68] sm:$0xff] %vm1328_vm4, %v1247_v18  ;;  %v2042_v18 = vld [vmem:[#allocation2 + $0xe4] sm:$0xff] }
 0x192   : > { %1558 = vst.msk [vmem:[#allocation3 + $0x60] sm:$0xff] %vm13210_vm5, %v1462_v19  ;;  %2556 = vrot.lane.b32.xlu0 %v2467_v16, %s13214_s9  ;;  %v2686_v19 = vld [vmem:[#allocation2 + $0xbe] sm:$0xff] }
 0x193   : > { %2771 = vrot.lane.b32.xlu1 %v2683_v17, %s10188_s23 }
 0x194   : > { %v2111_v23 = vpop.permute.xlu0 %2110 }
 0x195   : > { %v2326_v24 = vpop.permute.xlu1 %2325  ;;  %v2893_v25 = vld [vmem:[#allocation3 + $0x48] sm:$0xff]  ;;  %2208 = vst.msk [vmem:[#allocation3 + $0x58] sm:$0xff] %vm2196_vm8, %v2111_v23  ;;  %v1171_v23 = vld [vmem:[#allocation2 + $0xb9] sm:$0xff] }
 0x196   : > { %2424 = vst.msk [vmem:[#allocation3 + $0x50] sm:$0xff] %vm2413_vm9, %v2326_v24  ;;  %9440 = vmatmul.mubr.msk.f32.gmra.mrb[8].mxu0 %vm2929_vm12, %v2893_v25  ;;  %1260 = vrot.lane.b32.xlu0 %v1168_v20, %s10181_s0  ;;  %v1177_v24 = vld [vmem:[#allocation2 + $0xe9] sm:$0xff] }
 0x197   : > { %1272 = vrot.lane.b32.xlu1 %v1174_v21, %s10181_s0 }
 0x198   : > { %v1464_v28 = vpop.permute.xlu0 %1463 }
 0x199   : > { %v1679_v29 = vpop.permute.xlu1 %1678  ;;  %1559 = vst.msk [vmem:[#allocation3 + $0x68] sm:$0xff] %vm13210_vm5, %v1464_v28 }
 0x19a   : > { %1775 = vst.msk [vmem:[#allocation3 + $0x60] sm:$0xff] %vm1762_vm6, %v1679_v29  ;;  %1909 = vrot.lane.b32.xlu0 %v1818_v27, %s13217_s13 }
 0x19b   : > { %2124 = vrot.lane.b32.xlu1 %v10852_v61, %s13218_s16 }
 0x19c   : > { %v2328_v32 = vpop.permute.xlu0 %2327 }
 0x19d   : > { %v2543_v33 = vpop.permute.xlu1 %2542  ;;  %2425 = vst.msk [vmem:[#allocation3 + $0x58] sm:$0xff] %vm2413_vm9, %v2328_v32 }
 0x19e   : > { %2641 = vst.msk [vmem:[#allocation3 + $0x50] sm:$0xff] %vm2630_vm10, %v2543_v33  ;;  %2773 = vrot.lane.b32.xlu0 %v2684_v30, %s10188_s23  ;;  %v998_v30 = vld [vmem:[%s10482_s1 + $0xe8] sm:$0xff] }
 0x19f   : > { %1262 = vrot.lane.b32.xlu1 %v1169_v31, %s10181_s0  ;;  %1073 = vst.msk [vmem:[#allocation2 + $0x117] sm:$0xff] %vm1001_vm0, %v998_v30  ;;  %v2043_v31 = vld [vmem:[#allocation2 + $0xec] sm:$0xff] }
 0x1a0   : > { %v1681_v35 = vpop.permute.xlu0 %1680 }
 0x1a1   : > { %v1896_v36 = vpop.permute.xlu1 %1895  ;;  %1776 = vst.msk [vmem:[#allocation3 + $0x68] sm:$0xff] %vm1762_vm6, %v1681_v35  ;;  %v11009_v35 = vld [vmem:[#allocation2 + $0xf4] sm:$0xff] }
 0x1a2   : > { %1992 = vst.msk [vmem:[#allocation3 + $0x60] sm:$0xff] %vm1979_vm7, %v1896_v36  ;;  %1274 = vrot.lane.b32.xlu0 %v1175_v34, %s10181_s0  ;;  %v11007_v34 = vld [vmem:[#allocation2 + $0xc4] sm:$0xff] }
 0x1a3   : > { %1477 = vrot.lane.b32.xlu1 %v10860_v0, %s10180_s2  ;;  %v1825_v0 = vld [vmem:[#allocation2 + $0xe3] sm:$0xff] }
 0x1a4   : > { %v2545_v38 = vpop.permute.xlu0 %2544 }
 0x1a5   : > { %v2760_v39 = vpop.permute.xlu1 %2759  ;;  %2642 = vst.msk [vmem:[#allocation3 + $0x58] sm:$0xff] %vm2630_vm10, %v2545_v38 }
 0x1a6   : > { %2858 = vst.msk [vmem:[#allocation3 + $0x50] sm:$0xff] %vm2847_vm11, %v2760_v39  ;;  %1489 = vrot.lane.b32.xlu0 %v10912_v37, %s10180_s2  ;;  %v999_v39 = vld [vmem:[%s10482_s1 + $0xf0] sm:$0xff] }
 0x1a7   : > { %2126 = vrot.lane.b32.xlu1 %v10868_v4, %s13218_s16  ;;  %1074 = vst.msk [vmem:[#allocation2 + $0x121] sm:$0xff] %vm1001_vm0, %v999_v39 }
 0x1a8   : > { %v1249_v42 = vpop.permute.xlu0 %1248 }
 0x1a9   : > { %v1898_v43 = vpop.permute.xlu1 %1897  ;;  %1343 = vst.msk [vmem:[#allocation3 + $0x70] sm:$0xff] %vm1328_vm4, %v1249_v42  ;;  %v10189_v42 = vmov 1983009808  }
 0x1aa   : > { %1993 = vst.msk [vmem:[#allocation3 + $0x68] sm:$0xff] %vm1979_vm7, %v1898_v43  ;;  %2341 = vrot.lane.b32.xlu0 %v10922_v41, %s13215_s18  ;;  %v3361_v43 = vunpack.c.l.s4 %v10189_v42 }
 0x1ab   : > { %1479 = vrot.lane.b32.xlu1 %v10879_v11, %s10180_s2  ;;  %v1099_v11 = vld [vmem:[#allocation2 + $0xb8] sm:$0xff] }
 0x1ac   : > { %v2113_v46 = vpop.permute.xlu0 %2112  ;;  %1135 = vst.msk [vmem:[#allocation3 + $0xb8] sm:$0xff] %vm1001_vm0, %v1099_v11 }
 0x1ad   : > { %v2762_v47 = vpop.permute.xlu1 %2761  ;;  %v2894_v48 = vld [vmem:[#allocation3 + $0x50] sm:$0xff]  ;;  %2209 = vst.msk [vmem:[#allocation3 + $0x60] sm:$0xff] %vm2196_vm8, %v2113_v46 }
 0x1ae   : > { %2859 = vst.msk [vmem:[#allocation3 + $0x58] sm:$0xff] %vm2847_vm11, %v2762_v47  ;;  %9442 = vmatprep.mubr.msk.f32.mxu0 %vm2929_vm12, %v2894_v48  ;;  %1491 = vrot.lane.b32.xlu0 %v1392_v44, %s10180_s2  ;;  %v3363_v44 = vlaneseq  ;;  %v11027_v46 = vld [vmem:[#allocation2 + $0xf2] sm:$0xff] }
 0x1af   : > { %1694 = vrot.lane.b32.xlu1 %v10930_v45, %s10182_s11 }
 0x1b0   : > { %v1251_v51 = vpop.permute.xlu0 %1250 }
 0x1b1   : > { %v1466_v52 = vpop.permute.xlu1 %1465  ;;  %1344 = vst.msk [vmem:[#allocation3 + $0x78] sm:$0xff] %vm1328_vm4, %v1251_v51  ;;  %v11039_v51 = vshrl.u32 %v3363_v44, 7 }
 0x1b2   : > { %1560 = vst.msk [vmem:[#allocation3 + $0x70] sm:$0xff] %vm13210_vm5, %v1466_v52  ;;  %1706 = vrot.lane.b32.xlu0 %v10938_v49, %s10182_s11  ;;  %v11041_v52 = vld [vmem:[#allocation2 + $0xcc] sm:$0xff] }
 0x1b3   : > { %2343 = vrot.lane.b32.xlu1 %v10940_v50, %s13215_s18 }
 0x1b4   : > { %v2115_v55 = vpop.permute.xlu0 %2114 }
 0x1b5   : > { %v2330_v56 = vpop.permute.xlu1 %2329  ;;  %v2895_v57 = vld [vmem:[#allocation3 + $0x58] sm:$0xff]  ;;  %2210 = vst.msk [vmem:[#allocation3 + $0x68] sm:$0xff] %vm2196_vm8, %v2115_v55 }
 0x1b6   : > { %2426 = vst.msk [vmem:[#allocation3 + $0x60] sm:$0xff] %vm2413_vm9, %v2330_v56  ;;  %9443 = vmatmul.mubr.msk.f32.gmra.mrb[10].mxu0 %vm2929_vm12, %v2895_v57  ;;  %2558 = vrot.lane.b32.xlu0 %v2468_v53, %s13214_s9  ;;  %v11043_v53 = vld [vmem:[#allocation2 + $0xfc] sm:$0xff] }
 0x1b7   : > { %1696 = vrot.lane.b32.xlu1 %v10948_v54, %s10182_s11 }
 0x1b8   : > { %v1468_v61 = vpop.permute.xlu0 %1467 }
 0x1b9   : > { %v1683_v62 = vpop.permute.xlu1 %1682  ;;  %1561 = vst.msk [vmem:[#allocation3 + $0x78] sm:$0xff] %vm13210_vm5, %v1468_v61 }
 0x1ba   : > { %1777 = vst.msk [vmem:[#allocation3 + $0x70] sm:$0xff] %vm1762_vm6, %v1683_v62  ;;  %1708 = vrot.lane.b32.xlu0 %v10956_v58, %s10182_s11  ;;  %v2470_v62 = vld [vmem:[#allocation2 + $0xc5] sm:$0xff] }
 0x1bb   : > { %1911 = vrot.lane.b32.xlu1 %v1819_v59, %s13217_s13 }
 0x1bc   : > { %v2332_v3 = vpop.permute.xlu0 %2331 }
 0x1bd   : > { %v2547_v4 = vpop.permute.xlu1 %2546  ;;  %2427 = vst.msk [vmem:[#allocation3 + $0x68] sm:$0xff] %vm2413_vm9, %v2332_v3 }
 0x1be   : > { %2643 = vst.msk [vmem:[#allocation3 + $0x60] sm:$0xff] %vm2630_vm10, %v2547_v4  ;;  %1923 = vrot.lane.b32.xlu0 %v1825_v0, %s13217_s13 }
 0x1bf   : > { %2560 = vrot.lane.b32.xlu1 %v2469_v2, %s13214_s9 }
 0x1c0   : > { %v1685_v7 = vpop.permute.xlu0 %1684 }
 0x1c1   : > { %v1900_v8 = vpop.permute.xlu1 %1899  ;;  %1778 = vst.msk [vmem:[#allocation3 + $0x78] sm:$0xff] %vm1762_vm6, %v1685_v7  ;;  %v11062_v7 = vld [vmem:[#allocation2 + $0xca] sm:$0xff] }
 0x1c2   : > { %1994 = vst.msk [vmem:[#allocation3 + $0x70] sm:$0xff] %vm1979_vm7, %v1900_v8  ;;  %2775 = vrot.lane.b32.xlu0 %v2685_v5, %s10188_s23  ;;  %v11064_v8 = vld [vmem:[#allocation2 + $0xfa] sm:$0xff] }
 0x1c3   : > { %1264 = vrot.lane.b32.xlu1 %v1170_v6, %s10181_s0 }
 0x1c4   : > { %v2549_v12 = vpop.permute.xlu0 %2548 }
 0x1c5   : > { %v2764_v13 = vpop.permute.xlu1 %2763  ;;  %2644 = vst.msk [vmem:[#allocation3 + $0x68] sm:$0xff] %vm2630_vm10, %v2549_v12 }
 0x1c6   : > { %2860 = vst.msk [vmem:[#allocation3 + $0x60] sm:$0xff] %vm2847_vm11, %v2764_v13  ;;  %1276 = vrot.lane.b32.xlu0 %v1176_v9, %s10181_s0 }
 0x1c7   : > { %1913 = vrot.lane.b32.xlu1 %v1820_v10, %s13217_s13 }
 0x1c8   : > { %v1253_v16 = vpop.permute.xlu0 %1252 }
 0x1c9   : > { %v1902_v17 = vpop.permute.xlu1 %1901  ;;  %1345 = vst.msk [vmem:[#allocation3 + $0x80] sm:$0xff] %vm1328_vm4, %v1253_v16 }
 0x1ca   : > { %1995 = vst.msk [vmem:[#allocation3 + $0x78] sm:$0xff] %vm1979_vm7, %v1902_v17  ;;  %1925 = vrot.lane.b32.xlu0 %v1826_v15, %s13217_s13  ;;  %v1821_v15 = vld [vmem:[#allocation2 + $0xc3] sm:$0xff] }
 0x1cb   : > { %2128 = vrot.lane.b32.xlu1 %v10922_v41, %s13218_s16 }
 0x1cc   : > { %v2117_v20 = vpop.permute.xlu0 %2116 }
 0x1cd   : > { %v2766_v21 = vpop.permute.xlu1 %2765  ;;  %v2896_v22 = vld [vmem:[#allocation3 + $0x60] sm:$0xff]  ;;  %2211 = vst.msk [vmem:[#allocation3 + $0x70] sm:$0xff] %vm2196_vm8, %v2117_v20 }
 0x1ce   : > { %2861 = vst.msk [vmem:[#allocation3 + $0x68] sm:$0xff] %vm2847_vm11, %v2766_v21  ;;  %9445 = vmatprep.mubr.msk.f32.mxu0 %vm2929_vm12, %v2896_v22  ;;  %2140 = vrot.lane.b32.xlu0 %v2042_v18, %s13218_s16  ;;  %v1827_v18 = vld [vmem:[#allocation2 + $0xf3] sm:$0xff] }
 0x1cf   : > { %2777 = vrot.lane.b32.xlu1 %v2686_v19, %s10188_s23 }
 0x1d0   : > { %v1255_v25 = vpop.permute.xlu0 %1254 }
 0x1d1   : > { %v1470_v26 = vpop.permute.xlu1 %1469  ;;  %1346 = vst.msk [vmem:[#allocation3 + $0x88] sm:$0xff] %vm1328_vm4, %v1255_v25  ;;  %v1100_v25 = vld [vmem:[#allocation2 + $0xc0] sm:$0xff] }
 0x1d2   : > { %1562 = vst.msk [vmem:[#allocation3 + $0x80] sm:$0xff] %vm13210_vm5, %v1470_v26  ;;  %1266 = vrot.lane.b32.xlu0 %v1171_v23, %s10181_s0 }
 0x1d3   : > { %1278 = vrot.lane.b32.xlu1 %v1177_v24, %s10181_s0  ;;  %1136 = vst.msk [vmem:[#allocation3 + $0xc0] sm:$0xff] %vm1001_vm0, %v1100_v25 }
 0x1d4   : > { %v2119_v27 = vpop.permute.xlu0 %2118 }
 0x1d5   : > { %v2334_v28 = vpop.permute.xlu1 %2333  ;;  %v2897_v29 = vld [vmem:[#allocation3 + $0x68] sm:$0xff]  ;;  %2212 = vst.msk [vmem:[#allocation3 + $0x78] sm:$0xff] %vm2196_vm8, %v2119_v27 }
 0x1d6   : > { %2428 = vst.msk [vmem:[#allocation3 + $0x70] sm:$0xff] %vm2413_vm9, %v2334_v28  ;;  %9446 = vmatmul.mubr.msk.f32.gmra.mrb[12].mxu0 %vm2929_vm12, %v2897_v29  ;;  %1481 = vrot.lane.b32.xlu0 %v10930_v45, %s10180_s2  ;;  %v11025_v45 = vld [vmem:[#allocation2 + $0xc2] sm:$0xff]  ;;  %v2471_v27 = vld [vmem:[#allocation2 + $0xcd] sm:$0xff] }
 0x1d7   : > { %1493 = vrot.lane.b32.xlu1 %v10938_v49, %s10180_s2  ;;  %v11036_v49 = vld [vmem:[%s10239_s25] ss:$0 sm:$0xff]  ;;  %v1106_v28 = vld [vmem:[#allocation2 + $0xf0] sm:$0xff] }
 0x1d8   : > { %v1472_v32 = vpop.permute.xlu0 %1471  ;;  %1142 = vst.msk [vmem:[#allocation3 + $0xf0] sm:$0xff] %vm1001_vm0, %v1106_v28 }
 0x1d9   : > { %v1687_v33 = vpop.permute.xlu1 %1686  ;;  %1563 = vst.msk [vmem:[#allocation3 + $0x88] sm:$0xff] %vm13210_vm5, %v1472_v32  ;;  %v2477_v32 = vld [vmem:[#allocation2 + $0xfd] sm:$0xff] }
 0x1da   : > { %1779 = vst.msk [vmem:[#allocation3 + $0x80] sm:$0xff] %vm1762_vm6, %v1687_v33  ;;  %2130 = vrot.lane.b32.xlu0 %v10940_v50, %s13218_s16  ;;  %v3362_v50 = vunpack.c.0.s8 %v3361_v43 }
 0x1db   : > { %2142 = vrot.lane.b32.xlu1 %v2043_v31, %s13218_s16 }
 0x1dc   : > { %v2336_v36 = vpop.permute.xlu0 %2335  ;;  %v11048_v59 = vsub.s32 %v3362_v50, %v11039_v51  ;;  %v1000_v50 = vld [vmem:[%s10482_s1 + $0xf8] sm:$0xff]  ;;  %s10192_s1 = smov 32  }
 0x1dd   : > { %v2551_v38 = vpop.permute.xlu1 %2550  ;;  %2429 = vst.msk [vmem:[#allocation3 + $0x78] sm:$0xff] %vm2413_vm9, %v2336_v36 }
 0x1de   : > { %2645 = vst.msk [vmem:[#allocation3 + $0x70] sm:$0xff] %vm2630_vm10, %v2551_v38  ;;  %2345 = vrot.lane.b32.xlu0 %v11007_v34, %s13215_s18 }
 0x1df   : > { %2357 = vrot.lane.b32.xlu1 %v11009_v35, %s13215_s18  ;;  %1075 = vst.msk [vmem:[#allocation2 + $0x129] sm:$0xff] %vm1001_vm0, %v1000_v50 }
 0x1e0   : > { %v1689_v40 = vpop.permute.xlu0 %1688 }
 0x1e1   : > { %v1904_v41 = vpop.permute.xlu1 %1903  ;;  %1780 = vst.msk [vmem:[#allocation3 + $0x88] sm:$0xff] %vm1762_vm6, %v1689_v40 }
 0x1e2   : > { %1996 = vst.msk [vmem:[#allocation3 + $0x80] sm:$0xff] %vm1979_vm7, %v1904_v41  ;;  %1483 = vrot.lane.b32.xlu0 %v10948_v54, %s10180_s2  ;;  %v2687_v41 = vld [vmem:[#allocation2 + $0xc6] sm:$0xff] }
 0x1e3   : > { %1495 = vrot.lane.b32.xlu1 %v10956_v58, %s10180_s2 }
 0x1e4   : > { %v2553_v47 = vpop.permute.xlu0 %2552 }
 0x1e5   : > { %v2768_v48 = vpop.permute.xlu1 %2767  ;;  %2646 = vst.msk [vmem:[#allocation3 + $0x78] sm:$0xff] %vm2630_vm10, %v2553_v47 }
 0x1e6   : > { %2862 = vst.msk [vmem:[#allocation3 + $0x70] sm:$0xff] %vm2847_vm11, %v2768_v48  ;;  %1698 = vrot.lane.b32.xlu0 %v11025_v45, %s10182_s11  ;;  %v2693_v48 = vld [vmem:[#allocation2 + $0xf6] sm:$0xff] }
 0x1e7   : > { %1710 = vrot.lane.b32.xlu1 %v11027_v46, %s10182_s11 }
 0x1e8   : > { %v1257_v54 = vpop.permute.xlu0 %1256 }
 0x1e9   : > { %v9429_v55 = vpop.f32.mrb[0].mxu0  ;;  %1347 = vst.msk [vmem:[#allocation3 + $0x90] sm:$0xff] %vm1328_vm4, %v1257_v54  ;;  %v1906_v57 = vpop.permute.xlu1 %1905 }
 0x1ea   : > { %v3114_v56 = vadd.f32 %v9429_v55, %v11036_v49  ;;  %v3108_v58 = vpop.f32.mrb[1].mxu0  ;;  %1997 = vst.msk [vmem:[#allocation3 + $0x88] sm:$0xff] %vm1979_vm7, %v1906_v57  ;;  %2347 = vrot.lane.b32.xlu0 %v11041_v52, %s13215_s18 }
 0x1eb   : > { %v3109_v60 = vadd.f32 %v11036_v49, %v3108_v58  ;;  %2359 = vrot.lane.b32.xlu1 %v11043_v53, %s13215_s18 }
 0x1ec   : > { %v3288_v61 = vmax.f32 %v3114_v56, 0.0  ;;  %v2121_v0 = vpop.permute.xlu0 %2120 }
 0x1ed   : > { %v2898_v2 = vld [vmem:[#allocation3 + $0x70] sm:$0xff]  ;;  %v3287_v3 = vmax.f32 %v3109_v60, 0.0  ;;  %2213 = vst.msk [vmem:[#allocation3 + $0x80] sm:$0xff] %vm2196_vm8, %v2121_v0  ;;  %v2770_v4 = vpop.permute.xlu1 %2769 }
 0x1ee   : > { %9448 = vmatprep.mubr.msk.f32.mxu0 %vm2929_vm12, %v2898_v2  ;;  %v3376_v5 = vcombine.high %v3288_v61, %v3288_v61  ;;  %v3383_v6 = vrot.slane %v3288_v61, %v11048_v59  ;;  %2863 = vst.msk [vmem:[#allocation3 + $0x78] sm:$0xff] %vm2847_vm11, %v2770_v4  ;;  %2562 = vrot.lane.b32.xlu0 %v2470_v62, %s13214_s9  ;;  %v1172_v61 = vld [vmem:[#allocation2 + $0xc1] sm:$0xff] }
 0x1ef   : > { %2574 = vrot.lane.b32.xlu1 %v2476_v63, %s13214_s9  ;;  %v3366_v10 = vrot.slane %v3287_v3, %v11048_v59  ;;  %v3359_v16 = vcombine.high %v3287_v3, %v3287_v3  ;;  %v1178_v3 = vld [vmem:[#allocation2 + $0xf1] sm:$0xff] }
 0x1f0   : > { %v1259_v9 = vpop.permute.xlu0 %1258  ;;  %v11069_v12 = vrot.slane %v3376_v5, %v11048_v59  ;;  %v3391_v13 = vcombine.high %v3383_v6, %v3383_v6  ;;  %v4120_v14 = vsel %vm4091_vm14, %v3383_v6, -inf }
 0x1f1   : > { %1348 = vst.msk [vmem:[#allocation3 + $0x98] sm:$0xff] %vm1328_vm4, %v1259_v9  ;;  %v1474_v11 = vpop.permute.xlu1 %1473  ;;  %v4092_v19 = vsel %vm4091_vm14, %v3366_v10, -inf  ;;  %v4121_v22 = vrot.slane %v4120_v14, 4  ;;  %v3374_v26 = vcombine.high %v3366_v10, %v3366_v10  ;;  %v3373_v29 = vrot.slane %v3359_v16, %v11048_v59 }
 0x1f2   : > { %1564 = vst.msk [vmem:[#allocation3 + $0x90] sm:$0xff] %vm13210_vm5, %v1474_v11  ;;  %1700 = vrot.lane.b32.xlu0 %v11062_v7, %s10182_s11  ;;  %v4127_v23 = vsel %vm4091_vm14, %v3391_v13, -inf  ;;  %v4134_v24 = vsel %vm4091_vm14, %v11069_v12, -inf  ;;  %v4093_v30 = vrot.slane %v4092_v19, 4  ;;  %v1822_v13 = vld [vmem:[#allocation2 + $0xcb] sm:$0xff] }
 0x1f3   : > { %1712 = vrot.lane.b32.xlu1 %v11064_v8, %s10182_s11  ;;  %v4128_v33 = vrot.slane %v4127_v23, 4  ;;  %v4135_v36 = vrot.slane %v4134_v24, 4  ;;  %v4122_v39 = vmax.f32 %v4120_v14, %v4121_v22  ;;  %v4099_v40 = vsel %vm4091_vm14, %v3374_v26, -inf  ;;  %v1107_v22 = vld [vmem:[#allocation2 + $0xf8] sm:$0xff] }
 0x1f4   : > { %v2123_v17 = vpop.permute.xlu0 %2122  ;;  %v3375_v42 = vcombine.high %v3373_v29, %v3373_v29  ;;  %v4094_v43 = vmax.f32 %v4092_v19, %v4093_v30  ;;  %v4106_v56 = vsel %vm4091_vm14, %v3373_v29, -inf  ;;  %v4100_v60 = vrot.slane %v4099_v40, 4  ;;  %1143 = vst.msk [vmem:[#allocation3 + $0xf8] sm:$0xff] %vm1001_vm0, %v1107_v22 }
 0x1f5   : > { %2214 = vst.msk [vmem:[#allocation3 + $0x88] sm:$0xff] %vm2196_vm8, %v2123_v17  ;;  %v2338_v20 = vpop.permute.xlu1 %2337  ;;  %v2899_v21 = vld [vmem:[#allocation3 + $0x78] sm:$0xff]  ;;  %v4129_v54 = vmax.f32 %v4127_v23, %v4128_v33  ;;  %v4136_v55 = vmax.f32 %v4134_v24, %v4135_v36  ;;  %v4123_v58 = vrot.slane %v4122_v39, 2  ;;  %v4107_v63 = vrot.slane %v4106_v56, 4 }
 0x1f6   : > { %2430 = vst.msk [vmem:[#allocation3 + $0x80] sm:$0xff] %vm2413_vm9, %v2338_v20  ;;  %9449 = vmatmul.mubr.msk.f32.gmra.mrb[14].mxu0 %vm2929_vm12, %v2899_v21  ;;  %1915 = vrot.lane.b32.xlu0 %v1821_v15, %s13217_s13  ;;  %v4095_v62 = vrot.slane %v4094_v43, 2  ;;  %v4113_v0 = vsel %vm4091_vm14, %v3375_v42, -inf  ;;  %v4101_v10 = vmax.f32 %v4099_v40, %v4100_v60  ;;  %v1828_v17 = vld [vmem:[#allocation2 + $0xfb] sm:$0xff]  ;;  %v1101_v21 = vld [vmem:[#allocation2 + $0xc8] sm:$0xff] }
 0x1f7   : > { %1927 = vrot.lane.b32.xlu1 %v1827_v18, %s13217_s13  ;;  %v4130_v4 = vrot.slane %v4129_v54, 2  ;;  %v4137_v5 = vrot.slane %v4136_v55, 2  ;;  %v4124_v9 = vmax.f32 %v4122_v39, %v4123_v58  ;;  %v4114_v11 = vrot.slane %v4113_v0, 4  ;;  %1137 = vst.msk [vmem:[#allocation3 + $0xc8] sm:$0xff] %vm1001_vm0, %v1101_v21 }
 0x1f8   : > { %v1476_v31 = vpop.permute.xlu0 %1475  ;;  %v4096_v14 = vmax.f32 %v4094_v43, %v4095_v62  ;;  %v4108_v15 = vmax.f32 %v4106_v56, %v4107_v63  ;;  %v4102_v24 = vrot.slane %v4101_v10, 2  ;;  %v2688_v43 = vld [vmem:[#allocation2 + $0xce] sm:$0xff]  ;;  %v2694_v56 = vld [vmem:[#allocation2 + $0xfe] sm:$0xff] }
 0x1f9   : > { %1565 = vst.msk [vmem:[#allocation3 + $0x98] sm:$0xff] %vm13210_vm5, %v1476_v31  ;;  %v1691_v38 = vpop.permute.xlu1 %1690  ;;  %v4131_v18 = vmax.f32 %v4129_v54, %v4130_v4  ;;  %v4138_v19 = vmax.f32 %v4136_v55, %v4137_v5  ;;  %v4125_v23 = vrot.slane %v4124_v9, 1  ;;  %v4115_v25 = vmax.f32 %v4113_v0, %v4114_v11 }
 0x1fa   : > { %1781 = vst.msk [vmem:[#allocation3 + $0x90] sm:$0xff] %vm1762_vm6, %v1691_v38  ;;  %2564 = vrot.lane.b32.xlu0 %v2471_v27, %s13214_s9  ;;  %v4097_v26 = vrot.slane %v4096_v14, 1  ;;  %v4109_v27 = vrot.slane %v4108_v15, 2  ;;  %v4103_v39 = vmax.f32 %v4101_v10, %v4102_v24 }
 0x1fb   : > { %2576 = vrot.lane.b32.xlu1 %v2477_v32, %s13214_s9  ;;  %v4132_v30 = vrot.slane %v4131_v18, 1  ;;  %v4139_v31 = vrot.slane %v4138_v19, 1  ;;  %v4126_v38 = vmax.f32 %v4124_v9, %v4125_v23  ;;  %v1173_v9 = vld [vmem:[#allocation2 + $0xc9] sm:$0xff] }
 0x1fc   : > { %v2340_v47 = vpop.permute.xlu0 %2339  ;;  %v11122_v50 = vmax.f32 %v4108_v15, %v4109_v27  ;;  %v4104_v63 = vrot.slane %v4103_v39, 1 }
 0x1fd   : > { %2431 = vst.msk [vmem:[#allocation3 + $0x88] sm:$0xff] %vm2413_vm9, %v2340_v47  ;;  %v2555_v57 = vpop.permute.xlu1 %2554  ;;  %v3392_v47 = vcombine.high %v11069_v12, %v11069_v12  ;;  %v11126_v58 = vmax.f32 %v4138_v19, %v4139_v31  ;;  %v11131_v62 = vsel %vm4988_vm13, %v4126_v38, -inf }
 0x1fe   : > { %2647 = vst.msk [vmem:[#allocation3 + $0x80] sm:$0xff] %vm2630_vm10, %v2555_v57  ;;  %2779 = vrot.lane.b32.xlu0 %v2687_v41, %s10188_s23  ;;  %v4116_v41 = vrot.slane %v4115_v25, 2  ;;  %v11124_v57 = vmax.f32 %v4131_v18, %v4132_v30  ;;  %v4111_v10 = vrot.slane %v11122_v50, 1  ;;  %v11154_v38 = vmax.f32 %v4103_v39, %v4104_v63 }
 0x1ff   : > { %2791 = vrot.lane.b32.xlu1 %v2693_v48, %s10188_s23  ;;  %v4098_v48 = vmax.f32 %v4096_v14, %v4097_v26 }
 0x200   : > { %v1693_v2 = vpop.permute.xlu0 %1692 }
 0x201   : > { %1782 = vst.msk [vmem:[#allocation3 + $0x98] sm:$0xff] %vm1762_vm6, %v1693_v2  ;;  %v1908_v6 = vpop.permute.xlu1 %1907 }
 0x202   : > { %1998 = vst.msk [vmem:[#allocation3 + $0x90] sm:$0xff] %vm1979_vm7, %v1908_v6  ;;  %1268 = vrot.lane.b32.xlu0 %v1172_v61, %s10181_s0 }
 0x203   : > { %1280 = vrot.lane.b32.xlu1 %v1178_v3, %s10181_s0  ;;  %v4117_v3 = vmax.f32 %v4115_v25, %v4116_v41 }
 0x204   : > { %v2557_v16 = vpop.permute.xlu0 %2556 }
 0x205   : > { %2648 = vst.msk [vmem:[#allocation3 + $0x88] sm:$0xff] %vm2630_vm10, %v2557_v16  ;;  %v2772_v20 = vpop.permute.xlu1 %2771  ;;  %v1179_v16 = vld [vmem:[#allocation2 + $0xf9] sm:$0xff]  ;;  %v4118_v26 = vrot.slane %v4117_v3, 1 }
 0x206   : > { %2864 = vst.msk [vmem:[#allocation3 + $0x80] sm:$0xff] %vm2847_vm11, %v2772_v20  ;;  %1917 = vrot.lane.b32.xlu0 %v1822_v13, %s13217_s13 }
 0x207   : > { %1929 = vrot.lane.b32.xlu1 %v1828_v17, %s13217_s13  ;;  %v11143_v17 = vsel %vm4988_vm13, %v4098_v48, -inf }
 0x208   : > { %v1261_v28 = vpop.permute.xlu0 %1260 }
 0x209   : > { %v9432_v29 = vpop.f32.mrb[2].mxu0  ;;  %1349 = vst.msk [vmem:[#allocation3 + $0xa0] sm:$0xff] %vm1328_vm4, %v1261_v28  ;;  %v1273_v32 = vpop.permute.xlu1 %1272 }
 0x20a   : > { %v3124_v33 = vadd.f32 %v9432_v29, %v11036_v49  ;;  %v3118_v36 = vpop.f32.mrb[3].mxu0  ;;  %1355 = vst.msk [vmem:[#allocation3 + $0xd0] sm:$0xff] %vm1328_vm4, %v1273_v32  ;;  %2132 = vrot.lane.b32.xlu0 %v11007_v34, %s13218_s16 }
 0x20b   : > { %v3119_v40 = vadd.f32 %v11036_v49, %v3118_v36  ;;  %2144 = vrot.lane.b32.xlu1 %v11009_v35, %s13218_s16 }
 0x20c   : > { %v3290_v42 = vmax.f32 %v3124_v33, 0.0  ;;  %v1910_v55 = vpop.permute.xlu0 %1909 }
 0x20d   : > { %v3289_v54 = vmax.f32 %v3119_v40, 0.0  ;;  %1999 = vst.msk [vmem:[#allocation3 + $0x98] sm:$0xff] %vm1979_vm7, %v1910_v55  ;;  %v2125_v35 = vpop.permute.xlu1 %2124  ;;  %v2900_v61 = vld [vmem:[#allocation3 + $0x80] sm:$0xff] }
 0x20e   : > { %v3410_v34 = vcombine.high %v3290_v42, %v3290_v42  ;;  %v3417_v60 = vrot.slane %v3290_v42, %v11048_v59  ;;  %2215 = vst.msk [vmem:[#allocation3 + $0x90] sm:$0xff] %vm2196_vm8, %v2125_v35  ;;  %2781 = vrot.lane.b32.xlu0 %v2688_v43, %s10188_s23  ;;  %9451 = vmatprep.mubr.msk.f32.mxu0 %vm2929_vm12, %v2900_v61 }
 0x20f   : > { %v3393_v0 = vcombine.high %v3289_v54, %v3289_v54  ;;  %v3400_v2 = vrot.slane %v3289_v54, %v11048_v59  ;;  %2793 = vrot.lane.b32.xlu1 %v2694_v56, %s10188_s23 }
 0x210   : > { %v3424_v4 = vrot.slane %v3410_v34, %v11048_v59  ;;  %v3425_v5 = vcombine.high %v3417_v60, %v3417_v60  ;;  %v4169_v6 = vsel %vm4091_vm14, %v3417_v60, -inf  ;;  %v2774_v15 = vpop.permute.xlu0 %2773  ;;  %v4119_v34 = vmax.f32 %v4117_v3, %v4118_v26 }
 0x211   : > { %v4170_v11 = vrot.slane %v4169_v6, 4  ;;  %v3407_v13 = vrot.slane %v3393_v0, %v11048_v59  ;;  %v3408_v14 = vcombine.high %v3400_v2, %v3400_v2  ;;  %2865 = vst.msk [vmem:[#allocation3 + $0x88] sm:$0xff] %vm2847_vm11, %v2774_v15  ;;  %v1263_v21 = vpop.permute.xlu1 %1262 }
 0x212   : > { %v3426_v18 = vcombine.high %v3424_v4, %v3424_v4  ;;  %v4176_v19 = vsel %vm4091_vm14, %v3425_v5, -inf  ;;  %v4183_v20 = vsel %vm4091_vm14, %v3424_v4, -inf  ;;  %1350 = vst.msk [vmem:[#allocation3 + $0xa8] sm:$0xff] %vm1328_vm4, %v1263_v21  ;;  %1270 = vrot.lane.b32.xlu0 %v1173_v9, %s10181_s0  ;;  %v11170_v15 = vsel %vm4988_vm13, %v4119_v34, -inf }
 0x213   : > { %v4171_v22 = vmax.f32 %v4169_v6, %v4170_v11  ;;  %v4177_v23 = vrot.slane %v4176_v19, 4  ;;  %v4184_v24 = vrot.slane %v4183_v20, 4  ;;  %v3409_v25 = vcombine.high %v3407_v13, %v3407_v13  ;;  %1282 = vrot.lane.b32.xlu1 %v1179_v16, %s10181_s0 }
 0x214   : > { %v4190_v27 = vsel %vm4091_vm14, %v3426_v18, -inf  ;;  %v4148_v28 = vsel %vm4091_vm14, %v3408_v14, -inf  ;;  %v4155_v29 = vsel %vm4091_vm14, %v3407_v13, -inf  ;;  %v1275_v36 = vpop.permute.xlu0 %1274 }
 0x215   : > { %v4172_v30 = vrot.slane %v4171_v22, 2  ;;  %v4178_v31 = vmax.f32 %v4176_v19, %v4177_v23  ;;  %v4185_v32 = vmax.f32 %v4183_v20, %v4184_v24  ;;  %v4191_v33 = vrot.slane %v4190_v27, 4  ;;  %1356 = vst.msk [vmem:[#allocation3 + $0xd8] sm:$0xff] %vm1328_vm4, %v1275_v36  ;;  %v1478_v43 = vpop.permute.xlu1 %1477  ;;  %v11174_v20 = vld [vmem:[#allocation2 + $0xd4] sm:$0xff] }
 0x216   : > { %v4149_v40 = vrot.slane %v4148_v28, 4  ;;  %v4156_v41 = vrot.slane %v4155_v29, 4  ;;  %v4162_v42 = vsel %vm4091_vm14, %v3409_v25, -inf  ;;  %1566 = vst.msk [vmem:[#allocation3 + $0xa0] sm:$0xff] %vm13210_vm5, %v1478_v43  ;;  %1485 = vrot.lane.b32.xlu0 %v11025_v45, %s10180_s2  ;;  %v4112_v43 = vmax.f32 %v11122_v50, %v4111_v10 }
 0x217   : > { %v4173_v48 = vmax.f32 %v4171_v22, %v4172_v30  ;;  %v4179_v54 = vrot.slane %v4178_v31, 2  ;;  %v4186_v55 = vrot.slane %v4185_v32, 2  ;;  %v4192_v56 = vmax.f32 %v4190_v27, %v4191_v33  ;;  %1497 = vrot.lane.b32.xlu1 %v11027_v46, %s10180_s2 }
 0x218   : > { %v4150_v60 = vmax.f32 %v4148_v28, %v4149_v40  ;;  %v4157_v39 = vmax.f32 %v4155_v29, %v4156_v41  ;;  %v4163_v35 = vrot.slane %v4162_v42, 4  ;;  %v1490_v4 = vpop.permute.xlu0 %1489  ;;  %v2901_v5 = vld [vmem:[#allocation3 + $0x88] sm:$0xff]  ;;  %v4141_v50 = vsel %vm4091_vm14, %v3392_v47, -inf }
 0x219   : > { %v4174_v61 = vrot.slane %v4173_v48, 1  ;;  %v4180_v63 = vmax.f32 %v4178_v31, %v4179_v54  ;;  %v4187_v0 = vmax.f32 %v4185_v32, %v4186_v55  ;;  %v4193_v2 = vrot.slane %v4192_v56, 2  ;;  %1572 = vst.msk [vmem:[#allocation3 + $0xd0] sm:$0xff] %vm13210_vm5, %v1490_v4  ;;  %v2127_v45 = vpop.permute.xlu1 %2126  ;;  %9452 = vmatmul.mubr.msk.f32.gmra.mrb[16].mxu0 %vm2929_vm12, %v2901_v5 }
 0x21a   : > { %v4151_v6 = vrot.slane %v4150_v60, 2  ;;  %v4158_v9 = vrot.slane %v4157_v39, 2  ;;  %v4164_v11 = vmax.f32 %v4162_v42, %v4163_v35  ;;  %2216 = vst.msk [vmem:[#allocation3 + $0x98] sm:$0xff] %vm2196_vm8, %v2127_v45  ;;  %2134 = vrot.lane.b32.xlu0 %v11041_v52, %s13218_s16  ;;  %v11177_v52 = vld [vmem:[#allocation2 + $0x104] sm:$0xff] }
 0x21b   : > { %v4175_v3 = vmax.f32 %v4173_v48, %v4174_v61  ;;  %v4181_v13 = vrot.slane %v4180_v63, 1  ;;  %v4188_v14 = vrot.slane %v4187_v0, 1  ;;  %v4194_v46 = vmax.f32 %v4192_v56, %v4193_v2  ;;  %2146 = vrot.lane.b32.xlu1 %v11043_v53, %s13218_s16 }
 0x21c   : > { %v4152_v16 = vmax.f32 %v4150_v60, %v4151_v6  ;;  %v4159_v18 = vmax.f32 %v4157_v39, %v4158_v9  ;;  %v4165_v19 = vrot.slane %v4164_v11, 2  ;;  %v2342_v25 = vpop.permute.xlu0 %2341  ;;  %v5004_v53 = vsel %vm4988_vm13, %v11124_v57, -inf  ;;  %v11227_v9 = vld [vmem:[#allocation2 + $0x10c] sm:$0xff] }
 0x21d   : > { %v4182_v21 = vmax.f32 %v4180_v63, %v4181_v13  ;;  %v4189_v22 = vmax.f32 %v4187_v0, %v4188_v14  ;;  %v4195_v23 = vrot.slane %v4194_v46, 1  ;;  %v4999_v24 = vsel %vm4988_vm13, %v4175_v3, -inf  ;;  %2432 = vst.msk [vmem:[#allocation3 + $0x90] sm:$0xff] %vm2413_vm9, %v2342_v25  ;;  %v1480_v30 = vpop.permute.xlu1 %1479  ;;  %v11215_v63 = vld [vmem:[#allocation2 + $0x102] sm:$0xff] }
 0x21e   : > { %v5000_v26 = vmax.f32 %v11170_v15, %v4999_v24  ;;  %v4153_v27 = vrot.slane %v4152_v16, 1  ;;  %v4160_v28 = vrot.slane %v4159_v18, 1  ;;  %v4166_v29 = vmax.f32 %v4164_v11, %v4165_v19  ;;  %1567 = vst.msk [vmem:[#allocation3 + $0xa8] sm:$0xff] %vm13210_vm5, %v1480_v30  ;;  %2349 = vrot.lane.b32.xlu0 %v11174_v20, %s13215_s18  ;;  %v2472_v15 = vld [vmem:[#allocation2 + $0xd5] sm:$0xff]  ;;  %v2478_v19 = vld [vmem:[#allocation2 + $0x105] sm:$0xff] }
 0x21f   : > { %v4196_v31 = vmax.f32 %v4194_v46, %v4195_v23  ;;  %v5002_v32 = vsel %vm4988_vm13, %v4182_v21, -inf  ;;  %v5005_v33 = vsel %vm4988_vm13, %v4189_v22, -inf  ;;  %2361 = vrot.lane.b32.xlu1 %v11177_v52, %s13215_s18  ;;  %v5007_v57 = vsel %vm4988_vm13, %v11126_v58, -inf  ;;  %v1607_v24 = vld [vmem:[#allocation2 + $0xda] sm:$0xff] }
 0x220   : > { %v5003_v36 = vmax.f32 %v11131_v62, %v5002_v32  ;;  %v5006_v40 = vmax.f32 %v5004_v53, %v5005_v33  ;;  %v4154_v41 = vmax.f32 %v4152_v16, %v4153_v27  ;;  %v4161_v42 = vmax.f32 %v4159_v18, %v4160_v28  ;;  %v1492_v55 = vpop.permute.xlu0 %1491  ;;  %v11247_v27 = vld [vmem:[#allocation2 + $0x10a] sm:$0xff]  ;;  %v1823_v32 = vld [vmem:[#allocation2 + $0xd3] sm:$0xff] }
 0x221   : > { %v5008_v48 = vsel %vm4988_vm13, %v4196_v31, -inf  ;;  %v4167_v54 = vrot.slane %v4166_v29, 1  ;;  %v4992_v62 = vsel %vm4988_vm13, %v11154_v38, -inf  ;;  %1573 = vst.msk [vmem:[#allocation3 + $0xd8] sm:$0xff] %vm13210_vm5, %v1492_v55  ;;  %v1695_v39 = vpop.permute.xlu1 %1694  ;;  %v4995_v38 = vsel %vm4988_vm13, %v4112_v43, -inf  ;;  %v2473_v55 = vld [vmem:[#allocation2 + $0xdd] sm:$0xff] }
 0x222   : > { %v5009_v56 = vmax.f32 %v5007_v57, %v5008_v48  ;;  %v4990_v34 = vsel %vm4988_vm13, %v4154_v41, -inf  ;;  %v4993_v60 = vsel %vm4988_vm13, %v4161_v42, -inf  ;;  %1783 = vst.msk [vmem:[#allocation3 + $0xa0] sm:$0xff] %vm1762_vm6, %v1695_v39  ;;  %1487 = vrot.lane.b32.xlu0 %v11062_v7, %s10180_s2  ;;  %vm13211_vm5 = vcmask 1046534   ;;  %v1108_v48 = vld [vmem:[#allocation2 + $0x100] sm:$0xff] }
 0x223   : > { %v4168_v58 = vmax.f32 %v4166_v29, %v4167_v54  ;;  %v4991_v10 = vmax.f32 %v11143_v17, %v4990_v34  ;;  %v4994_v35 = vmax.f32 %v4992_v62, %v4993_v60  ;;  %1499 = vrot.lane.b32.xlu1 %v11064_v8, %s10180_s2  ;;  %v4142_v17 = vrot.slane %v4141_v50, 4  ;;  %v11224_v8 = vld [vmem:[#allocation2 + $0xdc] sm:$0xff]  ;;  %1144 = vst.msk [vmem:[#allocation3 + $0x100] sm:$0xff] %vm1001_vm0, %v1108_v48  ;;  %v2479_v34 = vld [vmem:[#allocation2 + $0x10d] sm:$0xff] }
 0x224   : > { %v1707_v47 = vpop.permute.xlu0 %1706 }
 0x225   : > { %v4996_v61 = vsel %vm4988_vm13, %v4168_v58, -inf  ;;  %v5204_v12 = vsel %vm13209_vm15, %v4994_v35, %v4991_v10  ;;  %1789 = vst.msk [vmem:[#allocation3 + $0xd0] sm:$0xff] %vm1762_vm6, %v1707_v47  ;;  %v2344_v2 = vpop.permute.xlu1 %2343  ;;  %vm13213_vm15 = vcmask 1045509   ;;  %v4143_v11 = vmax.f32 %v4141_v50, %v4142_v17  ;;  %v2695_v17 = vld [vmem:[#allocation2 + $0x106] sm:$0xff] }
 0x226   : > { %v4997_v0 = vmax.f32 %v4995_v38, %v4996_v61  ;;  %2433 = vst.msk [vmem:[#allocation3 + $0x98] sm:$0xff] %vm2413_vm9, %v2344_v2  ;;  %1702 = vrot.lane.b32.xlu0 %v10912_v37, %s10182_s11  ;;  %v2689_v38 = vld [vmem:[#allocation2 + $0xd6] sm:$0xff] }
 0x227   : > { %1714 = vrot.lane.b32.xlu1 %v11215_v63, %s10182_s11  ;;  %v4144_v21 = vrot.slane %v4143_v11, 2 }
 0x228   : > { %v5206_v7 = vsel %vm5205_vm2, %v4997_v0, %v5204_v12  ;;  %v2559_v5 = vpop.permute.xlu0 %2558 }
 0x229   : > { %v5208_v4 = vsel %vm5207_vm3, %v5000_v26, %v5206_v7  ;;  %v9435_v6 = vpop.f32.mrb[4].mxu0  ;;  %2649 = vst.msk [vmem:[#allocation3 + $0x90] sm:$0xff] %vm2630_vm10, %v2559_v5  ;;  %v1697_v37 = vpop.permute.xlu1 %1696  ;;  %v4145_v28 = vmax.f32 %v4143_v11, %v4144_v21  ;;  %v1180_v11 = vld [vmem:[#allocation2 + $0x101] sm:$0xff] }
 0x22a   : > { %v3128_v45 = vpop.f32.mrb[5].mxu0  ;;  %v5210_v3 = vsel %vm13216_vm1, %v5003_v36, %v5208_v4  ;;  %1784 = vst.msk [vmem:[#allocation3 + $0xa8] sm:$0xff] %vm1762_vm6, %v1697_v37  ;;  %2351 = vrot.lane.b32.xlu0 %v11224_v8, %s13215_s18  ;;  %v3134_v53 = vadd.f32 %v9435_v6, %v11036_v49  ;;  %v1109_v21 = vld [vmem:[#allocation2 + $0x108] sm:$0xff] }
 0x22b   : > { %v3129_v13 = vadd.f32 %v11036_v49, %v3128_v45  ;;  %v5212_v14 = vsel %vm13213_vm15, %v5006_v40, %v5210_v3  ;;  %2363 = vrot.lane.b32.xlu1 %v11227_v9, %s13215_s18  ;;  %v1829_v40 = vld [vmem:[#allocation2 + $0x103] sm:$0xff]  ;;  %v4146_v41 = vrot.slane %v4145_v28, 1  ;;  %1145 = vst.msk [vmem:[#allocation3 + $0x108] sm:$0xff] %vm1001_vm0, %v1109_v21 }
 0x22c   : > { %v11237_v46 = vsel %vm13211_vm5, %v5009_v56, %v5212_v14  ;;  %v1709_v18 = vpop.permute.xlu0 %1708  ;;  %v3292_v43 = vmax.f32 %v3134_v53, 0.0  ;;  %vm13212_vm5 = vcmask 1047559  }
 0x22d   : > { %v3291_v16 = vmax.f32 %v3129_v13, 0.0  ;;  %1790 = vst.msk [vmem:[#allocation3 + $0xd8] sm:$0xff] %vm1762_vm6, %v1709_v18  ;;  %v1912_v22 = vpop.permute.xlu1 %1911  ;;  %v4147_v60 = vmax.f32 %v4145_v28, %v4146_v41  ;;  %v1824_v13 = vld [vmem:[#allocation2 + $0xdb] sm:$0xff] }
 0x22e   : > { %2000 = vst.msk [vmem:[#allocation3 + $0xa0] sm:$0xff] %vm1979_vm7, %v1912_v22  ;;  %2566 = vrot.lane.b32.xlu0 %v2472_v15, %s13214_s9  ;;  %v3450_v58 = vrot.slane %v3292_v43, %v11048_v59  ;;  %v3443_v10 = vcombine.high %v3292_v43, %v3292_v43 }
 0x22f   : > { %v3434_v23 = vrot.slane %v3291_v16, %v11048_v59  ;;  %2578 = vrot.lane.b32.xlu1 %v2478_v19, %s13214_s9  ;;  %v3427_v33 = vcombine.high %v3291_v16, %v3291_v16  ;;  %v5010_v0 = vsel %vm4988_vm13, %v4147_v60, -inf }
 0x230   : > { %v1924_v26 = vpop.permute.xlu0 %1923  ;;  %v3458_v4 = vcombine.high %v3450_v58, %v3450_v58  ;;  %v11273_v6 = vrot.slane %v3443_v10, %v11048_v59  ;;  %v4218_v14 = vsel %vm4091_vm14, %v3450_v58, -inf }
 0x231   : > { %v4197_v25 = vsel %vm4091_vm14, %v3434_v23, -inf  ;;  %2006 = vst.msk [vmem:[#allocation3 + $0xd0] sm:$0xff] %vm1979_vm7, %v1924_v26  ;;  %v2561_v30 = vpop.permute.xlu1 %2560  ;;  %v3441_v62 = vrot.slane %v3427_v33, %v11048_v59  ;;  %v4219_v22 = vrot.slane %v4218_v14, 4 }
 0x232   : > { %v4198_v29 = vrot.slane %v4197_v25, 4  ;;  %2650 = vst.msk [vmem:[#allocation3 + $0x98] sm:$0xff] %vm2630_vm10, %v2561_v30  ;;  %1704 = vrot.lane.b32.xlu0 %v1607_v24, %s10182_s11  ;;  %v4225_v16 = vsel %vm4091_vm14, %v3458_v4, -inf  ;;  %v4232_v18 = vsel %vm4091_vm14, %v11273_v6, -inf }
 0x233   : > { %1716 = vrot.lane.b32.xlu1 %v11247_v27, %s10182_s11  ;;  %v3442_v61 = vcombine.high %v3441_v62, %v3441_v62  ;;  %v4226_v24 = vrot.slane %v4225_v16, 4  ;;  %v4233_v26 = vrot.slane %v4232_v18, 4  ;;  %v4204_v28 = vsel %vm4091_vm14, %v3441_v62, -inf  ;;  %v2696_v62 = vld [vmem:[#allocation2 + $0x10e] sm:$0xff] }
 0x234   : > { %v4199_v31 = vmax.f32 %v4197_v25, %v4198_v29  ;;  %v2776_v36 = vpop.permute.xlu0 %2775  ;;  %v4220_v30 = vmax.f32 %v4218_v14, %v4219_v22  ;;  %v4205_v48 = vrot.slane %v4204_v28, 4 }
 0x235   : > { %2866 = vst.msk [vmem:[#allocation3 + $0x90] sm:$0xff] %vm2847_vm11, %v2776_v36  ;;  %v1265_v57 = vpop.permute.xlu1 %1264  ;;  %v4211_v37 = vsel %vm4091_vm14, %v3442_v61, -inf  ;;  %v4227_v33 = vmax.f32 %v4225_v16, %v4226_v24  ;;  %v4234_v43 = vmax.f32 %v4232_v18, %v4233_v26 }
 0x236   : > { %v4200_v42 = vrot.slane %v4199_v31, 2  ;;  %1351 = vst.msk [vmem:[#allocation3 + $0xb0] sm:$0xff] %vm1328_vm4, %v1265_v57  ;;  %1919 = vrot.lane.b32.xlu0 %v1823_v32, %s13217_s13  ;;  %v4212_v19 = vrot.slane %v4211_v37, 4  ;;  %v2690_v32 = vld [vmem:[#allocation2 + $0xde] sm:$0xff] }
 0x237   : > { %1931 = vrot.lane.b32.xlu1 %v1829_v40, %s13217_s13 }
 0x238   : > { %v4201_v54 = vmax.f32 %v4199_v31, %v4200_v42  ;;  %v1277_v56 = vpop.permute.xlu0 %1276  ;;  %v4213_v29 = vmax.f32 %v4211_v37, %v4212_v19 }
 0x239   : > { %1357 = vst.msk [vmem:[#allocation3 + $0xe0] sm:$0xff] %vm1328_vm4, %v1277_v56  ;;  %v1914_v50 = vpop.permute.xlu1 %1913  ;;  %v4221_v56 = vrot.slane %v4220_v30, 2 }
 0x23a   : > { %v4202_v39 = vrot.slane %v4201_v54, 1  ;;  %2001 = vst.msk [vmem:[#allocation3 + $0xa8] sm:$0xff] %vm1979_vm7, %v1914_v50  ;;  %2568 = vrot.lane.b32.xlu0 %v2473_v55, %s13214_s9  ;;  %v4228_v50 = vrot.slane %v4227_v33, 2 }
 0x23b   : > { %2580 = vrot.lane.b32.xlu1 %v2479_v34, %s13214_s9 }
 0x23c   : > { %v4203_v35 = vmax.f32 %v4201_v54, %v4202_v39  ;;  %v1926_v12 = vpop.permute.xlu0 %1925  ;;  %v2902_v47 = vld [vmem:[#allocation3 + $0x90] sm:$0xff]  ;;  %v1181_v39 = vld [vmem:[#allocation2 + $0x109] sm:$0xff] }
 0x23d   : > { %2007 = vst.msk [vmem:[#allocation3 + $0xd8] sm:$0xff] %vm1979_vm7, %v1926_v12  ;;  %v2129_v7 = vpop.permute.xlu1 %2128  ;;  %9454 = vmatprep.mubr.msk.f32.mxu0 %vm2929_vm12, %v2902_v47 }
 0x23e   : > { %v5011_v2 = vsel %vm4988_vm13, %v4203_v35, -inf  ;;  %2217 = vst.msk [vmem:[#allocation3 + $0xa0] sm:$0xff] %vm2196_vm8, %v2129_v7  ;;  %2783 = vrot.lane.b32.xlu0 %v2689_v38, %s10188_s23  ;;  %v4206_v35 = vmax.f32 %v4204_v28, %v4205_v48  ;;  %v2257_v28 = vld [vmem:[#allocation2 + $0xe4] sm:$0xff] }
 0x23f   : > { %v5012_v5 = vmax.f32 %v5010_v0, %v5011_v2  ;;  %2795 = vrot.lane.b32.xlu1 %v2695_v17, %s10188_s23  ;;  %v4222_v0 = vmax.f32 %v4220_v30, %v4221_v56 }
 0x240   : > { %v2141_v3 = vpop.permute.xlu0 %2140  ;;  %v4207_v19 = vrot.slane %v4206_v35, 2 }
 0x241   : > { %v5216_v45 = vsel %vm13212_vm5, %v5012_v5, %v11237_v46  ;;  %2223 = vst.msk [vmem:[#allocation3 + $0xd0] sm:$0xff] %vm2196_vm8, %v2141_v3  ;;  %v2778_v15 = vpop.permute.xlu1 %2777  ;;  %v1830_v46 = vld [vmem:[#allocation2 + $0x10b] sm:$0xff]  ;;  %vm13236_vm5 = vcmask 23568   ;;  %v4229_v5 = vmax.f32 %v4227_v33, %v4228_v50 }
 0x242   : > { %5218 = vst.msk [vmem:[#allocation4 + $0xb] sm:$0xff] %vm4988_vm13, %v5216_v45  ;;  %1284 = vrot.lane.b32.xlu0 %v1180_v11, %s10181_s0  ;;  %vm13237_vm15 = vmmov %vm13236_vm5 }
 0x243   : > { %2867 = vst.msk [vmem:[#allocation3 + $0x98] sm:$0xff] %vm2847_vm11, %v2778_v15  ;;  %1921 = vrot.lane.b32.xlu1 %v1824_v13, %s13217_s13  ;;  %v4230_v30 = vrot.slane %v4229_v5, 1 }
 0x244   : > { %v1267_v23 = vpop.permute.xlu0 %1266 }
 0x245   : > { %1352 = vst.msk [vmem:[#allocation3 + $0xb8] sm:$0xff] %vm1328_vm4, %v1267_v23  ;;  %v1279_v25 = vpop.permute.xlu1 %1278 }
 0x246   : > { %1358 = vst.msk [vmem:[#allocation3 + $0xe8] sm:$0xff] %vm1328_vm4, %v1279_v25  ;;  %1933 = vrot.lane.b32.xlu0 %v1830_v46, %s13217_s13 }
 0x247   : > { %2136 = vrot.lane.b32.xlu1 %v11174_v20, %s13218_s16  ;;  %v4214_v20 = vrot.slane %v4213_v29, 2 }
 0x248   : > { %v1482_v53 = vpop.permute.xlu0 %1481 }
 0x249   : > { %v9438_v31 = vpop.f32.mrb[6].mxu0  ;;  %1568 = vst.msk [vmem:[#allocation3 + $0xb0] sm:$0xff] %vm13236_vm5, %v1482_v53  ;;  %v1494_v36 = vpop.permute.xlu1 %1493  ;;  %v5339_v57 = vld [vmem:[#allocation4 + $0x8] sm:$0xff]  ;;  %v4215_v61 = vmax.f32 %v4213_v29, %v4214_v20  ;;  %v4223_v29 = vrot.slane %v4222_v0, 1 }
 0x24a   : > { %v3144_v40 = vadd.f32 %v9438_v31, %v11036_v49  ;;  %v3138_v41 = vpop.f32.mrb[7].mxu0  ;;  %v2903_v42 = vld [vmem:[#allocation3 + $0x98] sm:$0xff]  ;;  %1574 = vst.msk [vmem:[#allocation3 + $0xe0] sm:$0xff] %vm13237_vm15, %v1494_v36  ;;  %2148 = vrot.lane.b32.xlu0 %v11177_v52, %s13218_s16  ;;  %v4235_v52 = vrot.slane %v4234_v43, 2  ;;  %vm13238_vm15 = vmmov %vm13236_vm5 }
 0x24b   : > { %v3139_v54 = vadd.f32 %v11036_v49, %v3138_v41  ;;  %9455 = vmatmul.mubr.msk.f32.gmra.mrb[18].mxu0 %vm2929_vm12, %v2903_v42  ;;  %5349 = vst.msk [vmem:[#allocation5 + $0x8] sm:$0xff] %vm4988_vm13, %v5339_v57  ;;  %2785 = vrot.lane.b32.xlu1 %v2690_v32, %s10188_s23  ;;  %v4216_v46 = vrot.slane %v4215_v61, 1  ;;  %v11331_v57 = vld [vmem:[#allocation2 + $0x114] sm:$0xff]  ;;  %v4224_v56 = vmax.f32 %v4222_v0, %v4223_v29 }
 0x24c   : > { %v3294_v55 = vmax.f32 %v3144_v40, 0.0  ;;  %v2131_v60 = vpop.permute.xlu0 %2130  ;;  %v4236_v18 = vmax.f32 %v4234_v43, %v4235_v52  ;;  %v4208_v40 = vmax.f32 %v4206_v35, %v4207_v19 }
 0x24d   : > { %v11304_v34 = vmax.f32 %v3139_v54, 0.0  ;;  %2218 = vst.msk [vmem:[#allocation3 + $0xa8] sm:$0xff] %vm2196_vm8, %v2131_v60  ;;  %v2143_v10 = vpop.permute.xlu1 %2142  ;;  %v4217_v41 = vmax.f32 %v4215_v61, %v4216_v46  ;;  %v4231_v60 = vmax.f32 %v4229_v5, %v4230_v30  ;;  %v11342_v61 = vld [vmem:[#allocation2 + $0x112] sm:$0xff]  ;;  %v11356_v46 = vld [vmem:[#allocation2 + $0x11c] sm:$0xff] }
 0x24e   : > { %v3477_v58 = vcombine.high %v3294_v55, %v3294_v55  ;;  %v3484_v49 = vrot.slane %v3294_v55, %v11048_v59  ;;  %2224 = vst.msk [vmem:[#allocation3 + $0xd8] sm:$0xff] %vm2196_vm8, %v2143_v10  ;;  %2797 = vrot.lane.b32.xlu0 %v2696_v62, %s10188_s23  ;;  %v3459_v62 = vcombine.high %v11273_v6, %v11273_v6  ;;  %v4209_v35 = vrot.slane %v4208_v40, 1 }
 0x24f   : > { %v3460_v38 = vcombine.high %v11304_v34, %v11304_v34  ;;  %1286 = vrot.lane.b32.xlu1 %v1181_v39, %s10181_s0  ;;  %v5022_v5 = vsel %vm4988_vm13, %v4231_v60, -inf }
 0x250   : > { %v3491_v12 = vrot.slane %v3477_v58, %v11048_v59  ;;  %v3492_v47 = vcombine.high %v3484_v49, %v3484_v49  ;;  %v4267_v17 = vsel %vm4091_vm14, %v3484_v49, -inf  ;;  %v2346_v4 = vpop.permute.xlu0 %2345 }
 0x251   : > { %v4268_v2 = vrot.slane %v4267_v17, 4  ;;  %v3474_v7 = vrot.slane %v3460_v38, %v11048_v59  ;;  %2434 = vst.msk [vmem:[#allocation3 + $0xa0] sm:$0xff] %vm2413_vm9, %v2346_v4  ;;  %v2358_v3 = vpop.permute.xlu1 %2357  ;;  %v5016_v38 = vsel %vm4988_vm13, %v4217_v41, -inf  ;;  %v5019_v4 = vsel %vm4988_vm13, %v4224_v56, -inf  ;;  %v1110_v41 = vld [vmem:[#allocation2 + $0x110] sm:$0xff] }
 0x252   : > { %v3493_v11 = vcombine.high %v3491_v12, %v3491_v12  ;;  %v4274_v37 = vsel %vm4091_vm14, %v3492_v47, -inf  ;;  %v4281_v45 = vsel %vm4091_vm14, %v3491_v12, -inf  ;;  %2440 = vst.msk [vmem:[#allocation3 + $0xd0] sm:$0xff] %vm2413_vm9, %v2358_v3  ;;  %1501 = vrot.lane.b32.xlu0 %v11215_v63, %s10180_s2 }
 0x253   : > { %v4269_v13 = vmax.f32 %v4267_v17, %v4268_v2  ;;  %v4275_v14 = vrot.slane %v4274_v37, 4  ;;  %v4282_v15 = vrot.slane %v4281_v45, 4  ;;  %v3476_v16 = vcombine.high %v3474_v7, %v3474_v7  ;;  %2138 = vrot.lane.b32.xlu1 %v11224_v8, %s13218_s16  ;;  %v2258_v7 = vld [vmem:[#allocation2 + $0xec] sm:$0xff]  ;;  %1146 = vst.msk [vmem:[#allocation3 + $0x110] sm:$0xff] %vm1001_vm0, %v1110_v41 }
 0x254   : > { %v4288_v21 = vsel %vm4091_vm14, %v3493_v11, -inf  ;;  %v1484_v26 = vpop.permute.xlu0 %1483  ;;  %v4237_v8 = vrot.slane %v4236_v18, 1 }
 0x255   : > { %v4270_v22 = vrot.slane %v4269_v13, 2  ;;  %v4276_v23 = vmax.f32 %v4274_v37, %v4275_v14  ;;  %v4283_v24 = vmax.f32 %v4281_v45, %v4282_v15  ;;  %v4289_v25 = vrot.slane %v4288_v21, 4  ;;  %1569 = vst.msk [vmem:[#allocation3 + $0xb8] sm:$0xff] %vm13236_vm5, %v1484_v26  ;;  %v1496_v63 = vpop.permute.xlu1 %1495 }
 0x256   : > { %v4260_v53 = vsel %vm4091_vm14, %v3476_v16, -inf  ;;  %1575 = vst.msk [vmem:[#allocation3 + $0xe8] sm:$0xff] %vm13238_vm15, %v1496_v63  ;;  %2150 = vrot.lane.b32.xlu0 %v11227_v9, %s13218_s16  ;;  %v4238_v52 = vmax.f32 %v4236_v18, %v4237_v8  ;;  %v3467_v14 = vrot.slane %v11304_v34, %v11048_v59  ;;  %v4210_v15 = vmax.f32 %v4208_v40, %v4209_v35  ;;  %v11369_v8 = vld [vmem:[#allocation2 + $0x11a] sm:$0xff] }
 0x257   : > { %v4271_v31 = vmax.f32 %v4269_v13, %v4270_v22  ;;  %v4277_v32 = vrot.slane %v4276_v23, 2  ;;  %v4284_v33 = vrot.slane %v4283_v24, 2  ;;  %v4290_v36 = vmax.f32 %v4288_v21, %v4289_v25  ;;  %2353 = vrot.lane.b32.xlu1 %v2257_v28, %s13215_s18 }
 0x258   : > { %v4261_v42 = vrot.slane %v4260_v53, 4  ;;  %v1699_v55 = vpop.permute.xlu0 %1698  ;;  %v5025_v21 = vsel %vm4988_vm13, %v4238_v52, -inf  ;;  %v4239_v34 = vsel %vm4091_vm14, %v3459_v62, -inf  ;;  %v3475_v29 = vcombine.high %v3467_v14, %v3467_v14  ;;  %v11387_v52 = vld [vmem:[%s10239_s25] ss:$0 sm:$0xff] }
 0x259   : > { %v4272_v43 = vrot.slane %v4271_v31, 1  ;;  %v4278_v48 = vmax.f32 %v4276_v23, %v4277_v32  ;;  %v4285_v54 = vmax.f32 %v4283_v24, %v4284_v33  ;;  %v4291_v20 = vrot.slane %v4290_v36, 2  ;;  %1785 = vst.msk [vmem:[#allocation3 + $0xb0] sm:$0xff] %vm1762_vm6, %v1699_v55  ;;  %v1711_v9 = vpop.permute.xlu1 %1710  ;;  %v2474_v24 = vld [vmem:[#allocation2 + $0xe5] sm:$0xff] }
 0x25a   : > { %v4262_v39 = vmax.f32 %v4260_v53, %v4261_v42  ;;  %1791 = vst.msk [vmem:[#allocation3 + $0xe0] sm:$0xff] %vm1762_vm6, %v1711_v9  ;;  %2365 = vrot.lane.b32.xlu0 %v11331_v57, %s13215_s18  ;;  %v5013_v30 = vsel %vm4988_vm13, %v4210_v15, -inf  ;;  %v4246_v53 = vsel %vm4091_vm14, %v3467_v14, -inf  ;;  %v4240_v32 = vrot.slane %v4239_v34, 4  ;;  %v1182_v14 = vld [vmem:[#allocation2 + $0x111] sm:$0xff] }
 0x25b   : > { %v4273_v50 = vmax.f32 %v4271_v31, %v4272_v43  ;;  %v4279_v58 = vrot.slane %v4278_v48, 1  ;;  %v4286_v49 = vrot.slane %v4285_v54, 1  ;;  %v4292_v10 = vmax.f32 %v4290_v36, %v4291_v20  ;;  %1503 = vrot.lane.b32.xlu1 %v11247_v27, %s10180_s2  ;;  %v2480_v31 = vld [vmem:[#allocation2 + $0x115] sm:$0xff] }
 0x25c   : > { %v4263_v6 = vrot.slane %v4262_v39, 2  ;;  %v2348_v2 = vpop.permute.xlu0 %2347  ;;  %v4247_v42 = vrot.slane %v4246_v53, 4  ;;  %v4253_v43 = vsel %vm4091_vm14, %v3475_v29, -inf  ;;  %vm13239_vm5 = vcmask 1041409   ;;  %v1831_v20 = vld [vmem:[#allocation2 + $0x113] sm:$0xff] }
 0x25d   : > { %v4280_v12 = vmax.f32 %v4278_v48, %v4279_v58  ;;  %v4287_v47 = vmax.f32 %v4285_v54, %v4286_v49  ;;  %v4293_v17 = vrot.slane %v4292_v10, 1  ;;  %v5017_v0 = vsel %vm4988_vm13, %v4273_v50, -inf  ;;  %2435 = vst.msk [vmem:[#allocation3 + $0xa8] sm:$0xff] %vm2413_vm9, %v2348_v2  ;;  %v2360_v45 = vpop.permute.xlu1 %2359 }
 0x25e   : > { %v5018_v11 = vmax.f32 %v5016_v38, %v5017_v0  ;;  %v4264_v37 = vmax.f32 %v4262_v39, %v4263_v6  ;;  %2441 = vst.msk [vmem:[#allocation3 + $0xd8] sm:$0xff] %vm2413_vm9, %v2360_v45  ;;  %1718 = vrot.lane.b32.xlu0 %v11342_v61, %s10182_s11  ;;  %v4241_v55 = vmax.f32 %v4239_v34, %v4240_v32  ;;  %v2475_v39 = vld [vmem:[#allocation2 + $0xed] sm:$0xff]  ;;  %v4254_v9 = vrot.slane %v4253_v43, 4  ;;  %v2481_v38 = vld [vmem:[#allocation2 + $0x11d] sm:$0xff] }
 0x25f   : > { %v4294_v3 = vmax.f32 %v4292_v10, %v4293_v17  ;;  %v5020_v27 = vsel %vm4988_vm13, %v4280_v12, -inf  ;;  %v5023_v13 = vsel %vm4988_vm13, %v4287_v47, -inf  ;;  %2355 = vrot.lane.b32.xlu1 %v2258_v7, %s13215_s18  ;;  %v4248_v10 = vmax.f32 %v4246_v53, %v4247_v42  ;;  %v2691_v17 = vld [vmem:[#allocation2 + $0xe6] sm:$0xff] }
 0x260   : > { %v5021_v16 = vmax.f32 %v5019_v4, %v5020_v27  ;;  %v5024_v18 = vmax.f32 %v5022_v5, %v5023_v13  ;;  %v4265_v19 = vrot.slane %v4264_v37, 1  ;;  %v2563_v23 = vpop.permute.xlu0 %2562  ;;  %v4242_v6 = vrot.slane %v4241_v55, 2 }
 0x261   : > { %v5026_v22 = vsel %vm4988_vm13, %v4294_v3, -inf  ;;  %2651 = vst.msk [vmem:[#allocation3 + $0xa0] sm:$0xff] %vm2630_vm10, %v2563_v23  ;;  %v2575_v28 = vpop.permute.xlu1 %2574  ;;  %v4255_v0 = vmax.f32 %v4253_v43, %v4254_v9  ;;  %v4249_v7 = vrot.slane %v4248_v10, 2  ;;  %v2692_v43 = vld [vmem:[#allocation2 + $0xee] sm:$0xff]  ;;  %vm13241_vm15 = vcmask 1046534  }
 0x262   : > { %v5027_v25 = vmax.f32 %v5025_v21, %v5026_v22  ;;  %v4266_v26 = vmax.f32 %v4264_v37, %v4265_v19  ;;  %2657 = vst.msk [vmem:[#allocation3 + $0xd0] sm:$0xff] %vm2630_vm10, %v2575_v28  ;;  %2367 = vrot.lane.b32.xlu0 %v11356_v46, %s13215_s18  ;;  %v4243_v37 = vmax.f32 %v4241_v55, %v4242_v6  ;;  %v1111_v22 = vld [vmem:[#allocation2 + $0x118] sm:$0xff] }
 0x263   : > { %2570 = vrot.lane.b32.xlu1 %v2474_v24, %s13214_s9  ;;  %v4256_v15 = vrot.slane %v4255_v0, 2  ;;  %v4250_v19 = vmax.f32 %v4248_v10, %v4249_v7  ;;  %1147 = vst.msk [vmem:[#allocation3 + $0x118] sm:$0xff] %vm1001_vm0, %v1111_v22  ;;  %v2698_v55 = vld [vmem:[#allocation2 + $0x11e] sm:$0xff]  ;;  %vm13240_vm0 = vcmask 1045509  }
 0x264   : > { %v5014_v63 = vsel %vm4988_vm13, %v4266_v26, -inf  ;;  %v1701_v36 = vpop.permute.xlu0 %1700  ;;  %v1832_v26 = vld [vmem:[#allocation2 + $0x11b] sm:$0xff]  ;;  %v4244_v28 = vrot.slane %v4243_v37, 1 }
 0x265   : > { %v5015_v33 = vmax.f32 %v5013_v30, %v5014_v63  ;;  %1786 = vst.msk [vmem:[#allocation3 + $0xb8] sm:$0xff] %vm1762_vm6, %v1701_v36  ;;  %v1713_v40 = vpop.permute.xlu1 %1712  ;;  %v4257_v30 = vmax.f32 %v4255_v0, %v4256_v15  ;;  %v1183_v6 = vld [vmem:[#allocation2 + $0x119] sm:$0xff] }
 0x266   : > { %1792 = vst.msk [vmem:[#allocation3 + $0xe8] sm:$0xff] %vm1762_vm6, %v1713_v40  ;;  %2582 = vrot.lane.b32.xlu0 %v2480_v31, %s13214_s9 }
 0x267   : > { %v5227_v48 = vsel %vm13239_vm5, %v5018_v11, %v5015_v33  ;;  %1720 = vrot.lane.b32.xlu1 %v11369_v8, %s10182_s11  ;;  %v2697_v11 = vld [vmem:[#allocation2 + $0x116] sm:$0xff]  ;;  %v4251_v33 = vrot.slane %v4250_v19, 1  ;;  %vm13242_vm5 = vcmask 1047559  }
 0x268   : > { %v5228_v54 = vsel %vm5205_vm2, %v5021_v16, %v5227_v48  ;;  %v1916_v62 = vpop.permute.xlu0 %1915  ;;  %v4245_v48 = vmax.f32 %v4243_v37, %v4244_v28  ;;  %v1616_v28 = vld [vmem:[#allocation2 + $0x122] sm:$0xff] }
 0x269   : > { %v9441_v56 = vpop.f32.mrb[8].mxu0  ;;  %v5229_v60 = vsel %vm5207_vm3, %v5024_v18, %v5228_v54  ;;  %2002 = vst.msk [vmem:[#allocation3 + $0xb0] sm:$0xff] %vm1979_vm7, %v1916_v62  ;;  %v1928_v50 = vpop.permute.xlu1 %1927  ;;  %v4258_v62 = vrot.slane %v4257_v30, 1 }
 0x26a   : > { %v3148_v58 = vpop.f32.mrb[9].mxu0  ;;  %v11383_v49 = vsel %vm13216_vm1, %v5027_v25, %v5229_v60  ;;  %2008 = vst.msk [vmem:[#allocation3 + $0xe0] sm:$0xff] %vm1979_vm7, %v1928_v50  ;;  %1935 = vrot.lane.b32.xlu0 %v1831_v20, %s13217_s13  ;;  %v3154_v23 = vadd.f32 %v11387_v52, %v9441_v56 }
 0x26b   : > { %v3149_v35 = vadd.f32 %v11387_v52, %v3148_v58  ;;  %2572 = vrot.lane.b32.xlu1 %v2475_v39, %s13214_s9  ;;  %v4252_v58 = vmax.f32 %v4250_v19, %v4251_v33  ;;  %v4259_v0 = vmax.f32 %v4257_v30, %v4258_v62 }
 0x26c   : > { %v2565_v47 = vpop.permute.xlu0 %2564  ;;  %v3296_v36 = vmax.f32 %v3154_v23, 0.0 }
 0x26d   : > { %v3295_v12 = vmax.f32 %v3149_v35, 0.0  ;;  %2652 = vst.msk [vmem:[#allocation3 + $0xa8] sm:$0xff] %vm2630_vm10, %v2565_v47  ;;  %v2577_v2 = vpop.permute.xlu1 %2576  ;;  %v5028_v47 = vsel %vm4988_vm13, %v4245_v48, -inf  ;;  %v5031_v37 = vsel %vm4988_vm13, %v4252_v58, -inf  ;;  %v5034_v19 = vsel %vm4988_vm13, %v4259_v0, -inf  ;;  %v2699_v0 = vld [vmem:[#allocation2 + $0x126] sm:$0xff] }
 0x26e   : > { %2658 = vst.msk [vmem:[#allocation3 + $0xd8] sm:$0xff] %vm2630_vm10, %v2577_v2  ;;  %2584 = vrot.lane.b32.xlu0 %v2481_v38, %s13214_s9 }
 0x26f   : > { %v3494_v4 = vcombine.high %v3295_v12, %v3295_v12  ;;  %v3501_v5 = vrot.slane %v3295_v12, %v11048_v59  ;;  %2787 = vrot.lane.b32.xlu1 %v2691_v17, %s10188_s23  ;;  %v3510_v12 = vcombine.high %v3296_v36, %v3296_v36 }
 0x270   : > { %v2780_v13 = vpop.permute.xlu0 %2779 }
 0x271   : > { %v3508_v45 = vrot.slane %v3494_v4, %v11048_v59  ;;  %v3509_v3 = vcombine.high %v3501_v5, %v3501_v5  ;;  %v4295_v27 = vsel %vm4091_vm14, %v3501_v5, -inf  ;;  %2868 = vst.msk [vmem:[#allocation3 + $0xa0] sm:$0xff] %vm2847_vm11, %v2780_v13  ;;  %v2792_v18 = vpop.permute.xlu1 %2791  ;;  %v11429_v13 = vrot.slane %v3510_v12, %v11048_v59  ;;  %v2483_v12 = vld [vmem:[#allocation2 + $0x12d] sm:$0xff] }
 0x272   : > { %v4296_v16 = vrot.slane %v4295_v27, 4  ;;  %2874 = vst.msk [vmem:[#allocation3 + $0xd0] sm:$0xff] %vm2847_vm11, %v2792_v18  ;;  %2799 = vrot.lane.b32.xlu0 %v2697_v11, %s10188_s23  ;;  %v11433_v18 = vld [vmem:[#allocation2 + $0x124] sm:$0xff] }
 0x273   : > { %v4302_v21 = vsel %vm4091_vm14, %v3509_v3, -inf  ;;  %v4309_v25 = vsel %vm4091_vm14, %v3508_v45, -inf  ;;  %1288 = vrot.lane.b32.xlu1 %v1182_v14, %s10181_s0 }
 0x274   : > { %v4297_v24 = vmax.f32 %v4295_v27, %v4296_v16  ;;  %v4303_v34 = vrot.slane %v4302_v21, 4  ;;  %v1269_v29 = vpop.permute.xlu0 %1268  ;;  %v4310_v31 = vrot.slane %v4309_v25, 4 }
 0x275   : > { %1353 = vst.msk [vmem:[#allocation3 + $0xc0] sm:$0xff] %vm1328_vm4, %v1269_v29  ;;  %v1281_v32 = vpop.permute.xlu1 %1280 }
 0x276   : > { %v4298_v53 = vrot.slane %v4297_v24, 2  ;;  %v4304_v63 = vmax.f32 %v4302_v21, %v4303_v34  ;;  %1359 = vst.msk [vmem:[#allocation3 + $0xf0] sm:$0xff] %vm1328_vm4, %v1281_v32  ;;  %1937 = vrot.lane.b32.xlu0 %v1832_v26, %s13217_s13  ;;  %v4311_v42 = vmax.f32 %v4309_v25, %v4310_v31  ;;  %v4330_v34 = vsel %vm4091_vm14, %v11429_v13, -inf }
 0x277   : > { %2152 = vrot.lane.b32.xlu1 %v11331_v57, %s13218_s16  ;;  %v3517_v57 = vrot.slane %v3296_v36, %v11048_v59  ;;  %v2482_v36 = vld [vmem:[#allocation2 + $0x125] sm:$0xff] }
 0x278   : > { %v4299_v40 = vmax.f32 %v4297_v24, %v4298_v53  ;;  %v4305_v41 = vrot.slane %v4304_v63, 2  ;;  %v1918_v54 = vpop.permute.xlu0 %1917  ;;  %v2904_v20 = vld [vmem:[#allocation3 + $0xa0] sm:$0xff]  ;;  %v4312_v39 = vrot.slane %v4311_v42, 2 }
 0x279   : > { %2003 = vst.msk [vmem:[#allocation3 + $0xb8] sm:$0xff] %vm1979_vm7, %v1918_v54  ;;  %v1930_v9 = vpop.permute.xlu1 %1929  ;;  %9457 = vmatprep.mubr.msk.f32.mxu0 %vm2929_vm12, %v2904_v20  ;;  %v2910_v50 = vld [vmem:[#allocation3 + $0xd0] sm:$0xff]  ;;  %v3525_v45 = vcombine.high %v3517_v57, %v3517_v57  ;;  %v4316_v23 = vsel %vm4091_vm14, %v3517_v57, -inf }
 0x27a   : > { %v4300_v56 = vrot.slane %v4299_v40, 1  ;;  %v4306_v60 = vmax.f32 %v4304_v63, %v4305_v41  ;;  %2009 = vst.msk [vmem:[#allocation3 + $0xe8] sm:$0xff] %vm1979_vm7, %v1930_v9  ;;  %2789 = vrot.lane.b32.xlu0 %v2692_v43, %s10188_s23  ;;  %9466 = vmatprep.mubr.msk.f32.mxu1 %vm2929_vm12, %v2910_v50  ;;  %v4313_v38 = vmax.f32 %v4311_v42, %v4312_v39  ;;  %v4317_v29 = vrot.slane %v4316_v23, 4  ;;  %v11455_v63 = vld [vmem:[#allocation2 + $0x12c] sm:$0xff] }
 0x27b   : > { %2801 = vrot.lane.b32.xlu1 %v2698_v55, %s10188_s23  ;;  %v1617_v55 = vld [vmem:[#allocation2 + $0x12a] sm:$0xff] }
 0x27c   : > { %v4301_v10 = vmax.f32 %v4299_v40, %v4300_v56  ;;  %v4307_v35 = vrot.slane %v4306_v60, 1  ;;  %v2133_v17 = vpop.permute.xlu0 %2132  ;;  %v4314_v7 = vrot.slane %v4313_v38, 1  ;;  %v4318_v40 = vmax.f32 %v4316_v23, %v4317_v29  ;;  %v2700_v29 = vld [vmem:[#allocation2 + $0x12e] sm:$0xff] }
 0x27d   : > { %2219 = vst.msk [vmem:[#allocation3 + $0xb0] sm:$0xff] %vm2196_vm8, %v2133_v17  ;;  %v2145_v5 = vpop.permute.xlu1 %2144 }
 0x27e   : > { %v4308_v2 = vmax.f32 %v4306_v60, %v4307_v35  ;;  %v5029_v4 = vsel %vm4988_vm13, %v4301_v10, -inf  ;;  %2225 = vst.msk [vmem:[#allocation3 + $0xe0] sm:$0xff] %vm2196_vm8, %v2145_v5  ;;  %1290 = vrot.lane.b32.xlu0 %v1183_v6, %s10181_s0  ;;  %v4315_v3 = vmax.f32 %v4313_v38, %v4314_v7  ;;  %v1833_v60 = vld [vmem:[#allocation2 + $0x123] sm:$0xff]  ;;  %v4319_v39 = vrot.slane %v4318_v40, 2 }
 0x27f   : > { %v5030_v11 = vmax.f32 %v5028_v47, %v5029_v4  ;;  %1505 = vrot.lane.b32.xlu1 %v11342_v61, %s10180_s2 }
 0x280   : > { %v5032_v27 = vsel %vm4988_vm13, %v4308_v2, -inf  ;;  %v2782_v16 = vpop.permute.xlu0 %2781  ;;  %v5035_v21 = vsel %vm4988_vm13, %v4315_v3, -inf  ;;  %v4320_v2 = vmax.f32 %v4318_v40, %v4319_v39  ;;  %v2268_v39 = vld [vmem:[#allocation2 + $0x13c] sm:$0xff] }
 0x281   : > { %v5033_v14 = vmax.f32 %v5031_v37, %v5032_v27  ;;  %v5231_v15 = vsel %vm13240_vm0, %v5030_v11, %v11383_v49  ;;  %2869 = vst.msk [vmem:[#allocation3 + $0xa8] sm:$0xff] %vm2847_vm11, %v2782_v16  ;;  %v2794_v22 = vpop.permute.xlu1 %2793  ;;  %v5036_v61 = vmax.f32 %v5034_v19, %v5035_v21  ;;  %v4323_v49 = vsel %vm4091_vm14, %v3525_v45, -inf }
 0x282   : > { %2875 = vst.msk [vmem:[#allocation3 + $0xd8] sm:$0xff] %vm2847_vm11, %v2794_v22  ;;  %2154 = vrot.lane.b32.xlu0 %v11356_v46, %s13218_s16  ;;  %v4324_v53 = vrot.slane %v4323_v49, 4  ;;  %v4331_v46 = vrot.slane %v4330_v34, 4  ;;  %vm13243_vm0 = vcmask 23568  }
 0x283   : > { %v5232_v24 = vsel %vm13241_vm15, %v5033_v14, %v5231_v15  ;;  %2369 = vrot.lane.b32.xlu1 %v11433_v18, %s13215_s18  ;;  %vm13244_vm15 = vmmov %vm13243_vm0  ;;  %v1834_v15 = vld [vmem:[#allocation2 + $0x12b] sm:$0xff] }
 0x284   : > { %v5233_v25 = vsel %vm13242_vm5, %v5036_v61, %v5232_v24  ;;  %v1271_v26 = vpop.permute.xlu0 %1270  ;;  %v4332_v54 = vmax.f32 %v4330_v34, %v4331_v46  ;;  %v4321_v61 = vrot.slane %v4320_v2, 1  ;;  %vm13245_vm5 = vmmov %vm13243_vm0 }
 0x285   : > { %5235 = vst.msk [vmem:[#allocation4 + $0x15] sm:$0xff] %vm4988_vm13, %v5233_v25  ;;  %v1283_v30 = vpop.permute.xlu1 %1282 }
 0x286   : > { %1354 = vst.msk [vmem:[#allocation3 + $0xc8] sm:$0xff] %vm1328_vm4, %v1271_v26  ;;  %1360 = vst.msk [vmem:[#allocation3 + $0xf8] sm:$0xff] %vm1328_vm4, %v1283_v30  ;;  %1507 = vrot.lane.b32.xlu0 %v11369_v8, %s10180_s2  ;;  %v4325_v8 = vmax.f32 %v4323_v49, %v4324_v53  ;;  %v4333_v35 = vrot.slane %v4332_v54, 2 }
 0x287   : > { %1722 = vrot.lane.b32.xlu1 %v1616_v28, %s10182_s11 }
 0x288   : > { %v1486_v31 = vpop.permute.xlu0 %1485  ;;  %v2905_v33 = vld [vmem:[#allocation3 + $0xa8] sm:$0xff]  ;;  %v4326_v57 = vrot.slane %v4325_v8, 2  ;;  %v4334_v27 = vmax.f32 %v4332_v54, %v4333_v35 }
 0x289   : > { %v9444_v32 = vpop.f32.mrb[10].mxu0  ;;  %1570 = vst.msk [vmem:[#allocation3 + $0xc0] sm:$0xff] %vm13243_vm0, %v1486_v31  ;;  %v1498_v41 = vpop.permute.xlu1 %1497  ;;  %9458 = vmatmul.mubr.msk.f32.gmra.mrb[20].mxu0 %vm2929_vm12, %v2905_v33  ;;  %v2911_v48 = vld [vmem:[#allocation3 + $0xd8] sm:$0xff]  ;;  %v3526_v33 = vcombine.high %v11429_v13, %v11429_v13  ;;  %v2267_v13 = vld [vmem:[#allocation2 + $0x134] sm:$0xff] }
 0x28a   : > { %v3164_v42 = vadd.f32 %v11387_v52, %v9444_v32  ;;  %v3158_v43 = vpop.f32.mrb[11].mxu0  ;;  %1576 = vst.msk [vmem:[#allocation3 + $0xf0] sm:$0xff] %vm13244_vm15, %v1498_v41  ;;  %9467 = vmatmul.mubr.msk.f32.vlgmr.msra.gmra.mrb[0].mxu1 %vm2929_vm12, %v2911_v48  ;;  %2371 = vrot.lane.b32.xlu0 %v11455_v63, %s13215_s18  ;;  %v4327_v37 = vmax.f32 %v4325_v8, %v4326_v57  ;;  %v4335_v28 = vrot.slane %v4334_v27, 1  ;;  %vm13246_vm15 = vcmask 1041409  }
 0x28b   : > { %2586 = vrot.lane.b32.xlu1 %v2482_v36, %s13214_s9  ;;  %v3159_v62 = vadd.f32 %v11387_v52, %v3158_v43  ;;  %v4322_v36 = vmax.f32 %v4320_v2, %v4321_v61 }
 0x28c   : > { %v3298_v20 = vmax.f32 %v3164_v42, 0.0  ;;  %v2135_v56 = vpop.permute.xlu0 %2134  ;;  %v5340_v10 = vld [vmem:[#allocation4 + $0x10] sm:$0xff]  ;;  %v4328_v49 = vrot.slane %v4327_v37, 1  ;;  %v4336_v8 = vmax.f32 %v4334_v27, %v4335_v28 }
 0x28d   : > { %2220 = vst.msk [vmem:[#allocation3 + $0xb8] sm:$0xff] %vm2196_vm8, %v2135_v56  ;;  %v2147_v58 = vpop.permute.xlu1 %2146  ;;  %v3297_v47 = vmax.f32 %v3159_v62, 0.0 }
 0x28e   : > { %v3544_v9 = vcombine.high %v3298_v20, %v3298_v20  ;;  %v3551_v50 = vrot.slane %v3298_v20, %v11048_v59  ;;  %2226 = vst.msk [vmem:[#allocation3 + $0xe8] sm:$0xff] %vm2196_vm8, %v2147_v58  ;;  %1724 = vrot.lane.b32.xlu0 %v1617_v55, %s10182_s11  ;;  %v4329_v41 = vmax.f32 %v4327_v37, %v4328_v49 }
 0x28f   : > { %1939 = vrot.lane.b32.xlu1 %v1833_v60, %s13217_s13  ;;  %5350 = vst.msk [vmem:[#allocation5 + $0x10] sm:$0xff] %vm4988_vm13, %v5340_v10  ;;  %v3527_v22 = vcombine.high %v3297_v47, %v3297_v47  ;;  %v3534_v54 = vrot.slane %v3297_v47, %v11048_v59  ;;  %v5043_v47 = vsel %vm4988_vm13, %v4336_v8, -inf }
 0x290   : > { %v3558_v38 = vrot.slane %v3544_v9, %v11048_v59  ;;  %v3559_v6 = vcombine.high %v3551_v50, %v3551_v50  ;;  %v2350_v17 = vpop.permute.xlu0 %2349  ;;  %v4337_v9 = vsel %vm4091_vm14, %v3526_v33, -inf  ;;  %v5037_v50 = vsel %vm4988_vm13, %v4322_v36, -inf  ;;  %v5359_v36 = vld [vmem:[#allocation4 + $0x9] sm:$0xff] }
 0x291   : > { %2436 = vst.msk [vmem:[#allocation3 + $0xb0] sm:$0xff] %vm2413_vm9, %v2350_v17  ;;  %v2362_v11 = vpop.permute.xlu1 %2361  ;;  %v11486_v31 = vrot.slane %v3527_v22, %v11048_v59 }
 0x292   : > { %v3560_v7 = vcombine.high %v3558_v38, %v3558_v38  ;;  %v4372_v4 = vsel %vm4091_vm14, %v3559_v6, -inf  ;;  %v4379_v5 = vsel %vm4091_vm14, %v3558_v38, -inf  ;;  %2442 = vst.msk [vmem:[#allocation3 + $0xe0] sm:$0xff] %vm2413_vm9, %v2362_v11  ;;  %2588 = vrot.lane.b32.xlu0 %v2483_v12, %s13214_s9  ;;  %v2484_v12 = vld [vmem:[#allocation2 + $0x135] sm:$0xff] }
 0x293   : > { %v4373_v45 = vrot.slane %v4372_v4, 4  ;;  %v4380_v3 = vrot.slane %v4379_v5, 4  ;;  %2803 = vrot.lane.b32.xlu1 %v2699_v0, %s10188_s23  ;;  %v3543_v56 = vcombine.high %v11486_v31, %v11486_v31  ;;  %v3542_v0 = vcombine.high %v3534_v54, %v3534_v54 }
 0x294   : > { %v4386_v14 = vsel %vm4091_vm14, %v3560_v7, -inf  ;;  %v1488_v23 = vpop.permute.xlu0 %1487 }
 0x295   : > { %v4374_v16 = vmax.f32 %v4372_v4, %v4373_v45  ;;  %v4381_v19 = vmax.f32 %v4379_v5, %v4380_v3  ;;  %v4387_v21 = vrot.slane %v4386_v14, 4  ;;  %1571 = vst.msk [vmem:[#allocation3 + $0xc8] sm:$0xff] %vm13245_vm5, %v1488_v23  ;;  %v1500_v24 = vpop.permute.xlu1 %1499  ;;  %v4365_v2 = vsel %vm4091_vm14, %v3543_v56, -inf  ;;  %v2485_v4 = vld [vmem:[#allocation2 + $0x13d] sm:$0xff]  ;;  %v5420_v56 = vld [vmem:[#allocation4 + $0xa] sm:$0xff] }
 0x296   : > { %1577 = vst.msk [vmem:[#allocation3 + $0xf8] sm:$0xff] %vm13243_vm0, %v1500_v24  ;;  %1941 = vrot.lane.b32.xlu0 %v1834_v15, %s13217_s13  ;;  %v4338_v5 = vrot.slane %v4337_v9, 4  ;;  %v4344_v3 = vsel %vm4091_vm14, %v3534_v54, -inf  ;;  %v4366_v27 = vrot.slane %v4365_v2, 4  ;;  %vm13247_vm5 = vcmask 1045509   ;;  %s10195_s13 = smov 56  }
 0x297   : > { %v4375_v34 = vrot.slane %v4374_v16, 2  ;;  %v4382_v25 = vrot.slane %v4381_v19, 2  ;;  %v4388_v26 = vmax.f32 %v4386_v14, %v4387_v21  ;;  %2156 = vrot.lane.b32.xlu1 %v11433_v18, %s13218_s16  ;;  %v5338_v18 = vld [vmem:[#allocation4] sm:$0xff]  ;;  %v2701_v14 = vld [vmem:[#allocation2 + $0x136] sm:$0xff]  ;;  %v2702_v21 = vld [vmem:[#allocation2 + $0x13e] sm:$0xff]  ;;  %v4345_v61 = vrot.slane %v4344_v3, 4 }
 0x298   : > { %v1703_v32 = vpop.permute.xlu0 %1702  ;;  %5348 = vst.msk [vmem:[#allocation5] sm:$0xff] %vm4988_vm13, %v5338_v18  ;;  %v4339_v22 = vmax.f32 %v4337_v9, %v4338_v5  ;;  %v4367_v49 = vmax.f32 %v4365_v2, %v4366_v27 }
 0x299   : > { %v4376_v30 = vmax.f32 %v4374_v16, %v4375_v34  ;;  %v4383_v53 = vmax.f32 %v4381_v19, %v4382_v25  ;;  %v4389_v46 = vrot.slane %v4388_v26, 2  ;;  %1787 = vst.msk [vmem:[#allocation3 + $0xc0] sm:$0xff] %vm1762_vm6, %v1703_v32  ;;  %v1715_v40 = vpop.permute.xlu1 %1714  ;;  %v4351_v16 = vsel %vm4091_vm14, %v3542_v0, -inf  ;;  %v5358_v34 = vld [vmem:[#allocation4 + $0x1] sm:$0xff] }
 0x29a   : > { %1793 = vst.msk [vmem:[#allocation3 + $0xf0] sm:$0xff] %vm1762_vm6, %v1715_v40  ;;  %2805 = vrot.lane.b32.xlu0 %v2700_v29, %s10188_s23  ;;  %v4352_v24 = vrot.slane %v4351_v16, 4  ;;  %v4358_v25 = vsel %vm4091_vm14, %v11486_v31, -inf  ;;  %v4340_v29 = vrot.slane %v4339_v22, 2  ;;  %v4346_v32 = vmax.f32 %v4344_v3, %v4345_v61  ;;  %v5541_v61 = vld [vmem:[#allocation4 + $0xb] sm:$0xff] }
 0x29b   : > { %v4377_v42 = vrot.slane %v4376_v30, 1  ;;  %v4384_v43 = vrot.slane %v4383_v53, 1  ;;  %v4390_v48 = vmax.f32 %v4388_v26, %v4389_v46  ;;  %2158 = vrot.lane.b32.xlu1 %v11455_v63, %s13218_s16  ;;  %v5040_v63 = vsel %vm4988_vm13, %v4329_v41, -inf  ;;  %s10196_s16 = smov 64  }
 0x29c   : > { %v2352_v60 = vpop.permute.xlu0 %2351  ;;  %v4353_v40 = vmax.f32 %v4351_v16, %v4352_v24  ;;  %v4359_v41 = vrot.slane %v4358_v25, 4  ;;  %v4368_v31 = vrot.slane %v4367_v49, 2  ;;  %v4341_v8 = vmax.f32 %v4339_v22, %v4340_v29 }
 0x29d   : > { %v4378_v20 = vmax.f32 %v4376_v30, %v4377_v42  ;;  %v4385_v55 = vmax.f32 %v4383_v53, %v4384_v43  ;;  %v4391_v62 = vrot.slane %v4390_v48, 1  ;;  %2437 = vst.msk [vmem:[#allocation3 + $0xb8] sm:$0xff] %vm2413_vm9, %v2352_v60  ;;  %v2364_v58 = vpop.permute.xlu1 %2363  ;;  %v5419_v43 = vld [vmem:[#allocation4 + $0x2] sm:$0xff] }
 0x29e   : > { %2443 = vst.msk [vmem:[#allocation3 + $0xe8] sm:$0xff] %vm2413_vm9, %v2364_v58  ;;  %2373 = vrot.lane.b32.xlu0 %v2267_v13, %s13215_s18  ;;  %v4354_v60 = vrot.slane %v4353_v40, 2  ;;  %v4369_v9 = vmax.f32 %v4367_v49, %v4368_v31 }
 0x29f   : > { %v4392_v57 = vmax.f32 %v4390_v48, %v4391_v62  ;;  %v5038_v10 = vsel %vm4988_vm13, %v4378_v20, -inf  ;;  %v5041_v35 = vsel %vm4988_vm13, %v4385_v55, -inf  ;;  %2375 = vrot.lane.b32.xlu1 %v2268_v39, %s13215_s18  ;;  %v4347_v20 = vrot.slane %v4346_v32, 2  ;;  %s10194_s18 = smov 48  }
 0x2a0   : > { %v5039_v38 = vmax.f32 %v5037_v50, %v5038_v10  ;;  %v5042_v6 = vmax.f32 %v5040_v63, %v5041_v35  ;;  %v2567_v7 = vpop.permute.xlu0 %2566  ;;  %v4360_v39 = vmax.f32 %v4358_v25, %v4359_v41  ;;  %v4370_v3 = vrot.slane %v4369_v9, 1 }
 0x2a1   : > { %v5044_v17 = vsel %vm4988_vm13, %v4392_v57, -inf  ;;  %2653 = vst.msk [vmem:[#allocation3 + $0xb0] sm:$0xff] %vm2630_vm10, %v2567_v7  ;;  %v2579_v45 = vpop.permute.xlu1 %2578  ;;  %v11549_v7 = vld [vmem:[#allocation4 + $0x12] sm:$0xff] }
 0x2a2   : > { %v5045_v11 = vmax.f32 %v5043_v47, %v5044_v17  ;;  %v5244_v37 = vsel %vm13246_vm15, %v5042_v6, %v5039_v38  ;;  %2659 = vst.msk [vmem:[#allocation3 + $0xe0] sm:$0xff] %vm2630_vm10, %v2579_v45  ;;  %2590 = vrot.lane.b32.xlu0 %v2484_v12, %s13214_s9  ;;  %v4342_v38 = vrot.slane %v4341_v8, 1  ;;  %v4348_v47 = vmax.f32 %v4346_v32, %v4347_v20 }
 0x2a3   : > { %2592 = vrot.lane.b32.xlu1 %v2485_v4, %s13214_s9  ;;  %v4361_v4 = vrot.slane %v4360_v39, 2  ;;  %v4355_v45 = vmax.f32 %v4353_v40, %v4354_v60  ;;  %v4371_v32 = vmax.f32 %v4369_v9, %v4370_v3  ;;  %s10193_s9 = smov 40   ;;  %vm13248_vm15 = vcmask 1046534  }
 0x2a4   : > { %v11518_v15 = vsel %vm5205_vm2, %v5045_v11, %v5244_v37  ;;  %v1705_v19 = vpop.permute.xlu0 %1704  ;;  %v4343_v24 = vmax.f32 %v4341_v8, %v4342_v38  ;;  %v4349_v49 = vrot.slane %v4348_v47, 1 }
 0x2a5   : > { %1788 = vst.msk [vmem:[#allocation3 + $0xc8] sm:$0xff] %vm1762_vm6, %v1705_v19  ;;  %v1717_v23 = vpop.permute.xlu1 %1716 }
 0x2a6   : > { %1794 = vst.msk [vmem:[#allocation3 + $0xf8] sm:$0xff] %vm1762_vm6, %v1717_v23  ;;  %2807 = vrot.lane.b32.xlu0 %v2701_v14, %s10188_s23 }
 0x2a7   : > { %2809 = vrot.lane.b32.xlu1 %v2702_v21, %s10188_s23 }
 0x2a8   : > { %v1920_v26 = vpop.permute.xlu0 %1919 }
 0x2a9   : > { %v9447_v28 = vpop.f32.mrb[12].mxu0  ;;  %2004 = vst.msk [vmem:[#allocation3 + $0xc0] sm:$0xff] %vm1979_vm7, %v1920_v26  ;;  %v1932_v30 = vpop.permute.xlu1 %1931  ;;  %v5360_v26 = vld [vmem:[#allocation4 + $0x11] sm:$0xff] }
 0x2aa   : > { %v3174_v53 = vadd.f32 %v11387_v52, %v9447_v28  ;;  %v3168_v46 = vpop.f32.mrb[13].mxu0  ;;  %2010 = vst.msk [vmem:[#allocation3 + $0xf0] sm:$0xff] %vm1979_vm7, %v1932_v30  ;;  %5378 = vrot.lane.b32.xlu0 %v5358_v34, %s10188_s23  ;;  %v4362_v28 = vmax.f32 %v4360_v39, %v4361_v4 }
 0x2ab   : > { %v3169_v33 = vadd.f32 %v11387_v52, %v3168_v46  ;;  %5380 = vrot.lane.b32.xlu1 %v5359_v36, %s10188_s23  ;;  %v4356_v46 = vrot.slane %v4355_v45, 1 }
 0x2ac   : > { %v11532_v42 = vmax.f32 %v3174_v53, 0.0  ;;  %v2569_v18 = vpop.permute.xlu0 %2568  ;;  %v4363_v60 = vrot.slane %v4362_v28, 1 }
 0x2ad   : > { %v3299_v48 = vmax.f32 %v3169_v33, 0.0  ;;  %2654 = vst.msk [vmem:[#allocation3 + $0xb8] sm:$0xff] %vm2630_vm10, %v2569_v18  ;;  %v2581_v13 = vpop.permute.xlu1 %2580 }
 0x2ae   : > { %v3585_v54 = vrot.slane %v11532_v42, %v11048_v59  ;;  %2660 = vst.msk [vmem:[#allocation3 + $0xe8] sm:$0xff] %vm2630_vm10, %v2581_v13  ;;  %5439 = vrot.lane.b32.xlu0 %v5419_v43, %s10190_s26  ;;  %v4350_v13 = vmax.f32 %v4348_v47, %v4349_v49 }
 0x2af   : > { %v3561_v55 = vcombine.high %v3299_v48, %v3299_v48  ;;  %v3568_v62 = vrot.slane %v3299_v48, %v11048_v59  ;;  %5441 = vrot.lane.b32.xlu1 %v5420_v56, %s10190_s26 }
 0x2b0   : > { %v4421_v50 = vsel %vm4091_vm14, %v3585_v54, -inf  ;;  %v2784_v35 = vpop.permute.xlu0 %2783  ;;  %v5542_v54 = vld [vmem:[#allocation4 + $0x13] sm:$0xff] }
 0x2b1   : > { %v4422_v58 = vrot.slane %v4421_v50, 4  ;;  %v3575_v63 = vrot.slane %v3561_v55, %v11048_v59  ;;  %v3576_v57 = vcombine.high %v3568_v62, %v3568_v62  ;;  %v4393_v10 = vsel %vm4091_vm14, %v3568_v62, -inf  ;;  %2870 = vst.msk [vmem:[#allocation3 + $0xb0] sm:$0xff] %vm2847_vm11, %v2784_v35  ;;  %v2796_v12 = vpop.permute.xlu1 %2795 }
 0x2b2   : > { %v4394_v6 = vrot.slane %v4393_v10, 4  ;;  %2876 = vst.msk [vmem:[#allocation3 + $0xe0] sm:$0xff] %vm2847_vm11, %v2796_v12  ;;  %5500 = vrot.lane.b32.xlu0 %v5420_v56, %s10191_s20  ;;  %v5046_v62 = vsel %vm4988_vm13, %v4343_v24, -inf  ;;  %v5602_v56 = vld [vmem:[#allocation4 + $0xc] sm:$0xff] }
 0x2b3   : > { %v4423_v17 = vmax.f32 %v4421_v50, %v4422_v58  ;;  %v3577_v0 = vcombine.high %v3575_v63, %v3575_v63  ;;  %v4400_v2 = vsel %vm4091_vm14, %v3576_v57, -inf  ;;  %v4407_v37 = vsel %vm4091_vm14, %v3575_v63, -inf  ;;  %5502 = vrot.lane.b32.xlu1 %v11549_v7, %s10191_s20 }
 0x2b4   : > { %v4395_v5 = vmax.f32 %v4393_v10, %v4394_v6  ;;  %v4401_v11 = vrot.slane %v4400_v2, 4  ;;  %v4408_v14 = vrot.slane %v4407_v37, 4  ;;  %v1285_v16 = vpop.permute.xlu0 %1284  ;;  %v4357_v58 = vmax.f32 %v4355_v45, %v4356_v46 }
 0x2b5   : > { %v4424_v27 = vrot.slane %v4423_v17, 2  ;;  %v4414_v22 = vsel %vm4091_vm14, %v3577_v0, -inf  ;;  %1361 = vst.msk [vmem:[#allocation3 + $0x100] sm:$0xff] %vm1328_vm4, %v1285_v16  ;;  %v1922_v23 = vpop.permute.xlu1 %1921  ;;  %v5058_v63 = vsel %vm4988_vm13, %v4371_v32, -inf  ;;  %v3578_v0 = vcombine.high %v11532_v42, %v11532_v42 }
 0x2b6   : > { %v4396_v19 = vrot.slane %v4395_v5, 2  ;;  %v4402_v21 = vmax.f32 %v4400_v2, %v4401_v11  ;;  %v4409_v25 = vmax.f32 %v4407_v37, %v4408_v14  ;;  %2005 = vst.msk [vmem:[#allocation3 + $0xc8] sm:$0xff] %vm1979_vm7, %v1922_v23  ;;  %5561 = vrot.lane.b32.xlu0 %v5541_v61, %s10192_s1  ;;  %v4415_v53 = vrot.slane %v4414_v22, 4 }
 0x2b7   : > { %v4425_v34 = vmax.f32 %v4423_v17, %v4424_v27  ;;  %5382 = vrot.lane.b32.xlu1 %v5360_v26, %s10188_s23  ;;  %v5049_v11 = vsel %vm4988_vm13, %v4350_v13, -inf  ;;  %v5052_v3 = vsel %vm4988_vm13, %v4357_v58, -inf  ;;  %v11583_v23 = vrot.slane %v3578_v0, %v11048_v59 }
 0x2b8   : > { %v4397_v29 = vmax.f32 %v4395_v5, %v4396_v19  ;;  %v4403_v30 = vrot.slane %v4402_v21, 2  ;;  %v4410_v36 = vrot.slane %v4409_v25, 2  ;;  %v1934_v40 = vpop.permute.xlu0 %1933  ;;  %v2906_v41 = vld [vmem:[#allocation3 + $0xb0] sm:$0xff]  ;;  %v4416_v48 = vmax.f32 %v4414_v22, %v4415_v53 }
 0x2b9   : > { %v4426_v33 = vrot.slane %v4425_v34, 1  ;;  %2011 = vst.msk [vmem:[#allocation3 + $0xf8] sm:$0xff] %vm1979_vm7, %v1934_v40  ;;  %v2137_v18 = vpop.permute.xlu1 %2136  ;;  %9460 = vmatprep.mubr.msk.f32.mxu0 %vm2929_vm12, %v2906_v41  ;;  %v2912_v8 = vld [vmem:[#allocation3 + $0xe0] sm:$0xff]  ;;  %v4364_v5 = vmax.f32 %v4362_v28, %v4363_v60  ;;  %v3593_v60 = vcombine.high %v11583_v23, %v11583_v23 }
 0x2ba   : > { %v4398_v31 = vrot.slane %v4397_v29, 1  ;;  %v4404_v43 = vmax.f32 %v4402_v21, %v4403_v30  ;;  %v4411_v55 = vmax.f32 %v4409_v25, %v4410_v36  ;;  %2221 = vst.msk [vmem:[#allocation3 + $0xc0] sm:$0xff] %vm2196_vm8, %v2137_v18  ;;  %9469 = vmatprep.mubr.msk.f32.mxu1 %vm2929_vm12, %v2912_v8  ;;  %5563 = vrot.lane.b32.xlu0 %v5542_v54, %s10192_s1  ;;  %v4417_v50 = vrot.slane %v4416_v48, 2 }
 0x2bb   : > { %v4427_v20 = vmax.f32 %v4425_v34, %v4426_v33  ;;  %5622 = vrot.lane.b32.xlu1 %v5602_v56, %s10193_s9  ;;  %v5055_v24 = vsel %vm4988_vm13, %v4364_v5, -inf }
 0x2bc   : > { %v4399_v39 = vmax.f32 %v4397_v29, %v4398_v31  ;;  %v4405_v9 = vrot.slane %v4404_v43, 1  ;;  %v4412_v10 = vrot.slane %v4411_v55, 1  ;;  %v2149_v35 = vpop.permute.xlu0 %2148  ;;  %v4418_v12 = vmax.f32 %v4416_v48, %v4417_v50 }
 0x2bd   : > { %v5059_v57 = vsel %vm4988_vm13, %v4427_v20, -inf  ;;  %2227 = vst.msk [vmem:[#allocation3 + $0xf0] sm:$0xff] %vm2196_vm8, %v2149_v35  ;;  %v2786_v17 = vpop.permute.xlu1 %2785  ;;  %v4428_v29 = vsel %vm4091_vm14, %v11583_v23, -inf }
 0x2be   : > { %v5060_v38 = vmax.f32 %v5058_v63, %v5059_v57  ;;  %v4406_v6 = vmax.f32 %v4404_v43, %v4405_v9  ;;  %v5047_v47 = vsel %vm4988_vm13, %v4399_v39, -inf  ;;  %v4413_v2 = vmax.f32 %v4411_v55, %v4412_v10  ;;  %2871 = vst.msk [vmem:[#allocation3 + $0xb8] sm:$0xff] %vm2847_vm11, %v2786_v17  ;;  %v5724_v10 = vld [vmem:[#allocation4 + $0x15] sm:$0xff] }
 0x2bf   : > { %v5048_v4 = vmax.f32 %v5046_v62, %v5047_v47  ;;  %v4419_v37 = vrot.slane %v4418_v12, 1  ;;  %5443 = vrot.lane.b32.xlu1 %v11549_v7, %s10190_s26  ;;  %v5663_v7 = vld [vmem:[#allocation4 + $0x14] sm:$0xff]  ;;  %v4429_v33 = vrot.slane %v4428_v29, 4 }
 0x2c0   : > { %v5050_v45 = vsel %vm4988_vm13, %v4406_v6, -inf  ;;  %v5053_v14 = vsel %vm4988_vm13, %v4413_v2, -inf  ;;  %v2798_v16 = vpop.permute.xlu0 %2797 }
 0x2c1   : > { %v5051_v27 = vmax.f32 %v5049_v11, %v5050_v45  ;;  %v5246_v42 = vsel %vm5207_vm3, %v5048_v4, %v11518_v15  ;;  %v4420_v19 = vmax.f32 %v4418_v12, %v4419_v37  ;;  %v5054_v21 = vmax.f32 %v5052_v3, %v5053_v14  ;;  %2877 = vst.msk [vmem:[#allocation3 + $0xe8] sm:$0xff] %vm2847_vm11, %v2798_v16  ;;  %v1287_v22 = vpop.permute.xlu1 %1286 }
 0x2c2   : > { %1362 = vst.msk [vmem:[#allocation3 + $0x108] sm:$0xff] %vm1328_vm4, %v1287_v22  ;;  %v4430_v18 = vmax.f32 %v4428_v29, %v4429_v33  ;;  %v4435_v12 = vsel %vm4091_vm14, %v3593_v60, -inf }
 0x2c3   : > { %v5247_v61 = vsel %vm13216_vm1, %v5051_v27, %v5246_v42  ;;  %v5056_v49 = vsel %vm4988_vm13, %v4420_v19, -inf  ;;  %5683 = vrot.lane.b32.xlu1 %v5663_v7, %s10194_s18  ;;  %vm13249_vm1 = vcmask 1047559   ;;  %v4436_v45 = vrot.slane %v4435_v12, 4 }
 0x2c4   : > { %v5248_v15 = vsel %vm13247_vm5, %v5054_v21, %v5247_v61  ;;  %v5057_v34 = vmax.f32 %v5055_v24, %v5056_v49  ;;  %v1502_v25 = vpop.permute.xlu0 %1501  ;;  %v4431_v39 = vrot.slane %v4430_v18, 2  ;;  %v5785_v24 = vld [vmem:[#allocation4 + $0x16] sm:$0xff]  ;;  %vm13251_vm5 = vmmov %vm13243_vm0 }
 0x2c5   : > { %1578 = vst.msk [vmem:[#allocation3 + $0x100] sm:$0xff] %vm13243_vm0, %v1502_v25  ;;  %v2139_v26 = vpop.permute.xlu1 %2138  ;;  %v2907_v28 = vld [vmem:[#allocation3 + $0xb8] sm:$0xff]  ;;  %v4437_v49 = vmax.f32 %v4435_v12, %v4436_v45 }
 0x2c6   : > { %v5249_v30 = vsel %vm13248_vm15, %v5057_v34, %v5248_v15  ;;  %2222 = vst.msk [vmem:[#allocation3 + $0xc8] sm:$0xff] %vm2196_vm8, %v2139_v26  ;;  %9461 = vmatmul.mubr.msk.f32.gmra.mrb[22].mxu0 %vm2929_vm12, %v2907_v28  ;;  %v4432_v6 = vmax.f32 %v4430_v18, %v4431_v39  ;;  %vm13255_vm15 = vcmask 1045509  }
 0x2c7   : > { %v5250_v53 = vsel %vm13249_vm1, %v5060_v38, %v5249_v30  ;;  %vm13250_vm1 = vmmov %vm13243_vm0  ;;  %v4438_v33 = vrot.slane %v4437_v49, 2 }
 0x2c8   : > { %5252 = vst.msk [vmem:[#allocation4 + $0x1f] sm:$0xff] %vm4988_vm13, %v5250_v53  ;;  %v2151_v46 = vpop.permute.xlu0 %2150  ;;  %v2913_v32 = vld [vmem:[#allocation3 + $0xe8] sm:$0xff]  ;;  %v4433_v27 = vrot.slane %v4432_v6, 1 }
 0x2c9   : > { %2228 = vst.msk [vmem:[#allocation3 + $0xf8] sm:$0xff] %vm2196_vm8, %v2151_v46  ;;  %v2354_v36 = vpop.permute.xlu1 %2353  ;;  %v9450_v40 = vpop.f32.mrb[14].mxu0  ;;  %9470 = vmatmul.mubr.msk.f32.gmra.mrb[2].mxu1 %vm2929_vm12, %v2913_v32 }
 0x2ca   : > { %2438 = vst.msk [vmem:[#allocation3 + $0xc0] sm:$0xff] %vm2413_vm9, %v2354_v36  ;;  %v3184_v41 = vadd.f32 %v11387_v52, %v9450_v40  ;;  %v3178_v31 = vpop.f32.mrb[15].mxu0  ;;  %v4434_v25 = vmax.f32 %v4432_v6, %v4433_v27 }
 0x2cb   : > { %v3179_v8 = vadd.f32 %v11387_v52, %v3178_v31 }
 0x2cc   : > { %v3302_v43 = vmax.f32 %v3184_v41, 0.0  ;;  %v2366_v48 = vpop.permute.xlu0 %2365  ;;  %v11641_v31 = vsel %vm4988_vm13, %v4434_v25, -inf }
 0x2cd   : > { %2444 = vst.msk [vmem:[#allocation3 + $0xf0] sm:$0xff] %vm2413_vm9, %v2366_v48  ;;  %v1504_v54 = vpop.permute.xlu1 %1503  ;;  %v3301_v52 = vmax.f32 %v3179_v8, 0.0 }
 0x2ce   : > { %v3611_v13 = vcombine.high %v3302_v43, %v3302_v43  ;;  %1579 = vst.msk [vmem:[#allocation3 + $0x108] sm:$0xff] %vm13250_vm1, %v1504_v54  ;;  %v3618_v63 = vrot.slane %v3302_v43, %v11048_v59  ;;  %vm13256_vm1 = vcmask 1046534  }
 0x2cf   : > { %v5361_v20 = vld [vmem:[#allocation4 + $0x19] sm:$0xff]  ;;  %v3601_v17 = vrot.slane %v3301_v52, %v11048_v59  ;;  %v3594_v11 = vcombine.high %v3301_v52, %v3301_v52 }
 0x2d0   : > { %v5482_v55 = vld [vmem:[#allocation4 + $0x1a] sm:$0xff]  ;;  %v3625_v62 = vrot.slane %v3611_v13, %v11048_v59  ;;  %5384 = vrot.lane.b32.xlu0 %v5361_v20, %s10188_s23  ;;  %v1719_v56 = vpop.permute.xlu0 %1718  ;;  %v3626_v2 = vcombine.high %v3618_v63, %v3618_v63  ;;  %v4470_v4 = vsel %vm4091_vm14, %v3618_v63, -inf }
 0x2d1   : > { %5504 = vrot.lane.b32.xlu1 %v5482_v55, %s10191_s20  ;;  %1795 = vst.msk [vmem:[#allocation3 + $0x100] sm:$0xff] %vm1762_vm6, %v1719_v56  ;;  %v2356_v9 = vpop.permute.xlu1 %2355  ;;  %v5341_v50 = vld [vmem:[#allocation4 + $0x18] sm:$0xff]  ;;  %v5342_v58 = vld [vmem:[#allocation4 + $0x20] sm:$0xff]  ;;  %v4442_v42 = vsel %vm4091_vm14, %v3601_v17, -inf  ;;  %v4471_v19 = vrot.slane %v4470_v4, 4  ;;  %v3609_v22 = vcombine.high %v3601_v17, %v3601_v17  ;;  %v3608_v61 = vrot.slane %v3594_v11, %v11048_v59 }
 0x2d2   : > { %v3627_v57 = vcombine.high %v3625_v62, %v3625_v62  ;;  %2439 = vst.msk [vmem:[#allocation3 + $0xc8] sm:$0xff] %vm2413_vm9, %v2356_v9  ;;  %v5543_v37 = vld [vmem:[#allocation4 + $0x1b] sm:$0xff]  ;;  %v4477_v21 = vsel %vm4091_vm14, %v3626_v2, -inf  ;;  %v4443_v15 = vrot.slane %v4442_v42, 4 }
 0x2d3   : > { %5351 = vst.msk [vmem:[#allocation5 + $0x18] sm:$0xff] %vm4988_vm13, %v5341_v50  ;;  %5352 = vst.msk [vmem:[#allocation5 + $0x20] sm:$0xff] %vm4988_vm13, %v5342_v58  ;;  %v4478_v26 = vrot.slane %v4477_v21, 4  ;;  %v4472_v30 = vmax.f32 %v4470_v4, %v4471_v19  ;;  %v4449_v53 = vsel %vm4091_vm14, %v3609_v22, -inf  ;;  %v4456_v32 = vsel %vm4091_vm14, %v3608_v61, -inf }
 0x2d4   : > { %v4484_v35 = vsel %vm4091_vm14, %v3627_v57, -inf  ;;  %5624 = vrot.lane.b32.xlu0 %v5663_v7, %s10193_s9  ;;  %v2368_v38 = vpop.permute.xlu0 %2367  ;;  %v11631_v7 = vld [vmem:[#allocation4 + $0x1c] sm:$0xff]  ;;  %v3610_v36 = vcombine.high %v3608_v61, %v3608_v61  ;;  %v4444_v40 = vmax.f32 %v4442_v42, %v4443_v15  ;;  %v4450_v18 = vrot.slane %v4449_v53, 4  ;;  %v11658_v42 = vld [vmem:[%s10239_s25] ss:$0 sm:$0xff] }
 0x2d5   : > { %5744 = vrot.lane.b32.xlu1 %v5724_v10, %s10195_s13  ;;  %v4485_v47 = vrot.slane %v4484_v35, 4  ;;  %2445 = vst.msk [vmem:[#allocation3 + $0xf8] sm:$0xff] %vm2413_vm9, %v2368_v38  ;;  %v2571_v0 = vpop.permute.xlu1 %2570  ;;  %v4479_v43 = vmax.f32 %v4477_v21, %v4478_v26  ;;  %v4473_v54 = vrot.slane %v4472_v30, 2  ;;  %v4457_v20 = vrot.slane %v4456_v32, 4 }
 0x2d6   : > { %2655 = vst.msk [vmem:[#allocation3 + $0xc0] sm:$0xff] %vm2630_vm10, %v2571_v0  ;;  %v4445_v62 = vrot.slane %v4444_v40, 2  ;;  %v4463_v56 = vsel %vm4091_vm14, %v3610_v36, -inf  ;;  %v4451_v52 = vmax.f32 %v4449_v53, %v4450_v18 }
 0x2d7   : > { %v4486_v5 = vmax.f32 %v4484_v35, %v4485_v47  ;;  %v4480_v39 = vrot.slane %v4479_v43, 2  ;;  %v4474_v50 = vmax.f32 %v4472_v30, %v4473_v54  ;;  %v4458_v58 = vmax.f32 %v4456_v32, %v4457_v20 }
 0x2d8   : > { %5445 = vrot.lane.b32.xlu0 %v5482_v55, %s10190_s26  ;;  %v2583_v3 = vpop.permute.xlu0 %2582  ;;  %v4439_v55 = vmax.f32 %v4437_v49, %v4438_v33  ;;  %v4464_v63 = vrot.slane %v4463_v56, 4  ;;  %v4446_v10 = vmax.f32 %v4444_v40, %v4445_v62  ;;  %v4452_v6 = vrot.slane %v4451_v52, 2 }
 0x2d9   : > { %5565 = vrot.lane.b32.xlu1 %v5543_v37, %s10192_s1  ;;  %v4487_v14 = vrot.slane %v4486_v5, 2  ;;  %2661 = vst.msk [vmem:[#allocation3 + $0xf0] sm:$0xff] %vm2630_vm10, %v2583_v3  ;;  %v1721_v16 = vpop.permute.xlu1 %1720  ;;  %v4481_v38 = vmax.f32 %v4479_v43, %v4480_v39  ;;  %v4475_v17 = vrot.slane %v4474_v50, 1  ;;  %v4459_v0 = vrot.slane %v4458_v58, 2 }
 0x2da   : > { %1796 = vst.msk [vmem:[#allocation3 + $0x108] sm:$0xff] %vm1762_vm6, %v1721_v16  ;;  %v4440_v57 = vrot.slane %v4439_v55, 1  ;;  %v4465_v2 = vmax.f32 %v4463_v56, %v4464_v63  ;;  %v4453_v27 = vmax.f32 %v4451_v52, %v4452_v6 }
 0x2db   : > { %v4488_v23 = vmax.f32 %v4486_v5, %v4487_v14  ;;  %v4447_v5 = vrot.slane %v4446_v10, 1  ;;  %v4482_v3 = vrot.slane %v4481_v38, 1  ;;  %v4476_v21 = vmax.f32 %v4474_v50, %v4475_v17 }
 0x2dc   : > { %5685 = vrot.lane.b32.xlu0 %v11631_v7, %s10194_s18  ;;  %v1936_v34 = vpop.permute.xlu0 %1935  ;;  %v4441_v4 = vmax.f32 %v4439_v55, %v4440_v57  ;;  %v11662_v22 = vmax.f32 %v4458_v58, %v4459_v0  ;;  %v4466_v61 = vrot.slane %v4465_v2, 2 }
 0x2dd   : > { %5805 = vrot.lane.b32.xlu1 %v5785_v24, %s10196_s16  ;;  %v4489_v28 = vrot.slane %v4488_v23, 1  ;;  %2012 = vst.msk [vmem:[#allocation3 + $0x100] sm:$0xff] %vm1979_vm7, %v1936_v34  ;;  %v2573_v29 = vpop.permute.xlu1 %2572  ;;  %v11666_v49 = vmax.f32 %v4446_v10, %v4447_v5  ;;  %v4483_v26 = vmax.f32 %v4481_v38, %v4482_v3 }
 0x2de   : > { %2656 = vst.msk [vmem:[#allocation3 + $0xc8] sm:$0xff] %vm2630_vm10, %v2573_v29  ;;  %v11669_v34 = vsel %vm4988_vm13, %v4441_v4, -inf  ;;  %v4461_v32 = vrot.slane %v11662_v22, 1  ;;  %v4467_v40 = vmax.f32 %v4465_v2, %v4466_v61 }
 0x2df   : > { %v4490_v46 = vmax.f32 %v4488_v23, %v4489_v28  ;;  %v4454_v28 = vrot.slane %v4453_v27, 1 }
 0x2e0   : > { %v2585_v41 = vpop.permute.xlu0 %2584  ;;  %v4468_v38 = vrot.slane %v4467_v40, 1 }
 0x2e1   : > { %v11644_v48 = vsel %vm4988_vm13, %v4490_v46, -inf  ;;  %2662 = vst.msk [vmem:[#allocation3 + $0xf8] sm:$0xff] %vm2630_vm10, %v2585_v41  ;;  %v2788_v8 = vpop.permute.xlu1 %2787  ;;  %v11674_v46 = vsel %vm4988_vm13, %v4476_v21, -inf }
 0x2e2   : > { %v5063_v13 = vmax.f32 %v11641_v31, %v11644_v48  ;;  %2872 = vst.msk [vmem:[#allocation3 + $0xc0] sm:$0xff] %vm2847_vm11, %v2788_v8 }
 0x2e4   : > { %v2800_v60 = vpop.permute.xlu0 %2799 }
 0x2e5   : > { %2878 = vst.msk [vmem:[#allocation3 + $0xf0] sm:$0xff] %vm2847_vm11, %v2800_v60  ;;  %v1289_v9 = vpop.permute.xlu1 %1288  ;;  %v11683_v60 = vmax.f32 %v4453_v27, %v4454_v28 }
 0x2e6   : > { %1363 = vst.msk [vmem:[#allocation3 + $0x110] sm:$0xff] %vm1328_vm4, %v1289_v9 }
 0x2e8   : > { %v1938_v35 = vpop.permute.xlu0 %1937 }
 0x2e9   : > { %2013 = vst.msk [vmem:[#allocation3 + $0x108] sm:$0xff] %vm1979_vm7, %v1938_v35  ;;  %v2153_v12 = vpop.permute.xlu1 %2152  ;;  %v2908_v47 = vld [vmem:[#allocation3 + $0xc0] sm:$0xff] }
 0x2ea   : > { %2229 = vst.msk [vmem:[#allocation3 + $0x100] sm:$0xff] %vm2196_vm8, %v2153_v12  ;;  %9463 = vmatprep.mubr.msk.f32.mxu0 %vm2929_vm12, %v2908_v47 }
 0x2ec   : > { %v2790_v11 = vpop.permute.xlu0 %2789  ;;  %v9453_v37 = vpop.f32.mrb[16].mxu0  ;;  %v2914_v45 = vld [vmem:[#allocation3 + $0xf0] sm:$0xff] }
 0x2ed   : > { %2873 = vst.msk [vmem:[#allocation3 + $0xc8] sm:$0xff] %vm2847_vm11, %v2790_v11  ;;  %v2802_v14 = vpop.permute.xlu1 %2801  ;;  %v3194_v16 = vadd.f32 %v11658_v42, %v9453_v37  ;;  %v3188_v19 = vpop.f32.mrb[17].mxu0  ;;  %9472 = vmatprep.mubr.msk.f32.mxu1 %vm2929_vm12, %v2914_v45  ;;  %v11694_v11 = vsel %vm4988_vm13, %v4483_v26, -inf }
 0x2ee   : > { %2879 = vst.msk [vmem:[#allocation3 + $0xf8] sm:$0xff] %vm2847_vm11, %v2802_v14  ;;  %v3189_v23 = vadd.f32 %v11658_v42, %v3188_v19 }
 0x2ef   : > { %v3304_v24 = vmax.f32 %v3194_v16, 0.0 }
 0x2f0   : > { %v3303_v15 = vmax.f32 %v3189_v23, 0.0  ;;  %v1291_v25 = vpop.permute.xlu0 %1290  ;;  %v4469_v23 = vmax.f32 %v4467_v40, %v4468_v38 }
 0x2f1   : > { %v3645_v29 = vcombine.high %v3304_v24, %v3304_v24  ;;  %v3652_v30 = vrot.slane %v3304_v24, %v11048_v59  ;;  %1364 = vst.msk [vmem:[#allocation3 + $0x118] sm:$0xff] %vm1328_vm4, %v1291_v25  ;;  %v1506_v53 = vpop.permute.xlu1 %1505  ;;  %vm13252_vm4 = vmmov %vm13243_vm0  ;;  %vm13254_vm0 = vcmask 1044484  }
 0x2f2   : > { %v3628_v33 = vcombine.high %v3303_v15, %v3303_v15  ;;  %v3635_v36 = vrot.slane %v3303_v15, %v11048_v59  ;;  %1580 = vst.msk [vmem:[#allocation3 + $0x110] sm:$0xff] %vm13251_vm5, %v1506_v53  ;;  %v4462_v53 = vmax.f32 %v11662_v22, %v4461_v32  ;;  %vm5713_vm5 = vcmask 458112  }
 0x2f3   : > { %v3659_v41 = vrot.slane %v3645_v29, %v11048_v59  ;;  %v3660_v43 = vcombine.high %v3652_v30, %v3652_v30  ;;  %v4519_v18 = vsel %vm4091_vm14, %v3652_v30, -inf }
 0x2f4   : > { %v4520_v8 = vrot.slane %v4519_v18, 4  ;;  %v3642_v54 = vrot.slane %v3628_v33, %v11048_v59  ;;  %v3643_v20 = vcombine.high %v3635_v36, %v3635_v36  ;;  %v4491_v55 = vsel %vm4091_vm14, %v3635_v36, -inf  ;;  %v2155_v62 = vpop.permute.xlu0 %2154  ;;  %v2909_v56 = vld [vmem:[#allocation3 + $0xc8] sm:$0xff] }
 0x2f5   : > { %v4526_v39 = vsel %vm4091_vm14, %v3660_v43, -inf  ;;  %v4533_v52 = vsel %vm4091_vm14, %v3659_v41, -inf  ;;  %v4492_v9 = vrot.slane %v4491_v55, 4  ;;  %2230 = vst.msk [vmem:[#allocation3 + $0x108] sm:$0xff] %vm2196_vm8, %v2155_v62  ;;  %v2370_v50 = vpop.permute.xlu1 %2369  ;;  %9464 = vmatmul.mubr.msk.f32.gmra.mrb[24].mxu0 %vm2929_vm12, %v2909_v56  ;;  %v2915_v58 = vld [vmem:[#allocation3 + $0xf8] sm:$0xff]  ;;  %v5073_v31 = vsel %vm4988_vm13, %v4462_v53, -inf }
 0x2f6   : > { %v4521_v63 = vmax.f32 %v4519_v18, %v4520_v8  ;;  %v4527_v57 = vrot.slane %v4526_v39, 4  ;;  %v4534_v10 = vrot.slane %v4533_v52, 4  ;;  %v3644_v35 = vcombine.high %v3642_v54, %v3642_v54  ;;  %2446 = vst.msk [vmem:[#allocation3 + $0x100] sm:$0xff] %vm2413_vm9, %v2370_v50  ;;  %9473 = vmatmul.mubr.msk.f32.gmra.mrb[4].mxu1 %vm2929_vm12, %v2915_v58 }
 0x2f7   : > { %v4493_v6 = vmax.f32 %v4491_v55, %v4492_v9  ;;  %v4498_v12 = vsel %vm4091_vm14, %v3643_v20, -inf  ;;  %v4505_v47 = vsel %vm4091_vm14, %v3642_v54, -inf  ;;  %v5076_v20 = vsel %vm4988_vm13, %v4469_v23, -inf  ;;  %v5857_v23 = vld [vmem:[%s10244_s29 + $0x8] sm:$0xff] }
 0x2f8   : > { %v4522_v17 = vrot.slane %v4521_v63, 2  ;;  %v4528_v0 = vmax.f32 %v4526_v39, %v4527_v57  ;;  %v4535_v2 = vmax.f32 %v4533_v52, %v4534_v10  ;;  %v4499_v4 = vrot.slane %v4498_v12, 4  ;;  %v1508_v5 = vpop.permute.xlu0 %1507 }
 0x2f9   : > { %v4494_v37 = vrot.slane %v4493_v6, 2  ;;  %v4506_v45 = vrot.slane %v4505_v47, 4  ;;  %v4512_v3 = vsel %vm4091_vm14, %v3644_v35, -inf  ;;  %1581 = vst.msk [vmem:[#allocation3 + $0x118] sm:$0xff] %vm13252_vm4, %v1508_v5  ;;  %v1723_v27 = vpop.permute.xlu1 %1722  ;;  %vm5774_vm4 = vcmask 523712  }
 0x2fa   : > { %v4523_v14 = vmax.f32 %v4521_v63, %v4522_v17  ;;  %v4529_v16 = vrot.slane %v4528_v0, 2  ;;  %v4536_v19 = vrot.slane %v4535_v2, 2  ;;  %v4500_v21 = vmax.f32 %v4498_v12, %v4499_v4  ;;  %1797 = vst.msk [vmem:[#allocation3 + $0x110] sm:$0xff] %vm1762_vm6, %v1723_v27 }
 0x2fb   : > { %v4495_v61 = vmax.f32 %v4493_v6, %v4494_v37  ;;  %v4507_v24 = vmax.f32 %v4505_v47, %v4506_v45  ;;  %v4513_v15 = vrot.slane %v4512_v3, 4  ;;  %v5067_v4 = vsel %vm4988_vm13, %v11666_v49, -inf }
 0x2fc   : > { %v4524_v25 = vrot.slane %v4523_v14, 1  ;;  %v4530_v26 = vmax.f32 %v4528_v0, %v4529_v16  ;;  %v4537_v28 = vmax.f32 %v4535_v2, %v4536_v19  ;;  %v4501_v29 = vrot.slane %v4500_v21, 2  ;;  %v2372_v30 = vpop.permute.xlu0 %2371 }
 0x2fd   : > { %v4496_v33 = vrot.slane %v4495_v61, 1  ;;  %v4508_v36 = vrot.slane %v4507_v24, 2  ;;  %v4514_v41 = vmax.f32 %v4512_v3, %v4513_v15  ;;  %2447 = vst.msk [vmem:[#allocation3 + $0x108] sm:$0xff] %vm2413_vm9, %v2372_v30  ;;  %v2587_v43 = vpop.permute.xlu1 %2586  ;;  %v5861_v30 = vld [vmem:[%s10244_s29 + $0x28] sm:$0xff] }
 0x2fe   : > { %v4525_v18 = vmax.f32 %v4523_v14, %v4524_v25  ;;  %v4531_v8 = vrot.slane %v4530_v26, 1  ;;  %v4538_v54 = vrot.slane %v4537_v28, 1  ;;  %v4502_v40 = vmax.f32 %v4500_v21, %v4501_v29  ;;  %2663 = vst.msk [vmem:[#allocation3 + $0x100] sm:$0xff] %vm2630_vm10, %v2587_v43  ;;  %v5856_v21 = vld [vmem:[%s10244_s29] sm:$0xff]  ;;  %v5859_v25 = vld [vmem:[%s10244_s29 + $0x18] sm:$0xff] }
 0x2ff   : > { %v4497_v55 = vmax.f32 %v4495_v61, %v4496_v33  ;;  %v4509_v62 = vmax.f32 %v4507_v24, %v4508_v36  ;;  %v4515_v56 = vrot.slane %v4514_v41, 2  ;;  %v5858_v61 = vld [vmem:[%s10244_s29 + $0x10] sm:$0xff]  ;;  %v9590_v15 = vpack.c.bf16 %v5857_v23, %v5856_v21  ;;  %v5860_v29 = vld [vmem:[%s10244_s29 + $0x20] sm:$0xff] }
 0x300   : > { %v4532_v39 = vmax.f32 %v4530_v26, %v4531_v8  ;;  %v4539_v52 = vmax.f32 %v4537_v28, %v4538_v54  ;;  %v5077_v22 = vsel %vm4988_vm13, %v4525_v18, -inf  ;;  %v4503_v32 = vrot.slane %v4502_v40, 1  ;;  %v1725_v9 = vpop.permute.xlu0 %1724 }
 0x301   : > { %v5078_v50 = vmax.f32 %v5076_v20, %v5077_v22  ;;  %v4510_v58 = vrot.slane %v4509_v62, 1  ;;  %v4516_v63 = vmax.f32 %v4514_v41, %v4515_v56  ;;  %v5065_v57 = vsel %vm4988_vm13, %v4497_v55, -inf  ;;  %1798 = vst.msk [vmem:[#allocation3 + $0x118] sm:$0xff] %vm1762_vm6, %v1725_v9  ;;  %v1940_v10 = vpop.permute.xlu1 %1939  ;;  %9591 = vmatprep.subr.bf16.mxu1 %v9590_v15  ;;  %v5863_v20 = vld [vmem:[%s10244_s29 + $0x38] sm:$0xff] }
 0x302   : > { %v5080_v35 = vsel %vm4988_vm13, %v4532_v39, -inf  ;;  %v5083_v38 = vsel %vm4988_vm13, %v4539_v52, -inf  ;;  %v4504_v6 = vmax.f32 %v4502_v40, %v4503_v32  ;;  %v5066_v12 = vmax.f32 %v11669_v34, %v5065_v57  ;;  %2014 = vst.msk [vmem:[#allocation3 + $0x110] sm:$0xff] %vm1979_vm7, %v1940_v10  ;;  %9593 = vmatpush3.bf16.msra.mxu1 %v9590_v15  ;;  %v5862_v40 = vld [vmem:[%s10244_s29 + $0x30] sm:$0xff]  ;;  %v5864_v57 = vld [vmem:[%s10244_s29 + $0x40] sm:$0xff] }
 0x303   : > { %v5081_v47 = vmax.f32 %v11674_v46, %v5080_v35  ;;  %v5084_v17 = vmax.f32 %v11694_v11, %v5083_v38  ;;  %v4511_v0 = vmax.f32 %v4509_v62, %v4510_v58  ;;  %v4517_v2 = vrot.slane %v4516_v63, 1  ;;  %v5725_v58 = vld [vmem:[#allocation4 + $0x1d] sm:$0xff] }
 0x304   : > { %v5068_v5 = vsel %vm4988_vm13, %v4504_v6, -inf  ;;  %vm13253_vm6 = vcmask 1041409   ;;  %v2589_v45 = vpop.permute.xlu0 %2588  ;;  %v5070_v34 = vsel %vm4988_vm13, %v11683_v60, -inf  ;;  %v9594_v28 = vpack.c.bf16 %v5859_v25, %v5858_v61  ;;  %v5362_v38 = vld [vmem:[#allocation4 + $0x21] sm:$0xff] }
 0x305   : > { %v5261_v37 = vsel %vm13253_vm6, %v5066_v12, %v5063_v13  ;;  %v4518_v46 = vmax.f32 %v4516_v63, %v4517_v2  ;;  %v5069_v11 = vmax.f32 %v5067_v4, %v5068_v5  ;;  %v5071_v3 = vsel %vm4988_vm13, %v4511_v0, -inf  ;;  %2664 = vst.msk [vmem:[#allocation3 + $0x108] sm:$0xff] %vm2630_vm10, %v2589_v45  ;;  %v2804_v49 = vpop.permute.xlu1 %2803  ;;  %v5786_v63 = vld [vmem:[#allocation4 + $0x1e] sm:$0xff] }
 0x306   : > { %v5072_v27 = vmax.f32 %v5070_v34, %v5071_v3  ;;  %2880 = vst.msk [vmem:[#allocation3 + $0x100] sm:$0xff] %vm2847_vm11, %v2804_v49  ;;  %9595 = vmatprep.subr.bf16.mxu1 %v9594_v28  ;;  %v9598_v18 = vpack.c.bf16 %v5861_v30, %v5860_v29  ;;  %v9602_v56 = vpack.c.bf16 %v5863_v20, %v5862_v40  ;;  %vm5835_vm6 = vcmask 589312  }
 0x307   : > { %v5074_v48 = vsel %vm4988_vm13, %v4518_v46, -inf  ;;  %v5262_v13 = vsel %vm5205_vm2, %v5069_v11, %v5261_v37  ;;  %9597 = vmatpush3.bf16.msra.mxu1 %v9594_v28 }
 0x308   : > { %v5075_v60 = vmax.f32 %v5073_v31, %v5074_v48  ;;  %v5263_v14 = vsel %vm5207_vm3, %v5072_v27, %v5262_v13  ;;  %v1942_v16 = vpop.permute.xlu0 %1941  ;;  %9599 = vmatprep.subr.bf16.mxu1 %v9598_v18 }
 0x309   : > { %2015 = vst.msk [vmem:[#allocation3 + $0x118] sm:$0xff] %vm1979_vm7, %v1942_v16  ;;  %v2157_v19 = vpop.permute.xlu1 %2156  ;;  %vm13257_vm7 = vcmask 1047559  }
 0x30a   : > { %v5264_v24 = vsel %vm13254_vm0, %v5075_v60, %v5263_v14  ;;  %2231 = vst.msk [vmem:[#allocation3 + $0x110] sm:$0xff] %vm2196_vm8, %v2157_v19  ;;  %vm13219_vm0 = vcmask 588800  }
 0x30b   : > { %v5265_v26 = vsel %vm13255_vm15, %v5078_v50, %v5264_v24  ;;  %9601 = vmatpush3.bf16.msra.mxu1 %v9598_v18  ;;  %vm13258_vm15 = vcmask 1041409  }
 0x30c   : > { %v5266_v53 = vsel %vm13256_vm1, %v5081_v47, %v5265_v26  ;;  %v2806_v33 = vpop.permute.xlu0 %2805  ;;  %9603 = vmatprep.subr.bf16.mxu1 %v9602_v56  ;;  %vm13259_vm1 = vcmask 1044484  }
 0x30d   : > { %v5267_v36 = vsel %vm13257_vm7, %v5084_v17, %v5266_v53  ;;  %2881 = vst.msk [vmem:[#allocation3 + $0x108] sm:$0xff] %vm2847_vm11, %v2806_v33  ;;  %v2159_v41 = vpop.permute.xlu1 %2158  ;;  %v2916_v43 = vld [vmem:[#allocation3 + $0x100] sm:$0xff]  ;;  %vm13260_vm7 = vcmask 1045509  }
 0x30e   : > { %5269 = vst.msk [vmem:[#allocation4 + $0x29] sm:$0xff] %vm4988_vm13, %v5267_v36  ;;  %9475 = vmatprep.mubr.msk.f32.mxu1 %vm2929_vm12, %v2916_v43 }
 0x30f   : > { %2232 = vst.msk [vmem:[#allocation3 + $0x118] sm:$0xff] %vm2196_vm8, %v2159_v41  ;;  %vm5408_vm8 = vcmask 130112   ;;  %9605 = vmatpush3.bf16.msra.mxu1 %v9602_v56 }
 0x310   : > { %v2374_v8 = vpop.permute.xlu0 %2373  ;;  %9497 = vmatprep.subr.mxu1 %v5864_v57 }
 0x311   : > { %2448 = vst.msk [vmem:[#allocation3 + $0x110] sm:$0xff] %vm2413_vm9, %v2374_v8  ;;  %v2376_v54 = vpop.permute.xlu1 %2375 }
 0x312   : > { %2449 = vst.msk [vmem:[#allocation3 + $0x118] sm:$0xff] %vm2413_vm9, %v2376_v54  ;;  %vm5469_vm9 = vcmask 195712  }
 0x313   : > { %9498 = vmatpush3.msra.mxu1 %v5864_v57 }
 0x314   : > { %v2591_v55 = vpop.permute.xlu0 %2590  ;;  %v2917_v62 = vld [vmem:[#allocation3 + $0x108] sm:$0xff] }
 0x315   : > { %2665 = vst.msk [vmem:[#allocation3 + $0x110] sm:$0xff] %vm2630_vm10, %v2591_v55  ;;  %v2593_v39 = vpop.permute.xlu1 %2592  ;;  %v5483_v52 = vld [vmem:[#allocation4 + $0x22] sm:$0xff]  ;;  %9476 = vmatmul.mubr.msk.f32.gmra.mrb[6].mxu1 %vm2929_vm12, %v2917_v62  ;;  %v5484_v45 = vld [vmem:[#allocation4 + $0x2a] sm:$0xff] }
 0x316   : > { %v5544_v22 = vld [vmem:[#allocation4 + $0x23] sm:$0xff]  ;;  %2666 = vst.msk [vmem:[#allocation3 + $0x118] sm:$0xff] %vm2630_vm10, %v2593_v39  ;;  %5506 = vrot.lane.b32.xlu0 %v5483_v52, %s10191_s20  ;;  %vm5530_vm10 = vcmask 261312   ;;  %v5545_v49 = vld [vmem:[#allocation4 + $0x2b] sm:$0xff] }
 0x317   : > { %5567 = vrot.lane.b32.xlu1 %v5544_v22, %s10192_s1  ;;  %v5343_v32 = vld [vmem:[#allocation4 + $0x28] sm:$0xff] }
 0x318   : > { %v2808_v9 = vpop.permute.xlu0 %2807  ;;  %5353 = vst.msk [vmem:[#allocation5 + $0x28] sm:$0xff] %vm4988_vm13, %v5343_v32  ;;  %v5665_v0 = vld [vmem:[#allocation4 + $0x24] sm:$0xff] }
 0x319   : > { %2882 = vst.msk [vmem:[#allocation3 + $0x110] sm:$0xff] %vm2847_vm11, %v2808_v9  ;;  %v2810_v50 = vpop.permute.xlu1 %2809  ;;  %v5363_v37 = vld [vmem:[#allocation4 + $0x29] sm:$0xff] }
 0x31a   : > { %2883 = vst.msk [vmem:[#allocation3 + $0x118] sm:$0xff] %vm2847_vm11, %v2810_v50  ;;  %5746 = vrot.lane.b32.xlu0 %v5725_v58, %s10195_s13  ;;  %vm5591_vm11 = vcmask 326912   ;;  %v5726_v46 = vld [vmem:[#allocation4 + $0x25] sm:$0xff] }
 0x31b   : > { %5807 = vrot.lane.b32.xlu1 %v5786_v63, %s10196_s16  ;;  %v5787_v31 = vld [vmem:[#allocation4 + $0x26] sm:$0xff] }
 0x31c   : > { %v5379_v10 = vpop.permute.xlu0 %5378 }
 0x31d   : > { %5409 = vst.msk [vmem:[#allocation5] sm:$0xff] %vm5408_vm8, %v5379_v10  ;;  %v5381_v6 = vpop.permute.xlu1 %5380 }
 0x31e   : > { %v9456_v35 = vpop.f32.mrb[18].mxu0  ;;  %5386 = vrot.lane.b32.xlu0 %v5362_v38, %s10188_s23  ;;  %5410 = vst.msk [vmem:[#allocation5 + $0x8] sm:$0xff] %vm5408_vm8, %v5381_v6 }
 0x31f   : > { %5447 = vrot.lane.b32.xlu1 %v5483_v52, %s10190_s26  ;;  %v3198_v12 = vpop.f32.mrb[19].mxu0  ;;  %v3204_v21 = vadd.f32 %v11658_v42, %v9456_v35 }
 0x320   : > { %v5440_v47 = vpop.permute.xlu0 %5439  ;;  %v2918_v17 = vld [vmem:[#allocation3 + $0x110] sm:$0xff]  ;;  %v3199_v60 = vadd.f32 %v11658_v42, %v3198_v12 }
 0x321   : > { %5470 = vst.msk [vmem:[#allocation5] sm:$0xff] %vm5469_vm9, %v5440_v47  ;;  %v5442_v2 = vpop.permute.xlu1 %5441  ;;  %9478 = vmatprep.mubr.msk.f32.mxu1 %vm2929_vm12, %v2918_v17  ;;  %v2919_v4 = vld [vmem:[#allocation3 + $0x118] sm:$0xff]  ;;  %v3306_v15 = vmax.f32 %v3204_v21, 0.0 }
 0x322   : > { %5626 = vrot.lane.b32.xlu0 %v11631_v7, %s10193_s9  ;;  %5471 = vst.msk [vmem:[#allocation5 + $0x8] sm:$0xff] %vm5469_vm9, %v5442_v2  ;;  %9479 = vmatmul.mubr.msk.f32.gmra.mrb[8].mxu1 %vm2929_vm12, %v2919_v4  ;;  %vm5652_vm12 = vcmask 392512   ;;  %v3305_v19 = vmax.f32 %v3199_v60, 0.0 }
 0x323   : > { %5687 = vrot.lane.b32.xlu1 %v5665_v0, %s10194_s18  ;;  %v3685_v29 = vrot.slane %v3306_v15, %v11048_v59  ;;  %v3678_v33 = vcombine.high %v3306_v15, %v3306_v15 }
 0x324   : > { %v5501_v5 = vpop.permute.xlu0 %5500  ;;  %v3661_v24 = vcombine.high %v3305_v19, %v3305_v19  ;;  %v3668_v50 = vrot.slane %v3305_v19, %v11048_v59 }
 0x325   : > { %5531 = vst.msk [vmem:[#allocation5] sm:$0xff] %vm5530_vm10, %v5501_v5  ;;  %v5503_v34 = vpop.permute.xlu1 %5502  ;;  %v3693_v41 = vcombine.high %v3685_v29, %v3685_v29  ;;  %v11802_v43 = vrot.slane %v3678_v33, %v11048_v59  ;;  %v4568_v8 = vsel %vm4091_vm14, %v3685_v29, -inf }
 0x326   : > { %5388 = vrot.lane.b32.xlu0 %v5363_v37, %s10188_s23  ;;  %5532 = vst.msk [vmem:[#allocation5 + $0x8] sm:$0xff] %vm5530_vm10, %v5503_v34  ;;  %v11794_v28 = vrot.slane %v3661_v24, %v11048_v59  ;;  %v4569_v62 = vrot.slane %v4568_v8, 4  ;;  %v4540_v17 = vsel %vm4091_vm14, %v3668_v50, -inf  ;;  %v3676_v5 = vcombine.high %v3668_v50, %v3668_v50 }
 0x327   : > { %5508 = vrot.lane.b32.xlu1 %v5484_v45, %s10191_s20  ;;  %v4575_v54 = vsel %vm4091_vm14, %v3693_v41, -inf  ;;  %v4582_v20 = vsel %vm4091_vm14, %v11802_v43, -inf }
 0x328   : > { %v5562_v7 = vpop.permute.xlu0 %5561  ;;  %v3677_v36 = vcombine.high %v11794_v28, %v11794_v28  ;;  %v4576_v56 = vrot.slane %v4575_v54, 4  ;;  %v4583_v39 = vrot.slane %v4582_v20, 4  ;;  %v4570_v22 = vmax.f32 %v4568_v8, %v4569_v62 }
 0x329   : > { %5592 = vst.msk [vmem:[#allocation5] sm:$0xff] %vm5591_vm11, %v5562_v7  ;;  %v5383_v11 = vpop.permute.xlu1 %5382  ;;  %v4554_v33 = vsel %vm4091_vm14, %v11794_v28, -inf }
 0x32a   : > { %5628 = vrot.lane.b32.xlu0 %v5665_v0, %s10193_s9  ;;  %5411 = vst.msk [vmem:[#allocation5 + $0x10] sm:$0xff] %vm5408_vm8, %v5383_v11  ;;  %v4561_v18 = vsel %vm4091_vm14, %v3677_v36, -inf  ;;  %v4577_v9 = vmax.f32 %v4575_v54, %v4576_v56  ;;  %v4584_v10 = vmax.f32 %v4582_v20, %v4583_v39  ;;  %v4571_v12 = vrot.slane %v4570_v22, 2 }
 0x32b   : > { %5748 = vrot.lane.b32.xlu1 %v5726_v46, %s10195_s13  ;;  %v4562_v55 = vrot.slane %v4561_v18, 4  ;;  %v4541_v11 = vrot.slane %v4540_v17, 4  ;;  %v4555_v50 = vrot.slane %v4554_v33, 4 }
 0x32c   : > { %v5564_v3 = vpop.permute.xlu0 %5563  ;;  %v4578_v47 = vrot.slane %v4577_v9, 2  ;;  %v4585_v4 = vrot.slane %v4584_v10, 2  ;;  %v4572_v46 = vmax.f32 %v4570_v22, %v4571_v12 }
 0x32d   : > { %5593 = vst.msk [vmem:[#allocation5 + $0x8] sm:$0xff] %vm5591_vm11, %v5564_v3  ;;  %v5623_v27 = vpop.permute.xlu1 %5622  ;;  %v4563_v52 = vmax.f32 %v4561_v18, %v4562_v55 }
 0x32e   : > { %5449 = vrot.lane.b32.xlu0 %v5484_v45, %s10190_s26  ;;  %5653 = vst.msk [vmem:[#allocation5] sm:$0xff] %vm5652_vm12, %v5623_v27  ;;  %v4586_v19 = vmax.f32 %v4584_v10, %v4585_v4  ;;  %v4573_v29 = vrot.slane %v4572_v46, 1 }
 0x32f   : > { %5569 = vrot.lane.b32.xlu1 %v5545_v49, %s10192_s1  ;;  %v4564_v38 = vrot.slane %v4563_v52, 2  ;;  %v4579_v49 = vmax.f32 %v4577_v9, %v4578_v47 }
 0x330   : > { %v4587_v54 = vrot.slane %v4586_v19, 1  ;;  %v4574_v22 = vmax.f32 %v4572_v46, %v4573_v29 }
 0x331   : > { %v5444_v48 = vpop.permute.xlu1 %5443  ;;  %v4565_v37 = vmax.f32 %v4563_v52, %v4564_v38 }
 0x332   : > { %5472 = vst.msk [vmem:[#allocation5 + $0x10] sm:$0xff] %vm5469_vm9, %v5444_v48  ;;  %v4588_v38 = vmax.f32 %v4586_v19, %v4587_v54 }
 0x333   : > { %5809 = vrot.lane.b32.xlu1 %v5787_v31, %s10196_s16  ;;  %v4566_v21 = vrot.slane %v4565_v37, 1 }
 0x335   : > { %v5684_v13 = vpop.permute.xlu1 %5683  ;;  %v4567_v20 = vmax.f32 %v4565_v37, %v4566_v21 }
 0x336   : > { %5714 = vst.msk [vmem:[#allocation5] sm:$0xff] %vm5713_vm5, %v5684_v13  ;;  %v4547_v13 = vsel %vm4091_vm14, %v3676_v5, -inf  ;;  %v11835_v5 = vsel %vm4988_vm13, %v4574_v22, -inf }
 0x342   : > { %v5385_v14 = vpop.permute.xlu0 %5384 }
 0x343   : > { %v5505_v16 = vpop.permute.xlu1 %5504  ;;  %5412 = vst.msk [vmem:[#allocation5 + $0x18] sm:$0xff] %vm5408_vm8, %v5385_v14 }
 0x344   : > { %5533 = vst.msk [vmem:[#allocation5 + $0x10] sm:$0xff] %vm5530_vm10, %v5505_v16 }
 0x346   : > { %v5625_v23 = vpop.permute.xlu0 %5624 }
 0x347   : > { %v5745_v61 = vpop.permute.xlu1 %5744  ;;  %5654 = vst.msk [vmem:[#allocation5 + $0x8] sm:$0xff] %vm5652_vm12, %v5625_v23 }
 0x348   : > { %5775 = vst.msk [vmem:[#allocation5] sm:$0xff] %vm5774_vm4, %v5745_v61 }
 0x34a   : > { %v5446_v25 = vpop.permute.xlu0 %5445 }
 0x34b   : > { %v5566_v26 = vpop.permute.xlu1 %5565  ;;  %5473 = vst.msk [vmem:[#allocation5 + $0x18] sm:$0xff] %vm5469_vm9, %v5446_v25 }
 0x34c   : > { %5594 = vst.msk [vmem:[#allocation5 + $0x10] sm:$0xff] %vm5591_vm11, %v5566_v26 }
 0x34e   : > { %v5686_v30 = vpop.permute.xlu0 %5685 }
 0x34f   : > { %v5806_v53 = vpop.permute.xlu1 %5805  ;;  %5715 = vst.msk [vmem:[#allocation5 + $0x8] sm:$0xff] %vm5713_vm5, %v5686_v30  ;;  %v4580_v30 = vrot.slane %v4579_v49, 1 }
 0x350   : > { %5836 = vst.msk [vmem:[#allocation5] sm:$0xff] %vm5835_vm6, %v5806_v53  ;;  %v4548_v53 = vrot.slane %v4547_v13, 4 }
 0x352   : > { %v4549_v9 = vmax.f32 %v4547_v13, %v4548_v53 }
 0x357   : > { %v5846_v40 = vld [vmem:[#allocation5] sm:$0xff] }
 0x358   : > { %9499 = vmatprep.mubr.msk.f32.mxu1 %vm13219_vm0, %v5846_v40  ;;  %v4542_v40 = vmax.f32 %v4540_v17, %v4541_v11 }
 0x35a   : > { %v4543_v37 = vrot.slane %v4542_v40, 2 }
 0x35c   : > { %v9459_v32 = vpop.f32.mrb[20].mxu0  ;;  %v4544_v21 = vmax.f32 %v4542_v40, %v4543_v37 }
 0x35d   : > { %v3214_v58 = vadd.f32 %v11658_v42, %v9459_v32  ;;  %v11812_v63 = vpop.f32.mrb[0].mxu1  ;;  %v3208_v57 = vpop.f32.mrb[21].mxu0  ;;  %v4581_v32 = vmax.f32 %v4579_v49, %v4580_v30  ;;  %v4550_v49 = vrot.slane %v4549_v9, 2 }
 0x35e   : > { %v11814_v35 = vpop.f32.mrb[1].mxu1  ;;  %v3209_v61 = vadd.f32 %v11658_v42, %v3208_v57 }
 0x35f   : > { %v3308_v6 = vmax.f32 %v3214_v58, 0.0 }
 0x360   : > { %v3307_v55 = vmax.f32 %v3209_v61, 0.0 }
 0x361   : > { %v3712_v0 = vcombine.high %v3308_v6, %v3308_v6  ;;  %v3719_v2 = vrot.slane %v3308_v6, %v11048_v59  ;;  %v11828_v6 = vsel %vm4988_vm13, %v4567_v20, -inf }
 0x362   : > { %v3695_v12 = vcombine.high %v3307_v55, %v3307_v55  ;;  %v3702_v47 = vrot.slane %v3307_v55, %v11048_v59 }
 0x363   : > { %v3726_v45 = vrot.slane %v3712_v0, %v11048_v59  ;;  %v3727_v34 = vcombine.high %v3719_v2, %v3719_v2  ;;  %v4617_v7 = vsel %vm4091_vm14, %v3719_v2, -inf }
 0x364   : > { %v4618_v3 = vrot.slane %v4617_v7, 4 }
 0x365   : > { %v3728_v27 = vcombine.high %v3726_v45, %v3726_v45  ;;  %v4624_v31 = vsel %vm4091_vm14, %v3727_v34, -inf  ;;  %v4631_v48 = vsel %vm4091_vm14, %v3726_v45, -inf  ;;  %v4556_v45 = vmax.f32 %v4554_v33, %v4555_v50 }
 0x366   : > { %v4619_v60 = vmax.f32 %v4617_v7, %v4618_v3  ;;  %v4625_v14 = vrot.slane %v4624_v31, 4  ;;  %v4632_v16 = vrot.slane %v4631_v48, 4  ;;  %v11840_v7 = vsel %vm4988_vm13, %v4581_v32, -inf }
 0x367   : > { %v4638_v23 = vsel %vm4091_vm14, %v3728_v27, -inf  ;;  %v3244_v50 = vadd.f32 %v11658_v42, %v11812_v63 }
 0x368   : > { %v4620_v24 = vrot.slane %v4619_v60, 2  ;;  %v4626_v15 = vmax.f32 %v4624_v31, %v4625_v14  ;;  %v4633_v25 = vmax.f32 %v4631_v48, %v4632_v16  ;;  %v4639_v26 = vrot.slane %v4638_v23, 4 }
 0x369   : > { %v11853_v48 = vsel %vm4988_vm13, %v4588_v38, -inf  ;;  %v3710_v14 = vcombine.high %v3702_v47, %v3702_v47  ;;  %v4557_v16 = vrot.slane %v4556_v45, 2  ;;  %v3314_v37 = vmax.f32 %v3244_v50, 0.0 }
 0x36a   : > { %v4621_v36 = vmax.f32 %v4619_v60, %v4620_v24  ;;  %v4627_v41 = vrot.slane %v4626_v15, 2  ;;  %v4634_v18 = vrot.slane %v4633_v25, 2  ;;  %v4640_v8 = vmax.f32 %v4638_v23, %v4639_v26 }
 0x36b   : > { %v3709_v60 = vrot.slane %v3695_v12, %v11048_v59  ;;  %v4596_v61 = vsel %vm4091_vm14, %v3710_v14, -inf  ;;  %v4558_v30 = vmax.f32 %v4556_v45, %v4557_v16  ;;  %v3239_v16 = vadd.f32 %v11658_v42, %v11814_v35 }
 0x36c   : > { %v4622_v62 = vrot.slane %v4621_v36, 1  ;;  %v4628_v56 = vmax.f32 %v4626_v15, %v4627_v41  ;;  %v4635_v39 = vmax.f32 %v4633_v25, %v4634_v18  ;;  %v4641_v52 = vrot.slane %v4640_v8, 2 }
 0x36d   : > { %v3711_v23 = vcombine.high %v3709_v60, %v3709_v60  ;;  %v4603_v24 = vsel %vm4091_vm14, %v3709_v60, -inf  ;;  %v4551_v15 = vmax.f32 %v4549_v9, %v4550_v49  ;;  %v4597_v25 = vrot.slane %v4596_v61, 4 }
 0x36e   : > { %v4623_v58 = vmax.f32 %v4621_v36, %v4622_v62  ;;  %v4629_v57 = vrot.slane %v4628_v56, 1  ;;  %v4636_v10 = vrot.slane %v4635_v39, 1  ;;  %v4642_v28 = vmax.f32 %v4640_v8, %v4641_v52 }
 0x36f   : > { %v4604_v26 = vrot.slane %v4603_v24, 4  ;;  %v4610_v29 = vsel %vm4091_vm14, %v3711_v23, -inf  ;;  %v4598_v53 = vmax.f32 %v4596_v61, %v4597_v25  ;;  %v4545_v41 = vrot.slane %v4544_v21, 1 }
 0x370   : > { %v4630_v17 = vmax.f32 %v4628_v56, %v4629_v57  ;;  %v4637_v0 = vmax.f32 %v4635_v39, %v4636_v10  ;;  %v4643_v2 = vrot.slane %v4642_v28, 1  ;;  %v11832_v4 = vsel %vm4988_vm13, %v4623_v58, -inf }
 0x371   : > { %v5096_v34 = vmax.f32 %v11828_v6, %v11832_v4  ;;  %v4605_v33 = vmax.f32 %v4603_v24, %v4604_v26  ;;  %v4611_v36 = vrot.slane %v4610_v29, 4  ;;  %v4552_v18 = vrot.slane %v4551_v15, 1 }
 0x372   : > { %v4644_v46 = vmax.f32 %v4642_v28, %v4643_v2  ;;  %v11843_v11 = vsel %vm4988_vm13, %v4630_v17, -inf  ;;  %v11846_v3 = vsel %vm4988_vm13, %v4637_v0, -inf  ;;  %v4599_v8 = vrot.slane %v4598_v53, 2 }
 0x373   : > { %v5099_v27 = vmax.f32 %v11835_v5, %v11843_v11  ;;  %v5102_v31 = vmax.f32 %v11840_v7, %v11846_v3  ;;  %v4606_v54 = vrot.slane %v4605_v33, 2  ;;  %v4612_v20 = vmax.f32 %v4610_v29, %v4611_v36 }
 0x374   : > { %v11856_v13 = vsel %vm4988_vm13, %v4644_v46, -inf  ;;  %v4559_v40 = vrot.slane %v4558_v30, 1  ;;  %v4600_v55 = vmax.f32 %v4598_v53, %v4599_v8  ;;  %v4546_v39 = vmax.f32 %v4544_v21, %v4545_v41 }
 0x375   : > { %v5105_v19 = vmax.f32 %v11853_v48, %v11856_v13  ;;  %v4607_v62 = vmax.f32 %v4605_v33, %v4606_v54  ;;  %v4613_v56 = vrot.slane %v4612_v20, 2  ;;  %v4553_v52 = vmax.f32 %v4551_v15, %v4552_v18 }
 0x376   : > { %v4601_v22 = vrot.slane %v4600_v55, 1  ;;  %v4560_v58 = vmax.f32 %v4558_v30, %v4559_v40  ;;  %v5085_v38 = vsel %vm4988_vm13, %v4546_v39, -inf  ;;  %v3694_v2 = vcombine.high %v11802_v43, %v11802_v43 }
 0x377   : > { %v4608_v32 = vrot.slane %v4607_v62, 1  ;;  %v4614_v9 = vmax.f32 %v4612_v20, %v4613_v56  ;;  %v5088_v12 = vsel %vm4988_vm13, %v4553_v52, -inf  ;;  %v3819_v23 = vrot.slane %v3314_v37, %v11048_v59 }
 0x378   : > { %v4602_v57 = vmax.f32 %v4600_v55, %v4601_v22  ;;  %v5091_v63 = vsel %vm4988_vm13, %v4560_v58, -inf  ;;  %v4589_v21 = vsel %vm4091_vm14, %v3694_v2, -inf  ;;  %v3812_v15 = vcombine.high %v3314_v37, %v3314_v37 }
 0x379   : > { %v4609_v10 = vmax.f32 %v4607_v62, %v4608_v32  ;;  %v4615_v28 = vrot.slane %v4614_v9, 1  ;;  %v11885_v26 = vmax.f32 %v3239_v16, 0.0  ;;  %v4590_v29 = vrot.slane %v4589_v21, 4 }
 0x37a   : > { %v5086_v17 = vsel %vm4988_vm13, %v4602_v57, -inf  ;;  %v3827_v6 = vcombine.high %v3819_v23, %v3819_v23  ;;  %v3826_v33 = vrot.slane %v3812_v15, %v11048_v59  ;;  %v4764_v11 = vsel %vm4091_vm14, %v3819_v23, -inf }
 0x37b   : > { %v4616_v47 = vmax.f32 %v4614_v9, %v4615_v28  ;;  %v5089_v0 = vsel %vm4988_vm13, %v4609_v10, -inf  ;;  %v5087_v45 = vmax.f32 %v5085_v38, %v5086_v17  ;;  %v11906_v5 = vrot.slane %v11885_v26, %v11048_v59 }
 0x37c   : > { %v5090_v46 = vmax.f32 %v5088_v12, %v5089_v0  ;;  %v4591_v7 = vmax.f32 %v4589_v21, %v4590_v29  ;;  %v4771_v3 = vsel %vm4091_vm14, %v3827_v6, -inf  ;;  %v4778_v48 = vsel %vm4091_vm14, %v3826_v33, -inf }
 0x37d   : > { %v5092_v49 = vsel %vm4988_vm13, %v4616_v47, -inf  ;;  %v4765_v13 = vrot.slane %v4764_v11, 4  ;;  %v4772_v41 = vrot.slane %v4771_v3, 4  ;;  %v3828_v18 = vcombine.high %v3826_v33, %v3826_v33 }
 0x37e   : > { %v5093_v60 = vmax.f32 %v5091_v63, %v5092_v49  ;;  %v5278_v14 = vsel %vm13258_vm15, %v5090_v46, %v5087_v45  ;;  %vm13261_vm15 = vcmask 1046534   ;;  %v4592_v36 = vrot.slane %v4591_v7, 2 }
 0x37f   : > { %v4779_v8 = vrot.slane %v4778_v48, 4  ;;  %v4766_v62 = vmax.f32 %v4764_v11, %v4765_v13  ;;  %v4773_v39 = vmax.f32 %v4771_v3, %v4772_v41  ;;  %v4785_v22 = vsel %vm4091_vm14, %v3828_v18, -inf }
 0x380   : > { %v5279_v61 = vsel %vm5205_vm2, %v5093_v60, %v5278_v14  ;;  %v4593_v56 = vmax.f32 %v4591_v7, %v4592_v36  ;;  %v4786_v47 = vrot.slane %v4785_v22, 4  ;;  %v3796_v14 = vcombine.high %v11885_v26, %v11885_v26 }
 0x381   : > { %v5280_v25 = vsel %vm5207_vm3, %v5096_v34, %v5279_v61  ;;  %v4780_v52 = vmax.f32 %v4778_v48, %v4779_v8  ;;  %v4767_v57 = vrot.slane %v4766_v62, 2  ;;  %v4774_v12 = vrot.slane %v4773_v39, 2 }
 0x382   : > { %v5281_v35 = vsel %vm13259_vm1, %v5099_v27, %v5280_v25  ;;  %v4594_v38 = vrot.slane %v4593_v56, 1  ;;  %v3811_v6 = vcombine.high %v11906_v5, %v11906_v5  ;;  %v3810_v33 = vrot.slane %v3796_v14, %v11048_v59 }
 0x383   : > { %v5282_v30 = vsel %vm13260_vm7, %v5102_v31, %v5281_v35  ;;  %v4781_v0 = vrot.slane %v4780_v52, 2  ;;  %v4768_v60 = vmax.f32 %v4766_v62, %v4767_v57  ;;  %vm13262_vm1 = vcmask 1047559  }
 0x384   : > { %v11900_v53 = vsel %vm13261_vm15, %v5105_v19, %v5282_v30  ;;  %v4743_v19 = vsel %vm4091_vm14, %v11906_v5, -inf  ;;  %v4595_v61 = vmax.f32 %v4593_v56, %v4594_v38  ;;  %v4750_v18 = vsel %vm4091_vm14, %v3811_v6, -inf }
 0x385   : > { %v4744_v40 = vrot.slane %v4743_v19, 4  ;;  %v4782_v25 = vmax.f32 %v4780_v52, %v4781_v0  ;;  %v11956_v0 = vld [vmem:[%s10239_s25] ss:$0 sm:$0xff]  ;;  %vm13263_vm7 = vcmask 1041409   ;;  %vm5193_vm15 = vcmask 62464  }
 0x386   : > { %5194 = vst.msk [vmem:[#allocation4 + $0x60] sm:$0x3f] %vm5193_vm15, %v10179_v1  ;;  %vm13266_vm15 = vcmask 1045509  }
 0x387   : > { %v4745_v50 = vmax.f32 %v4743_v19, %v4744_v40  ;;  %v4783_v5 = vrot.slane %v4782_v25, 1  ;;  %v4757_v40 = vsel %vm4091_vm14, %v3810_v33, -inf }
 0x388   : > { %v5507_v43 = vpop.permute.xlu0 %5506 }
 0x389   : > { %v5568_v24 = vpop.permute.xlu1 %5567  ;;  %5534 = vst.msk [vmem:[#allocation5 + $0x18] sm:$0xff] %vm5530_vm10, %v5507_v43  ;;  %v4746_v46 = vrot.slane %v4745_v50, 2  ;;  %v4775_v43 = vmax.f32 %v4773_v39, %v4774_v12 }
 0x38a   : > { %5595 = vst.msk [vmem:[#allocation5 + $0x18] sm:$0xff] %vm5591_vm11, %v5568_v24  ;;  %v4787_v24 = vmax.f32 %v4785_v22, %v4786_v47 }
 0x38b   : > { %v4776_v3 = vrot.slane %v4775_v43, 1 }
 0x38c   : > { %v5747_v4 = vpop.permute.xlu0 %5746 }
 0x38d   : > { %v5808_v34 = vpop.permute.xlu1 %5807  ;;  %5776 = vst.msk [vmem:[#allocation5 + $0x8] sm:$0xff] %vm5774_vm4, %v5747_v4  ;;  %v4747_v4 = vmax.f32 %v4745_v50, %v4746_v46  ;;  %v4777_v56 = vmax.f32 %v4775_v43, %v4776_v3 }
 0x38e   : > { %5837 = vst.msk [vmem:[#allocation5 + $0x8] sm:$0xff] %vm5835_vm6, %v5808_v34 }
 0x38f   : > { %v4748_v41 = vrot.slane %v4747_v4, 1 }
 0x390   : > { %v5387_v27 = vpop.permute.xlu0 %5386 }
 0x391   : > { %v5448_v31 = vpop.permute.xlu1 %5447  ;;  %5413 = vst.msk [vmem:[#allocation5 + $0x20] sm:$0xff] %vm5408_vm8, %v5387_v27  ;;  %v4788_v27 = vrot.slane %v4787_v24, 2  ;;  %v4749_v57 = vmax.f32 %v4747_v4, %v4748_v41 }
 0x392   : > { %5474 = vst.msk [vmem:[#allocation5 + $0x20] sm:$0xff] %vm5469_vm9, %v5448_v31  ;;  %v5106_v31 = vsel %vm4988_vm13, %v4595_v61, -inf }
 0x393   : > { %v11947_v39 = vmax.f32 %v4787_v24, %v4788_v27  ;;  %v11969_v43 = vsel %vm4988_vm13, %v4749_v57, -inf }
 0x394   : > { %v5627_v54 = vpop.permute.xlu0 %5626 }
 0x395   : > { %v5688_v20 = vpop.permute.xlu1 %5687  ;;  %5655 = vst.msk [vmem:[#allocation5 + $0x10] sm:$0xff] %vm5652_vm12, %v5627_v54  ;;  %v5847_v55 = vld [vmem:[#allocation5 + $0x8] sm:$0xff] }
 0x396   : > { %5716 = vst.msk [vmem:[#allocation5 + $0x10] sm:$0xff] %vm5713_vm5, %v5688_v20  ;;  %9500 = vmatmul.mubr.msk.f32.vlgmr.msra.gmra.mrb[10].mxu1 %vm13219_vm0, %v5847_v55 }
 0x398   : > { %v5389_v32 = vpop.permute.xlu0 %5388 }
 0x399   : > { %v5509_v9 = vpop.permute.xlu1 %5508  ;;  %5414 = vst.msk [vmem:[#allocation5 + $0x28] sm:$0xff] %vm5408_vm8, %v5389_v32  ;;  %v9462_v58 = vpop.f32.mrb[22].mxu0  ;;  %v4784_v32 = vmax.f32 %v4782_v25, %v4783_v5 }
 0x39a   : > { %5535 = vst.msk [vmem:[#allocation5 + $0x20] sm:$0xff] %vm5530_vm10, %v5509_v9  ;;  %v3224_v10 = vadd.f32 %v11658_v42, %v9462_v58  ;;  %v3218_v28 = vpop.f32.mrb[23].mxu0  ;;  %v4751_v9 = vrot.slane %v4750_v18, 4 }
 0x39b   : > { %v3219_v17 = vadd.f32 %v11658_v42, %v3218_v28 }
 0x39c   : > { %v3310_v2 = vmax.f32 %v3224_v10, 0.0  ;;  %v5629_v37 = vpop.permute.xlu0 %5628  ;;  %v9471_v49 = vpop.f32.mrb[2].mxu1  ;;  %v4758_v10 = vrot.slane %v4757_v40, 4 }
 0x39d   : > { %v5749_v45 = vpop.permute.xlu1 %5748  ;;  %v3309_v63 = vmax.f32 %v3219_v17, 0.0  ;;  %5656 = vst.msk [vmem:[#allocation5 + $0x18] sm:$0xff] %vm5652_vm12, %v5629_v37  ;;  %v3254_v21 = vadd.f32 %v11658_v42, %v9471_v49  ;;  %v3248_v23 = vpop.f32.mrb[3].mxu1  ;;  %v4769_v42 = vrot.slane %v4768_v60, 1  ;;  %v4790_v37 = vrot.slane %v11947_v39, 1 }
 0x39e   : > { %5777 = vst.msk [vmem:[#allocation5 + $0x10] sm:$0xff] %vm5774_vm4, %v5749_v45  ;;  %v3745_v16 = vcombine.high %v3310_v2, %v3310_v2  ;;  %v3752_v52 = vrot.slane %v3310_v2, %v11048_v59  ;;  %v3249_v2 = vadd.f32 %v11956_v0, %v3248_v23  ;;  %v11961_v45 = vsel %vm4988_vm13, %v4777_v56, -inf }
 0x39f   : > { %v3736_v15 = vrot.slane %v3309_v63, %v11048_v59  ;;  %v3316_v34 = vmax.f32 %v3254_v21, 0.0  ;;  %v3729_v13 = vcombine.high %v3309_v63, %v3309_v63  ;;  %v4770_v20 = vmax.f32 %v4768_v60, %v4769_v42 }
 0x3a0   : > { %v11931_v35 = vrot.slane %v3745_v16, %v11048_v59  ;;  %v5450_v29 = vpop.permute.xlu0 %5449  ;;  %v3760_v46 = vcombine.high %v3752_v52, %v3752_v52  ;;  %v11964_v49 = vsel %vm4988_vm13, %v4784_v32, -inf  ;;  %v11966_v60 = vmax.f32 %v4750_v18, %v4751_v9 }
 0x3a1   : > { %v5570_v30 = vpop.permute.xlu1 %5569  ;;  %v4645_v26 = vsel %vm4091_vm14, %v3736_v15, -inf  ;;  %5475 = vst.msk [vmem:[#allocation5 + $0x28] sm:$0xff] %vm5469_vm9, %v5450_v29  ;;  %v3846_v54 = vcombine.high %v3316_v34, %v3316_v34  ;;  %v3853_v62 = vrot.slane %v3316_v34, %v11048_v59  ;;  %v3743_v50 = vrot.slane %v3729_v13, %v11048_v59 }
 0x3a2   : > { %5596 = vst.msk [vmem:[#allocation5 + $0x20] sm:$0xff] %vm5591_vm11, %v5570_v30  ;;  %v3761_v7 = vcombine.high %v11931_v35, %v11931_v35  ;;  %v4646_v11 = vrot.slane %v4645_v26, 4  ;;  %v11953_v12 = vsel %vm4988_vm13, %v4770_v20, -inf  ;;  %v4759_v61 = vmax.f32 %v4757_v40, %v4758_v10 }
 0x3a3   : > { %v3860_v38 = vrot.slane %v3846_v54, %v11048_v59  ;;  %v3861_v17 = vcombine.high %v3853_v62, %v3853_v62  ;;  %v3744_v14 = vcombine.high %v3743_v50, %v3743_v50  ;;  %v4666_v15 = vsel %vm4091_vm14, %v3752_v52, -inf }
 0x3a4   : > { %v4687_v48 = vsel %vm4091_vm14, %v3761_v7, -inf  ;;  %v4647_v19 = vmax.f32 %v4645_v26, %v4646_v11  ;;  %v3315_v30 = vmax.f32 %v3249_v2, 0.0  ;;  %v4673_v6 = vsel %vm4091_vm14, %v3760_v46, -inf }
 0x3a5   : > { %v5810_v36 = vpop.permute.xlu1 %5809  ;;  %v4688_v8 = vrot.slane %v4687_v48, 4  ;;  %v3862_v24 = vcombine.high %v3860_v38, %v3860_v38  ;;  %v4820_v29 = vsel %vm4091_vm14, %v3861_v17, -inf  ;;  %v4680_v4 = vsel %vm4091_vm14, %v11931_v35, -inf }
 0x3a6   : > { %5838 = vst.msk [vmem:[#allocation5 + $0x10] sm:$0xff] %vm5835_vm6, %v5810_v36  ;;  %v4648_v55 = vrot.slane %v4647_v19, 2  ;;  %v4652_v42 = vsel %vm4091_vm14, %v3743_v50, -inf  ;;  %v4659_v33 = vsel %vm4091_vm14, %v3744_v14, -inf  ;;  %v4821_v7 = vrot.slane %v4820_v29, 4 }
 0x3a7   : > { %v4689_v22 = vmax.f32 %v4687_v48, %v4688_v8  ;;  %v4827_v11 = vsel %vm4091_vm14, %v3860_v38, -inf  ;;  %v4834_v48 = vsel %vm4091_vm14, %v3862_v24, -inf  ;;  %v4667_v13 = vrot.slane %v4666_v15, 4 }
 0x3a8   : > { %v4649_v58 = vmax.f32 %v4647_v19, %v4648_v55  ;;  %v4828_v5 = vrot.slane %v4827_v11, 4  ;;  %v4674_v35 = vrot.slane %v4673_v6, 4  ;;  %v4822_v19 = vmax.f32 %v4820_v29, %v4821_v7 }
 0x3a9   : > { %v4690_v28 = vrot.slane %v4689_v22, 2  ;;  %v4835_v41 = vrot.slane %v4834_v48, 4  ;;  %v3829_v18 = vcombine.high %v3315_v30, %v3315_v30  ;;  %v3836_v8 = vrot.slane %v3315_v30, %v11048_v59 }
 0x3aa   : > { %v4650_v47 = vrot.slane %v4649_v58, 1  ;;  %v4829_v36 = vmax.f32 %v4827_v11, %v4828_v5  ;;  %v4681_v54 = vrot.slane %v4680_v4, 4  ;;  %v4653_v20 = vrot.slane %v4652_v42, 4 }
 0x3ab   : > { %v4691_v63 = vmax.f32 %v4689_v22, %v4690_v28  ;;  %v4660_v40 = vrot.slane %v4659_v33, 4  ;;  %v4760_v55 = vrot.slane %v4759_v61, 2  ;;  %v4836_v56 = vmax.f32 %v4834_v48, %v4835_v41 }
 0x3ac   : > { %v4651_v16 = vmax.f32 %v4649_v58, %v4650_v47  ;;  %v4830_v62 = vrot.slane %v4829_v36, 2  ;;  %v3843_v52 = vrot.slane %v3829_v18, %v11048_v59  ;;  %v4668_v22 = vmax.f32 %v4666_v15, %v4667_v13 }
 0x3ad   : > { %v5848_v21 = vld [vmem:[#allocation5 + $0x10] sm:$0xff]  ;;  %v4692_v23 = vrot.slane %v4691_v63, 1  ;;  %v4675_v32 = vmax.f32 %v4673_v6, %v4674_v35  ;;  %v3844_v50 = vcombine.high %v3836_v8, %v3836_v8  ;;  %v4837_v57 = vrot.slane %v4836_v56, 2 }
 0x3ae   : > { %9502 = vmatprep.mubr.msk.f32.mxu1 %vm13219_vm0, %v5848_v21  ;;  %v5107_v25 = vsel %vm4988_vm13, %v4651_v16, -inf  ;;  %v4831_v58 = vmax.f32 %v4829_v36, %v4830_v62  ;;  %v3845_v10 = vcombine.high %v3843_v52, %v3843_v52  ;;  %v4792_v28 = vsel %vm4091_vm14, %v3836_v8, -inf }
 0x3af   : > { %v4693_v26 = vmax.f32 %v4691_v63, %v4692_v23  ;;  %v5108_v34 = vmax.f32 %v5106_v31, %v5107_v25  ;;  %v4682_v38 = vmax.f32 %v4680_v4, %v4681_v54  ;;  %v4654_v47 = vmax.f32 %v4652_v42, %v4653_v20 }
 0x3b0   : > { %v4661_v17 = vmax.f32 %v4659_v33, %v4660_v40  ;;  %v4753_v46 = vrot.slane %v11966_v60, 2  ;;  %v4761_v63 = vmax.f32 %v4759_v61, %v4760_v55  ;;  %v4832_v14 = vrot.slane %v4831_v58, 1 }
 0x3b1   : > { %v11982_v3 = vsel %vm4988_vm13, %v4693_v26, -inf  ;;  %v5284_v27 = vsel %vm13262_vm1, %v5108_v34, %v11900_v53  ;;  %v4823_v53 = vrot.slane %v4822_v19, 2  ;;  %v4838_v16 = vmax.f32 %v4836_v56, %v4837_v57  ;;  %vm13264_vm1 = vmmov %vm13263_vm7 }
 0x3b2   : > { %v5126_v31 = vmax.f32 %v11982_v3, %v11969_v43  ;;  %5286 = vst.msk [vmem:[#allocation4 + $0x33] sm:$0xff] %vm4988_vm13, %v5284_v27  ;;  %v4669_v24 = vrot.slane %v4668_v22, 2  ;;  %v4676_v15 = vrot.slane %v4675_v32, 2  ;;  %v4793_v29 = vrot.slane %v4792_v28, 4 }
 0x3b3   : > { %v4824_v9 = vmax.f32 %v4822_v19, %v4823_v53  ;;  %v4833_v30 = vmax.f32 %v4831_v58, %v4832_v14  ;;  %v4839_v6 = vrot.slane %v4838_v16, 1  ;;  %v4799_v4 = vsel %vm4091_vm14, %v3844_v50, -inf }
 0x3b4   : > { %v4813_v61 = vsel %vm4091_vm14, %v3845_v10, -inf  ;;  %v4683_v34 = vrot.slane %v4682_v38, 2  ;;  %v4655_v42 = vrot.slane %v4654_v47, 2  ;;  %v4662_v33 = vrot.slane %v4661_v17, 2 }
 0x3b5   : > { %v4825_v2 = vrot.slane %v4824_v9, 1  ;;  %v4840_v11 = vmax.f32 %v4838_v16, %v4839_v6  ;;  %v5137_v5 = vsel %vm4988_vm13, %v4833_v30, -inf  ;;  %v4806_v48 = vsel %vm4091_vm14, %v3843_v52, -inf }
 0x3b6   : > { %v5138_v19 = vmax.f32 %v11961_v45, %v5137_v5  ;;  %v4794_v36 = vmax.f32 %v4792_v28, %v4793_v29  ;;  %v4800_v41 = vrot.slane %v4799_v4, 4  ;;  %v4814_v18 = vrot.slane %v4813_v61, 4 }
 0x3b7   : > { %v4826_v25 = vmax.f32 %v4824_v9, %v4825_v2  ;;  %v4754_v8 = vmax.f32 %v11966_v60, %v4753_v46  ;;  %v4670_v54 = vmax.f32 %v4668_v22, %v4669_v24  ;;  %v4677_v20 = vmax.f32 %v4675_v32, %v4676_v15 }
 0x3b8   : > { %v4684_v40 = vmax.f32 %v4682_v38, %v4683_v34  ;;  %v4807_v62 = vrot.slane %v4806_v48, 4  ;;  %v4762_v45 = vrot.slane %v4761_v63, 1  ;;  %v4656_v56 = vmax.f32 %v4654_v47, %v4655_v42 }
 0x3b9   : > { %v11994_v21 = vld [vmem:[#allocation4 + $0x2c] sm:$0xff]  ;;  %v5134_v7 = vsel %vm4988_vm13, %v4826_v25, -inf  ;;  %v4663_v52 = vmax.f32 %v4661_v17, %v4662_v33  ;;  %v4795_v50 = vrot.slane %v4794_v36, 2  ;;  %v4801_v58 = vmax.f32 %v4799_v4, %v4800_v41  ;;  %v12022_v14 = vld [vmem:[#allocation4 + $0x34] sm:$0xff] }
 0x3ba   : > { %v5546_v23 = vld [vmem:[#allocation4 + $0x33] sm:$0xff]  ;;  %5689 = vrot.lane.b32.xlu0 %v11994_v21, %s10194_s18  ;;  %v5135_v27 = vmax.f32 %v11953_v12, %v5134_v7  ;;  %v5140_v12 = vsel %vm4988_vm13, %v4840_v11, -inf  ;;  %v4815_v57 = vmax.f32 %v4813_v61, %v4814_v18  ;;  %v4755_v22 = vrot.slane %v4754_v8, 1 }
 0x3bb   : > { %5571 = vrot.lane.b32.xlu1 %v5546_v23, %s10192_s1  ;;  %v5344_v26 = vld [vmem:[#allocation4 + $0x30] sm:$0xff]  ;;  %v5141_v53 = vmax.f32 %v11964_v49, %v5140_v12  ;;  %v4671_v32 = vrot.slane %v4670_v54, 1  ;;  %v4791_v49 = vmax.f32 %v11947_v39, %v4790_v37  ;;  %v4678_v10 = vrot.slane %v4677_v20, 1 }
 0x3bc   : > { %5354 = vst.msk [vmem:[#allocation5 + $0x30] sm:$0xff] %vm4988_vm13, %v5344_v26  ;;  %v5485_v13 = vld [vmem:[#allocation4 + $0x32] sm:$0xff]  ;;  %v5312_v55 = vsel %vm13263_vm7, %v5138_v19, %v5135_v27  ;;  %v4685_v28 = vrot.slane %v4684_v40, 1  ;;  %v4808_v38 = vmax.f32 %v4806_v48, %v4807_v62  ;;  %v4763_v47 = vmax.f32 %v4761_v63, %v4762_v45 }
 0x3bd   : > { %v5788_v35 = vld [vmem:[#allocation4 + $0x2e] sm:$0xff]  ;;  %v12016_v60 = vsel %vm5205_vm2, %v5141_v53, %v5312_v55  ;;  %v4657_v17 = vrot.slane %v4656_v56, 1  ;;  %v4664_v2 = vrot.slane %v4663_v52, 1  ;;  %v4796_v16 = vmax.f32 %v4794_v36, %v4795_v50 }
 0x3be   : > { %5510 = vrot.lane.b32.xlu0 %v5485_v13, %s10191_s20  ;;  %v5727_v9 = vld [vmem:[#allocation4 + $0x2d] sm:$0xff]  ;;  %v4802_v23 = vrot.slane %v4801_v58, 2  ;;  %v4816_v24 = vrot.slane %v4815_v57, 2  ;;  %v4756_v39 = vmax.f32 %v4754_v8, %v4755_v22  ;;  %v4672_v37 = vmax.f32 %v4670_v54, %v4671_v32 }
 0x3bf   : > { %5811 = vrot.lane.b32.xlu1 %v5788_v35, %s10196_s16  ;;  %v5364_v46 = vld [vmem:[#allocation4 + $0x31] sm:$0xff]  ;;  %v4679_v15 = vmax.f32 %v4677_v20, %v4678_v10  ;;  %v4686_v25 = vmax.f32 %v4684_v40, %v4685_v28  ;;  %v4809_v29 = vrot.slane %v4808_v38, 2  ;;  %v12028_v63 = vsel %vm4988_vm13, %v4791_v49, -inf }
 0x3c0   : > { %v12031_v6 = vsel %vm4988_vm13, %v4763_v47, -inf  ;;  %v4658_v4 = vmax.f32 %v4656_v56, %v4657_v17  ;;  %v4665_v61 = vmax.f32 %v4663_v52, %v4664_v2  ;;  %v4797_v33 = vrot.slane %v4796_v16, 1 }
 0x3c1   : > { %v4803_v7 = vmax.f32 %v4801_v58, %v4802_v23  ;;  %v4817_v11 = vmax.f32 %v4815_v57, %v4816_v24  ;;  %v12038_v48 = vsel %vm4988_vm13, %v4672_v37, -inf  ;;  %v12042_v19 = vsel %vm4988_vm13, %v4756_v39, -inf }
 0x3c2   : > { %5750 = vrot.lane.b32.xlu0 %v5727_v9, %s10195_s13  ;;  %v12045_v36 = vsel %vm4988_vm13, %v4679_v15, -inf  ;;  %v12048_v41 = vsel %vm4988_vm13, %v4686_v25, -inf  ;;  %v12050_v18 = vmax.f32 %v4808_v38, %v4809_v29  ;;  %v12057_v12 = vsel %vm4988_vm13, %v4665_v61, -inf }
 0x3c3   : > { %5451 = vrot.lane.b32.xlu1 %v5485_v13, %s10190_s26  ;;  %v12059_v40 = vmax.f32 %v4796_v16, %v4797_v33  ;;  %v4804_v53 = vrot.slane %v4803_v7, 1  ;;  %v4818_v55 = vrot.slane %v4817_v11, 1  ;;  %vm13265_vm7 = vcmask 1044484  }
 0x3c4   : > { %v4811_v50 = vrot.slane %v12050_v18, 1  ;;  %vm13269_vm0 = vcmask 1045509  }
 0x3c5   : > { %v4819_v38 = vmax.f32 %v4817_v11, %v4818_v55  ;;  %v4805_v29 = vmax.f32 %v4803_v7, %v4804_v53 }
 0x3c6   : > { %5390 = vrot.lane.b32.xlu0 %v5364_v46, %s10188_s23 }
 0x3c7   : > { %5691 = vrot.lane.b32.xlu1 %v12022_v14, %s10194_s18 }
 0x3c8   : > { %v9465_v30 = vpop.f32.mrb[24].mxu0 }
 0x3c9   : > { %v3234_v26 = vadd.f32 %v11956_v0, %v9465_v30  ;;  %v9474_v34 = vpop.f32.mrb[4].mxu1  ;;  %v3228_v42 = vpop.f32.mrb[25].mxu0 }
 0x3ca   : > { %v3264_v27 = vadd.f32 %v11956_v0, %v9474_v34  ;;  %v3258_v5 = vpop.f32.mrb[5].mxu1  ;;  %5630 = vrot.lane.b32.xlu0 %v11994_v21, %s10193_s9  ;;  %v3229_v35 = vadd.f32 %v11956_v0, %v3228_v42  ;;  %v12053_v21 = vsel %vm4988_vm13, %v4658_v4, -inf }
 0x3cb   : > { %v3312_v13 = vmax.f32 %v3234_v26, 0.0  ;;  %v3259_v61 = vadd.f32 %v11956_v0, %v3258_v5 }
 0x3cc   : > { %v3318_v8 = vmax.f32 %v3264_v27, 0.0  ;;  %v3311_v9 = vmax.f32 %v3229_v35, 0.0  ;;  %v12073_v27 = vsel %vm4988_vm13, %v4819_v38, -inf }
 0x3cd   : > { %v3779_v54 = vcombine.high %v3312_v13, %v3312_v13  ;;  %v3786_v20 = vrot.slane %v3312_v13, %v11048_v59 }
 0x3ce   : > { %v3887_v62 = vrot.slane %v3318_v8, %v11048_v59  ;;  %v3880_v57 = vcombine.high %v3318_v8, %v3318_v8  ;;  %v3762_v23 = vcombine.high %v3311_v9, %v3311_v9  ;;  %v3769_v24 = vrot.slane %v3311_v9, %v11048_v59 }
 0x3cf   : > { %v3793_v45 = vrot.slane %v3779_v54, %v11048_v59  ;;  %v3794_v56 = vcombine.high %v3786_v20, %v3786_v20  ;;  %v4715_v52 = vsel %vm4091_vm14, %v3786_v20, -inf }
 0x3d0   : > { %v4716_v58 = vrot.slane %v4715_v52, 4  ;;  %v4869_v22 = vsel %vm4091_vm14, %v3887_v62, -inf  ;;  %v3894_v30 = vrot.slane %v3880_v57, %v11048_v59  ;;  %v3776_v13 = vrot.slane %v3762_v23, %v11048_v59 }
 0x3d1   : > { %v3795_v32 = vcombine.high %v3793_v45, %v3793_v45  ;;  %v4722_v49 = vsel %vm4091_vm14, %v3794_v56, -inf  ;;  %v4729_v10 = vsel %vm4091_vm14, %v3793_v45, -inf  ;;  %v4870_v28 = vrot.slane %v4869_v22, 4 }
 0x3d2   : > { %v4717_v47 = vmax.f32 %v4715_v52, %v4716_v58  ;;  %v4723_v17 = vrot.slane %v4722_v49, 4  ;;  %v4730_v2 = vrot.slane %v4729_v10, 4  ;;  %v4694_v35 = vsel %vm4091_vm14, %v3769_v24, -inf }
 0x3d3   : > { %v4736_v46 = vsel %vm4091_vm14, %v3795_v32, -inf  ;;  %v4871_v16 = vmax.f32 %v4869_v22, %v4870_v28  ;;  %v4876_v55 = vsel %vm4091_vm14, %v3894_v30, -inf  ;;  %v4695_v5 = vrot.slane %v4694_v35, 4 }
 0x3d4   : > { %v4718_v39 = vrot.slane %v4717_v47, 2  ;;  %v4724_v37 = vmax.f32 %v4722_v49, %v4723_v17  ;;  %v4731_v15 = vmax.f32 %v4729_v10, %v4730_v2  ;;  %v4737_v25 = vrot.slane %v4736_v46, 4 }
 0x3d5   : > { %v4872_v4 = vrot.slane %v4871_v16, 2  ;;  %v3317_v62 = vmax.f32 %v3259_v61, 0.0  ;;  %v3777_v57 = vcombine.high %v3769_v24, %v3769_v24  ;;  %v3778_v22 = vcombine.high %v3776_v13, %v3776_v13 }
 0x3d6   : > { %v4719_v26 = vmax.f32 %v4717_v47, %v4718_v39  ;;  %v4725_v34 = vrot.slane %v4724_v37, 2  ;;  %v4732_v42 = vrot.slane %v4731_v15, 2  ;;  %v4738_v33 = vmax.f32 %v4736_v46, %v4737_v25 }
 0x3d7   : > { %v4873_v11 = vmax.f32 %v4871_v16, %v4872_v4  ;;  %v4696_v32 = vmax.f32 %v4694_v35, %v4695_v5  ;;  %v4877_v17 = vrot.slane %v4876_v55, 4  ;;  %v3863_v46 = vcombine.high %v3317_v62, %v3317_v62 }
 0x3d8   : > { %v4720_v8 = vrot.slane %v4719_v26, 1  ;;  %v4726_v54 = vmax.f32 %v4724_v37, %v4725_v34  ;;  %v4733_v7 = vmax.f32 %v4731_v15, %v4732_v42  ;;  %v4739_v20 = vrot.slane %v4738_v33, 2 }
 0x3d9   : > { %v4874_v53 = vrot.slane %v4873_v11, 1  ;;  %v4812_v37 = vmax.f32 %v12050_v18, %v4811_v50  ;;  %v3895_v4 = vcombine.high %v3894_v30, %v3894_v30  ;;  %v4701_v34 = vsel %vm4091_vm14, %v3777_v57, -inf }
 0x3da   : > { %v4721_v45 = vmax.f32 %v4719_v26, %v4720_v8  ;;  %v4727_v56 = vrot.slane %v4726_v54, 1  ;;  %v4734_v52 = vrot.slane %v4733_v7, 1  ;;  %v4740_v9 = vmax.f32 %v4738_v33, %v4739_v20 }
 0x3db   : > { %v4875_v58 = vmax.f32 %v4873_v11, %v4874_v53  ;;  %v4697_v26 = vrot.slane %v4696_v32, 2  ;;  %v4708_v42 = vsel %vm4091_vm14, %v3778_v22, -inf  ;;  %v12106_v33 = vsel %vm4988_vm13, %v12059_v40, -inf }
 0x3dc   : > { %v4728_v49 = vmax.f32 %v4726_v54, %v4727_v56  ;;  %v4735_v10 = vmax.f32 %v4733_v7, %v4734_v52  ;;  %v4741_v28 = vrot.slane %v4740_v9, 1  ;;  %v12079_v38 = vsel %vm4988_vm13, %v4721_v45, -inf }
 0x3dd   : > { %v5114_v47 = vmax.f32 %v12057_v12, %v12079_v38  ;;  %v12084_v2 = vsel %vm4988_vm13, %v4875_v58, -inf  ;;  %v12110_v50 = vmax.f32 %v4876_v55, %v4877_v17  ;;  %v4702_v11 = vrot.slane %v4701_v34, 4 }
 0x3de   : > { %v4742_v16 = vmax.f32 %v4740_v9, %v4741_v28  ;;  %v12087_v23 = vsel %vm4988_vm13, %v4728_v49, -inf  ;;  %v12090_v24 = vsel %vm4988_vm13, %v4735_v10, -inf  ;;  %v5156_v39 = vmax.f32 %v12073_v27, %v12084_v2 }
 0x3df   : > { %v5117_v15 = vmax.f32 %v12038_v48, %v12087_v23  ;;  %v5120_v25 = vmax.f32 %v12045_v36, %v12090_v24  ;;  %v4698_v13 = vmax.f32 %v4696_v32, %v4697_v26  ;;  %v4709_v30 = vrot.slane %v4708_v42, 4 }
 0x3e0   : > { %v12100_v61 = vsel %vm4988_vm13, %v4742_v16, -inf  ;;  %v3870_v35 = vrot.slane %v3317_v62, %v11048_v59  ;;  %v3877_v8 = vrot.slane %v3863_v46, %v11048_v59  ;;  %v12115_v54 = vsel %vm4988_vm13, %v4805_v29, -inf }
 0x3e1   : > { %v5123_v18 = vmax.f32 %v12048_v41, %v12100_v61  ;;  %v12118_v7 = vsel %vm4988_vm13, %v4812_v37, -inf  ;;  %v12121_v40 = vsel %vm4091_vm14, %v3895_v4, -inf  ;;  %v4703_v20 = vmax.f32 %v4701_v34, %v4702_v11 }
 0x3e2   : > { %v4699_v53 = vrot.slane %v4698_v13, 1  ;;  %v4710_v55 = vmax.f32 %v4708_v42, %v4709_v30  ;;  %v3878_v5 = vcombine.high %v3870_v35, %v3870_v35  ;;  %v3879_v45 = vcombine.high %v3877_v8, %v3877_v8 }
 0x3e3   : > { %v4879_v56 = vrot.slane %v12110_v50, 2  ;;  %v4704_v52 = vrot.slane %v4703_v20, 2  ;;  %v4841_v62 = vsel %vm4091_vm14, %v3870_v35, -inf  ;;  %v4855_v9 = vsel %vm4091_vm14, %v3877_v8, -inf }
 0x3e4   : > { %v4700_v29 = vmax.f32 %v4698_v13, %v4699_v53  ;;  %v4711_v58 = vrot.slane %v4710_v55, 2  ;;  %v4842_v57 = vrot.slane %v4841_v62, 4  ;;  %v4848_v22 = vsel %vm4091_vm14, %v3878_v5, -inf }
 0x3e5   : > { %v4705_v32 = vmax.f32 %v4703_v20, %v4704_v52  ;;  %v4849_v49 = vrot.slane %v4848_v22, 4  ;;  %v4856_v10 = vrot.slane %v4855_v9, 4  ;;  %v4862_v28 = vsel %vm4091_vm14, %v3879_v45, -inf }
 0x3e6   : > { %v4712_v17 = vmax.f32 %v4710_v55, %v4711_v58  ;;  %v5127_v46 = vsel %vm4988_vm13, %v4700_v29, -inf  ;;  %v4843_v16 = vmax.f32 %v4841_v62, %v4842_v57  ;;  %v4863_v37 = vrot.slane %v4862_v28, 4 }
 0x3e7   : > { %v4706_v26 = vrot.slane %v4705_v32, 1  ;;  %v5129_v34 = vmax.f32 %v5127_v46, %v12042_v19  ;;  %v4850_v42 = vmax.f32 %v4848_v22, %v4849_v49  ;;  %v4857_v11 = vmax.f32 %v4855_v9, %v4856_v10 }
 0x3e8   : > { %v9477_v4 = vpop.f32.mrb[6].mxu1  ;;  %v4713_v30 = vrot.slane %v4712_v17, 1  ;;  %v4844_v35 = vrot.slane %v4843_v16, 2  ;;  %v4864_v8 = vmax.f32 %v4862_v28, %v4863_v37  ;;  %v4880_v43 = vmax.f32 %v12110_v50, %v4879_v56 }
 0x3e9   : > { %v3268_v13 = vpop.f32.mrb[7].mxu1  ;;  %v3274_v20 = vadd.f32 %v11956_v0, %v9477_v4  ;;  %v4707_v53 = vmax.f32 %v4705_v32, %v4706_v26  ;;  %v4851_v5 = vrot.slane %v4850_v42, 2  ;;  %v4858_v45 = vrot.slane %v4857_v11, 2 }
 0x3ea   : > { %v3269_v55 = vadd.f32 %v11956_v0, %v3268_v13  ;;  %v4714_v52 = vmax.f32 %v4712_v17, %v4713_v30  ;;  %v4845_v62 = vmax.f32 %v4843_v16, %v4844_v35  ;;  %v4865_v29 = vrot.slane %v4864_v8, 2 }
 0x3eb   : > { %v3320_v58 = vmax.f32 %v3274_v20, 0.0  ;;  %v5130_v57 = vsel %vm4988_vm13, %v4707_v53, -inf  ;;  %v4852_v19 = vmax.f32 %v4850_v42, %v4851_v5  ;;  %v4859_v22 = vmax.f32 %v4857_v11, %v4858_v45 }
 0x3ec   : > { %v3319_v9 = vmax.f32 %v3269_v55, 0.0  ;;  %v5110_v49 = vsel %vm4988_vm13, %v4714_v52, -inf  ;;  %v5132_v10 = vmax.f32 %v5130_v57, %v12031_v6  ;;  %v4846_v28 = vrot.slane %v4845_v62, 1 }
 0x3ed   : > { %v4866_v46 = vmax.f32 %v4864_v8, %v4865_v29  ;;  %v5111_v32 = vmax.f32 %v12053_v21, %v5110_v49  ;;  %v4853_v37 = vrot.slane %v4852_v19, 1  ;;  %v4860_v4 = vrot.slane %v4859_v22, 1 }
 0x3ee   : > { %v3913_v26 = vcombine.high %v3320_v58, %v3320_v58  ;;  %v4847_v17 = vmax.f32 %v4845_v62, %v4846_v28  ;;  %v3920_v13 = vrot.slane %v3320_v58, %v11048_v59  ;;  %v3896_v30 = vcombine.high %v3319_v9, %v3319_v9 }
 0x3ef   : > { %v4867_v16 = vrot.slane %v4866_v46, 1  ;;  %v5295_v42 = vsel %vm13264_vm1, %v5114_v47, %v5111_v32  ;;  %v4854_v11 = vmax.f32 %v4852_v19, %v4853_v37  ;;  %v4861_v35 = vmax.f32 %v4859_v22, %v4860_v4 }
 0x3f0   : > { %v3927_v6 = vrot.slane %v3913_v26, %v11048_v59  ;;  %v5296_v21 = vsel %vm5205_vm2, %v5117_v15, %v5295_v42  ;;  %v5143_v20 = vsel %vm4988_vm13, %v4847_v17, -inf  ;;  %v3928_v53 = vcombine.high %v3920_v13, %v3920_v13 }
 0x3f1   : > { %v4868_v8 = vmax.f32 %v4866_v46, %v4867_v16  ;;  %v5297_v12 = vsel %vm5207_vm3, %v5120_v25, %v5296_v21  ;;  %v5144_v38 = vmax.f32 %v12028_v63, %v5143_v20  ;;  %v5146_v47 = vsel %vm4988_vm13, %v4854_v11, -inf }
 0x3f2   : > { %v5149_v5 = vsel %vm4988_vm13, %v4861_v35, -inf  ;;  %v5298_v48 = vsel %vm13265_vm7, %v5123_v18, %v5297_v12  ;;  %v5147_v23 = vmax.f32 %v12106_v33, %v5146_v47  ;;  %v3929_v25 = vcombine.high %v3927_v6, %v3927_v6 }
 0x3f3   : > { %v5150_v15 = vmax.f32 %v12115_v54, %v5149_v5  ;;  %v5152_v45 = vsel %vm4988_vm13, %v4868_v8, -inf  ;;  %v5299_v63 = vsel %vm13266_vm15, %v5126_v31, %v5298_v48  ;;  %v5314_v24 = vsel %vm5207_vm3, %v5144_v38, %v12016_v60  ;;  %v5728_v5 = vld [vmem:[#allocation4 + $0x35] sm:$0xff] }
 0x3f4   : > { %v5153_v36 = vmax.f32 %v12118_v7, %v5152_v45  ;;  %vm13267_vm1 = vcmask 1046534   ;;  %v5315_v61 = vsel %vm13265_vm7, %v5147_v23, %v5314_v24  ;;  %v4918_v33 = vsel %vm4091_vm14, %v3920_v13, -inf }
 0x3f5   : > { %v5300_v41 = vsel %vm13267_vm1, %v5129_v34, %v5299_v63  ;;  %v4925_v18 = vsel %vm4091_vm14, %v3928_v53, -inf  ;;  %v9480_v54 = vpop.f32.mrb[8].mxu1  ;;  %vm13268_vm15 = vcmask 1047559   ;;  %v5316_v31 = vsel %vm13269_vm0, %v5150_v15, %v5315_v61 }
 0x3f6   : > { %v5301_v3 = vsel %vm13268_vm15, %v5132_v10, %v5300_v41  ;;  %v4919_v7 = vrot.slane %v4918_v33, 4  ;;  %v12177_v60 = vpop.f32.mrb[9].mxu1  ;;  %v5317_v34 = vsel %vm13267_vm1, %v5153_v36, %v5316_v31  ;;  %v4926_v55 = vrot.slane %v4925_v18, 4  ;;  %vm13270_vm7 = vmmov %vm13268_vm15 }
 0x3f7   : > { %5303 = vst.msk [vmem:[#allocation4 + $0x3d] sm:$0xff] %vm4988_vm13, %v5301_v3  ;;  %v4932_v52 = vsel %vm4091_vm14, %v3929_v25, -inf  ;;  %v3910_v62 = vrot.slane %v3896_v30, %v11048_v59  ;;  %v5318_v50 = vsel %vm13270_vm7, %v5156_v39, %v5317_v34  ;;  %v3903_v29 = vrot.slane %v3319_v9, %v11048_v59 }
 0x3f8   : > { %v4933_v56 = vrot.slane %v4932_v52, 4  ;;  %5320 = vst.msk [vmem:[#allocation4 + $0x47] sm:$0xff] %vm4988_vm13, %v5318_v50  ;;  %v4920_v58 = vmax.f32 %v4918_v33, %v4919_v7  ;;  %v4881_v19 = vrot.slane %v4880_v43, 1  ;;  %v4884_v22 = vrot.slane %v12121_v40, 4 }
 0x3f9   : > { %v3912_v57 = vcombine.high %v3910_v62, %v3910_v62  ;;  %v4927_v10 = vmax.f32 %v4925_v18, %v4926_v55  ;;  %v3284_v46 = vadd.f32 %v11956_v0, %v9480_v54  ;;  %v3911_v27 = vcombine.high %v3903_v29, %v3903_v29 }
 0x3fa   : > { %v4934_v49 = vmax.f32 %v4932_v52, %v4933_v56  ;;  %v4921_v2 = vrot.slane %v4920_v58, 2  ;;  %v4890_v39 = vsel %vm4091_vm14, %v3903_v29, -inf  ;;  %v4882_v4 = vmax.f32 %v4880_v43, %v4881_v19 }
 0x3fb   : > { %v4911_v28 = vsel %vm4091_vm14, %v3912_v57, -inf  ;;  %v3322_v9 = vmax.f32 %v3284_v46, 0.0  ;;  %v4885_v26 = vmax.f32 %v12121_v40, %v4884_v22  ;;  %v4928_v30 = vrot.slane %v4927_v10, 2 }
 0x3fc   : > { %v4935_v32 = vrot.slane %v4934_v49, 2  ;;  %v4912_v37 = vrot.slane %v4911_v28, 4  ;;  %v4891_v6 = vrot.slane %v4890_v39, 4  ;;  %v4897_v21 = vsel %vm4091_vm14, %v3911_v27, -inf }
 0x3fd   : > { %v3947_v11 = vcombine.high %v3322_v9, %v3322_v9  ;;  %v4904_v8 = vsel %vm4091_vm14, %v3910_v62, -inf  ;;  %v4922_v20 = vmax.f32 %v4920_v58, %v4921_v2  ;;  %v3954_v40 = vrot.slane %v3322_v9, %v11048_v59 }
 0x3fe   : > { %v4936_v17 = vmax.f32 %v4934_v49, %v4935_v32  ;;  %v5365_v16 = vld [vmem:[#allocation4 + $0x39] sm:$0xff]  ;;  %v4913_v42 = vmax.f32 %v4911_v28, %v4912_v37  ;;  %v4886_v12 = vrot.slane %v4885_v26, 2  ;;  %v12200_v38 = vsel %vm4988_vm13, %v4882_v4, -inf }
 0x3ff   : > { %v5486_v13 = vld [vmem:[#allocation4 + $0x3a] sm:$0xff]  ;;  %5392 = vrot.lane.b32.xlu0 %v5365_v16, %s10188_s23  ;;  %v4929_v23 = vmax.f32 %v4927_v10, %v4928_v30  ;;  %v4898_v15 = vrot.slane %v4897_v21, 4  ;;  %v4905_v45 = vrot.slane %v4904_v8, 4  ;;  %v3961_v63 = vrot.slane %v3947_v11, %v11048_v59  ;;  %v5347_v24 = vld [vmem:[#allocation4 + $0x48] sm:$0xff] }
 0x400   : > { %5512 = vrot.lane.b32.xlu1 %v5486_v13, %s10191_s20  ;;  %v4937_v35 = vrot.slane %v4936_v17, 1  ;;  %v4914_v53 = vrot.slane %v4913_v42, 2  ;;  %v5345_v48 = vld [vmem:[#allocation4 + $0x38] sm:$0xff]  ;;  %v5346_v36 = vld [vmem:[#allocation4 + $0x40] sm:$0xff]  ;;  %v4892_v41 = vmax.f32 %v4890_v39, %v4891_v6  ;;  %v3962_v61 = vcombine.high %v3954_v40, %v3954_v40  ;;  %5357 = vst.msk [vmem:[#allocation5 + $0x48] sm:$0xff] %vm4988_vm13, %v5347_v24 }
 0x401   : > { %5355 = vst.msk [vmem:[#allocation5 + $0x38] sm:$0xff] %vm4988_vm13, %v5345_v48  ;;  %v4967_v33 = vsel %vm4091_vm14, %v3954_v40, -inf  ;;  %5356 = vst.msk [vmem:[#allocation5 + $0x40] sm:$0xff] %vm4988_vm13, %v5346_v36  ;;  %v4923_v18 = vrot.slane %v4922_v20, 1  ;;  %v12215_v43 = vmax.f32 %v4885_v26, %v4886_v12  ;;  %v4981_v7 = vsel %vm4091_vm14, %v3961_v63, -inf  ;;  %v5547_v34 = vld [vmem:[#allocation4 + $0x3b] sm:$0xff] }
 0x402   : > { %v4938_v47 = vmax.f32 %v4936_v17, %v4937_v35  ;;  %v4915_v54 = vmax.f32 %v4913_v42, %v4914_v53  ;;  %v4968_v3 = vrot.slane %v4967_v33, 4  ;;  %v4974_v31 = vsel %vm4091_vm14, %v3962_v61, -inf  ;;  %v12226_v27 = vld [vmem:[#allocation4 + $0x3c] sm:$0xff] }
 0x403   : > { %5632 = vrot.lane.b32.xlu0 %v12022_v14, %s10193_s9  ;;  %v4930_v55 = vrot.slane %v4929_v23, 1  ;;  %v4899_v52 = vmax.f32 %v4897_v21, %v4898_v15  ;;  %v12219_v62 = vmax.f32 %v4904_v8, %v4905_v45  ;;  %v4975_v50 = vrot.slane %v4974_v31, 4  ;;  %v5789_v2 = vld [vmem:[#allocation4 + $0x36] sm:$0xff]  ;;  %v5487_v8 = vld [vmem:[#allocation4 + $0x42] sm:$0xff] }
 0x404   : > { %5752 = vrot.lane.b32.xlu1 %v5728_v5, %s10195_s13  ;;  %v12208_v25 = vsel %vm4988_vm13, %v4938_v47, -inf  ;;  %v4893_v56 = vrot.slane %v4892_v41, 2  ;;  %v4969_v29 = vmax.f32 %v4967_v33, %v4968_v3  ;;  %v4982_v58 = vrot.slane %v4981_v7, 4  ;;  %v5790_v3 = vld [vmem:[#allocation4 + $0x3e] sm:$0xff] }
 0x405   : > { %v5159_v14 = vmax.f32 %v12200_v38, %v12208_v25  ;;  %v3279_v57 = vadd.f32 %v11956_v0, %v12177_v60  ;;  %v4924_v19 = vmax.f32 %v4922_v20, %v4923_v18  ;;  %v4916_v22 = vrot.slane %v4915_v54, 1  ;;  %v5548_v20 = vld [vmem:[#allocation4 + $0x43] sm:$0xff] }
 0x406   : > { %v4976_v49 = vmax.f32 %v4974_v31, %v4975_v50  ;;  %vm6461_vm0 = vcmask 130048   ;;  %v4888_v10 = vrot.slane %v12215_v43, 1  ;;  %v4970_v28 = vrot.slane %v4969_v29, 2 }
 0x407   : > { %5453 = vrot.lane.b32.xlu0 %v5486_v13, %s10190_s26  ;;  %v4983_v46 = vmax.f32 %v4981_v7, %v4982_v58  ;;  %v3321_v32 = vmax.f32 %v3279_v57, 0.0  ;;  %6510 = vst.msk [vmem:[#allocation6] sm:$0xff] %vm6461_vm0, %v10179_v1  ;;  %6511 = vst.msk [vmem:[#allocation6 + $0x8] sm:$0xff] %vm6461_vm0, %v10179_v1  ;;  %v4931_v0 = vmax.f32 %v4929_v23, %v4930_v55  ;;  %v4900_v60 = vrot.slane %v4899_v52, 2 }
 0x408   : > { %5573 = vrot.lane.b32.xlu1 %v5547_v34, %s10192_s1  ;;  %6512 = vst.msk [vmem:[#allocation6 + $0x10] sm:$0xff] %vm6461_vm0, %v10179_v1  ;;  %6513 = vst.msk [vmem:[#allocation6 + $0x18] sm:$0xff] %vm6461_vm0, %v10179_v1  ;;  %v4907_v39 = vrot.slane %v12219_v62, 2  ;;  %v4977_v37 = vrot.slane %v4976_v49, 2  ;;  %v4971_v9 = vmax.f32 %v4969_v29, %v4970_v28  ;;  %v12250_v16 = vsel %vm4988_vm13, %v4924_v19, -inf }
 0x409   : > { %6514 = vst.msk [vmem:[#allocation6 + $0x20] sm:$0xff] %vm6461_vm0, %v10179_v1  ;;  %6515 = vst.msk [vmem:[#allocation6 + $0x28] sm:$0xff] %vm6461_vm0, %v10179_v1  ;;  %v4984_v4 = vrot.slane %v4983_v46, 2  ;;  %v3930_v26 = vcombine.high %v3321_v32, %v3321_v32  ;;  %v3937_v17 = vrot.slane %v3321_v32, %v11048_v59  ;;  %v4894_v13 = vmax.f32 %v4892_v41, %v4893_v56 }
 0x40a   : > { %6516 = vst.msk [vmem:[#allocation6 + $0x30] sm:$0xff] %vm6461_vm0, %v10179_v1  ;;  %6517 = vst.msk [vmem:[#allocation6 + $0x38] sm:$0xff] %vm6461_vm0, %v10179_v1  ;;  %v4917_v30 = vmax.f32 %v4915_v54, %v4916_v22  ;;  %v4978_v42 = vmax.f32 %v4976_v49, %v4977_v37  ;;  %v4972_v11 = vrot.slane %v4971_v9, 1  ;;  %v12254_v53 = vsel %vm4988_vm13, %v4931_v0, -inf  ;;  %v5729_v54 = vld [vmem:[#allocation4 + $0x3d] sm:$0xff] }
 0x40b   : > { %5693 = vrot.lane.b32.xlu0 %v12226_v27, %s10194_s18  ;;  %v4985_v35 = vmax.f32 %v4983_v46, %v4984_v4  ;;  %v3944_v6 = vrot.slane %v3930_v26, %v11048_v59  ;;  %v3945_v21 = vcombine.high %v3937_v17, %v3937_v17  ;;  %v4901_v40 = vmax.f32 %v4899_v52, %v4900_v60 }
 0x40c   : > { %5813 = vrot.lane.b32.xlu1 %v5789_v2, %s10196_s16  ;;  %v4979_v12 = vrot.slane %v4978_v42, 1  ;;  %v4939_v47 = vsel %vm4091_vm14, %v3937_v17, -inf  ;;  %v4973_v5 = vmax.f32 %v4971_v9, %v4972_v11  ;;  %v12260_v63 = vsel %vm4988_vm13, %v4917_v30, -inf  ;;  %v5366_v2 = vld [vmem:[#allocation4 + $0x41] sm:$0xff] }
 0x40d   : > { %v4986_v48 = vrot.slane %v4985_v35, 1  ;;  %v3946_v23 = vcombine.high %v3944_v6, %v3944_v6  ;;  %v4940_v15 = vrot.slane %v4939_v47, 4  ;;  %v4946_v36 = vsel %vm4091_vm14, %v3945_v21, -inf  ;;  %v5669_v11 = vld [vmem:[#allocation4 + $0x44] sm:$0xff] }
 0x40e   : > { %v4980_v45 = vmax.f32 %v4978_v42, %v4979_v12  ;;  %v4953_v24 = vsel %vm4091_vm14, %v3944_v6, -inf  ;;  %v12265_v61 = vsel %vm4988_vm13, %v4973_v5, -inf  ;;  %v4947_v18 = vrot.slane %v4946_v36, 4  ;;  %v5367_v5 = vld [vmem:[#allocation4 + $0x49] sm:$0xff] }
 0x40f   : > { %5514 = vrot.lane.b32.xlu0 %v5487_v8, %s10191_s20  ;;  %v4987_v41 = vmax.f32 %v4985_v35, %v4986_v48  ;;  %v4941_v33 = vmax.f32 %v4939_v47, %v4940_v15  ;;  %v5174_v31 = vmax.f32 %v12260_v63, %v12265_v61  ;;  %v4954_v34 = vrot.slane %v4953_v24, 4 }
 0x410   : > { %5575 = vrot.lane.b32.xlu1 %v5548_v20, %s10192_s1  ;;  %v12270_v7 = vsel %vm4988_vm13, %v4980_v45, -inf  ;;  %v4960_v55 = vsel %vm4091_vm14, %v3946_v23, -inf  ;;  %v4948_v29 = vmax.f32 %v4946_v36, %v4947_v18  ;;  %v4908_v58 = vmax.f32 %v12219_v62, %v4907_v39 }
 0x411   : > { %v5177_v52 = vmax.f32 %v12250_v16, %v12270_v7  ;;  %v5179_v50 = vsel %vm4988_vm13, %v4987_v41, -inf  ;;  %v4942_v56 = vrot.slane %v4941_v33, 2  ;;  %v4955_v19 = vmax.f32 %v4953_v24, %v4954_v34 }
 0x412   : > { %v5180_v57 = vmax.f32 %v12254_v53, %v5179_v50  ;;  %v4961_v22 = vrot.slane %v4960_v55, 4  ;;  %v4895_v49 = vrot.slane %v4894_v13, 1  ;;  %v4902_v28 = vrot.slane %v4901_v40, 1 }
 0x413   : > { %5754 = vrot.lane.b32.xlu0 %v5729_v54, %s10195_s13  ;;  %v4943_v46 = vmax.f32 %v4941_v33, %v4942_v56  ;;  %v4949_v32 = vrot.slane %v4948_v29, 2  ;;  %v4956_v0 = vrot.slane %v4955_v19, 2  ;;  %v4889_v37 = vmax.f32 %v12215_v43, %v4888_v10 }
 0x414   : > { %5815 = vrot.lane.b32.xlu1 %v5790_v3, %s10196_s16  ;;  %v4962_v60 = vmax.f32 %v4960_v55, %v4961_v22  ;;  %v4909_v9 = vrot.slane %v4908_v58, 1  ;;  %v4896_v17 = vmax.f32 %v4894_v13, %v4895_v49  ;;  %v4903_v16 = vmax.f32 %v4901_v40, %v4902_v28 }
 0x415   : > { %v4944_v62 = vrot.slane %v4943_v46, 1  ;;  %v4950_v39 = vmax.f32 %v4948_v29, %v4949_v32  ;;  %v4957_v4 = vmax.f32 %v4955_v19, %v4956_v0  ;;  %v5160_v43 = vsel %vm4988_vm13, %v4889_v37, -inf  ;;  %v5791_v19 = vld [vmem:[#allocation4 + $0x46] sm:$0xff]  ;;  %v5672_v0 = vld [vmem:[#allocation4 + $0x5c] sm:$0xff] }
 0x416   : > { %v4963_v26 = vrot.slane %v4962_v60, 2  ;;  %v5163_v40 = vsel %vm4988_vm13, %v4896_v17, -inf  ;;  %v5166_v12 = vsel %vm4988_vm13, %v4903_v16, -inf  ;;  %vm13271_vm14 = vcmask 1041409  }
 0x417   : > { %5394 = vrot.lane.b32.xlu0 %v5366_v2, %s10188_s23  ;;  %v4945_v30 = vmax.f32 %v4943_v46, %v4944_v62  ;;  %v4951_v42 = vrot.slane %v4950_v39, 1  ;;  %v4958_v35 = vrot.slane %v4957_v4, 1  ;;  %vm13272_vm15 = vcmask 1044484   ;;  %v5794_v62 = vld [vmem:[#allocation4 + $0x5e] sm:$0xff] }
 0x418   : > { %5455 = vrot.lane.b32.xlu1 %v5487_v8, %s10190_s26  ;;  %v4964_v6 = vmax.f32 %v4962_v60, %v4963_v26  ;;  %v4910_v8 = vmax.f32 %v4908_v58, %v4909_v9  ;;  %vm13273_vm1 = vcmask 1045509   ;;  %vm13274_vm7 = vcmask 1046534   ;;  %v5733_v60 = vld [vmem:[#allocation4 + $0x5d] sm:$0xff]  ;;  %v12341_v9 = vld [vmem:[%s10249_s3] ss:$0 sm:$0xff] }
 0x419   : > { %v4952_v21 = vmax.f32 %v4950_v39, %v4951_v42  ;;  %v5161_v10 = vsel %vm4988_vm13, %v4945_v30, -inf  ;;  %v4959_v20 = vmax.f32 %v4957_v4, %v4958_v35 }
 0x41a   : > { %v4965_v53 = vrot.slane %v4964_v6, 1  ;;  %v5162_v13 = vmax.f32 %v5160_v43, %v5161_v10  ;;  %v5169_v36 = vsel %vm4988_vm13, %v4910_v8, -inf }
 0x41b   : > { %5634 = vrot.lane.b32.xlu0 %v12226_v27, %s10193_s9  ;;  %v5164_v47 = vsel %vm4988_vm13, %v4952_v21, -inf  ;;  %v5167_v23 = vsel %vm4988_vm13, %v4959_v20, -inf }
 0x41c   : > { %5695 = vrot.lane.b32.xlu1 %v5669_v11, %s10194_s18  ;;  %v4966_v48 = vmax.f32 %v4964_v6, %v4965_v53  ;;  %v5165_v27 = vmax.f32 %v5163_v40, %v5164_v47  ;;  %v5329_v15 = vsel %vm13271_vm14, %v5162_v13, %v5159_v14  ;;  %v5168_v45 = vmax.f32 %v5166_v12, %v5167_v23 }
 0x41d   : > { %vm13275_vm14 = vcmask 1047559  }
 0x41e   : > { %v5170_v24 = vsel %vm4988_vm13, %v4966_v48, -inf  ;;  %v5330_v41 = vsel %vm5205_vm2, %v5165_v27, %v5329_v15 }
 0x41f   : > { %5396 = vrot.lane.b32.xlu0 %v5367_v5, %s10188_s23  ;;  %v5171_v33 = vmax.f32 %v5169_v36, %v5170_v24  ;;  %v5331_v18 = vsel %vm5207_vm3, %v5168_v45, %v5330_v41  ;;  %s10199_s23 = smov 96  }
 0x421   : > { %v5332_v54 = vsel %vm13272_vm15, %v5171_v33, %v5331_v18  ;;  %vm6236_vm15 = vcmask 123904  }
 0x422   : > { %v5333_v38 = vsel %vm13273_vm1, %v5174_v31, %v5332_v54  ;;  %v5730_v31 = vld [vmem:[#allocation4 + $0x45] sm:$0xff]  ;;  %vm13277_vm1 = vcmask 1041409  }
 0x423   : > { %5636 = vrot.lane.b32.xlu0 %v5669_v11, %s10193_s9  ;;  %v5334_v25 = vsel %vm13274_vm7, %v5177_v52, %v5333_v38 }
 0x424   : > { %v5335_v14 = vsel %vm13275_vm14, %v5180_v57, %v5334_v25 }
 0x425   : > { %5337 = vst.msk [vmem:[#allocation4 + $0x51] sm:$0xff] %vm4988_vm13, %v5335_v14  ;;  %vm13276_vm13 = vcmask 588800  }
 0x426   : > { %vm13278_vm7 = vmmov %vm13276_vm13 }
 0x427   : > { %vm13279_vm14 = vmmov %vm13278_vm7 }
 0x42c   : > { %v5690_v3 = vpop.permute.xlu0 %5689  ;;  %v5428_v34 = vld [vmem:[#allocation4 + $0x4a] sm:$0xff]  ;;  %v5489_v56 = vld [vmem:[#allocation4 + $0x52] sm:$0xff] }
 0x42d   : > { %v5572_v7 = vpop.permute.xlu1 %5571  ;;  %5717 = vst.msk [vmem:[#allocation5 + $0x18] sm:$0xff] %vm5713_vm5, %v5690_v3  ;;  %5457 = vrot.lane.b32.xlu0 %v5428_v34, %s10190_s26  ;;  %5516 = vrot.lane.b32.xlu1 %v5428_v34, %s10191_s20  ;;  %v5670_v61 = vld [vmem:[#allocation4 + $0x4c] sm:$0xff]  ;;  %v5611_v2 = vld [vmem:[#allocation4 + $0x54] sm:$0xff] }
 0x42e   : > { %v5549_v29 = vld [vmem:[#allocation4 + $0x4b] sm:$0xff]  ;;  %v5550_v46 = vld [vmem:[#allocation4 + $0x53] sm:$0xff] }
 0x42f   : > { %v5731_v57 = vld [vmem:[#allocation4 + $0x4d] sm:$0xff]  ;;  %v5732_v37 = vld [vmem:[#allocation4 + $0x55] sm:$0xff] }
 0x430   : > { %v5511_v55 = vpop.permute.xlu0 %5510  ;;  %v5792_v32 = vld [vmem:[#allocation4 + $0x4e] sm:$0xff]  ;;  %v5793_v39 = vld [vmem:[#allocation4 + $0x56] sm:$0xff] }
 0x431   : > { %5536 = vst.msk [vmem:[#allocation5 + $0x28] sm:$0xff] %vm5530_vm10, %v5511_v55  ;;  %v5812_v63 = vpop.permute.xlu1 %5811  ;;  %5697 = vrot.lane.b32.xlu0 %v5670_v61, %s10194_s18  ;;  %5756 = vrot.lane.b32.xlu1 %v5730_v31, %s10195_s13 }
 0x432   : > { %5597 = vst.msk [vmem:[#allocation5 + $0x28] sm:$0xff] %vm5591_vm11, %v5572_v7 }
 0x434   : > { %v5751_v52 = vpop.permute.xlu0 %5750 }
 0x435   : > { %5778 = vst.msk [vmem:[#allocation5 + $0x18] sm:$0xff] %vm5774_vm4, %v5751_v52  ;;  %v5452_v50 = vpop.permute.xlu1 %5451  ;;  %5518 = vrot.lane.b32.xlu0 %v5489_v56, %s10191_s20  ;;  %5577 = vrot.lane.b32.xlu1 %v5549_v29, %s10192_s1  ;;  %s10203_s20 = smov 126  }
 0x436   : > { %5839 = vst.msk [vmem:[#allocation5 + $0x18] sm:$0xff] %vm5835_vm6, %v5812_v63 }
 0x438   : > { %v5391_v58 = vpop.permute.xlu0 %5390 }
 0x439   : > { %5415 = vst.msk [vmem:[#allocation5 + $0x30] sm:$0xff] %vm5408_vm8, %v5391_v58  ;;  %5758 = vrot.lane.b32.xlu0 %v5731_v57, %s10195_s13  ;;  %5817 = vrot.lane.b32.xlu1 %v5791_v19, %s10196_s16  ;;  %v5692_v49 = vpop.permute.xlu1 %5691 }
 0x43a   : > { %5476 = vst.msk [vmem:[#allocation5 + $0x30] sm:$0xff] %vm5469_vm9, %v5452_v50 }
 0x43c   : > { %v5631_v22 = vpop.permute.xlu0 %5630 }
 0x43d   : > { %5657 = vst.msk [vmem:[#allocation5 + $0x20] sm:$0xff] %vm5652_vm12, %v5631_v22  ;;  %v5849_v28 = vld [vmem:[#allocation5 + $0x18] sm:$0xff]  ;;  %5579 = vrot.lane.b32.xlu0 %v5550_v46, %s10192_s1  ;;  %5638 = vrot.lane.b32.xlu1 %v5670_v61, %s10193_s9 }
 0x43e   : > { %5718 = vst.msk [vmem:[#allocation5 + $0x20] sm:$0xff] %vm5713_vm5, %v5692_v49  ;;  %9503 = vmatmul.mubr.msk.f32.gmra.mrb[12].mxu1 %vm13276_vm13, %v5849_v28  ;;  %vm6518_vm13 = vcmask 125952  }
 0x43f   : > { %6519 = vst.msk [vmem:[#allocation6 + $0x40] sm:$0xf] %vm6518_vm13, %v10179_v1 }
 0x441   : > { %5819 = vrot.lane.b32.xlu0 %v5792_v32, %s10196_s16  ;;  %5640 = vrot.lane.b32.xlu1 %v5611_v2, %s10193_s9  ;;  %s10198_s9 = smov 80  }
 0x445   : > { %5699 = vrot.lane.b32.xlu0 %v5611_v2, %s10194_s18  ;;  %5701 = vrot.lane.b32.xlu1 %v5672_v0, %s10194_s18 }
 0x449   : > { %5760 = vrot.lane.b32.xlu0 %v5732_v37, %s10195_s13  ;;  %5762 = vrot.lane.b32.xlu1 %v5733_v60, %s10195_s13  ;;  %s10197_s13 = smov 112  }
 0x44d   : > { %5821 = vrot.lane.b32.xlu0 %v5793_v39, %s10196_s16  ;;  %5823 = vrot.lane.b32.xlu1 %v5794_v62, %s10196_s16 }
 0x469   : > { %v9501_v4 = vpop.f32.mrb[10].mxu1 }
 0x46a   : > { %v5975_v26 = vadd.f32 %v9501_v4, %v12341_v9  ;;  %v5969_v17 = vpop.f32.mrb[11].mxu1 }
 0x46b   : > { %v5970_v16 = vadd.f32 %v12341_v9, %v5969_v17 }
 0x46c   : > { %v6019_v30 = vmax.f32 %v5975_v26, 0.0 }
 0x46d   : > { %v6018_v42 = vmax.f32 %v5970_v16, 0.0 }
 0x46e   : > { %v6055_v11 = vcombine.high %v6019_v30, %v6019_v30  ;;  %v6062_v35 = vrot.slane %v6019_v30, %v11048_v59 }
 0x46f   : > { %v6038_v6 = vcombine.high %v6018_v42, %v6018_v42  ;;  %v6045_v21 = vrot.slane %v6018_v42, %v11048_v59 }
 0x470   : > { %v6069_v43 = vrot.slane %v6055_v11, %v11048_v59  ;;  %v6070_v10 = vcombine.high %v6062_v35, %v6062_v35 }
 0x471   : > { %v12349_v8 = vrot.slane %v6038_v6, %v11048_v59  ;;  %v6053_v20 = vcombine.high %v6045_v21, %v6045_v21  ;;  %v6237_v53 = vsel %vm6236_vm15, %v6045_v21, -inf  ;;  %v5393_v13 = vpop.permute.xlu0 %5392 }
 0x472   : > { %v5513_v40 = vpop.permute.xlu1 %5512  ;;  %v6071_v12 = vcombine.high %v6069_v43, %v6069_v43  ;;  %v6265_v47 = vsel %vm6236_vm15, %v6070_v10, -inf  ;;  %v6272_v5 = vsel %vm6236_vm15, %v6069_v43, -inf  ;;  %v6238_v48 = vrot.slane %v6237_v53, 4  ;;  %5416 = vst.msk [vmem:[#allocation5 + $0x38] sm:$0xff] %vm5408_vm8, %v5393_v13 }
 0x473   : > { %5537 = vst.msk [vmem:[#allocation5 + $0x30] sm:$0xff] %vm5530_vm10, %v5513_v40  ;;  %v6266_v27 = vrot.slane %v6265_v47, 4  ;;  %v6273_v23 = vrot.slane %v6272_v5, 4  ;;  %v6244_v15 = vsel %vm6236_vm15, %v6053_v20, -inf  ;;  %v6251_v41 = vsel %vm6236_vm15, %v12349_v8, -inf }
 0x474   : > { %v6279_v45 = vsel %vm6236_vm15, %v6071_v12, -inf  ;;  %v6239_v36 = vmax.f32 %v6237_v53, %v6238_v48  ;;  %v6245_v24 = vrot.slane %v6244_v15, 4  ;;  %v6252_v38 = vrot.slane %v6251_v41, 4 }
 0x475   : > { %v6267_v33 = vmax.f32 %v6265_v47, %v6266_v27  ;;  %v6274_v18 = vmax.f32 %v6272_v5, %v6273_v23  ;;  %v6280_v54 = vrot.slane %v6279_v45, 4  ;;  %v5633_v3 = vpop.permute.xlu0 %5632 }
 0x476   : > { %v6240_v25 = vrot.slane %v6239_v36, 2  ;;  %v6246_v14 = vmax.f32 %v6244_v15, %v6245_v24  ;;  %v5753_v7 = vpop.permute.xlu1 %5752  ;;  %v6253_v61 = vmax.f32 %v6251_v41, %v6252_v38  ;;  %5658 = vst.msk [vmem:[#allocation5 + $0x28] sm:$0xff] %vm5652_vm12, %v5633_v3  ;;  %v6564_v3 = vld [vmem:[#allocation6 + $0x1] sm:$0xff] }
 0x477   : > { %v6268_v34 = vrot.slane %v6267_v33, 2  ;;  %v6275_v55 = vrot.slane %v6274_v18, 2  ;;  %v6281_v63 = vmax.f32 %v6279_v45, %v6280_v54  ;;  %5779 = vst.msk [vmem:[#allocation5 + $0x20] sm:$0xff] %vm5774_vm4, %v5753_v7  ;;  %6572 = vrot.lane.b32.xlu1 %v6564_v3, %s10190_s26 }
 0x478   : > { %v6241_v31 = vmax.f32 %v6239_v36, %v6240_v25  ;;  %v6247_v52 = vrot.slane %v6246_v14, 2  ;;  %v6254_v58 = vrot.slane %v6253_v61, 2 }
 0x479   : > { %v6269_v50 = vmax.f32 %v6267_v33, %v6268_v34  ;;  %v6276_v56 = vmax.f32 %v6274_v18, %v6275_v55  ;;  %v6282_v29 = vrot.slane %v6281_v63, 2  ;;  %v5454_v22 = vpop.permute.xlu0 %5453  ;;  %v6565_v55 = vld [vmem:[#allocation6 + $0x9] sm:$0xff] }
 0x47a   : > { %v6242_v57 = vrot.slane %v6241_v31, 1  ;;  %v6248_v19 = vmax.f32 %v6246_v14, %v6247_v52  ;;  %v5574_v49 = vpop.permute.xlu1 %5573  ;;  %v6255_v2 = vmax.f32 %v6253_v61, %v6254_v58  ;;  %5477 = vst.msk [vmem:[#allocation5 + $0x38] sm:$0xff] %vm5469_vm9, %v5454_v22  ;;  %6574 = vrot.lane.b32.xlu0 %v6565_v55, %s10190_s26  ;;  %v6664_v61 = vld [vmem:[#allocation6 + $0x8] sm:$0xff] }
 0x47b   : > { %v6270_v28 = vrot.slane %v6269_v50, 1  ;;  %v6277_v46 = vrot.slane %v6276_v56, 1  ;;  %v6283_v32 = vmax.f32 %v6281_v63, %v6282_v29  ;;  %5598 = vst.msk [vmem:[#allocation5 + $0x30] sm:$0xff] %vm5591_vm11, %v5574_v49  ;;  %v6589_v63 = vld [vmem:[#allocation6 + $0x2] sm:$0xff] }
 0x47c   : > { %v6243_v0 = vmax.f32 %v6241_v31, %v6242_v57  ;;  %v6249_v60 = vrot.slane %v6248_v19, 1  ;;  %v6256_v4 = vrot.slane %v6255_v2, 1  ;;  %v6590_v31 = vld [vmem:[#allocation6 + $0xa] sm:$0xff]  ;;  %6561 = vst.msk [vmem:[#allocation7 + $0x20] sm:$0xff] %vm6461_vm0, %v6664_v61  ;;  %6597 = vrot.lane.b32.xlu1 %v6589_v63, %s10192_s1 }
 0x47d   : > { %v6271_v37 = vmax.f32 %v6269_v50, %v6270_v28  ;;  %v6278_v62 = vmax.f32 %v6276_v56, %v6277_v46  ;;  %v6284_v39 = vrot.slane %v6283_v32, 1  ;;  %v5694_v16 = vpop.permute.xlu0 %5693  ;;  %v6614_v56 = vld [vmem:[#allocation6 + $0x3] sm:$0xff] }
 0x47e   : > { %v6250_v26 = vmax.f32 %v6248_v19, %v6249_v60  ;;  %v6462_v17 = vsel %vm6461_vm0, %v6243_v0, -inf  ;;  %v5814_v30 = vpop.permute.xlu1 %5813  ;;  %v6257_v6 = vmax.f32 %v6255_v2, %v6256_v4  ;;  %5719 = vst.msk [vmem:[#allocation5 + $0x28] sm:$0xff] %vm5713_vm5, %v5694_v16  ;;  %6599 = vrot.lane.b32.xlu0 %v6590_v31, %s10192_s1  ;;  %v6639_v57 = vld [vmem:[#allocation6 + $0x4] sm:$0xff]  ;;  %v6054_v4 = vcombine.high %v12349_v8, %v12349_v8 }
 0x47f   : > { %v6285_v42 = vmax.f32 %v6283_v32, %v6284_v39  ;;  %v6463_v11 = vsel %vm6461_vm0, %v6271_v37, -inf  ;;  %v6466_v35 = vsel %vm6461_vm0, %v6278_v62, -inf  ;;  %5840 = vst.msk [vmem:[#allocation5 + $0x20] sm:$0xff] %vm5835_vm6, %v5814_v30 }
 0x480   : > { %v6464_v21 = vmax.f32 %v6462_v17, %v6463_v11  ;;  %v6465_v43 = vsel %vm6461_vm0, %v6250_v26, -inf  ;;  %v6468_v20 = vsel %vm6461_vm0, %v6257_v6, -inf  ;;  %6622 = vrot.lane.b32.xlu1 %v6614_v56, %s10194_s18  ;;  %v6258_v26 = vsel %vm6236_vm15, %v6054_v4, -inf }
 0x481   : > { %v6467_v10 = vmax.f32 %v6465_v43, %v6466_v35  ;;  %v6469_v53 = vsel %vm6461_vm0, %v6285_v42, -inf  ;;  %v5515_v40 = vpop.permute.xlu0 %5514  ;;  %v6259_v17 = vrot.slane %v6258_v26, 4 }
 0x482   : > { %v6470_v13 = vmax.f32 %v6468_v20, %v6469_v53  ;;  %v5576_v12 = vpop.permute.xlu1 %5575  ;;  %5538 = vst.msk [vmem:[#allocation5 + $0x38] sm:$0xff] %vm5530_vm10, %v5515_v40  ;;  %6722 = vrot.lane.b32.xlu0 %v6590_v31, %s10197_s13 }
 0x483   : > { %v6524_v47 = vsel %vm13277_vm1, %v6467_v10, %v6464_v21  ;;  %5599 = vst.msk [vmem:[#allocation5 + $0x38] sm:$0xff] %vm5591_vm11, %v5576_v12  ;;  %v6260_v30 = vmax.f32 %v6258_v26, %v6259_v17  ;;  %vm6684_vm1 = vcmask 786048  }
 0x484   : > { %v12375_v5 = vsel %vm5205_vm2, %v6470_v13, %v6524_v47  ;;  %6647 = vrot.lane.b32.xlu1 %v6639_v57, %s10196_s16 }
 0x485   : > { %v5755_v48 = vpop.permute.xlu0 %5754  ;;  %v6261_v43 = vrot.slane %v6260_v30, 2 }
 0x486   : > { %v5816_v27 = vpop.permute.xlu1 %5815  ;;  %v5850_v23 = vld [vmem:[#allocation5 + $0x20] sm:$0xff]  ;;  %5780 = vst.msk [vmem:[#allocation5 + $0x28] sm:$0xff] %vm5774_vm4, %v5755_v48 }
 0x487   : > { %9505 = vmatprep.mubr.msk.f32.mxu1 %vm13278_vm7, %v5850_v23  ;;  %5841 = vst.msk [vmem:[#allocation5 + $0x28] sm:$0xff] %vm5835_vm6, %v5816_v27  ;;  %v6262_v12 = vmax.f32 %v6260_v30, %v6261_v43 }
 0x488   : > { %6672 = vrot.lane.b32.xlu1 %v6664_v61, %s10198_s9 }
 0x489   : > { %v5395_v15 = vpop.permute.xlu0 %5394 }
 0x48a   : > { %v5456_v45 = vpop.permute.xlu1 %5455  ;;  %5417 = vst.msk [vmem:[#allocation5 + $0x40] sm:$0xff] %vm5408_vm8, %v5395_v15 }
 0x48b   : > { %5478 = vst.msk [vmem:[#allocation5 + $0x40] sm:$0xff] %vm5469_vm9, %v5456_v45 }
 0x48c   : > { %6697 = vrot.lane.b32.xlu1 %v6565_v55, %s10199_s23 }
 0x48d   : > { %v5635_v36 = vpop.permute.xlu0 %5634 }
 0x48e   : > { %v5696_v24 = vpop.permute.xlu1 %5695  ;;  %5659 = vst.msk [vmem:[#allocation5 + $0x30] sm:$0xff] %vm5652_vm12, %v5635_v36  ;;  %v5851_v41 = vld [vmem:[#allocation5 + $0x28] sm:$0xff] }
 0x48f   : > { %5720 = vst.msk [vmem:[#allocation5 + $0x30] sm:$0xff] %vm5713_vm5, %v5696_v24  ;;  %9506 = vmatmul.mubr.msk.f32.gmra.mrb[14].mxu1 %vm13279_vm14, %v5851_v41  ;;  %v6263_v24 = vrot.slane %v6262_v12, 1  ;;  %vm6734_vm14 = vcmask 1048448  }
 0x491   : > { %v5397_v33 = vpop.permute.xlu0 %5396 }
 0x492   : > { %5418 = vst.msk [vmem:[#allocation5 + $0x48] sm:$0xff] %vm5408_vm8, %v5397_v33  ;;  %vm13280_vm8 = vmmov %vm13278_vm7 }
 0x495   : > { %v5637_v18 = vpop.permute.xlu0 %5636 }
 0x496   : > { %5660 = vst.msk [vmem:[#allocation5 + $0x38] sm:$0xff] %vm5652_vm12, %v5637_v18 }
 0x49f   : > { %v5458_v54 = vpop.permute.xlu0 %5457  ;;  %v5517_v38 = vpop.permute.xlu1 %5516 }
 0x4a0   : > { %5479 = vst.msk [vmem:[#allocation5 + $0x48] sm:$0xff] %vm5469_vm9, %v5458_v54  ;;  %vm13281_vm9 = vmmov %vm13278_vm7 }
 0x4a1   : > { %5539 = vst.msk [vmem:[#allocation5 + $0x40] sm:$0xff] %vm5530_vm10, %v5517_v38 }
 0x4a3   : > { %v5698_v25 = vpop.permute.xlu0 %5697  ;;  %v5757_v14 = vpop.permute.xlu1 %5756 }
 0x4a4   : > { %5721 = vst.msk [vmem:[#allocation5 + $0x38] sm:$0xff] %vm5713_vm5, %v5698_v25 }
 0x4a5   : > { %5781 = vst.msk [vmem:[#allocation5 + $0x30] sm:$0xff] %vm5774_vm4, %v5757_v14  ;;  %v6264_v14 = vmax.f32 %v6262_v12, %v6263_v24 }
 0x4a7   : > { %v5519_v7 = vpop.permute.xlu0 %5518  ;;  %v5578_v34 = vpop.permute.xlu1 %5577 }
 0x4a8   : > { %5540 = vst.msk [vmem:[#allocation5 + $0x48] sm:$0xff] %vm5530_vm10, %v5519_v7  ;;  %vm13282_vm10 = vmmov %vm13278_vm7 }
 0x4a9   : > { %5600 = vst.msk [vmem:[#allocation5 + $0x40] sm:$0xff] %vm5591_vm11, %v5578_v34 }
 0x4ab   : > { %v5759_v52 = vpop.permute.xlu0 %5758  ;;  %v5818_v50 = vpop.permute.xlu1 %5817 }
 0x4ac   : > { %5782 = vst.msk [vmem:[#allocation5 + $0x38] sm:$0xff] %vm5774_vm4, %v5759_v52  ;;  %v6471_v52 = vsel %vm6461_vm0, %v6264_v14, -inf }
 0x4ad   : > { %5842 = vst.msk [vmem:[#allocation5 + $0x30] sm:$0xff] %vm5835_vm6, %v5818_v50 }
 0x4af   : > { %v5580_v29 = vpop.permute.xlu0 %5579  ;;  %v5639_v58 = vpop.permute.xlu1 %5638 }
 0x4b0   : > { %5601 = vst.msk [vmem:[#allocation5 + $0x48] sm:$0xff] %vm5591_vm11, %v5580_v29  ;;  %vm13283_vm11 = vmmov %vm13278_vm7  ;;  %vm6709_vm7 = vcmask 917248  }
 0x4b1   : > { %5661 = vst.msk [vmem:[#allocation5 + $0x40] sm:$0xff] %vm5652_vm12, %v5639_v58 }
 0x4b3   : > { %v5820_v19 = vpop.permute.xlu0 %5819  ;;  %v5641_v22 = vpop.permute.xlu1 %5640 }
 0x4b4   : > { %v5852_v49 = vld [vmem:[#allocation5 + $0x30] sm:$0xff]  ;;  %5843 = vst.msk [vmem:[#allocation5 + $0x38] sm:$0xff] %vm5835_vm6, %v5820_v19 }
 0x4b5   : > { %5662 = vst.msk [vmem:[#allocation5 + $0x48] sm:$0xff] %vm5652_vm12, %v5641_v22  ;;  %9508 = vmatprep.mubr.msk.f32.mxu1 %vm13280_vm8, %v5852_v49  ;;  %vm6584_vm12 = vcmask 261248   ;;  %vm13284_vm8 = vcmask 1041409  }
 0x4b7   : > { %v5700_v28 = vpop.permute.xlu0 %5699  ;;  %v5702_v46 = vpop.permute.xlu1 %5701 }
 0x4b8   : > { %5722 = vst.msk [vmem:[#allocation5 + $0x40] sm:$0xff] %vm5713_vm5, %v5700_v28  ;;  %5723 = vst.msk [vmem:[#allocation5 + $0x48] sm:$0xff] %vm5713_vm5, %v5702_v46  ;;  %vm6609_vm5 = vcmask 392448  }
 0x4bb   : > { %v5761_v32 = vpop.permute.xlu0 %5760  ;;  %v5763_v2 = vpop.permute.xlu1 %5762  ;;  %v5853_v0 = vld [vmem:[#allocation5 + $0x38] sm:$0xff] }
 0x4bc   : > { %5783 = vst.msk [vmem:[#allocation5 + $0x40] sm:$0xff] %vm5774_vm4, %v5761_v32  ;;  %5784 = vst.msk [vmem:[#allocation5 + $0x48] sm:$0xff] %vm5774_vm4, %v5763_v2  ;;  %9509 = vmatmul.mubr.msk.f32.gmra.mrb[16].mxu1 %vm13281_vm9, %v5853_v0  ;;  %v6556_v0 = vld [vmem:[#allocation6] sm:$0xff]  ;;  %vm6634_vm4 = vcmask 523648  }
 0x4bd   : > { %6560 = vst.msk [vmem:[#allocation7] sm:$0xff] %vm6461_vm0, %v6556_v0  ;;  %vm13285_vm9 = vmmov %vm13284_vm8 }
 0x4bf   : > { %v5822_v60 = vpop.permute.xlu0 %5821  ;;  %v5824_v37 = vpop.permute.xlu1 %5823 }
 0x4c0   : > { %5844 = vst.msk [vmem:[#allocation5 + $0x40] sm:$0xff] %vm5835_vm6, %v5822_v60  ;;  %5845 = vst.msk [vmem:[#allocation5 + $0x48] sm:$0xff] %vm5835_vm6, %v5824_v37  ;;  %vm6659_vm6 = vcmask 654848  }
 0x4c7   : > { %v5854_v62 = vld [vmem:[#allocation5 + $0x40] sm:$0xff]  ;;  %v5855_v39 = vld [vmem:[#allocation5 + $0x48] sm:$0xff] }
 0x4c8   : > { %9511 = vmatprep.mubr.msk.f32.mxu1 %vm13282_vm10, %v5854_v62  ;;  %vm7865_vm10 = vcmask 16384  }
 0x4c9   : > { %9512 = vmatmul.mubr.msk.f32.gmra.mrb[18].mxu1 %vm13283_vm11, %v5855_v39  ;;  %vm7960_vm11 = vcmask 1042432  }
 0x4e9   : > { %v6573_v22 = vpop.permute.xlu1 %6572 }
 0x4ea   : > { %6585 = vst.msk [vmem:[#allocation7] sm:$0xff] %vm6584_vm12, %v6573_v22 }
 0x4ee   : > { %v6598_v28 = vpop.permute.xlu1 %6597 }
 0x4ef   : > { %6610 = vst.msk [vmem:[#allocation7] sm:$0xff] %vm6609_vm5, %v6598_v28  ;;  %v7131_v28 = vld [vmem:[%s10254_s8 + $0x80] sm:$0xff] }
 0x4f2   : > { %v6623_v60 = vpop.permute.xlu1 %6622 }
 0x4f3   : > { %6635 = vst.msk [vmem:[#allocation7] sm:$0xff] %vm6634_vm4, %v6623_v60 }
 0x4f6   : > { %v6648_v62 = vpop.permute.xlu1 %6647 }
 0x4f7   : > { %6660 = vst.msk [vmem:[#allocation7] sm:$0xff] %vm6659_vm6, %v6648_v62 }
 0x4fa   : > { %v6673_v26 = vpop.permute.xlu1 %6672 }
 0x4fb   : > { %6685 = vst.msk [vmem:[#allocation7] sm:$0xff] %vm6684_vm1, %v6673_v26 }
 0x4fe   : > { %v6698_v17 = vpop.permute.xlu1 %6697 }
 0x4ff   : > { %6710 = vst.msk [vmem:[#allocation7] sm:$0xff] %vm6709_vm7, %v6698_v17 }
 0x511   : > { %v9504_v16 = vpop.f32.mrb[12].mxu1 }
 0x512   : > { %v5985_v42 = vadd.f32 %v9504_v16, %v12341_v9  ;;  %v5979_v11 = vpop.f32.mrb[13].mxu1 }
 0x513   : > { %v5980_v35 = vadd.f32 %v12341_v9, %v5979_v11 }
 0x514   : > { %v12427_v6 = vmax.f32 %v5985_v42, 0.0 }
 0x515   : > { %v6020_v21 = vmax.f32 %v5980_v35, 0.0 }
 0x516   : > { %v6088_v10 = vcombine.high %v12427_v6, %v12427_v6  ;;  %v6095_v30 = vrot.slane %v12427_v6, %v11048_v59 }
 0x517   : > { %v6072_v20 = vcombine.high %v6020_v21, %v6020_v21  ;;  %v6079_v8 = vrot.slane %v6020_v21, %v11048_v59 }
 0x518   : > { %v6102_v53 = vrot.slane %v6088_v10, %v11048_v59  ;;  %v6103_v11 = vcombine.high %v6095_v30, %v6095_v30  ;;  %v6307_v21 = vsel %vm6236_vm15, %v6095_v30, -inf }
 0x519   : > { %v12434_v13 = vrot.slane %v6072_v20, %v11048_v59  ;;  %v6286_v40 = vsel %vm6236_vm15, %v6079_v8, -inf  ;;  %v6308_v20 = vrot.slane %v6307_v21, 4 }
 0x51a   : > { %v6104_v47 = vcombine.high %v6102_v53, %v6102_v53  ;;  %v6287_v48 = vrot.slane %v6286_v40, 4  ;;  %v6314_v43 = vsel %vm6236_vm15, %v6103_v11, -inf  ;;  %v7133_v11 = vld [vmem:[%s10254_s8 + $0x90] sm:$0xff] }
 0x51b   : > { %v6293_v27 = vsel %vm6236_vm15, %v12434_v13, -inf  ;;  %v6087_v42 = vcombine.high %v12434_v13, %v12434_v13  ;;  %v6315_v8 = vrot.slane %v6314_v43, 4 }
 0x51c   : > { %v6321_v23 = vsel %vm6236_vm15, %v6104_v47, -inf  ;;  %v6288_v15 = vmax.f32 %v6286_v40, %v6287_v48  ;;  %v6294_v45 = vrot.slane %v6293_v27, 4  ;;  %v6309_v47 = vmax.f32 %v6307_v21, %v6308_v20  ;;  %v7117_v21 = vld [vmem:[%s10254_s8 + $0x10] sm:$0xff] }
 0x51d   : > { %v6322_v36 = vrot.slane %v6321_v23, 4  ;;  %v6300_v35 = vsel %vm6236_vm15, %v6087_v42, -inf  ;;  %v6316_v6 = vmax.f32 %v6314_v43, %v6315_v8 }
 0x51e   : > { %v6289_v41 = vrot.slane %v6288_v15, 2  ;;  %v6295_v33 = vmax.f32 %v6293_v27, %v6294_v45  ;;  %v6301_v10 = vrot.slane %v6300_v35, 4  ;;  %v6310_v13 = vrot.slane %v6309_v47, 2 }
 0x51f   : > { %v6323_v18 = vmax.f32 %v6321_v23, %v6322_v36  ;;  %v6317_v36 = vrot.slane %v6316_v6, 2 }
 0x520   : > { %v6290_v54 = vmax.f32 %v6288_v15, %v6289_v41  ;;  %v6296_v38 = vrot.slane %v6295_v33, 2  ;;  %v6302_v53 = vmax.f32 %v6300_v35, %v6301_v10  ;;  %v7134_v35 = vld [vmem:[%s10254_s8 + $0x98] sm:$0xff] }
 0x521   : > { %v6324_v25 = vrot.slane %v6323_v18, 2  ;;  %v9610_v8 = vpack.c.bf16 %v7134_v35, %v7133_v11 }
 0x522   : > { %v6291_v3 = vrot.slane %v6290_v54, 1  ;;  %v6297_v7 = vmax.f32 %v6295_v33, %v6296_v38  ;;  %v6303_v27 = vrot.slane %v6302_v53, 2  ;;  %v6311_v38 = vmax.f32 %v6309_v47, %v6310_v13 }
 0x523   : > { %v6325_v34 = vmax.f32 %v6323_v18, %v6324_v25 }
 0x524   : > { %v6292_v55 = vmax.f32 %v6290_v54, %v6291_v3  ;;  %v6298_v63 = vrot.slane %v6297_v7, 1  ;;  %v6304_v24 = vmax.f32 %v6302_v53, %v6303_v27  ;;  %v7118_v53 = vld [vmem:[%s10254_s8 + $0x18] sm:$0xff] }
 0x525   : > { %v6326_v61 = vrot.slane %v6325_v34, 1  ;;  %v9612_v27 = vpack.c.bf16 %v7118_v53, %v7117_v21  ;;  %v7143_v21 = vld [vmem:[%s10254_s8 + $0xe0] sm:$0xff] }
 0x526   : > { %v6299_v31 = vmax.f32 %v6297_v7, %v6298_v63  ;;  %v6472_v50 = vsel %vm6461_vm0, %v6292_v55, -inf  ;;  %v6305_v55 = vrot.slane %v6304_v24, 1 }
 0x527   : > { %v6327_v56 = vmax.f32 %v6325_v34, %v6326_v61  ;;  %v6473_v29 = vmax.f32 %v6471_v52, %v6472_v50  ;;  %v6318_v34 = vmax.f32 %v6316_v6, %v6317_v36  ;;  %v6312_v52 = vrot.slane %v6311_v38, 1  ;;  %v7119_v36 = vld [vmem:[%s10254_s8 + $0x20] sm:$0xff] }
 0x528   : > { %v12443_v58 = vsel %vm6461_vm0, %v6299_v31, -inf  ;;  %v6306_v22 = vmax.f32 %v6304_v24, %v6305_v55  ;;  %v7122_v55 = vld [vmem:[%s10254_s8 + $0x38] sm:$0xff] }
 0x529   : > { %v12446_v57 = vsel %vm6461_vm0, %v6327_v56, -inf  ;;  %v6526_v19 = vsel %vm5207_vm3, %v6473_v29, %v12375_v5  ;;  %v6575_v5 = vpop.permute.xlu0 %6574  ;;  %v6313_v62 = vmax.f32 %v6311_v38, %v6312_v52  ;;  %v7139_v52 = vld [vmem:[%s10254_s8 + $0xc0] sm:$0xff] }
 0x52a   : > { %v6476_v49 = vmax.f32 %v12443_v58, %v12446_v57  ;;  %6528 = vst.msk [vmem:[#allocation6 + $0x12] sm:$0xf] %vm6518_vm13, %v6526_v19  ;;  %v6319_v19 = vrot.slane %v6318_v34, 1  ;;  %v6477_v42 = vsel %vm6461_vm0, %v6306_v22, -inf }
 0x52b   : > { %6586 = vst.msk [vmem:[#allocation7 + $0x20] sm:$0xff] %vm6584_vm12, %v6575_v5 }
 0x52c   : > { %v6320_v30 = vmax.f32 %v6318_v34, %v6319_v19  ;;  %v7124_v19 = vld [vmem:[%s10254_s8 + $0x48] sm:$0xff] }
 0x52d   : > { %v6600_v4 = vpop.permute.xlu0 %6599 }
 0x52e   : > { %6611 = vst.msk [vmem:[#allocation7 + $0x20] sm:$0xff] %vm6609_vm5, %v6600_v4  ;;  %v6483_v24 = vsel %vm6461_vm0, %v6320_v30, -inf }
 0x531   : > { %v6747_v46 = vld [vmem:[#allocation6 + $0xc] sm:$0xff]  ;;  %v6723_v16 = vpop.permute.xlu0 %6722 }
 0x532   : > { %v6615_v32 = vld [vmem:[#allocation6 + $0xb] sm:$0xff]  ;;  %6755 = vrot.lane.b32.xlu0 %v6747_v46, %s10190_s26  ;;  %6735 = vst.msk [vmem:[#allocation7] sm:$0xff] %vm6734_vm14, %v6723_v16 }
 0x533   : > { %v6771_v2 = vld [vmem:[#allocation6 + $0x10] sm:$0xff]  ;;  %6624 = vrot.lane.b32.xlu1 %v6615_v32, %s10194_s18  ;;  %6743 = vst.msk [vmem:[#allocation7 + $0x8] sm:$0xff] %vm6461_vm0, %v6615_v32  ;;  %v7115_v32 = vld [vmem:[%s10254_s8] sm:$0xff] }
 0x534   : > { %6562 = vst.msk [vmem:[#allocation7 + $0x40] sm:$0xff] %vm6461_vm0, %v6771_v2  ;;  %v6795_v37 = vld [vmem:[#allocation6 + $0x11] sm:$0xff] }
 0x535   : > { %v6819_v39 = vld [vmem:[#allocation6 + $0x12] sm:$0xff] }
 0x536   : > { %6779 = vrot.lane.b32.xlu0 %v6771_v2, %s10192_s1 }
 0x537   : > { %6649 = vrot.lane.b32.xlu1 %v6747_v46, %s10196_s16  ;;  %v7132_v46 = vld [vmem:[%s10254_s8 + $0x88] sm:$0xff] }
 0x538   : > { %v9606_v60 = vpack.c.bf16 %v7132_v46, %v7131_v28 }
 0x53a   : > { %6803 = vrot.lane.b32.xlu0 %v6795_v37, %s10194_s18  ;;  %9607 = vmatprep.subr.bf16.mxu1 %v9606_v60 }
 0x53b   : > { %6699 = vrot.lane.b32.xlu1 %v6795_v37, %s10199_s23 }
 0x53e   : > { %6827 = vrot.lane.b32.xlu0 %v6819_v39, %s10196_s16 }
 0x53f   : > { %6724 = vrot.lane.b32.xlu1 %v6819_v39, %s10197_s13 }
 0x542   : > { %6674 = vrot.lane.b32.xlu0 %v6771_v2, %s10198_s9 }
 0x543   : > { %6576 = vrot.lane.b32.xlu1 %v6795_v37, %s10190_s26  ;;  %v7116_v37 = vld [vmem:[%s10254_s8 + $0x8] sm:$0xff] }
 0x544   : > { %v9608_v16 = vpack.c.bf16 %v7116_v37, %v7115_v32 }
 0x546   : > { %9609 = vmatpush3.bf16.msra.mxu1 %v9608_v16 }
 0x547   : > { %6601 = vrot.lane.b32.xlu1 %v6819_v39, %s10192_s1  ;;  %9611 = vmatprep.subr.bf16.mxu1 %v9610_v8 }
 0x54a   : > { %9613 = vmatpush3.bf16.msra.mxu1 %v9612_v27  ;;  %v7146_v27 = vld [vmem:[%s10254_s8 + $0xf8] sm:$0xff] }
 0x562   : > { %v9507_v40 = vpop.f32.mrb[14].mxu1 }
 0x563   : > { %v5989_v12 = vpop.f32.mrb[15].mxu1  ;;  %v5995_v39 = vadd.f32 %v9507_v40, %v12341_v9  ;;  %v6480_v40 = vsel %vm6461_vm0, %v6313_v62, -inf  ;;  %v7141_v62 = vld [vmem:[%s10254_s8 + $0xd0] sm:$0xff] }
 0x564   : > { %v5990_v48 = vadd.f32 %v12341_v9, %v5989_v12 }
 0x565   : > { %v6023_v47 = vmax.f32 %v5995_v39, 0.0  ;;  %v7142_v39 = vld [vmem:[%s10254_s8 + $0xd8] sm:$0xff] }
 0x566   : > { %v6022_v23 = vmax.f32 %v5990_v48, 0.0  ;;  %v9626_v30 = vpack.c.bf16 %v7142_v39, %v7141_v62 }
 0x567   : > { %v6121_v57 = vcombine.high %v6023_v47, %v6023_v47 }
 0x568   : > { %v6105_v15 = vcombine.high %v6022_v23, %v6022_v23  ;;  %v6112_v45 = vrot.slane %v6022_v23, %v11048_v59 }
 0x56a   : > { %v6119_v41 = vrot.slane %v6105_v15, %v11048_v59  ;;  %v6120_v33 = vcombine.high %v6112_v45, %v6112_v45  ;;  %v6328_v18 = vsel %vm6236_vm15, %v6112_v45, -inf  ;;  %v7135_v15 = vld [vmem:[%s10254_s8 + $0xa0] sm:$0xff]  ;;  %v7136_v45 = vld [vmem:[%s10254_s8 + $0xa8] sm:$0xff] }
 0x56b   : > { %v6329_v54 = vrot.slane %v6328_v18, 4 }
 0x56c   : > { %v6335_v25 = vsel %vm6236_vm15, %v6120_v33, -inf  ;;  %v6342_v7 = vsel %vm6236_vm15, %v6119_v41, -inf  ;;  %v9614_v33 = vpack.c.bf16 %v7136_v45, %v7135_v15 }
 0x56d   : > { %v6330_v14 = vmax.f32 %v6328_v18, %v6329_v54  ;;  %v6336_v3 = vrot.slane %v6335_v25, 4  ;;  %v6343_v31 = vrot.slane %v6342_v7, 4  ;;  %v7120_v18 = vld [vmem:[%s10254_s8 + $0x28] sm:$0xff] }
 0x56e   : > { %v9616_v58 = vpack.c.bf16 %v7120_v18, %v7119_v36  ;;  %9615 = vmatprep.subr.bf16.mxu1 %v9614_v33  ;;  %v7130_v36 = vld [vmem:[%s10254_s8 + $0x78] sm:$0xff] }
 0x56f   : > { %v6331_v63 = vrot.slane %v6330_v14, 2  ;;  %v6337_v61 = vmax.f32 %v6335_v25, %v6336_v3  ;;  %v6344_v29 = vmax.f32 %v6342_v7, %v6343_v31  ;;  %v7138_v3 = vld [vmem:[%s10254_s8 + $0xb8] sm:$0xff]  ;;  %v7121_v7 = vld [vmem:[%s10254_s8 + $0x30] sm:$0xff] }
 0x570   : > { %9617 = vmatpush3.bf16.msra.mxu1 %v9616_v58 }
 0x571   : > { %v6332_v50 = vmax.f32 %v6330_v14, %v6331_v63  ;;  %v6338_v56 = vrot.slane %v6337_v61, 2  ;;  %v6345_v5 = vrot.slane %v6344_v29, 2  ;;  %v7137_v14 = vld [vmem:[%s10254_s8 + $0xb0] sm:$0xff]  ;;  %v9620_v63 = vpack.c.bf16 %v7122_v55, %v7121_v7 }
 0x572   : > { %v9618_v34 = vpack.c.bf16 %v7138_v3, %v7137_v14 }
 0x573   : > { %v6333_v2 = vrot.slane %v6332_v50, 1  ;;  %v6339_v0 = vmax.f32 %v6337_v61, %v6338_v56  ;;  %v6346_v17 = vmax.f32 %v6344_v29, %v6345_v5  ;;  %v6135_v61 = vrot.slane %v6121_v57, %v11048_v59  ;;  %v7123_v56 = vld [vmem:[%s10254_s8 + $0x40] sm:$0xff] }
 0x574   : > { %9619 = vmatprep.subr.bf16.mxu1 %v9618_v34  ;;  %v9624_v28 = vpack.c.bf16 %v7124_v19, %v7123_v56 }
 0x575   : > { %v6334_v4 = vmax.f32 %v6332_v50, %v6333_v2  ;;  %v6340_v26 = vrot.slane %v6339_v0, 1  ;;  %v6347_v10 = vrot.slane %v6346_v17, 1  ;;  %v7140_v50 = vld [vmem:[%s10254_s8 + $0xc8] sm:$0xff]  ;;  %9621 = vmatpush3.bf16.msra.mxu1 %v9620_v63  ;;  %v6137_v46 = vcombine.high %v6135_v61, %v6135_v61 }
 0x576   : > { %v9622_v29 = vpack.c.bf16 %v7140_v50, %v7139_v52  ;;  %v6363_v37 = vsel %vm6236_vm15, %v6135_v61, -inf }
 0x577   : > { %v6341_v43 = vmax.f32 %v6339_v0, %v6340_v26  ;;  %v6478_v20 = vsel %vm6461_vm0, %v6334_v4, -inf  ;;  %v6348_v48 = vmax.f32 %v6346_v17, %v6347_v10  ;;  %v7125_v4 = vld [vmem:[%s10254_s8 + $0x50] sm:$0xff]  ;;  %v6370_v17 = vsel %vm6236_vm15, %v6137_v46, -inf  ;;  %v7127_v10 = vld [vmem:[%s10254_s8 + $0x60] sm:$0xff] }
 0x578   : > { %v6479_v12 = vmax.f32 %v6477_v42, %v6478_v20  ;;  %9623 = vmatprep.subr.bf16.mxu1 %v9622_v29  ;;  %v7126_v42 = vld [vmem:[%s10254_s8 + $0x58] sm:$0xff]  ;;  %v6364_v8 = vrot.slane %v6363_v37, 4 }
 0x579   : > { %v6481_v6 = vsel %vm6461_vm0, %v6341_v43, -inf  ;;  %v6484_v41 = vsel %vm6461_vm0, %v6348_v48, -inf  ;;  %9625 = vmatpush3.bf16.msra.mxu1 %v9624_v28  ;;  %v9628_v35 = vpack.c.bf16 %v7126_v42, %v7125_v4  ;;  %v7144_v43 = vld [vmem:[%s10254_s8 + $0xe8] sm:$0xff] }
 0x57a   : > { %v6482_v23 = vmax.f32 %v6480_v40, %v6481_v6  ;;  %v6533_v13 = vsel %vm13284_vm8, %v6479_v12, %v6476_v49  ;;  %v6485_v54 = vmax.f32 %v6483_v24, %v6484_v41  ;;  %v6128_v49 = vrot.slane %v6023_v47, %v11048_v59  ;;  %v7128_v40 = vld [vmem:[%s10254_s8 + $0x68] sm:$0xff]  ;;  %9627 = vmatprep.subr.bf16.mxu1 %v9626_v30  ;;  %v7145_v6 = vld [vmem:[%s10254_s8 + $0xf0] sm:$0xff] }
 0x57b   : > { %v9630_v53 = vpack.c.bf16 %v7144_v43, %v7143_v21  ;;  %v6371_v12 = vrot.slane %v6370_v17, 4  ;;  %v9632_v48 = vpack.c.bf16 %v7128_v40, %v7127_v10  ;;  %v6365_v15 = vmax.f32 %v6363_v37, %v6364_v8 }
 0x57c   : > { %v6534_v38 = vsel %vm5205_vm2, %v6482_v23, %v6533_v13  ;;  %v6136_v31 = vcombine.high %v6128_v49, %v6128_v49  ;;  %v6349_v22 = vsel %vm6236_vm15, %v6128_v49, -inf  ;;  %v7129_v23 = vld [vmem:[%s10254_s8 + $0x70] sm:$0xff]  ;;  %v9634_v45 = vpack.c.bf16 %v7146_v27, %v7145_v6 }
 0x57d   : > { %v6535_v25 = vsel %vm5207_vm3, %v6485_v54, %v6534_v38  ;;  %v6350_v5 = vrot.slane %v6349_v22, 4  ;;  %9629 = vmatpush3.bf16.msra.mxu1 %v9628_v35  ;;  %v6372_v24 = vmax.f32 %v6370_v17, %v6371_v12  ;;  %v9636_v33 = vpack.c.bf16 %v7130_v36, %v7129_v23 }
 0x57e   : > { %6537 = vst.msk [vmem:[#allocation6 + $0x1a] sm:$0xf] %vm6518_vm13, %v6535_v25  ;;  %v6356_v32 = vsel %vm6236_vm15, %v6136_v31, -inf  ;;  %9631 = vmatprep.subr.bf16.mxu1 %v9630_v53  ;;  %v6366_v58 = vrot.slane %v6365_v15, 2 }
 0x57f   : > { %v6357_v26 = vrot.slane %v6356_v32, 4  ;;  %v6351_v20 = vmax.f32 %v6349_v22, %v6350_v5  ;;  %v6373_v25 = vrot.slane %v6372_v24, 2  ;;  %v12581_v5 = vld [vmem:[#allocation6 + $0x31] sm:$0xff] }
 0x580   : > { %v6367_v63 = vmax.f32 %v6365_v15, %v6366_v58  ;;  %6922 = vst.msk [vmem:[#allocation7 + $0x70] sm:$0xff] %vm6461_vm0, %v12581_v5 }
 0x581   : > { %v6358_v47 = vmax.f32 %v6356_v32, %v6357_v26  ;;  %v6352_v13 = vrot.slane %v6351_v20, 2  ;;  %9633 = vmatpush3.bf16.msra.mxu1 %v9632_v48  ;;  %v6374_v52 = vmax.f32 %v6372_v24, %v6373_v25 }
 0x582   : > { %9635 = vmatprep.subr.bf16.mxu1 %v9634_v45  ;;  %v6368_v62 = vrot.slane %v6367_v63, 1 }
 0x583   : > { %v6359_v41 = vrot.slane %v6358_v47, 2  ;;  %v6353_v38 = vmax.f32 %v6351_v20, %v6352_v13  ;;  %v6375_v4 = vrot.slane %v6374_v52, 1 }
 0x584   : > { %v6369_v53 = vmax.f32 %v6367_v63, %v6368_v62 }
 0x585   : > { %v12527_v2 = vld [vmem:[#allocation6 + $0x14] sm:$0xff]  ;;  %v6360_v3 = vmax.f32 %v6358_v47, %v6359_v41  ;;  %9637 = vmatpush3.bf16.msra.mxu1 %v9636_v33  ;;  %v6354_v55 = vrot.slane %v6353_v38, 1  ;;  %v6376_v6 = vmax.f32 %v6374_v52, %v6375_v4 }
 0x586   : > { %v12529_v0 = vld [vmem:[#allocation6 + $0x13] sm:$0xff]  ;;  %6757 = vrot.lane.b32.xlu0 %v12527_v2, %s10190_s26 }
 0x587   : > { %6851 = vrot.lane.b32.xlu1 %v12529_v0, %s10198_s9  ;;  %v12535_v60 = vld [vmem:[#allocation6 + $0x19] sm:$0xff]  ;;  %6744 = vst.msk [vmem:[#allocation7 + $0x28] sm:$0xff] %vm6461_vm0, %v12529_v0  ;;  %v6361_v29 = vrot.slane %v6360_v3, 1  ;;  %v6355_v37 = vmax.f32 %v6353_v38, %v6354_v55 }
 0x588   : > { %6919 = vst.msk [vmem:[#allocation7 + $0x10] sm:$0xff] %vm6461_vm0, %v12535_v60  ;;  %v12546_v16 = vld [vmem:[#allocation6 + $0x18] sm:$0xff] }
 0x589   : > { %v6559_v11 = vld [vmem:[#allocation6 + $0x18] sm:$0xff]  ;;  %v6362_v42 = vmax.f32 %v6360_v3, %v6361_v29  ;;  %v12590_v40 = vsel %vm6461_vm0, %v6355_v37, -inf }
 0x58a   : > { %6563 = vst.msk [vmem:[#allocation7 + $0x60] sm:$0xff] %vm6461_vm0, %v6559_v11  ;;  %6781 = vrot.lane.b32.xlu0 %v12546_v16, %s10192_s1  ;;  %v12566_v54 = vld [vmem:[#allocation6 + $0x1a] sm:$0xff] }
 0x58b   : > { %6875 = vrot.lane.b32.xlu1 %v12527_v2, %s10199_s23  ;;  %v12594_v45 = vsel %vm6461_vm0, %v6362_v42, -inf }
 0x58e   : > { %6805 = vrot.lane.b32.xlu0 %v12535_v60, %s10194_s18 }
 0x58f   : > { %6899 = vrot.lane.b32.xlu1 %v12546_v16, %s10197_s13  ;;  %v9510_v18 = vpop.f32.mrb[16].mxu1 }
 0x590   : > { %v6005_v57 = vadd.f32 %v9510_v18, %v12341_v9  ;;  %v5999_v49 = vpop.f32.mrb[17].mxu1 }
 0x591   : > { %v6000_v14 = vadd.f32 %v12341_v9, %v5999_v49  ;;  %v12602_v49 = vsel %vm6461_vm0, %v6369_v53, -inf }
 0x592   : > { %6931 = vrot.lane.b32.xlu0 %v12566_v54, %s10190_s26  ;;  %v6025_v7 = vmax.f32 %v6005_v57, 0.0  ;;  %v12599_v57 = vld [vmem:[#allocation6 + $0x34] sm:$0xff] }
 0x593   : > { %6829 = vrot.lane.b32.xlu1 %v12566_v54, %s10196_s16  ;;  %v6024_v34 = vmax.f32 %v6000_v14, 0.0  ;;  %7097 = vst.msk [vmem:[#allocation7 + $0x58] sm:$0xff] %vm6461_vm0, %v12599_v57 }
 0x594   : > { %v6155_v61 = vcombine.high %v6025_v7, %v6025_v7  ;;  %v6162_v31 = vrot.slane %v6025_v7, %v11048_v59 }
 0x595   : > { %v6138_v50 = vcombine.high %v6024_v34, %v6024_v34  ;;  %v6145_v56 = vrot.slane %v6024_v34, %v11048_v59 }
 0x596   : > { %v6169_v19 = vrot.slane %v6155_v61, %v11048_v59  ;;  %v6398_v22 = vsel %vm6236_vm15, %v6162_v31, -inf }
 0x597   : > { %6626 = vrot.lane.b32.xlu1 %v12529_v0, %s10194_s18  ;;  %v6399_v28 = vrot.slane %v6398_v22, 4  ;;  %v6152_v46 = vrot.slane %v6138_v50, %v11048_v59  ;;  %v6153_v32 = vcombine.high %v6145_v56, %v6145_v56 }
 0x598   : > { %v6170_v39 = vcombine.high %v6169_v19, %v6169_v19  ;;  %v6405_v0 = vsel %vm6236_vm15, %v6169_v19, -inf }
 0x599   : > { %v6400_v26 = vmax.f32 %v6398_v22, %v6399_v28  ;;  %v6154_v17 = vcombine.high %v6152_v46, %v6152_v46  ;;  %v6377_v30 = vsel %vm6236_vm15, %v6153_v32, -inf  ;;  %v6384_v21 = vsel %vm6236_vm15, %v6152_v46, -inf }
 0x59a   : > { %v6412_v11 = vsel %vm6236_vm15, %v6170_v39, -inf  ;;  %v6378_v35 = vrot.slane %v6377_v30, 4  ;;  %v6406_v10 = vrot.slane %v6405_v0, 4  ;;  %v6385_v8 = vrot.slane %v6384_v21, 4 }
 0x59b   : > { %v6401_v43 = vrot.slane %v6400_v26, 2  ;;  %v6413_v20 = vrot.slane %v6412_v11, 4  ;;  %v6391_v47 = vsel %vm6236_vm15, %v6154_v17, -inf  ;;  %v6495_v22 = vsel %vm6461_vm0, %v6376_v6, -inf }
 0x59c   : > { %v6379_v12 = vmax.f32 %v6377_v30, %v6378_v35  ;;  %v9513_v48 = vpop.f32.mrb[18].mxu1  ;;  %v6386_v13 = vmax.f32 %v6384_v21, %v6385_v8  ;;  %v6392_v24 = vrot.slane %v6391_v47, 4  ;;  %v12597_v18 = vmax.f32 %v6405_v0, %v6406_v10 }
 0x59d   : > { %v6402_v27 = vmax.f32 %v6400_v26, %v6401_v43  ;;  %v6414_v23 = vmax.f32 %v6412_v11, %v6413_v20  ;;  %v6009_v15 = vpop.f32.mrb[19].mxu1  ;;  %v6015_v41 = vadd.f32 %v9513_v48, %v12341_v9 }
 0x59e   : > { %v6380_v36 = vrot.slane %v6379_v12, 2  ;;  %v6387_v58 = vrot.slane %v6386_v13, 2  ;;  %v6393_v14 = vmax.f32 %v6391_v47, %v6392_v24  ;;  %v6010_v31 = vadd.f32 %v12341_v9, %v6009_v15 }
 0x59f   : > { %v6403_v33 = vrot.slane %v6402_v27, 1  ;;  %v6415_v38 = vrot.slane %v6414_v23, 2  ;;  %v6027_v3 = vmax.f32 %v6015_v41, 0.0  ;;  %v6408_v19 = vrot.slane %v12597_v18, 2 }
 0x5a0   : > { %v6381_v25 = vmax.f32 %v6379_v12, %v6380_v36  ;;  %v6388_v61 = vmax.f32 %v6386_v13, %v6387_v58  ;;  %v6394_v50 = vrot.slane %v6393_v14, 2  ;;  %v6026_v30 = vmax.f32 %v6010_v31, 0.0 }
 0x5a1   : > { %v6404_v55 = vmax.f32 %v6402_v27, %v6403_v33  ;;  %v6416_v63 = vmax.f32 %v6414_v23, %v6415_v38  ;;  %v6188_v56 = vcombine.high %v6027_v3, %v6027_v3  ;;  %v6195_v29 = vrot.slane %v6027_v3, %v11048_v59 }
 0x5a2   : > { %v6382_v52 = vrot.slane %v6381_v25, 1  ;;  %v6389_v46 = vrot.slane %v6388_v61, 1  ;;  %v6395_v62 = vmax.f32 %v6393_v14, %v6394_v50  ;;  %v6171_v15 = vcombine.high %v6026_v30, %v6026_v30  ;;  %v7147_v50 = vld [vmem:[%s10254_s8 + $0x100] sm:$0xff] }
 0x5a3   : > { %v6496_v28 = vsel %vm6461_vm0, %v6404_v55, -inf  ;;  %v6202_v9 = vrot.slane %v6188_v56, %v11048_v59  ;;  %v6417_v4 = vrot.slane %v6416_v63, 1  ;;  %v6203_v17 = vcombine.high %v6195_v29, %v6195_v29  ;;  %v7148_v56 = vld [vmem:[%s10254_s8 + $0x108] sm:$0xff] }
 0x5a4   : > { %v6756_v7 = vpop.permute.xlu0 %6755  ;;  %v6497_v32 = vmax.f32 %v6495_v22, %v6496_v28  ;;  %v6383_v37 = vmax.f32 %v6381_v25, %v6382_v52  ;;  %v6390_v26 = vmax.f32 %v6388_v61, %v6389_v46  ;;  %v6396_v42 = vrot.slane %v6395_v62, 1 }
 0x5a5   : > { %v6625_v34 = vpop.permute.xlu1 %6624  ;;  %6767 = vst.msk [vmem:[#allocation7 + $0x8] sm:$0xff] %vm6584_vm12, %v6756_v7  ;;  %v6440_v35 = vsel %vm6236_vm15, %v6195_v29, -inf  ;;  %v6454_v21 = vsel %vm6236_vm15, %v6202_v9, -inf  ;;  %v6447_v8 = vsel %vm6236_vm15, %v6203_v17, -inf  ;;  %v6418_v23 = vmax.f32 %v6416_v63, %v6417_v4  ;;  %v7150_v4 = vld [vmem:[%s10254_s8 + $0x118] sm:$0xff] }
 0x5a6   : > { %6636 = vst.msk [vmem:[#allocation7 + $0x20] sm:$0xff] %vm6634_vm4, %v6625_v34  ;;  %v6487_v11 = vsel %vm6461_vm0, %v6383_v37, -inf  ;;  %v6490_v10 = vsel %vm6461_vm0, %v6390_v26, -inf  ;;  %v6441_v20 = vrot.slane %v6440_v35, 4  ;;  %v6397_v53 = vmax.f32 %v6395_v62, %v6396_v42 }
 0x5a7   : > { %v6488_v43 = vmax.f32 %v12590_v40, %v6487_v11  ;;  %v6491_v12 = vmax.f32 %v12594_v45, %v6490_v10  ;;  %v6448_v47 = vrot.slane %v6447_v8, 4  ;;  %v6455_v48 = vrot.slane %v6454_v21, 4 }
 0x5a8   : > { %v6780_v39 = vpop.permute.xlu0 %6779  ;;  %v6442_v13 = vmax.f32 %v6440_v35, %v6441_v20  ;;  %v6178_v36 = vrot.slane %v6026_v30, %v11048_v59  ;;  %v6493_v40 = vsel %vm6461_vm0, %v6397_v53, -inf  ;;  %v6185_v58 = vrot.slane %v6171_v15, %v11048_v59 }
 0x5a9   : > { %v6650_v0 = vpop.permute.xlu1 %6649  ;;  %6791 = vst.msk [vmem:[#allocation7 + $0x8] sm:$0xff] %vm6609_vm5, %v6780_v39  ;;  %v6542_v24 = vsel %vm13285_vm9, %v6491_v12, %v6488_v43  ;;  %v6449_v41 = vmax.f32 %v6447_v8, %v6448_v47  ;;  %v6456_v33 = vmax.f32 %v6454_v21, %v6455_v48  ;;  %v6494_v38 = vmax.f32 %v12602_v49, %v6493_v40  ;;  %v7151_v48 = vld [vmem:[%s10254_s8 + $0x120] sm:$0xff] }
 0x5aa   : > { %6661 = vst.msk [vmem:[#allocation7 + $0x20] sm:$0xff] %vm6659_vm6, %v6650_v0  ;;  %v6443_v45 = vrot.slane %v6442_v13, 2  ;;  %v6186_v25 = vcombine.high %v6178_v36, %v6178_v36  ;;  %v6419_v7 = vsel %vm6236_vm15, %v6178_v36, -inf  ;;  %v6187_v31 = vcombine.high %v6185_v58, %v6185_v58  ;;  %v7149_v0 = vld [vmem:[%s10254_s8 + $0x110] sm:$0xff] }
 0x5ab   : > { %v6450_v14 = vrot.slane %v6449_v41, 2  ;;  %v6457_v3 = vrot.slane %v6456_v33, 2  ;;  %v6543_v63 = vsel %vm5205_vm2, %v6494_v38, %v6542_v24  ;;  %v6420_v52 = vrot.slane %v6419_v7, 4 }
 0x5ac   : > { %v6804_v6 = vpop.permute.xlu0 %6803  ;;  %v6444_v61 = vmax.f32 %v6442_v13, %v6443_v45  ;;  %v10200_v49 = vmov 0.0|0.0   ;;  %v6544_v29 = vsel %vm5207_vm3, %v6497_v32, %v6543_v63  ;;  %v6426_v46 = vsel %vm6236_vm15, %v6186_v25, -inf }
 0x5ad   : > { %v6700_v27 = vpop.permute.xlu1 %6699  ;;  %6815 = vst.msk [vmem:[#allocation7 + $0x8] sm:$0xff] %vm6634_vm4, %v6804_v6  ;;  %9638 = vmatprep.subr.bf16.mxu0 %v10200_v49  ;;  %9665 = vmatprep.subr.bf16.mxu1 %v10200_v49  ;;  %v6451_v22 = vmax.f32 %v6449_v41, %v6450_v14  ;;  %v6458_v28 = vmax.f32 %v6456_v33, %v6457_v3  ;;  %v6427_v9 = vrot.slane %v6426_v46, 4  ;;  %v6433_v39 = vsel %vm6236_vm15, %v6187_v31, -inf  ;;  %v7152_v6 = vld [vmem:[%s10254_s8 + $0x128] sm:$0xff]  ;;  %vm13286_vm15 = vmmov %vm13284_vm8 }
 0x5ae   : > { %6546 = vst.msk [vmem:[#allocation6 + $0x22] sm:$0xf] %vm6518_vm13, %v6544_v29  ;;  %v6445_v37 = vrot.slane %v6444_v61, 1  ;;  %v6421_v62 = vmax.f32 %v6419_v7, %v6420_v52  ;;  %v6409_v26 = vmax.f32 %v12597_v18, %v6408_v19  ;;  %v6434_v30 = vrot.slane %v6433_v39, 4  ;;  %v7153_v7 = vld [vmem:[%s10254_s8 + $0x130] sm:$0xff] }
 0x5af   : > { %v6452_v17 = vrot.slane %v6451_v22, 1  ;;  %v9639_v11 = vpack.c.bf16 %v7148_v56, %v7147_v50  ;;  %v6459_v21 = vrot.slane %v6458_v28, 1  ;;  %v6428_v10 = vmax.f32 %v6426_v46, %v6427_v9  ;;  %v7156_v46 = vld [vmem:[%s10254_s8 + $0x148] sm:$0xff] }
 0x5b0   : > { %v6828_v34 = vpop.permute.xlu0 %6827  ;;  %v6446_v35 = vmax.f32 %v6444_v61, %v6445_v37  ;;  %v6422_v43 = vrot.slane %v6421_v62, 2  ;;  %v6501_v20 = vsel %vm6461_vm0, %v6418_v23, -inf  ;;  %v6435_v8 = vmax.f32 %v6433_v39, %v6434_v30  ;;  %v7157_v30 = vld [vmem:[%s10254_s8 + $0x150] sm:$0xff] }
 0x5b1   : > { %v6725_v55 = vpop.permute.xlu1 %6724  ;;  %6839 = vst.msk [vmem:[#allocation7 + $0x8] sm:$0xff] %vm6659_vm6, %v6828_v34  ;;  %9640 = vmatpush1.bf16.msra.mxu0 %v9639_v11  ;;  %v9642_v18 = vpack.c.bf16 %v7150_v4, %v7149_v0  ;;  %v6453_v19 = vmax.f32 %v6451_v22, %v6452_v17  ;;  %v6429_v47 = vrot.slane %v6428_v10, 2  ;;  %v6410_v13 = vrot.slane %v6409_v26, 1  ;;  %v7154_v34 = vld [vmem:[%s10254_s8 + $0x138] sm:$0xff] }
 0x5b2   : > { %v6502_v53 = vsel %vm6461_vm0, %v6446_v35, -inf  ;;  %v6423_v12 = vmax.f32 %v6421_v62, %v6422_v43  ;;  %9641 = vmatprep.subr.bf16.mxu0 %v10200_v49  ;;  %v6436_v36 = vrot.slane %v6435_v8, 2  ;;  %v6460_v40 = vmax.f32 %v6458_v28, %v6459_v21  ;;  %v7155_v28 = vld [vmem:[%s10254_s8 + $0x140] sm:$0xff]  ;;  %v7160_v43 = vld [vmem:[%s10254_s8 + $0x168] sm:$0xff] }
 0x5b3   : > { %v6503_v15 = vmax.f32 %v6501_v20, %v6502_v53  ;;  %v6430_v24 = vmax.f32 %v6428_v10, %v6429_v47  ;;  %v9645_v45 = vpack.c.bf16 %v7152_v6, %v7151_v48  ;;  %v6505_v14 = vsel %vm6461_vm0, %v6453_v19, -inf  ;;  %v7159_v21 = vld [vmem:[%s10254_s8 + $0x160] sm:$0xff]  ;;  %v7161_v20 = vld [vmem:[%s10254_s8 + $0x170] sm:$0xff]  ;;  %v7164_v6 = vld [vmem:[%s10254_s8 + $0x188] sm:$0xff] }
 0x5b4   : > { %v6675_v32 = vpop.permute.xlu0 %6674  ;;  %v6437_v41 = vmax.f32 %v6435_v8, %v6436_v36  ;;  %v6508_v61 = vsel %vm6461_vm0, %v6460_v40, -inf  ;;  %v9648_v29 = vpack.c.bf16 %v7154_v34, %v7153_v7  ;;  %v9657_v10 = vpack.c.bf16 %v7160_v43, %v7159_v21  ;;  %v7162_v8 = vld [vmem:[%s10254_s8 + $0x178] sm:$0xff]  ;;  %v7163_v48 = vld [vmem:[%s10254_s8 + $0x180] sm:$0xff] }
 0x5b5   : > { %v6577_v42 = vpop.permute.xlu1 %6576  ;;  %6686 = vst.msk [vmem:[#allocation7 + $0x20] sm:$0xff] %vm6684_vm1, %v6675_v32  ;;  %v12655_v33 = vld [vmem:[#allocation6 + $0x1b] sm:$0xff]  ;;  %9643 = vmatpush1.bf16.msra.mxu0 %v9642_v18  ;;  %v6431_v25 = vrot.slane %v6430_v24, 1  ;;  %vm8182_vm8 = vcmask 41000   ;;  %vm8198_vm9 = vcmask 106552  }
 0x5b6   : > { %6587 = vst.msk [vmem:[#allocation7 + $0x40] sm:$0xff] %vm6584_vm12, %v6577_v42  ;;  %v12657_v38 = vld [vmem:[#allocation6 + $0x1c] sm:$0xff]  ;;  %6955 = vrot.lane.b32.xlu0 %v12655_v33, %s10192_s1  ;;  %v6438_v63 = vrot.slane %v6437_v41, 1  ;;  %9644 = vmatprep.subr.bf16.mxu0 %v10200_v49 }
 0x5b7   : > { %6711 = vst.msk [vmem:[#allocation7 + $0x20] sm:$0xff] %vm6709_vm7, %v6700_v27  ;;  %v6424_v27 = vrot.slane %v6423_v12, 1  ;;  %6979 = vrot.lane.b32.xlu1 %v12657_v38, %s10194_s18  ;;  %v12664_v3 = vld [vmem:[#allocation6 + $0x21] sm:$0xff]  ;;  %v6432_v31 = vmax.f32 %v6430_v24, %v6431_v25  ;;  %v7158_v32 = vld [vmem:[%s10254_s8 + $0x158] sm:$0xff] }
 0x5b8   : > { %6736 = vst.msk [vmem:[#allocation7 + $0x20] sm:$0xff] %vm6734_vm14, %v6725_v55  ;;  %v6411_v55 = vmax.f32 %v6409_v26, %v6410_v13  ;;  %v6439_v50 = vmax.f32 %v6437_v41, %v6438_v63  ;;  %v12685_v0 = vld [vmem:[#allocation6 + $0x20] sm:$0xff]  ;;  %v9651_v26 = vpack.c.bf16 %v7156_v46, %v7155_v28  ;;  %v9654_v35 = vpack.c.bf16 %v7158_v32, %v7157_v30  ;;  %v6998_v63 = vld [vmem:[#allocation6 + $0x38] sm:$0xff] }
 0x5b9   : > { %v6602_v23 = vpop.permute.xlu1 %6601  ;;  %v6425_v58 = vmax.f32 %v6423_v12, %v6424_v27  ;;  %6745 = vst.msk [vmem:[#allocation7 + $0x48] sm:$0xff] %vm6461_vm0, %v12655_v33  ;;  %6920 = vst.msk [vmem:[#allocation7 + $0x30] sm:$0xff] %vm6461_vm0, %v12664_v3  ;;  %9646 = vmatpush1.bf16.msra.mxu0 %v9645_v45  ;;  %v6507_v22 = vsel %vm6461_vm0, %v6432_v31, -inf  ;;  %v12687_v4 = vld [vmem:[#allocation6 + $0x22] sm:$0xff]  ;;  %v9660_v12 = vpack.c.bf16 %v7162_v8, %v7161_v20  ;;  %v7022_v7 = vld [vmem:[#allocation6 + $0x39] sm:$0xff] }
 0x5ba   : > { %6612 = vst.msk [vmem:[#allocation7 + $0x40] sm:$0xff] %vm6609_vm5, %v6602_v23  ;;  %6853 = vrot.lane.b32.xlu0 %v12655_v33, %s10198_s9  ;;  %v6498_v37 = vsel %vm6461_vm0, %v6411_v55, -inf  ;;  %v6499_v62 = vsel %vm6461_vm0, %v6439_v50, -inf  ;;  %v6509_v9 = vmax.f32 %v6507_v22, %v6508_v61  ;;  %9647 = vmatprep.subr.bf16.mxu0 %v10200_v49  ;;  %v9663_v13 = vpack.c.bf16 %v7164_v6, %v7163_v48  ;;  %v7070_v34 = vld [vmem:[#allocation6 + $0x3b] sm:$0xff] }
 0x5bb   : > { %v6504_v52 = vsel %vm6461_vm0, %v6425_v58, -inf  ;;  %6877 = vrot.lane.b32.xlu1 %v12657_v38, %s10199_s23  ;;  %v6500_v39 = vmax.f32 %v6498_v37, %v6499_v62  ;;  %v7094_v55 = vld [vmem:[#allocation6 + $0x3c] sm:$0xff] }
 0x5bc   : > { %v6506_v56 = vmax.f32 %v6504_v52, %v6505_v14  ;;  %v7099_v14 = vld [vmem:[#allocation7] sm:$0xff]  ;;  %7098 = vst.msk [vmem:[#allocation7 + $0x78] sm:$0xff] %vm6461_vm0, %v7094_v55  ;;  %v7046_v61 = vld [vmem:[#allocation6 + $0x3a] sm:$0xff] }
 0x5bd   : > { %9649 = vmatpush1.bf16.msra.mxu0 %v9648_v29  ;;  %v6551_v17 = vsel %vm13286_vm15, %v6503_v15, %v6500_v39  ;;  %vm9054_vm15 = vcmp.lt.s32.totalorder %v3363_v44, 256 }
 0x5be   : > { %7003 = vrot.lane.b32.xlu0 %v12685_v0, %s10196_s16  ;;  %v6552_v42 = vsel %vm5205_vm2, %v6506_v56, %v6551_v17  ;;  %9650 = vmatprep.subr.bf16.mxu0 %v10200_v49  ;;  %vm10201_vm2 = vmmov 0  }
 0x5bf   : > { %6933 = vrot.lane.b32.xlu1 %v12687_v4, %s10190_s26  ;;  %v6553_v11 = vsel %vm5207_vm3, %v6509_v9, %v6552_v42  ;;  %v7103_v39 = vld [vmem:[#allocation7 + $0x20] sm:$0xff]  ;;  %vm7402_vm3 = vcmask 254976  }
 0x5c0   : > { %6555 = vst.msk [vmem:[#allocation6 + $0x2a] sm:$0xf] %vm6518_vm13, %v6553_v11  ;;  %vm7459_vm13 = vcmask 261120  }
 0x5c1   : > { %9652 = vmatpush1.bf16.msra.mxu0 %v9651_v26 }
 0x5c2   : > { %6901 = vrot.lane.b32.xlu0 %v12685_v0, %s10197_s13  ;;  %9653 = vmatprep.subr.bf16.mxu0 %v10200_v49 }
 0x5c3   : > { %7051 = vrot.lane.b32.xlu1 %v12687_v4, %s10199_s23 }
 0x5c5   : > { %9655 = vmatpush1.bf16.msra.mxu0 %v9654_v35 }
 0x5c6   : > { %7027 = vrot.lane.b32.xlu0 %v12664_v3, %s10198_s9  ;;  %9656 = vmatprep.subr.bf16.mxu0 %v10200_v49 }
 0x5c7   : > { %6759 = vrot.lane.b32.xlu1 %v12657_v38, %s10190_s26  ;;  %v7067_v18 = vld [vmem:[#allocation6 + $0x23] sm:$0xff]  ;;  %v6973_v47 = vld [vmem:[#allocation6 + $0x2c] sm:$0xff] }
 0x5c8   : > { %v7091_v19 = vld [vmem:[#allocation6 + $0x24] sm:$0xff]  ;;  %6746 = vst.msk [vmem:[#allocation7 + $0x68] sm:$0xff] %vm6461_vm0, %v7067_v18  ;;  %7096 = vst.msk [vmem:[#allocation7 + $0x38] sm:$0xff] %vm6461_vm0, %v6973_v47 }
 0x5c9   : > { %v7020_v53 = vld [vmem:[#allocation6 + $0x29] sm:$0xff]  ;;  %7095 = vst.msk [vmem:[#allocation7 + $0x18] sm:$0xff] %vm6461_vm0, %v7091_v19  ;;  %9658 = vmatpush1.bf16.msra.mxu0 %v9657_v10 }
 0x5ca   : > { %6921 = vst.msk [vmem:[#allocation7 + $0x50] sm:$0xff] %vm6461_vm0, %v7020_v53  ;;  %6783 = vrot.lane.b32.xlu0 %v12685_v0, %s10192_s1  ;;  %9659 = vmatprep.subr.bf16.mxu0 %v10200_v49  ;;  %v6996_v36 = vld [vmem:[#allocation6 + $0x28] sm:$0xff] }
 0x5cb   : > { %7075 = vrot.lane.b32.xlu1 %v7067_v18, %s10197_s13  ;;  %v7044_v23 = vld [vmem:[#allocation6 + $0x2a] sm:$0xff] }
 0x5cc   : > { %v7068_v40 = vld [vmem:[#allocation6 + $0x2b] sm:$0xff] }
 0x5cd   : > { %9661 = vmatpush1.bf16.msra.mxu0 %v9660_v12 }
 0x5ce   : > { %6807 = vrot.lane.b32.xlu0 %v12664_v3, %s10194_s18  ;;  %9662 = vmatprep.subr.bf16.mxu0 %v10200_v49 }
 0x5cf   : > { %7029 = vrot.lane.b32.xlu1 %v7020_v53, %s10198_s9  ;;  %v7106_v32 = vld [vmem:[#allocation7 + $0x38] sm:$0xff] }
 0x5d0   : > { %v7102_v15 = vld [vmem:[#allocation7 + $0x18] sm:$0xff] }
 0x5d1   : > { %9263 = vmatprep.mubr.msk.f32.mxu0 %vm6461_vm0, %v7102_v15  ;;  %9664 = vmatpush1.bf16.msra.mxu0 %v9663_v13 }
 0x5d2   : > { %6957 = vrot.lane.b32.xlu0 %v7067_v18, %s10192_s1  ;;  %9689 = vmatprep.subr.bf16.mxu0 %v10200_v49 }
 0x5d3   : > { %6651 = vrot.lane.b32.xlu1 %v12527_v2, %s10196_s16 }
 0x5d6   : > { %6981 = vrot.lane.b32.xlu0 %v7091_v19, %s10194_s18 }
 0x5d7   : > { %6855 = vrot.lane.b32.xlu1 %v7067_v18, %s10198_s9 }
 0x5da   : > { %7005 = vrot.lane.b32.xlu0 %v6996_v36, %s10196_s16 }
 0x5db   : > { %6676 = vrot.lane.b32.xlu1 %v12546_v16, %s10198_s9 }
 0x5de   : > { %7053 = vrot.lane.b32.xlu0 %v7044_v23, %s10199_s23 }
 0x5df   : > { %6879 = vrot.lane.b32.xlu1 %v7091_v19, %s10199_s23 }
 0x5e2   : > { %7077 = vrot.lane.b32.xlu0 %v7068_v40, %s10197_s13 }
 0x5e3   : > { %6701 = vrot.lane.b32.xlu1 %v12535_v60, %s10199_s23 }
 0x5e6   : > { %6831 = vrot.lane.b32.xlu0 %v12687_v4, %s10196_s16 }
 0x5e7   : > { %6903 = vrot.lane.b32.xlu1 %v6996_v36, %s10197_s13 }
 0x5ea   : > { %6761 = vrot.lane.b32.xlu0 %v7091_v19, %s10190_s26 }
 0x5eb   : > { %6628 = vrot.lane.b32.xlu1 %v12655_v33, %s10194_s18  ;;  %v6926_v33 = vld [vmem:[#allocation6 + $0x32] sm:$0xff] }
 0x5ee   : > { %6578 = vrot.lane.b32.xlu0 %v12535_v60, %s10190_s26 }
 0x5ef   : > { %6833 = vrot.lane.b32.xlu1 %v7044_v23, %s10196_s16 }
 0x5f2   : > { %6785 = vrot.lane.b32.xlu0 %v6996_v36, %s10192_s1 }
 0x5f3   : > { %6653 = vrot.lane.b32.xlu1 %v12657_v38, %s10196_s16 }
 0x5f6   : > { %6603 = vrot.lane.b32.xlu0 %v12566_v54, %s10192_s1 }
 0x5f7   : > { %6983 = vrot.lane.b32.xlu1 %v6973_v47, %s10194_s18 }
 0x5f8   : > { %v6758_v2 = vpop.permute.xlu0 %6757 }
 0x5f9   : > { %v6852_v16 = vpop.permute.xlu1 %6851  ;;  %6768 = vst.msk [vmem:[#allocation7 + $0x28] sm:$0xff] %vm6584_vm12, %v6758_v2 }
 0x5fa   : > { %6863 = vst.msk [vmem:[#allocation7 + $0x8] sm:$0xff] %vm6684_vm1, %v6852_v16  ;;  %6809 = vrot.lane.b32.xlu0 %v7020_v53, %s10194_s18  ;;  %v7110_v53 = vld [vmem:[#allocation7 + $0x58] sm:$0xff] }
 0x5fb   : > { %6881 = vrot.lane.b32.xlu1 %v6973_v47, %s10199_s23 }
 0x5fc   : > { %v6782_v27 = vpop.permute.xlu0 %6781 }
 0x5fd   : > { %v6876_v60 = vpop.permute.xlu1 %6875  ;;  %6792 = vst.msk [vmem:[#allocation7 + $0x28] sm:$0xff] %vm6609_vm5, %v6782_v27 }
 0x5fe   : > { %6887 = vst.msk [vmem:[#allocation7 + $0x8] sm:$0xff] %vm6709_vm7, %v6876_v60  ;;  %6935 = vrot.lane.b32.xlu0 %v7044_v23, %s10190_s26 }
 0x5ff   : > { %6703 = vrot.lane.b32.xlu1 %v12664_v3, %s10199_s23  ;;  %v6997_v3 = vld [vmem:[#allocation6 + $0x30] sm:$0xff] }
 0x600   : > { %v6806_v24 = vpop.permute.xlu0 %6805 }
 0x601   : > { %v6900_v41 = vpop.permute.xlu1 %6899  ;;  %6816 = vst.msk [vmem:[#allocation7 + $0x28] sm:$0xff] %vm6634_vm4, %v6806_v24 }
 0x602   : > { %6911 = vst.msk [vmem:[#allocation7 + $0x8] sm:$0xff] %vm6734_vm14, %v6900_v41  ;;  %6726 = vrot.lane.b32.xlu0 %v12566_v54, %s10197_s13  ;;  %v7069_v54 = vld [vmem:[#allocation6 + $0x33] sm:$0xff] }
 0x603   : > { %6937 = vrot.lane.b32.xlu1 %v6926_v33, %s10190_s26  ;;  %s10202_s26 = smov 127  }
 0x604   : > { %v6932_v38 = vpop.permute.xlu0 %6931 }
 0x605   : > { %v6830_v45 = vpop.permute.xlu1 %6829  ;;  %6943 = vst.msk [vmem:[#allocation7 + $0x10] sm:$0xff] %vm6584_vm12, %v6932_v38 }
 0x606   : > { %6840 = vst.msk [vmem:[#allocation7 + $0x28] sm:$0xff] %vm6659_vm6, %v6830_v45  ;;  %6959 = vrot.lane.b32.xlu0 %v7068_v40, %s10192_s1 }
 0x607   : > { %6728 = vrot.lane.b32.xlu1 %v12687_v4, %s10197_s13 }
 0x609   : > { %v6627_v58 = vpop.permute.xlu1 %6626  ;;  %v7100_v25 = vld [vmem:[#allocation7 + $0x8] sm:$0xff] }
 0x60a   : > { %6637 = vst.msk [vmem:[#allocation7 + $0x40] sm:$0xff] %vm6634_vm4, %v6627_v58  ;;  %7248 = vmatprep.mubr.f32.mxu1 %v7100_v25  ;;  %6857 = vrot.lane.b32.xlu0 %v7068_v40, %s10198_s9 }
 0x60b   : > { %7249 = vmatmul.mubr.f32.vlgmr.msra.gmra.mrb[20].mxu1 %v7099_v14  ;;  %7055 = vrot.lane.b32.xlu1 %v6926_v33, %s10199_s23 }
 0x60e   : > { %6678 = vrot.lane.b32.xlu0 %v12685_v0, %s10198_s9 }
 0x60f   : > { %7079 = vrot.lane.b32.xlu1 %v7069_v54, %s10197_s13 }
 0x612   : > { %7007 = vrot.lane.b32.xlu0 %v6997_v3, %s10196_s16 }
 0x613   : > { %7033 = vrot.lane.b32.xlu1 %v7022_v7, %s10198_s9 }
 0x616   : > { %6905 = vrot.lane.b32.xlu0 %v6997_v3, %s10197_s13 }
 0x617   : > { %7081 = vrot.lane.b32.xlu1 %v7070_v34, %s10197_s13  ;;  %s13288_s13 = sld [smem:[#allocation13_spill]] }
 0x61a   : > { %7031 = vrot.lane.b32.xlu0 %v12581_v5, %s10198_s9 }
 0x61d   : > { %s958_s9 = scalar_lea.vmem %s13288_s13, %s13303_s10  ;;  %s13296_s13 = sld [smem:[#allocation17_spill]] }
 0x61e   : > { %6961 = vrot.lane.b32.xlu0 %v7069_v54, %s10192_s1 }
 0x622   : > { %6985 = vrot.lane.b32.xlu0 %v12599_v57, %s10194_s18  ;;  %s13287_s18 = sld [smem:[#allocation14_spill]] }
 0x626   : > { %7009 = vrot.lane.b32.xlu0 %v6998_v63, %s10196_s16  ;;  %s12938_s16 = scalar_lea.vmem %s10352_s28, %s13303_s10 }
 0x627   : > { %8156 = vst [vmem:[%s12938_s16] sm:$0x1] %v10179_v1 }
 0x628   : > { %v6956_v31 = vpop.permute.xlu0 %6955  ;;  %s961_s1 = scalar_lea.vmem %s13287_s18, %s13303_s10  ;;  %s13292_s18 = sld [smem:[#allocation19_spill]] }
 0x629   : > { %v6980_v52 = vpop.permute.xlu1 %6979  ;;  %6967 = vst.msk [vmem:[#allocation7 + $0x10] sm:$0xff] %vm6609_vm5, %v6956_v31 }
 0x62a   : > { %6991 = vst.msk [vmem:[#allocation7 + $0x10] sm:$0xff] %vm6634_vm4, %v6980_v52  ;;  %7057 = vrot.lane.b32.xlu0 %v7046_v61, %s10199_s23 }
 0x62c   : > { %v6854_v5 = vpop.permute.xlu0 %6853 }
 0x62d   : > { %v6878_v50 = vpop.permute.xlu1 %6877  ;;  %6864 = vst.msk [vmem:[#allocation7 + $0x28] sm:$0xff] %vm6684_vm1, %v6854_v5 }
 0x62e   : > { %6888 = vst.msk [vmem:[#allocation7 + $0x28] sm:$0xff] %vm6709_vm7, %v6878_v50  ;;  %v7114_v50 = vld [vmem:[#allocation7 + $0x78] sm:$0xff] }
 0x630   : > { %v7004_v56 = vpop.permute.xlu0 %7003 }
 0x631   : > { %v6934_v57 = vpop.permute.xlu1 %6933  ;;  %7015 = vst.msk [vmem:[#allocation7 + $0x10] sm:$0xff] %vm6659_vm6, %v7004_v56 }
 0x632   : > { %6944 = vst.msk [vmem:[#allocation7 + $0x30] sm:$0xff] %vm6584_vm12, %v6934_v57 }
 0x634   : > { %v6902_v29 = vpop.permute.xlu0 %6901 }
 0x635   : > { %v7052_v22 = vpop.permute.xlu1 %7051  ;;  %6912 = vst.msk [vmem:[#allocation7 + $0x28] sm:$0xff] %vm6734_vm14, %v6902_v29 }
 0x638   : > { %v7028_v28 = vpop.permute.xlu0 %7027 }
 0x639   : > { %v6760_v46 = vpop.permute.xlu1 %6759  ;;  %7039 = vst.msk [vmem:[#allocation7 + $0x10] sm:$0xff] %vm6684_vm1, %v7028_v28 }
 0x63a   : > { %6769 = vst.msk [vmem:[#allocation7 + $0x48] sm:$0xff] %vm6584_vm12, %v6760_v46  ;;  %v7473_v46 = vld [vmem:[%s10264_s19] sm:$0xff] }
 0x63b   : > { %7063 = vst.msk [vmem:[#allocation7 + $0x10] sm:$0xff] %vm6709_vm7, %v7052_v22 }
 0x63c   : > { %v6784_v37 = vpop.permute.xlu0 %6783  ;;  %v7104_v9 = vld [vmem:[#allocation7 + $0x28] sm:$0xff] }
 0x63d   : > { %v7076_v62 = vpop.permute.xlu1 %7075  ;;  %6793 = vst.msk [vmem:[#allocation7 + $0x48] sm:$0xff] %vm6609_vm5, %v6784_v37  ;;  %7253 = vmatprep.mubr.f32.mxu1 %v7104_v9  ;;  %v7474_v37 = vld [vmem:[%s10264_s19 + $0x8] sm:$0xff]  ;;  %v7475_v9 = vld [vmem:[%s10264_s19 + $0x10] sm:$0xff] }
 0x63e   : > { %7087 = vst.msk [vmem:[#allocation7 + $0x10] sm:$0xff] %vm6734_vm14, %v7076_v62  ;;  %7254 = vmatmul.mubr.f32.gmra.mrb[22].mxu1 %v7103_v39  ;;  %v9666_v62 = vpack.c.bf16 %v7474_v37, %v7473_v46  ;;  %v7476_v39 = vld [vmem:[%s10264_s19 + $0x18] sm:$0xff] }
 0x640   : > { %v6808_v0 = vpop.permute.xlu0 %6807  ;;  %9667 = vmatpush3.bf16.msra.mxu1 %v9666_v62 }
 0x641   : > { %v7030_v4 = vpop.permute.xlu1 %7029  ;;  %6817 = vst.msk [vmem:[#allocation7 + $0x48] sm:$0xff] %vm6634_vm4, %v6808_v0  ;;  %v9669_v0 = vpack.c.bf16 %v7476_v39, %v7475_v9  ;;  %9668 = vmatprep.subr.bf16.mxu1 %v10200_v49 }
 0x644   : > { %v6958_v26 = vpop.permute.xlu0 %6957  ;;  %9670 = vmatpush3.bf16.msra.mxu1 %v9669_v0  ;;  %v9270_v0 = vld [vmem:[%s10264_s19 + $0x30] sm:$0xff] }
 0x645   : > { %v6652_v17 = vpop.permute.xlu1 %6651  ;;  %v7101_v30 = vld [vmem:[#allocation7 + $0x10] sm:$0xff]  ;;  %6968 = vst.msk [vmem:[#allocation7 + $0x30] sm:$0xff] %vm6609_vm5, %v6958_v26  ;;  %9671 = vmatprep.subr.bf16.mxu1 %v10200_v49 }
 0x646   : > { %6662 = vst.msk [vmem:[#allocation7 + $0x40] sm:$0xff] %vm6659_vm6, %v6652_v17  ;;  %7334 = vmatmul.mubr.f32.vlgmr.msra.gmra.mrb[26].mxu0 %v7101_v30 }
 0x647   : > { %9264 = vmatprep.mubr.msk.f32.mxu0 %vm6461_vm0, %v7106_v32 }
 0x648   : > { %v6982_v42 = vpop.permute.xlu0 %6981 }
 0x649   : > { %v6856_v11 = vpop.permute.xlu1 %6855  ;;  %6992 = vst.msk [vmem:[#allocation7 + $0x30] sm:$0xff] %vm6634_vm4, %v6982_v42 }
 0x64c   : > { %v7006_v35 = vpop.permute.xlu0 %7005 }
 0x64d   : > { %v6677_v21 = vpop.permute.xlu1 %6676  ;;  %7016 = vst.msk [vmem:[#allocation7 + $0x30] sm:$0xff] %vm6659_vm6, %v7006_v35 }
 0x64e   : > { %6687 = vst.msk [vmem:[#allocation7 + $0x40] sm:$0xff] %vm6684_vm1, %v6677_v21  ;;  %7040 = vst.msk [vmem:[#allocation7 + $0x30] sm:$0xff] %vm6684_vm1, %v7030_v4 }
 0x650   : > { %v7054_v43 = vpop.permute.xlu0 %7053 }
 0x651   : > { %v6880_v10 = vpop.permute.xlu1 %6879  ;;  %7064 = vst.msk [vmem:[#allocation7 + $0x30] sm:$0xff] %vm6709_vm7, %v7054_v43  ;;  %v7788_v43 = vld [vmem:[%s10274_s30] sm:$0xff] }
 0x654   : > { %v7078_v20 = vpop.permute.xlu0 %7077 }
 0x655   : > { %v6702_v8 = vpop.permute.xlu1 %6701  ;;  %7088 = vst.msk [vmem:[#allocation7 + $0x30] sm:$0xff] %vm6734_vm14, %v7078_v20 }
 0x656   : > { %6712 = vst.msk [vmem:[#allocation7 + $0x40] sm:$0xff] %vm6709_vm7, %v6702_v8 }
 0x658   : > { %v6832_v18 = vpop.permute.xlu0 %6831 }
 0x659   : > { %v6904_v19 = vpop.permute.xlu1 %6903  ;;  %6841 = vst.msk [vmem:[#allocation7 + $0x48] sm:$0xff] %vm6659_vm6, %v6832_v18 }
 0x65a   : > { %6865 = vst.msk [vmem:[#allocation7 + $0x48] sm:$0xff] %vm6684_vm1, %v6856_v11  ;;  %v12864_v11 = vld [vmem:[%s10259_s14] ss:$0 sm:$0xff] }
 0x65b   : > { %6889 = vst.msk [vmem:[#allocation7 + $0x48] sm:$0xff] %vm6709_vm7, %v6880_v10  ;;  %v7789_v10 = vld [vmem:[%s10274_s30 + $0x8] sm:$0xff] }
 0x65c   : > { %6913 = vst.msk [vmem:[#allocation7 + $0x48] sm:$0xff] %vm6734_vm14, %v6904_v19  ;;  %v6762_v12 = vpop.permute.xlu0 %6761  ;;  %v7105_v48 = vld [vmem:[#allocation7 + $0x30] sm:$0xff]  ;;  %v9690_v18 = vpack.c.bf16 %v7789_v10, %v7788_v43  ;;  %v9275_v43 = vld [vmem:[%s10264_s19 + $0x50] sm:$0xff] }
 0x65d   : > { %v6629_v47 = vpop.permute.xlu1 %6628  ;;  %6770 = vst.msk [vmem:[#allocation7 + $0x68] sm:$0xff] %vm6584_vm12, %v6762_v12  ;;  %7339 = vmatmul.mubr.f32.gmra.mrb[28].mxu0 %v7105_v48  ;;  %v9276_v10 = vld [vmem:[%s10264_s19 + $0x58] sm:$0xff] }
 0x65e   : > { %9265 = vmatprep.mubr.msk.f32.mxu0 %vm6461_vm0, %v7110_v53  ;;  %9691 = vmatpush3.bf16.msra.mxu0 %v9690_v18 }
 0x65f   : > { %9572 = vmatprep.subr.mxu0 %v10179_v1 }
 0x660   : > { %v6579_v6 = vpop.permute.xlu0 %6578 }
 0x661   : > { %v6834_v13 = vpop.permute.xlu1 %6833  ;;  %6588 = vst.msk [vmem:[#allocation7 + $0x60] sm:$0xff] %vm6584_vm12, %v6579_v6 }
 0x663   : > { %v7108_v15 = vld [vmem:[#allocation7 + $0x48] sm:$0xff] }
 0x664   : > { %v6786_v36 = vpop.permute.xlu0 %6785  ;;  %7258 = vmatprep.mubr.f32.mxu1 %v7108_v15 }
 0x665   : > { %v6654_v23 = vpop.permute.xlu1 %6653  ;;  %6794 = vst.msk [vmem:[#allocation7 + $0x68] sm:$0xff] %vm6609_vm5, %v6786_v36 }
 0x668   : > { %v6604_v40 = vpop.permute.xlu0 %6603 }
 0x669   : > { %v6984_v2 = vpop.permute.xlu1 %6983  ;;  %6613 = vst.msk [vmem:[#allocation7 + $0x60] sm:$0xff] %vm6609_vm5, %v6604_v40 }
 0x66a   : > { %6638 = vst.msk [vmem:[#allocation7 + $0x60] sm:$0xff] %vm6634_vm4, %v6629_v47 }
 0x66b   : > { %6663 = vst.msk [vmem:[#allocation7 + $0x60] sm:$0xff] %vm6659_vm6, %v6654_v23 }
 0x66c   : > { %v6810_v16 = vpop.permute.xlu0 %6809 }
 0x66d   : > { %v6882_v27 = vpop.permute.xlu1 %6881  ;;  %6818 = vst.msk [vmem:[#allocation7 + $0x68] sm:$0xff] %vm6634_vm4, %v6810_v16 }
 0x66e   : > { %6842 = vst.msk [vmem:[#allocation7 + $0x68] sm:$0xff] %vm6659_vm6, %v6834_v13 }
 0x670   : > { %v6936_v60 = vpop.permute.xlu0 %6935 }
 0x671   : > { %v6704_v24 = vpop.permute.xlu1 %6703  ;;  %6945 = vst.msk [vmem:[#allocation7 + $0x50] sm:$0xff] %vm6584_vm12, %v6936_v60 }
 0x674   : > { %v6727_v41 = vpop.permute.xlu0 %6726 }
 0x675   : > { %v6938_v33 = vpop.permute.xlu1 %6937  ;;  %6737 = vst.msk [vmem:[#allocation7 + $0x40] sm:$0xff] %vm6734_vm14, %v6727_v41 }
 0x676   : > { %6946 = vst.msk [vmem:[#allocation7 + $0x70] sm:$0xff] %vm6584_vm12, %v6938_v33  ;;  %vm7956_vm12 = vcmask 23552  }
 0x678   : > { %v6960_v38 = vpop.permute.xlu0 %6959 }
 0x679   : > { %6969 = vst.msk [vmem:[#allocation7 + $0x50] sm:$0xff] %vm6609_vm5, %v6960_v38  ;;  %v6729_v14 = vpop.permute.xlu1 %6728 }
 0x67a   : > { %6993 = vst.msk [vmem:[#allocation7 + $0x50] sm:$0xff] %vm6634_vm4, %v6984_v2 }
 0x67c   : > { %v6858_v45 = vpop.permute.xlu0 %6857  ;;  %v7107_v58 = vld [vmem:[#allocation7 + $0x40] sm:$0xff] }
 0x67d   : > { %6866 = vst.msk [vmem:[#allocation7 + $0x68] sm:$0xff] %vm6684_vm1, %v6858_v45  ;;  %7259 = vmatmul.mubr.f32.gmra.mrb[24].mxu1 %v7107_v58  ;;  %v7056_v3 = vpop.permute.xlu1 %7055 }
 0x67e   : > { %6890 = vst.msk [vmem:[#allocation7 + $0x68] sm:$0xff] %vm6709_vm7, %v6882_v27 }
 0x680   : > { %v6679_v25 = vpop.permute.xlu0 %6678 }
 0x681   : > { %6688 = vst.msk [vmem:[#allocation7 + $0x60] sm:$0xff] %vm6684_vm1, %v6679_v25  ;;  %v7080_v55 = vpop.permute.xlu1 %7079 }
 0x682   : > { %6713 = vst.msk [vmem:[#allocation7 + $0x60] sm:$0xff] %vm6709_vm7, %v6704_v24 }
 0x683   : > { %6738 = vst.msk [vmem:[#allocation7 + $0x60] sm:$0xff] %vm6734_vm14, %v6729_v14 }
 0x684   : > { %v7008_v54 = vpop.permute.xlu0 %7007 }
 0x685   : > { %7017 = vst.msk [vmem:[#allocation7 + $0x50] sm:$0xff] %vm6659_vm6, %v7008_v54  ;;  %v7034_v5 = vpop.permute.xlu1 %7033 }
 0x688   : > { %v6906_v7 = vpop.permute.xlu0 %6905 }
 0x689   : > { %6914 = vst.msk [vmem:[#allocation7 + $0x68] sm:$0xff] %vm6734_vm14, %v6906_v7  ;;  %v7082_v29 = vpop.permute.xlu1 %7081 }
 0x68a   : > { %v7111_v31 = vld [vmem:[#allocation7 + $0x60] sm:$0xff] }
 0x68c   : > { %v7032_v34 = vpop.permute.xlu0 %7031 }
 0x68d   : > { %7041 = vst.msk [vmem:[#allocation7 + $0x50] sm:$0xff] %vm6684_vm1, %v7032_v34 }
 0x68e   : > { %7065 = vst.msk [vmem:[#allocation7 + $0x50] sm:$0xff] %vm6709_vm7, %v7056_v3 }
 0x68f   : > { %7089 = vst.msk [vmem:[#allocation7 + $0x50] sm:$0xff] %vm6734_vm14, %v7080_v55 }
 0x690   : > { %v6962_v63 = vpop.permute.xlu0 %6961  ;;  %v7112_v61 = vld [vmem:[#allocation7 + $0x68] sm:$0xff] }
 0x691   : > { %6970 = vst.msk [vmem:[#allocation7 + $0x70] sm:$0xff] %vm6609_vm5, %v6962_v63  ;;  %7263 = vmatprep.mubr.f32.mxu1 %v7112_v61  ;;  %vm8060_vm5 = vcmask 8192  }
 0x692   : > { %7264 = vmatmul.mubr.f32.gmra.mrb[26].mxu1 %v7111_v31 }
 0x693   : > { %9522 = vmatprep.mubr.msk.f32.mxu1 %vm10201_vm2, %v10179_v1 }
 0x694   : > { %v6986_v52 = vpop.permute.xlu0 %6985 }
 0x695   : > { %6994 = vst.msk [vmem:[#allocation7 + $0x70] sm:$0xff] %vm6634_vm4, %v6986_v52 }
 0x696   : > { %v7109_v56 = vld [vmem:[#allocation7 + $0x50] sm:$0xff] }
 0x697   : > { %7344 = vmatmul.mubr.f32.gmra.mrb[30].mxu0 %v7109_v56  ;;  %v9268_v56 = vld [vmem:[%s10264_s19 + $0x20] sm:$0xff] }
 0x698   : > { %v7010_v57 = vpop.permute.xlu0 %7009  ;;  %9266 = vmatprep.mubr.msk.f32.mxu0 %vm6461_vm0, %v7114_v50 }
 0x699   : > { %7018 = vst.msk [vmem:[#allocation7 + $0x70] sm:$0xff] %vm6659_vm6, %v7010_v57  ;;  %v9269_v57 = vld [vmem:[%s10264_s19 + $0x28] sm:$0xff] }
 0x69a   : > { %7042 = vst.msk [vmem:[#allocation7 + $0x70] sm:$0xff] %vm6684_vm1, %v7034_v5  ;;  %v9672_v9 = vpack.c.bf16 %v9269_v57, %v9268_v56  ;;  %vm8034_vm1 = vcmask 49152  }
 0x69c   : > { %v7058_v22 = vpop.permute.xlu0 %7057 }
 0x69d   : > { %7066 = vst.msk [vmem:[#allocation7 + $0x70] sm:$0xff] %vm6709_vm7, %v7058_v22  ;;  %vm8162_vm7 = vcmask 24600  }
 0x69e   : > { %7090 = vst.msk [vmem:[#allocation7 + $0x70] sm:$0xff] %vm6734_vm14, %v7082_v29  ;;  %vm8172_vm14 = vcmask 32800  }
 0x6a5   : > { %v7113_v28 = vld [vmem:[#allocation7 + $0x70] sm:$0xff] }
 0x6a6   : > { %7349 = vmatmul.mubr.f32.gmra.mrb[32].mxu0 %v7113_v28 }
 0x6a7   : > { %9562 = vmatprep.mubr.msk.f32.mxu0 %vm10201_vm2, %v10179_v1 }
 0x6de   : > { %v9380_v4 = vpop.f32.mrb[20].mxu1 }
 0x6df   : > { %v9381_v26 = vpop.f32.mrb[21].mxu1 }
 0x6e0   : > { %v9382_v17 = vadd.f32 %v9381_v26, %v9380_v4  ;;  %v9271_v4 = vld [vmem:[%s10264_s19 + $0x38] sm:$0xff] }
 0x6e2   : > { %v7251_v35 = vadd.f32 %v9382_v17, %v12864_v11 }
 0x711   : > { %v9383_v30 = vpop.f32.mrb[22].mxu1 }
 0x712   : > { %v9384_v32 = vpop.f32.mrb[23].mxu1 }
 0x713   : > { %v9385_v42 = vadd.f32 %v9384_v32, %v9383_v30  ;;  %v9675_v32 = vpack.c.bf16 %v9271_v4, %v9270_v0 }
 0x715   : > { %v7256_v15 = vadd.f32 %v9385_v42, %v12864_v11  ;;  %v9273_v42 = vld [vmem:[%s10264_s19 + $0x40] sm:$0xff] }
 0x719   : > { %v7335_v21 = vpop.f32.mrb[26].mxu0 }
 0x71a   : > { %v7336_v20 = vadd.f32 %v7335_v21, %v7251_v35  ;;  %v7337_v8 = vpop.f32.mrb[27].mxu0  ;;  %v9274_v35 = vld [vmem:[%s10264_s19 + $0x48] sm:$0xff] }
 0x71b   : > { %v9678_v21 = vpack.c.bf16 %v9274_v35, %v9273_v42  ;;  %v9681_v8 = vpack.c.bf16 %v9276_v10, %v9275_v43  ;;  %v9280_v42 = vld [vmem:[%s10264_s19 + $0x70] sm:$0xff]  ;;  %v9281_v35 = vld [vmem:[%s10264_s19 + $0x78] sm:$0xff] }
 0x71c   : > { %v7354_v19 = vmax.f32 %v7336_v20, 0.0 }
 0x71e   : > { %v7368_v53 = vrot.slane %v7354_v19, %v11048_v59 }
 0x720   : > { %v7369_v12 = vcombine.high %v7368_v53, %v7368_v53  ;;  %v7403_v47 = vsel %vm7402_vm3, %v7368_v53, -inf }
 0x721   : > { %v7404_v6 = vrot.slane %v7403_v47, 4 }
 0x722   : > { %v7410_v48 = vsel %vm7402_vm3, %v7369_v12, -inf }
 0x723   : > { %v7411_v13 = vrot.slane %v7410_v48, 4  ;;  %v7405_v36 = vmax.f32 %v7403_v47, %v7404_v6 }
 0x725   : > { %v7412_v16 = vmax.f32 %v7410_v48, %v7411_v13  ;;  %v7406_v60 = vrot.slane %v7405_v36, 2 }
 0x727   : > { %v7413_v41 = vrot.slane %v7412_v16, 2  ;;  %v7407_v45 = vmax.f32 %v7405_v36, %v7406_v60 }
 0x729   : > { %v7414_v14 = vmax.f32 %v7412_v16, %v7413_v41  ;;  %v7408_v7 = vrot.slane %v7407_v45, 1 }
 0x72b   : > { %v7415_v63 = vrot.slane %v7414_v14, 1  ;;  %v7409_v52 = vmax.f32 %v7407_v45, %v7408_v7 }
 0x72d   : > { %v7416_v29 = vmax.f32 %v7414_v14, %v7415_v63  ;;  %v7460_v46 = vsel %vm7459_vm13, %v7409_v52, -inf }
 0x72f   : > { %v7463_v26 = vsel %vm7459_vm13, %v7416_v29, -inf }
 0x730   : > { %v7340_v23 = vpop.f32.mrb[28].mxu0 }
 0x731   : > { %v7341_v40 = vadd.f32 %v7340_v23, %v7256_v15  ;;  %v7342_v2 = vpop.f32.mrb[29].mxu0 }
 0x733   : > { %v7355_v27 = vmax.f32 %v7341_v40, 0.0 }
 0x735   : > { %v7376_v24 = vrot.slane %v7355_v27, %v11048_v59 }
 0x737   : > { %v7377_v33 = vcombine.high %v7376_v24, %v7376_v24  ;;  %v7417_v38 = vsel %vm7402_vm3, %v7376_v24, -inf }
 0x738   : > { %v7418_v58 = vrot.slane %v7417_v38, 4 }
 0x739   : > { %v7424_v25 = vsel %vm7402_vm3, %v7377_v33, -inf }
 0x73a   : > { %v7419_v54 = vmax.f32 %v7417_v38, %v7418_v58  ;;  %v7425_v3 = vrot.slane %v7424_v25, 4 }
 0x73c   : > { %v7420_v34 = vrot.slane %v7419_v54, 2  ;;  %v7426_v55 = vmax.f32 %v7424_v25, %v7425_v3 }
 0x73e   : > { %v7421_v61 = vmax.f32 %v7419_v54, %v7420_v34  ;;  %v7427_v31 = vrot.slane %v7426_v55, 2 }
 0x740   : > { %v7422_v5 = vrot.slane %v7421_v61, 1  ;;  %v7428_v50 = vmax.f32 %v7426_v55, %v7427_v31 }
 0x742   : > { %v7423_v22 = vmax.f32 %v7421_v61, %v7422_v5  ;;  %v7429_v28 = vrot.slane %v7428_v50, 1 }
 0x744   : > { %v7430_v37 = vmax.f32 %v7428_v50, %v7429_v28  ;;  %v7461_v62 = vsel %vm7459_vm13, %v7423_v22, -inf }
 0x745   : > { %v7462_v39 = vmax.f32 %v7460_v46, %v7461_v62  ;;  %v9279_v62 = vld [vmem:[%s10264_s19 + $0x68] sm:$0xff] }
 0x746   : > { %v7464_v17 = vsel %vm7459_vm13, %v7430_v37, -inf  ;;  %v9278_v37 = vld [vmem:[%s10264_s19 + $0x60] sm:$0xff] }
 0x747   : > { %9523 = vmatmul.mubr.msk.f32.vlgmr.msra.gmra.mrb[28].mxu1 %vm7459_vm13, %v7462_v39  ;;  %v7465_v30 = vmax.f32 %v7463_v26, %v7464_v17 }
 0x748   : > { %9673 = vmatpush3.bf16.msra.mxu1 %v9672_v9  ;;  %9533 = vmatprep.mubr.msk.f32.mxu1 %vm10201_vm2, %v10179_v1 }
 0x749   : > { %9674 = vmatprep.subr.bf16.mxu1 %v10200_v49 }
 0x74c   : > { %9676 = vmatpush3.bf16.msra.mxu1 %v9675_v32 }
 0x74d   : > { %9677 = vmatprep.subr.bf16.mxu1 %v10200_v49 }
 0x74f   : > { %9534 = vmatmul.mubr.msk.f32.vlgmr.msra.gmra.mrb[28].mxu1 %vm7459_vm13, %v7465_v30  ;;  %v9684_v30 = vpack.c.bf16 %v9279_v62, %v9278_v37 }
 0x750   : > { %v9386_v20 = vpop.f32.mrb[24].mxu1  ;;  %9679 = vmatpush3.bf16.msra.mxu1 %v9678_v21  ;;  %9544 = vmatprep.mubr.msk.f32.mxu1 %vm10201_vm2, %v10179_v1 }
 0x751   : > { %v9387_v18 = vpop.f32.mrb[25].mxu1  ;;  %9680 = vmatprep.subr.bf16.mxu1 %v10200_v49 }
 0x752   : > { %v9388_v19 = vadd.f32 %v9387_v18, %v9386_v20  ;;  %v9687_v20 = vpack.c.bf16 %v9281_v35, %v9280_v42  ;;  %v7873_v18 = vld [vmem:[%s10284_s12 + $0x8] sm:$0xff] }
 0x754   : > { %9682 = vmatpush3.bf16.msra.mxu1 %v9681_v8  ;;  %v7261_v48 = vadd.f32 %v9388_v19, %v12864_v11  ;;  %v7872_v8 = vld [vmem:[%s10284_s12] sm:$0xff] }
 0x755   : > { %9683 = vmatprep.subr.bf16.mxu1 %v10200_v49  ;;  %v9693_v19 = vpack.c.bf16 %v7873_v18, %v7872_v8 }
 0x765   : > { %v9389_v53 = vpop.f32.mrb[26].mxu1 }
 0x766   : > { %v9390_v12 = vpop.f32.mrb[27].mxu1 }
 0x767   : > { %v9391_v47 = vadd.f32 %v9390_v12, %v9389_v53  ;;  %v7472_v53 = vld [vmem:[%s10269_s24] sm:$0x1] }
 0x769   : > { %v7266_v24 = vadd.f32 %v9391_v47, %v12864_v11 }
 0x76a   : > { %v7345_v6 = vpop.f32.mrb[30].mxu0 }
 0x76b   : > { %v7346_v13 = vadd.f32 %v7345_v6, %v7261_v48  ;;  %v7347_v15 = vpop.f32.mrb[31].mxu0  ;;  %v7790_v6 = vld [vmem:[%s10279_s6] sm:$0x1] }
 0x76d   : > { %v7356_v36 = vmax.f32 %v7346_v13, 0.0 }
 0x76f   : > { %v7384_v23 = vrot.slane %v7356_v36, %v11048_v59 }
 0x771   : > { %v7385_v40 = vcombine.high %v7384_v23, %v7384_v23  ;;  %v7431_v2 = vsel %vm7402_vm3, %v7384_v23, -inf }
 0x772   : > { %v7432_v27 = vrot.slane %v7431_v2, 4 }
 0x773   : > { %v7438_v16 = vsel %vm7402_vm3, %v7385_v40, -inf }
 0x774   : > { %v7439_v60 = vrot.slane %v7438_v16, 4  ;;  %v7433_v41 = vmax.f32 %v7431_v2, %v7432_v27 }
 0x776   : > { %v7440_v58 = vmax.f32 %v7438_v16, %v7439_v60  ;;  %v7434_v14 = vrot.slane %v7433_v41, 2  ;;  %v7954_v16 = vld [vmem:[%s10292_s27] sm:$0x7] }
 0x778   : > { %v7441_v3 = vrot.slane %v7440_v58, 2  ;;  %v7435_v55 = vmax.f32 %v7433_v41, %v7434_v14 }
 0x779   : > { %v7350_v33 = vpop.f32.mrb[32].mxu0 }
 0x77a   : > { %v7351_v38 = vadd.f32 %v7350_v33, %v7266_v24  ;;  %v7352_v45 = vpop.f32.mrb[33].mxu0  ;;  %v7442_v11 = vmax.f32 %v7440_v58, %v7441_v3  ;;  %v7436_v5 = vrot.slane %v7435_v55, 1 }
 0x77b   : > { %v7874_v45 = vld [vmem:[#allocation8] sm:$0x1] }
 0x77c   : > { %v7357_v25 = vmax.f32 %v7351_v38, 0.0  ;;  %v7443_v57 = vrot.slane %v7442_v11, 1  ;;  %v7437_v22 = vmax.f32 %v7435_v55, %v7436_v5 }
 0x77e   : > { %v7392_v54 = vrot.slane %v7357_v25, %v11048_v59  ;;  %v7444_v9 = vmax.f32 %v7442_v11, %v7443_v57  ;;  %v7466_v4 = vsel %vm7459_vm13, %v7437_v22, -inf  ;;  %v8047_v25 = vld [vmem:[%s961_s1] sm:$0x1]  ;;  %s13295_s1 = sld [smem:[#allocation16_spill]] }
 0x77f   : > { %v8059_v14 = vmul.f32 %v8047_v25, %v8047_v25 }
 0x780   : > { %v7393_v7 = vcombine.high %v7392_v54, %v7392_v54  ;;  %v7445_v34 = vsel %vm7402_vm3, %v7392_v54, -inf  ;;  %v7469_v21 = vsel %vm7459_vm13, %v7444_v9, -inf }
 0x781   : > { %v7446_v63 = vrot.slane %v7445_v34, 4  ;;  %v8061_v3 = vsel %vm8060_vm5, %v8059_v14, 0.0 }
 0x782   : > { %v7452_v61 = vsel %vm7402_vm3, %v7393_v7, -inf }
 0x783   : > { %v7447_v31 = vmax.f32 %v7445_v34, %v7446_v63  ;;  %v7453_v52 = vrot.slane %v7452_v61, 4 }
 0x785   : > { %v7448_v50 = vrot.slane %v7447_v31, 2  ;;  %v7454_v56 = vmax.f32 %v7452_v61, %v7453_v52 }
 0x787   : > { %v7449_v29 = vmax.f32 %v7447_v31, %v7448_v50  ;;  %v7455_v59 = vrot.slane %v7454_v56, 2  ;;  %v8046_v50 = vld [vmem:[%s958_s9] sm:$0x1]  ;;  %s13297_s9 = smov 7  }
 0x789   : > { %v7450_v28 = vrot.slane %v7449_v29, 1  ;;  %v7456_v46 = vmax.f32 %v7454_v56, %v7455_v59  ;;  %v8048_v56 = vsub.f32 1.0, %v8046_v50 }
 0x78b   : > { %v7451_v39 = vmax.f32 %v7449_v29, %v7450_v28  ;;  %v7457_v0 = vrot.slane %v7456_v46, 1 }
 0x78d   : > { %v7458_v26 = vmax.f32 %v7456_v46, %v7457_v0  ;;  %v7467_v17 = vsel %vm7459_vm13, %v7451_v39, -inf }
 0x78e   : > { %v7468_v32 = vmax.f32 %v7466_v4, %v7467_v17 }
 0x78f   : > { %v7470_v43 = vsel %vm7459_vm13, %v7458_v26, -inf }
 0x790   : > { %9545 = vmatmul.mubr.msk.f32.vlgmr.msra.gmra.mrb[28].mxu1 %vm7459_vm13, %v7468_v32  ;;  %v7471_v10 = vmax.f32 %v7469_v21, %v7470_v43 }
 0x791   : > { %9685 = vmatpush3.bf16.msra.mxu1 %v9684_v30  ;;  %9555 = vmatprep.mubr.msk.f32.mxu1 %vm10201_vm2, %v10179_v1  ;;  %v10204_v30 = vmov 0  }
 0x792   : > { %9686 = vmatprep.subr.bf16.mxu1 %v10200_v49  ;;  %10076 = vset.pattern.permute.xlu0 %v10204_v30 }
 0x793   : > { %10077 = vset.pattern.permute.xlu1 %v10204_v30 }
 0x795   : > { %9688 = vmatpush3.bf16.msra.mxu1 %v9687_v20 }
 0x796   : > { %9692 = vmatprep.subr.bf16.mxu1 %v10200_v49 }
 0x798   : > { %9556 = vmatmul.mubr.msk.f32.vlgmr.msra.gmra.mrb[28].mxu1 %vm7459_vm13, %v7471_v10 }
 0x799   : > { %9569 = vmatprep.mubr.msk.f32.mxu1 %vm10201_vm2, %v10179_v1  ;;  %9694 = vmatpush3.bf16.msra.mxu1 %v9693_v19 }
 0x79a   : > { %9695 = vmatprep.subr.bf16.mxu1 %v10200_v49 }
 0x86b   : > { %v7783_v12 = vpop.f32.mrb[28].mxu1 }
 0x86c   : > { %v9988_v47 = vadd.f32 %v7783_v12, %v7472_v53  ;;  %v9557_v48 = vpop.f32.mrb[29].mxu1 }
 0x86e   : > { %9563 = vmatmul.mubr.msk.f32.vlgmr.msra.gmra.mrb[34].mxu0 %vm6461_vm0, %v9988_v47  ;;  %9570 = vmatmul.mubr.msk.f32.vlgmr.msra.gmra.mrb[30].mxu1 %vm6461_vm0, %v9988_v47 }
 0x86f   : > { %9574 = vmatprep.mubr.msk.f32.mxu0 %vm10201_vm2, %v10179_v1  ;;  %9581 = vmatprep.mubr.msk.f32.mxu1 %vm10201_vm2, %v10179_v1 }
 0x870   : > { %9573 = vmatpush3.msk.msra.mxu0 %vm7960_vm11, %v7954_v16 }
 0x941   : > { %v7860_v13 = vpop.f32.mrb[34].mxu0  ;;  %v7941_v49 = vpop.f32.mrb[30].mxu1 }
 0x942   : > { %v7861_v15 = vadd.f32 %v7860_v13, %v7790_v6  ;;  %v9564_v36 = vpop.f32.mrb[35].mxu0  ;;  %v9571_v23 = vpop.f32.mrb[31].mxu1  ;;  %v7942_v58 = vadd.f32 %v7941_v49, %v7874_v45 }
 0x943   : > { %v10205_v23 = vmov 1966171168  }
 0x944   : > { %v7864_v40 = vmul.f32 %v7861_v15, %v7861_v15  ;;  %v7946_v54 = vand.u32 2147483647, %v7942_v58  ;;  %v7945_v11 = vmax.f32 %v7942_v58, 0.0 }
 0x946   : > { %v7866_v2 = vsel %vm7865_vm10, %v7864_v40, 0.0  ;;  %v8111_v40 = vunpack.c.l.s4 %v10205_v23 }
 0x947   : > { %7867 = vadd.xlane.f32.xlu0 %v7866_v2 }
 0x948   : > { %v8112_v2 = vunpack.c.0.s8 %v8111_v40 }
 0x94a   : > { %v12963_v16 = vsub.s32 %v8112_v2, %v11039_v51 }
 0x9d4   : > { %v7868_v27 = vpop.xlane.xlu0 %7867 }
 0x9d5   : > { %v7869_v60 = vmax.f32 %v7868_v27, 1e-24 }
 0x9d7   : > { %10078 = vrsqrt.f32 %v7869_v60 }
 0x9e1   : > { %v10079_v24 = vpop.eup %10078 }
 0x9e2   : > { %v7871_v41 = vmul.f32 %v10079_v24, %v7861_v15 }
 0x9e4   : > { %9575 = vmatmul.mubr.msk.f32.vlgmr.msra.gmra.mrb[36].mxu0 %vm7956_vm12, %v7871_v41  ;;  %v12942_v33 = vsub.f32 0.0, %v7871_v41  ;;  %8157 = vst.msk [vmem:[%s12938_s16] sm:$0x1] %vm7865_vm10, %v7871_v41  ;;  %v8083_v22 = vsub.f32 1.0, %v7871_v41 }
 0x9e5   : > { %8439 = vmatprep.mubr.f32.mxu0 %v10179_v1  ;;  %v7947_v1 = vsub.f32 0.0, %v7946_v54 }
 0x9e6   : > { %v8086_v38 = vmul.f32 %v12942_v33, %v12942_v33  ;;  %v8085_v46 = vmul.f32 %v8083_v22, %v8083_v22 }
 0x9e7   : > { %v7948_v7 = vmul.f32 1.442695, %v7947_v1 }
 0x9e8   : > { %8088 = vrot.lane.b32.xlu1 %v8086_v38, %s10202_s26 }
 0x9e9   : > { %10080 = vpow2.f32 %v7948_v7 }
 0x9ec   : > { %8092 = vrot.lane.b32.xlu1 %v8086_v38, %s10203_s20 }
 0x9f3   : > { %v10081_v34 = vpop.eup %10080 }
 0x9f4   : > { %v7950_v55 = vadd.f32 1.0, %v10081_v34 }
 0x9f6   : > { %10082 = vlog2.f32 %v7950_v55 }
 0xa00   : > { %v10083_v63 = vpop.eup %10082 }
 0xa01   : > { %v7952_v61 = vmul.f32 0.6931472, %v10083_v63 }
 0xa03   : > { %v12953_v31 = vadd.f32 %v7952_v61, %v7945_v11 }
 0xa05   : > { %v8049_v52 = vmul.f32 -2.0, %v12953_v31 }
 0xa07   : > { %v8050_v5 = vmul.f32 1.442695, %v8049_v52 }
 0xa09   : > { %10084 = vpow2.f32 %v8050_v5 }
 0xa10   : > { %8062 = vadd.xlane.f32.xlu1 %v8061_v3 }
 0xa13   : > { %v10085_v57 = vpop.eup %10084 }
 0xa14   : > { %v8052_v29 = vmul.f32 %v10085_v57, %v8048_v56 }
 0xa16   : > { %v8053_v59 = vadd.f32 %v8052_v29, %v8046_v50  ;;  %v12980_v50 = vsub.s32 0, %v11039_v51 }
 0xa18   : > { %10086 = vlog2.f32 %v8053_v59 }
 0xa19   : > { %10088 = vrcp.f32 %v12953_v31 }
 0xa22   : > { %v10087_v0 = vpop.eup %10086 }
 0xa23   : > { %v8055_v4 = vmul.f32 0.6931472, %v10087_v0  ;;  %v10089_v26 = vpop.eup %10088 }
 0xa25   : > { %v8057_v17 = vmul.f32 %v10089_v26, %v8055_v4 }
 0xa27   : > { %v8058_v42 = vadd.f32 1.0, %v8057_v17 }
 0xa29   : > { %v8067_v43 = vmul.f32 %v8058_v42, %v8058_v42 }
 0xa2b   : > { %v8068_v10 = vsub.f32 1.0, %v8067_v43  ;;  %v8331_v43 = vld [vmem:[%s13292_s18] sm:$0xff] }
 0xa2d   : > { %v8069_v20 = vmax.f32 %v8068_v10, 0.0 }
 0xa2f   : > { %vm8072_vm4 = vcmp.eq.f32.partialorder %v8069_v20, inf  ;;  %v8075_v48 = vand.u32 2147483648, %v8069_v20  ;;  %vm8074_vm6 = vcmp.eq.f32.partialorder %v8069_v20, 0.0 }
 0xa5a   : > { %v8089_v28 = vpop.permute.xlu1 %8088 }
 0xa5b   : > { %v8091_v37 = vadd.f32 %v8089_v28, %v8085_v46  ;;  %v8254_v46 = vld [vmem:[%s10312_s17] sm:$0xff] }
 0xa5e   : > { %v8093_v62 = vpop.permute.xlu1 %8092 }
 0xa5f   : > { %v8095_v9 = vadd.f32 %v8093_v62, %v8091_v37  ;;  %v8255_v37 = vld [vmem:[%s10312_s17 + $0x8] sm:$0xff] }
 0xa60   : > { %v9696_v62 = vpack.c.bf16 %v8255_v37, %v8254_v46 }
 0xa61   : > { %v8096_v39 = vmax.f32 %v8095_v9, 1e-16 }
 0xa62   : > { %9697 = vmatpush3.bf16.msra.mxu1 %v9696_v62 }
 0xa63   : > { %10090 = vrsqrt.f32 %v8096_v39 }
 0xa64   : > { %10092 = vrsqrt.f32 %v8069_v20 }
 0xa6d   : > { %v10091_v32 = vpop.eup %10090 }
 0xa6e   : > { %8104 = vrot.lane.b32.xlu1 %v10091_v32, %s10180_s2  ;;  %8100 = vrot.lane.b32.xlu0 %v10091_v32, %s10181_s0  ;;  %v8098_v35 = vmul.f32 %v10091_v32, %v8083_v22  ;;  %v10093_v19 = vpop.eup %10092  ;;  %s13289_s2 = sld [smem:[#allocation12_spill]]  ;;  %s13290_s0 = sld [smem:[#allocation15_spill]] }
 0xa6f   : > { %v8071_v53 = vmul.f32 %v10093_v19, %v8069_v20 }
 0xa70   : > { %v8108_v21 = vmul.f32 %v8098_v35, %v8058_v42 }
 0xa71   : > { %v8073_v12 = vsel %vm8072_vm4, %v8069_v20, %v8071_v53  ;;  %v8333_v20 = vld [vmem:[%s13292_s18 + $0x10] sm:$0xff] }
 0xa72   : > { %v8076_v13 = vsel %vm8074_vm6, %v8075_v48, %v8073_v12  ;;  %v9700_v19 = vpack.c.bf16 %v8333_v20, %v8331_v43  ;;  %v8335_v12 = vld [vmem:[%s13292_s18 + $0x20] sm:$0xff]  ;;  %v8356_v43 = vld [vmem:[%s13292_s18 + $0xc8] sm:$0xff] }
 0xa74   : > { %s955_s23 = scalar_lea.vmem %s13289_s2, %s13303_s10  ;;  %v7955_v54 = vld [vmem:[%s13290_s0] sm:$0x1]  ;;  %s13298_s2 = sld [smem:[#allocation21_spill]] }
 0xa75   : > { %v8201_v14 = vld [vmem:[%s955_s23] sm:$0x1]  ;;  %s13299_s0 = sld [smem:[#allocation18_spill]]  ;;  %s13301_s23 = sld [smem:[#allocation22_spill]] }
 0xa9d   : > { %v8063_v8 = vpop.xlane.xlu1 %8062 }
 0xa9e   : > { %v8064_v18 = vmax.f32 %v8063_v8, 1e-24  ;;  %v8336_v8 = vld [vmem:[%s13292_s18 + $0x28] sm:$0xff] }
 0xaa0   : > { %10094 = vrsqrt.f32 %v8064_v18  ;;  %v8338_v18 = vld [vmem:[%s13292_s18 + $0x38] sm:$0xff] }
 0xaa1   : > { %v9702_v53 = vpack.c.bf16 %v8338_v18, %v8336_v8 }
 0xaaa   : > { %v10095_v47 = vpop.eup %10094 }
 0xaab   : > { %v8066_v6 = vmul.f32 %v10095_v47, %v8047_v25  ;;  %v8337_v47 = vld [vmem:[%s13292_s18 + $0x30] sm:$0xff] }
 0xaac   : > { %v9704_v48 = vpack.c.bf16 %v8337_v47, %v8335_v12  ;;  %v8360_v47 = vld [vmem:[%s13292_s18 + $0xe8] sm:$0xff] }
 0xaad   : > { %8079 = vrot.lane.b32.xlu0 %v8066_v6, %s10202_s26  ;;  %v8077_v49 = vmul.f32 %v8076_v13, %v8066_v6  ;;  %v8200_v6 = vld [vmem:[%s13295_s1] sm:$0xf] }
 0xab7   : > { %v8030_v15 = vpop.f32.mrb[36].mxu0 }
 0xab8   : > { %v9576_v36 = vpop.f32.mrb[37].mxu0  ;;  %v8031_v3 = vadd.f32 %v8030_v15, %v7955_v54  ;;  %v8251_v54 = vld [vmem:[%s13296_s13] sm:$0x1] }
 0xae0   : > { %v8105_v27 = vpop.permute.xlu1 %8104  ;;  %v8101_v60 = vpop.permute.xlu0 %8100 }
 0xae1   : > { %v8107_v24 = vmul.f32 %v8105_v27, %v12942_v33  ;;  %v8103_v41 = vmul.f32 %v8101_v60, %v12942_v33  ;;  %v8035_v33 = vsel %vm8034_vm1, %v8031_v3, -inf }
 0xae3   : > { %v8116_v38 = vrot.slane %v8103_v41, %v12963_v16  ;;  %v8136_v45 = vrot.slane %v8107_v24, %v12963_v16 }
 0xae5   : > { %v8123_v58 = vrot.slane %v8116_v38, %v12963_v16  ;;  %v8143_v25 = vrot.slane %v8136_v45, %v12963_v16 }
 0xae7   : > { %8124 = vrot.lane.b32.xlu0 %v8123_v58, %s10202_s26  ;;  %s13293_s26 = smov 4  }
 0xaeb   : > { %8144 = vrot.lane.b32.xlu0 %v8143_v25, %s10203_s20  ;;  %s13294_s20 = smov 6  }
 0xaef   : > { %8204 = vperm.xlu0 %10076, %v8201_v14  }
 0xb0e   : > { %8036 = vmax.xlane.f32.xlu0 %v8035_v33 }
 0xb1f   : > { %v8080_v1 = vpop.permute.xlu0 %8079 }
 0xb20   : > { %v8082_v55 = vmul.f32 %v8080_v1, %v8076_v13 }
 0xb24   : > { %8159 = vrot.lane.b32.xlu0 %v12953_v31, %s10182_s11  ;;  %s13291_s11 = smov 5  }
 0xb59   : > { %v8125_v7 = vpop.permute.xlu0 %8124 }
 0xb5a   : > { %v8127_v34 = vmul.f32 %v8125_v7, %v8077_v49 }
 0xb5c   : > { %v8128_v63 = vadd.f32 %v8127_v34, %v8108_v21  ;;  %v8334_v21 = vld [vmem:[%s13292_s18 + $0x18] sm:$0xff]  ;;  %v8340_v34 = vld [vmem:[%s13292_s18 + $0x48] sm:$0xff] }
 0xb5d   : > { %v8145_v61 = vpop.permute.xlu0 %8144 }
 0xb5e   : > { %v8147_v11 = vmul.f32 %v8145_v61, %v8082_v55 }
 0xb60   : > { %v8148_v52 = vadd.f32 %v8147_v11, %v8128_v63  ;;  %v8339_v63 = vld [vmem:[%s13292_s18 + $0x40] sm:$0xff]  ;;  %v8341_v11 = vld [vmem:[%s13292_s18 + $0x50] sm:$0xff] }
 0xb62   : > { %v8149_v5 = vmul.f32 2.0, %v8148_v52  ;;  %v8344_v52 = vld [vmem:[%s13292_s18 + $0x68] sm:$0xff] }
 0xb64   : > { %v8150_v56 = vmul.f32 %v8149_v5, %v8098_v35  ;;  %v8152_v57 = vmul.f32 %v8149_v5, %v8125_v7  ;;  %v8154_v29 = vmul.f32 %v8149_v5, %v8145_v61  ;;  %v8332_v35 = vld [vmem:[%s13292_s18 + $0x8] sm:$0xff]  ;;  %v8346_v5 = vld [vmem:[%s13292_s18 + $0x78] sm:$0xff] }
 0xb65   : > { %v9698_v10 = vpack.c.bf16 %v8334_v21, %v8332_v35  ;;  %v8353_v35 = vld [vmem:[%s13292_s18 + $0xb0] sm:$0xff] }
 0xb66   : > { %v8155_v59 = vsub.f32 %v8082_v55, %v8154_v29  ;;  %v8151_v22 = vsub.f32 %v8058_v42, %v8150_v56  ;;  %v8153_v31 = vsub.f32 %v8077_v49, %v8152_v57  ;;  %v8342_v55 = vld [vmem:[%s13292_s18 + $0x58] sm:$0xff]  ;;  %v9708_v56 = vpack.c.bf16 %v8341_v11, %v8339_v63  ;;  %v8343_v29 = vld [vmem:[%s13292_s18 + $0x60] sm:$0xff]  ;;  %v8473_v11 = vld [vmem:[%s13298_s2 + $0xc8] sm:$0xff] }
 0xb67   : > { %9699 = vmatprep.subr.bf16.mxu0 %v9698_v10  ;;  %v9706_v61 = vpack.c.bf16 %v8342_v55, %v8340_v34  ;;  %v9710_v57 = vpack.c.bf16 %v8346_v5, %v8344_v52  ;;  %v8358_v10 = vld [vmem:[%s13292_s18 + $0xd8] sm:$0xff]  ;;  %v8464_v63 = vld [vmem:[%s13298_s2 + $0x80] sm:$0xff]  ;;  %v8477_v52 = vld [vmem:[%s13298_s2 + $0xe8] sm:$0xff] }
 0xb68   : > { %8213 = vperm.xlu1 %10077, %v8151_v22   ;;  %v8178_v28 = vrot.slane %v8153_v31, %v12980_v50  ;;  %v8168_v32 = vrot.slane %v8151_v22, %v12980_v50  ;;  %v8188_v42 = vrot.slane %v8155_v59, %v12980_v50  ;;  %9701 = vmatpush1.bf16.msra.mxu0 %v9700_v19  ;;  %v8348_v22 = vld [vmem:[%s13292_s18 + $0x88] sm:$0xff]  ;;  %v8355_v19 = vld [vmem:[%s13292_s18 + $0xc0] sm:$0xff] }
 0xb69   : > { %9703 = vmatprep.subr.bf16.mxu0 %v9702_v53  ;;  %v9722_v18 = vpack.c.bf16 %v8358_v10, %v8356_v43  ;;  %v8357_v53 = vld [vmem:[%s13292_s18 + $0xd0] sm:$0xff]  ;;  %v8500_v43 = vld [vmem:[%s13298_s2 + $0x1a0] sm:$0xff]  ;;  %v8505_v10 = vld [vmem:[%s13298_s2 + $0x1c8] sm:$0xff] }
 0xb6a   : > { %8179 = vrot.lane.b32.xlu0 %v8178_v28, %s13291_s11  ;;  %v8350_v28 = vld [vmem:[%s13292_s18 + $0x98] sm:$0xff]  ;;  %v9724_v12 = vpack.c.bf16 %v8357_v53, %v8355_v19  ;;  %v8504_v19 = vld [vmem:[%s13298_s2 + $0x1c0] sm:$0xff]  ;;  %s9212_s11 = sshll.u32 %s13303_s10, 1 }
 0xb6b   : > { %v9714_v62 = vpack.c.bf16 %v8350_v28, %v8348_v22  ;;  %v8485_v22 = vld [vmem:[%s13298_s2 + $0x128] sm:$0xff]  ;;  %v8508_v53 = vld [vmem:[%s13298_s2 + $0x1e0] sm:$0xff] }
 0xb6c   : > { %8226 = vperm.xlu1 %10077, %v8153_v31   ;;  %9705 = vmatpush1.bf16.msra.mxu0 %v9704_v48  ;;  %v8359_v48 = vld [vmem:[%s13292_s18 + $0xe0] sm:$0xff] }
 0xb6d   : > { %9707 = vmatprep.subr.bf16.mxu0 %v9706_v61  ;;  %v8468_v61 = vld [vmem:[%s13298_s2 + $0xa0] sm:$0xff] }
 0xb6e   : > { %v8205_v9 = vpop.permute.xlu0 %8204  ;;  %v9740_v5 = vpack.c.bf16 %v8468_v61, %v8464_v63  ;;  %v8544_v63 = vld [vmem:[%s13298_s2 + $0x300] sm:$0xff] }
 0xb6f   : > { %v8210_v15 = vrot.slane %v8205_v9, %v12980_v50  ;;  %v8347_v9 = vld [vmem:[%s13292_s18 + $0x80] sm:$0xff] }
 0xb70   : > { %8239 = vperm.xlu1 %10077, %v8155_v59   ;;  %v8345_v59 = vld [vmem:[%s13292_s18 + $0x70] sm:$0xff]  ;;  %9709 = vmatpush1.bf16.msra.mxu0 %v9708_v56  ;;  %v9742_v56 = vpack.c.bf16 %v8477_v52, %v8473_v11  ;;  %v8548_v61 = vld [vmem:[%s13298_s2 + $0x320] sm:$0xff]  ;;  %v8553_v11 = vld [vmem:[%s13298_s2 + $0x348] sm:$0xff] }
 0xb71   : > { %v8211_v2 = vmul.f32 %v8210_v15, %v8200_v6  ;;  %v9712_v37 = vpack.c.bf16 %v8345_v59, %v8343_v29  ;;  %9711 = vmatprep.subr.bf16.mxu0 %v9710_v57  ;;  %v8449_v15 = vld [vmem:[%s13298_s2 + $0x8] sm:$0xff]  ;;  %v8472_v57 = vld [vmem:[%s13298_s2 + $0xc0] sm:$0xff] }
 0xb72   : > { %v8476_v29 = vld [vmem:[%s13298_s2 + $0xe0] sm:$0xff]  ;;  %v8481_v59 = vld [vmem:[%s13298_s2 + $0x108] sm:$0xff] }
 0xb73   : > { %v9746_v28 = vpack.c.bf16 %v8485_v22, %v8481_v59  ;;  %v8557_v52 = vld [vmem:[%s13298_s2 + $0x368] sm:$0xff] }
 0xb74   : > { %9713 = vmatpush1.bf16.msra.mxu0 %v9712_v37  ;;  %v8484_v37 = vld [vmem:[%s13298_s2 + $0x120] sm:$0xff]  ;;  %v8561_v59 = vld [vmem:[%s13298_s2 + $0x388] sm:$0xff] }
 0xb75   : > { %9715 = vmatprep.subr.bf16.mxu0 %v9714_v62  ;;  %v8489_v62 = vld [vmem:[%s13298_s2 + $0x148] sm:$0xff] }
 0xb76   : > { %v8565_v22 = vld [vmem:[%s13298_s2 + $0x3a8] sm:$0xff] }
 0xb9b   : > { %v8037_v39 = vpop.xlane.xlu0 %8036 }
 0xb9c   : > { %v8038_v0 = vsub.f32 %v8031_v3, %v8037_v39  ;;  %v8349_v39 = vld [vmem:[%s13292_s18 + $0x90] sm:$0xff] }
 0xb9e   : > { %v8039_v4 = vmul.f32 1.442695, %v8038_v0  ;;  %v8352_v0 = vld [vmem:[%s13292_s18 + $0xa8] sm:$0xff] }
 0xb9f   : > { %v8160_v26 = vpop.permute.xlu0 %8159 }
 0xba0   : > { %10096 = vpow2.f32 %v8039_v4  ;;  %8163 = vst.msk [vmem:[%s12938_s16] sm:$0x1] %vm8162_vm7, %v8160_v26  ;;  %v8354_v4 = vld [vmem:[%s13292_s18 + $0xb8] sm:$0xff] }
 0xbaa   : > { %v12987_v17 = vpop.eup %10096 }
 0xbab   : > { %v8041_v30 = vsel %vm8034_vm1, %v12987_v17, 0.0 }
 0xbac   : > { %8042 = vadd.xlane.f32.xlu1 %v8041_v30  ;;  %v9716_v30 = vpack.c.bf16 %v8349_v39, %v8347_v9  ;;  %v8493_v9 = vld [vmem:[%s13298_s2 + $0x168] sm:$0xff] }
 0xbae   : > { %9717 = vmatpush1.bf16.msra.mxu0 %v9716_v30  ;;  %v8497_v30 = vld [vmem:[%s13298_s2 + $0x188] sm:$0xff] }
 0xbbd   : > { %8169 = vrot.lane.b32.xlu1 %v8168_v32, %s13293_s26  ;;  %v9718_v32 = vpack.c.bf16 %v8354_v4, %v8352_v0  ;;  %v9750_v0 = vpack.c.bf16 %v8493_v9, %v8489_v62  ;;  %v8488_v4 = vld [vmem:[%s13298_s2 + $0x140] sm:$0xff]  ;;  %v8569_v9 = vld [vmem:[%s13298_s2 + $0x3c8] sm:$0xff]  ;;  %s968_s26 = scalar_lea.vmem %s10357_s7, %s9212_s11 }
 0xbbf   : > { %9719 = vmatprep.subr.bf16.mxu0 %v9718_v32  ;;  %v8501_v32 = vld [vmem:[%s13298_s2 + $0x1a8] sm:$0xff] }
 0xbc1   : > { %8189 = vrot.lane.b32.xlu1 %v8188_v42, %s13294_s20  ;;  %v8351_v42 = vld [vmem:[%s13292_s18 + $0xa0] sm:$0xff] }
 0xbc2   : > { %v9720_v8 = vpack.c.bf16 %v8353_v35, %v8351_v42  ;;  %v9754_v35 = vpack.c.bf16 %v8501_v32, %v8497_v30  ;;  %v8451_v32 = vld [vmem:[%s13298_s2 + $0x18] sm:$0xff] }
 0xbc4   : > { %9721 = vmatpush1.bf16.msra.mxu0 %v9720_v8 }
 0xbc5   : > { %9723 = vmatprep.subr.bf16.mxu0 %v9722_v18 }
 0xbc8   : > { %9725 = vmatpush1.bf16.msra.mxu0 %v9724_v12  ;;  %v8513_v12 = vld [vmem:[%s13298_s2 + $0x208] sm:$0xff] }
 0xbdc   : > { %v8180_v46 = vpop.permute.xlu0 %8179 }
 0xbe7   : > { %v8214_v13 = vpop.permute.xlu1 %8213 }
 0xbe8   : > { %v8219_v49 = vrot.slane %v8214_v13, %v12980_v50  ;;  %v8361_v13 = vld [vmem:[%s13292_s18 + $0xf0] sm:$0xff] }
 0xbea   : > { %v8220_v36 = vmul.f32 %v8219_v49, %v8200_v6  ;;  %v9728_v49 = vpack.c.bf16 %v8361_v13, %v8359_v48  ;;  %v8516_v13 = vld [vmem:[%s13298_s2 + $0x220] sm:$0xff] }
 0xbeb   : > { %v8227_v23 = vpop.permute.xlu1 %8226 }
 0xbec   : > { %v8232_v40 = vrot.slane %v8227_v23, %v12980_v50  ;;  %v8222_v27 = vrot.slane %v8220_v36, 1  ;;  %v8453_v36 = vld [vmem:[%s13298_s2 + $0x28] sm:$0xff] }
 0xbed   : > { %v9730_v23 = vpack.c.bf16 %v8453_v36, %v8449_v15  ;;  %v8525_v15 = vld [vmem:[%s13298_s2 + $0x268] sm:$0xff] }
 0xbee   : > { %v8233_v60 = vmul.f32 %v8232_v40, %v8200_v6  ;;  %v8224_v45 = vadd.f32 %v8222_v27, %v8211_v2  ;;  %v8256_v2 = vld [vmem:[%s13299_s0] sm:$0x1] }
 0xbef   : > { %v8240_v24 = vpop.permute.xlu1 %8239  ;;  %v8448_v27 = vld [vmem:[%s13298_s2] sm:$0xff] }
 0xbf0   : > { %v8235_v41 = vrot.slane %v8233_v60, 2  ;;  %v8245_v38 = vrot.slane %v8240_v24, %v12980_v50  ;;  %v8452_v60 = vld [vmem:[%s13298_s2 + $0x20] sm:$0xff] }
 0xbf2   : > { %v8246_v58 = vmul.f32 %v8245_v38, %v8200_v6  ;;  %v8237_v25 = vadd.f32 %v8235_v41, %v8224_v45  ;;  %v8457_v41 = vld [vmem:[%s13298_s2 + $0x48] sm:$0xff] }
 0xbf3   : > { %v8461_v38 = vld [vmem:[%s13298_s2 + $0x68] sm:$0xff] }
 0xbf4   : > { %v8248_v14 = vrot.slane %v8246_v58, 3 }
 0xbf6   : > { %v8250_v3 = vadd.f32 %v8248_v14, %v8237_v25  ;;  %v9732_v25 = vpack.c.bf16 %v8452_v60, %v8448_v27  ;;  %v8529_v27 = vld [vmem:[%s13298_s2 + $0x288] sm:$0xff] }
 0xbf7   : > { %v8533_v60 = vld [vmem:[%s13298_s2 + $0x2a8] sm:$0xff] }
 0xbf8   : > { %v8252_v33 = vadd.f32 %v8251_v54, %v8250_v3  ;;  %v9734_v54 = vpack.c.bf16 %v8461_v38, %v8457_v41  ;;  %v8456_v3 = vld [vmem:[%s13298_s2 + $0x40] sm:$0xff]  ;;  %v9770_v41 = vpack.c.bf16 %v8533_v60, %v8529_v27  ;;  %v8756_v60 = vld [vmem:[#allocation9 + $0x60] sm:$0xff] }
 0xbf9   : > { %v8528_v38 = vld [vmem:[%s13298_s2 + $0x280] sm:$0xff] }
 0xbfa   : > { %v8253_v1 = vmax.f32 %v8252_v33, 0.0  ;;  %v8460_v33 = vld [vmem:[%s13298_s2 + $0x60] sm:$0xff] }
 0xbfb   : > { %v9736_v34 = vpack.c.bf16 %v8460_v33, %v8456_v3  ;;  %v8536_v3 = vld [vmem:[%s13298_s2 + $0x2c0] sm:$0xff] }
 0xbfc   : > { %9582 = vmatmul.mubr.msk.f32.vlgmr.msra.gmra.mrb[32].mxu1 %vm6461_vm0, %v8253_v1  ;;  %vm8192_vm0 = vcmask 49200   ;;  %v8465_v1 = vld [vmem:[%s13298_s2 + $0x88] sm:$0xff]  ;;  %v8540_v33 = vld [vmem:[%s13298_s2 + $0x2e0] sm:$0xff] }
 0xc39   : > { %v8043_v7 = vpop.xlane.xlu1 %8042 }
 0xc3a   : > { %10098 = vrcp.f32 %v8043_v7  ;;  %v8469_v7 = vld [vmem:[%s13298_s2 + $0xa8] sm:$0xff] }
 0xc3b   : > { %v9738_v55 = vpack.c.bf16 %v8469_v7, %v8465_v1  ;;  %v8545_v1 = vld [vmem:[%s13298_s2 + $0x308] sm:$0xff] }
 0xc3c   : > { %v8549_v7 = vld [vmem:[%s13298_s2 + $0x328] sm:$0xff] }
 0xc3d   : > { %v8170_v31 = vpop.permute.xlu1 %8169 }
 0xc3e   : > { %8173 = vst.msk [vmem:[%s12938_s16] sm:$0x1] %vm8172_vm14, %v8170_v31  ;;  %v9744_v31 = vpack.c.bf16 %v8476_v29, %v8472_v57  ;;  %v8552_v57 = vld [vmem:[%s13298_s2 + $0x340] sm:$0xff] }
 0xc3f   : > { %8183 = vst.msk [vmem:[%s12938_s16] sm:$0x1] %vm8182_vm8, %v8180_v46  ;;  %v8480_v46 = vld [vmem:[%s13298_s2 + $0x100] sm:$0xff] }
 0xc40   : > { %v9748_v39 = vpack.c.bf16 %v8484_v37, %v8480_v46  ;;  %v8556_v29 = vld [vmem:[%s13298_s2 + $0x360] sm:$0xff] }
 0xc41   : > { %v8190_v26 = vpop.permute.xlu1 %8189  ;;  %v8560_v46 = vld [vmem:[%s13298_s2 + $0x380] sm:$0xff] }
 0xc42   : > { %8193 = vst.msk [vmem:[%s12938_s16] sm:$0x1] %vm8192_vm0, %v8190_v26  ;;  %v8492_v26 = vld [vmem:[%s13298_s2 + $0x160] sm:$0xff] }
 0xc43   : > { %v9752_v42 = vpack.c.bf16 %v8492_v26, %v8488_v4  ;;  %v8564_v37 = vld [vmem:[%s13298_s2 + $0x3a0] sm:$0xff] }
 0xc44   : > { %v10099_v21 = vpop.eup %10098  ;;  %v9788_v62 = vpack.c.bf16 %v8564_v37, %v8560_v46  ;;  %v8572_v26 = vld [vmem:[%s13298_s2 + $0x3e0] sm:$0xff] }
 0xc45   : > { %v8045_v20 = vmul.f32 %v10099_v21, %v12987_v17  ;;  %v8362_v17 = vld [vmem:[%s13292_s18 + $0xf8] sm:$0xff]  ;;  %v8496_v21 = vld [vmem:[%s13298_s2 + $0x180] sm:$0xff] }
 0xc46   : > { %v9726_v6 = vpack.c.bf16 %v8362_v17, %v8360_v47  ;;  %v9756_v8 = vpack.c.bf16 %v8500_v43, %v8496_v21  ;;  %v8517_v47 = vld [vmem:[%s13298_s2 + $0x228] sm:$0xff]  ;;  %v9760_v17 = vpack.c.bf16 %v8508_v53, %v8504_v19  ;;  %v8745_v21 = vld [vmem:[#allocation9 + $0x8] sm:$0xff] }
 0xc47   : > { %8195 = vrot.lane.b32.xlu0 %v8045_v20, %s13297_s9  ;;  %v8509_v20 = vld [vmem:[%s13298_s2 + $0x1e8] sm:$0xff]  ;;  %v9762_v48 = vpack.c.bf16 %v8517_v47, %v8513_v12 }
 0xc48   : > { %9727 = vmatprep.subr.bf16.mxu0 %v9726_v6  ;;  %v9758_v18 = vpack.c.bf16 %v8509_v20, %v8505_v10  ;;  %v8512_v6 = vld [vmem:[%s13298_s2 + $0x200] sm:$0xff]  ;;  %v8744_v10 = vld [vmem:[#allocation9] sm:$0xff] }
 0xc49   : > { %9729 = vmatpush1.bf16.msra.mxu0 %v9728_v49  ;;  %v8521_v49 = vld [vmem:[%s13298_s2 + $0x248] sm:$0xff]  ;;  %v9764_v36 = vpack.c.bf16 %v8516_v13, %v8512_v6 }
 0xc4a   : > { %9731 = vmatprep.subr.bf16.mxu0 %v9730_v23  ;;  %v9766_v23 = vpack.c.bf16 %v8525_v15, %v8521_v49  ;;  %v8747_v43 = vld [vmem:[#allocation9 + $0x18] sm:$0xff]  ;;  %v8748_v47 = vld [vmem:[#allocation9 + $0x20] sm:$0xff] }
 0xc4b   : > { %v9858_v20 = vpack.c.bf16 %v8747_v43, %v8745_v21  ;;  %v8751_v19 = vld [vmem:[#allocation9 + $0x38] sm:$0xff]  ;;  %v8752_v15 = vld [vmem:[#allocation9 + $0x40] sm:$0xff] }
 0xc4c   : > { %v8755_v6 = vld [vmem:[#allocation9 + $0x58] sm:$0xff] }
 0xc4d   : > { %9859 = vmatprep.subr.bf16.mxu1 %v9858_v20  ;;  %v8779_v46 = vld [vmem:[#allocation9 + $0x118] sm:$0xff]  ;;  %v8784_v20 = vld [vmem:[#allocation9 + $0x140] sm:$0xff] }
 0xc4e   : > { %v8787_v21 = vld [vmem:[#allocation9 + $0x158] sm:$0xff] }
 0xcb9   : > { %v8196_v40 = vpop.permute.xlu0 %8195 }
 0xcba   : > { %8199 = vst.msk [vmem:[%s12938_s16] sm:$0x1] %vm8198_vm9, %v8196_v40  ;;  %v8520_v40 = vld [vmem:[%s13298_s2 + $0x240] sm:$0xff]  ;;  %s13300_s16 = sld [smem:[#allocation20_spill]] }
 0xccf   : > { %v8326_v24 = vpop.f32.mrb[32].mxu1 }
 0xcd0   : > { %v8327_v45 = vadd.f32 %v8326_v24, %v8256_v2  ;;  %v9583_v58 = vpop.f32.mrb[33].mxu1  ;;  %v8524_v2 = vld [vmem:[%s13298_s2 + $0x260] sm:$0xff] }
 0xcd1   : > { %v9768_v24 = vpack.c.bf16 %v8524_v2, %v8520_v40  ;;  %v8537_v58 = vld [vmem:[%s13298_s2 + $0x2c8] sm:$0xff] }
 0xcd2   : > { %v8330_v14 = vmax.f32 %v8327_v45, 0.0  ;;  %v8532_v45 = vld [vmem:[%s13298_s2 + $0x2a0] sm:$0xff] }
 0xcd3   : > { %v8759_v40 = vld [vmem:[#allocation9 + $0x78] sm:$0xff] }
 0xcd4   : > { %8440 = vmatmul.mubr.f32.vlgmr.msra.gmra.mrb[38].mxu0 %v8330_v14  ;;  %v9772_v14 = vpack.c.bf16 %v8532_v45, %v8528_v38  ;;  %v8763_v38 = vld [vmem:[#allocation9 + $0x98] sm:$0xff] }
 0xcd5   : > { %9733 = vmatpush1.bf16.msra.mxu0 %v9732_v25  ;;  %v8541_v25 = vld [vmem:[%s13298_s2 + $0x2e8] sm:$0xff] }
 0xcd6   : > { %9735 = vmatprep.subr.bf16.mxu0 %v9734_v54  ;;  %v9774_v54 = vpack.c.bf16 %v8541_v25, %v8537_v58  ;;  %v8760_v25 = vld [vmem:[#allocation9 + $0x80] sm:$0xff] }
 0xcd9   : > { %9737 = vmatpush1.bf16.msra.mxu0 %v9736_v34  ;;  %v9776_v34 = vpack.c.bf16 %v8540_v33, %v8536_v3  ;;  %v8767_v3 = vld [vmem:[#allocation9 + $0xb8] sm:$0xff] }
 0xcda   : > { %9739 = vmatprep.subr.bf16.mxu0 %v9738_v55  ;;  %v9778_v55 = vpack.c.bf16 %v8549_v7, %v8545_v1  ;;  %v8764_v7 = vld [vmem:[#allocation9 + $0xa0] sm:$0xff] }
 0xcdd   : > { %9741 = vmatpush1.bf16.msra.mxu0 %v9740_v5  ;;  %v9780_v5 = vpack.c.bf16 %v8548_v61, %v8544_v63  ;;  %v8771_v63 = vld [vmem:[#allocation9 + $0xd8] sm:$0xff] }
 0xcde   : > { %9743 = vmatprep.subr.bf16.mxu0 %v9742_v56  ;;  %v9782_v56 = vpack.c.bf16 %v8557_v52, %v8553_v11  ;;  %v8768_v52 = vld [vmem:[#allocation9 + $0xc0] sm:$0xff] }
 0xce1   : > { %9745 = vmatpush1.bf16.msra.mxu0 %v9744_v31  ;;  %v9784_v31 = vpack.c.bf16 %v8556_v29, %v8552_v57  ;;  %v8775_v57 = vld [vmem:[#allocation9 + $0xf8] sm:$0xff] }
 0xce2   : > { %9747 = vmatprep.subr.bf16.mxu0 %v9746_v28  ;;  %v9786_v28 = vpack.c.bf16 %v8565_v22, %v8561_v59  ;;  %v8772_v22 = vld [vmem:[#allocation9 + $0xe0] sm:$0xff] }
 0xce5   : > { %9749 = vmatpush1.bf16.msra.mxu0 %v9748_v39  ;;  %v8573_v39 = vld [vmem:[%s13298_s2 + $0x3e8] sm:$0xff] }
 0xce6   : > { %9751 = vmatprep.subr.bf16.mxu0 %v9750_v0  ;;  %v8568_v0 = vld [vmem:[%s13298_s2 + $0x3c0] sm:$0xff]  ;;  %v9790_v4 = vpack.c.bf16 %v8573_v39, %v8569_v9  ;;  %v8776_v9 = vld [vmem:[#allocation9 + $0x100] sm:$0xff] }
 0xce7   : > { %v9792_v30 = vpack.c.bf16 %v8572_v26, %v8568_v0  ;;  %v8778_v39 = vld [vmem:[#allocation9 + $0x110] sm:$0xff]  ;;  %v8781_v0 = vld [vmem:[#allocation9 + $0x128] sm:$0xff] }
 0xce8   : > { %v9892_v26 = vpack.c.bf16 %v8778_v39, %v8776_v9  ;;  %v8466_v39 = vld [vmem:[%s13298_s2 + $0x90] sm:$0xff] }
 0xce9   : > { %9753 = vmatpush1.bf16.msra.mxu0 %v9752_v42  ;;  %v8455_v42 = vld [vmem:[%s13298_s2 + $0x38] sm:$0xff] }
 0xcea   : > { %9755 = vmatprep.subr.bf16.mxu0 %v9754_v35  ;;  %v9794_v35 = vpack.c.bf16 %v8455_v42, %v8451_v32  ;;  %v8780_v32 = vld [vmem:[#allocation9 + $0x120] sm:$0xff]  ;;  %v8782_v42 = vld [vmem:[#allocation9 + $0x130] sm:$0xff] }
 0xceb   : > { %v9896_v43 = vpack.c.bf16 %v8782_v42, %v8780_v32  ;;  %v8474_v42 = vld [vmem:[%s13298_s2 + $0xd0] sm:$0xff] }
 0xced   : > { %9757 = vmatpush1.bf16.msra.mxu0 %v9756_v8  ;;  %v8746_v8 = vld [vmem:[#allocation9 + $0x10] sm:$0xff] }
 0xcee   : > { %9759 = vmatprep.subr.bf16.mxu0 %v9758_v18  ;;  %v8749_v18 = vld [vmem:[#allocation9 + $0x28] sm:$0xff]  ;;  %v9860_v53 = vpack.c.bf16 %v8746_v8, %v8744_v10  ;;  %v8786_v8 = vld [vmem:[#allocation9 + $0x150] sm:$0xff] }
 0xcef   : > { %v9862_v12 = vpack.c.bf16 %v8751_v19, %v8749_v18  ;;  %v8789_v18 = vld [vmem:[#allocation9 + $0x168] sm:$0xff]  ;;  %v8791_v19 = vld [vmem:[#allocation9 + $0x178] sm:$0xff] }
 0xcf0   : > { %9861 = vmatpush1.bf16.msra.mxu1 %v9860_v53  ;;  %v9900_v53 = vpack.c.bf16 %v8786_v8, %v8784_v20  ;;  %v8482_v8 = vld [vmem:[%s13298_s2 + $0x110] sm:$0xff] }
 0xcf1   : > { %9761 = vmatpush1.bf16.msra.mxu0 %v9760_v17  ;;  %v8750_v17 = vld [vmem:[#allocation9 + $0x30] sm:$0xff]  ;;  %9863 = vmatprep.subr.bf16.mxu1 %v9862_v12  ;;  %v9902_v12 = vpack.c.bf16 %v8791_v19, %v8789_v18  ;;  %v8486_v18 = vld [vmem:[%s13298_s2 + $0x130] sm:$0xff] }
 0xcf2   : > { %9763 = vmatprep.subr.bf16.mxu0 %v9762_v48  ;;  %v8753_v48 = vld [vmem:[#allocation9 + $0x48] sm:$0xff]  ;;  %v9864_v13 = vpack.c.bf16 %v8750_v17, %v8748_v47  ;;  %v8788_v47 = vld [vmem:[#allocation9 + $0x160] sm:$0xff]  ;;  %v8790_v17 = vld [vmem:[#allocation9 + $0x170] sm:$0xff] }
 0xcf3   : > { %v9866_v49 = vpack.c.bf16 %v8755_v6, %v8753_v48  ;;  %v8793_v48 = vld [vmem:[#allocation9 + $0x188] sm:$0xff]  ;;  %v8795_v6 = vld [vmem:[#allocation9 + $0x198] sm:$0xff] }
 0xcf4   : > { %9865 = vmatpush1.bf16.msra.mxu1 %v9864_v13  ;;  %v9904_v13 = vpack.c.bf16 %v8790_v17, %v8788_v47  ;;  %v8491_v19 = vld [vmem:[%s13298_s2 + $0x158] sm:$0xff]  ;;  %v8490_v17 = vld [vmem:[%s13298_s2 + $0x150] sm:$0xff] }
 0xcf5   : > { %9765 = vmatpush1.bf16.msra.mxu0 %v9764_v36  ;;  %v8754_v36 = vld [vmem:[#allocation9 + $0x50] sm:$0xff]  ;;  %9867 = vmatprep.subr.bf16.mxu1 %v9866_v49  ;;  %v9906_v49 = vpack.c.bf16 %v8795_v6, %v8793_v48  ;;  %v8494_v48 = vld [vmem:[%s13298_s2 + $0x170] sm:$0xff] }
 0xcf6   : > { %9767 = vmatprep.subr.bf16.mxu0 %v9766_v23  ;;  %v8757_v23 = vld [vmem:[#allocation9 + $0x68] sm:$0xff]  ;;  %v9868_v2 = vpack.c.bf16 %v8754_v36, %v8752_v15  ;;  %v8792_v15 = vld [vmem:[#allocation9 + $0x180] sm:$0xff]  ;;  %v8794_v36 = vld [vmem:[#allocation9 + $0x190] sm:$0xff] }
 0xcf7   : > { %v9870_v27 = vpack.c.bf16 %v8759_v40, %v8757_v23  ;;  %v8797_v23 = vld [vmem:[#allocation9 + $0x1a8] sm:$0xff]  ;;  %v8799_v40 = vld [vmem:[#allocation9 + $0x1b8] sm:$0xff] }
 0xcf8   : > { %9869 = vmatpush1.bf16.msra.mxu1 %v9868_v2  ;;  %v9908_v2 = vpack.c.bf16 %v8794_v36, %v8792_v15  ;;  %v8499_v6 = vld [vmem:[%s13298_s2 + $0x198] sm:$0xff]  ;;  %v8498_v36 = vld [vmem:[%s13298_s2 + $0x190] sm:$0xff] }
 0xcf9   : > { %9769 = vmatpush1.bf16.msra.mxu0 %v9768_v24  ;;  %v8758_v24 = vld [vmem:[#allocation9 + $0x70] sm:$0xff]  ;;  %9871 = vmatprep.subr.bf16.mxu1 %v9870_v27  ;;  %v9910_v27 = vpack.c.bf16 %v8799_v40, %v8797_v23  ;;  %v8502_v23 = vld [vmem:[%s13298_s2 + $0x1b0] sm:$0xff] }
 0xcfa   : > { %9771 = vmatprep.subr.bf16.mxu0 %v9770_v41  ;;  %v8761_v41 = vld [vmem:[#allocation9 + $0x88] sm:$0xff]  ;;  %v9872_v45 = vpack.c.bf16 %v8758_v24, %v8756_v60  ;;  %v8796_v60 = vld [vmem:[#allocation9 + $0x1a0] sm:$0xff]  ;;  %v8798_v24 = vld [vmem:[#allocation9 + $0x1b0] sm:$0xff] }
 0xcfb   : > { %v9874_v58 = vpack.c.bf16 %v8763_v38, %v8761_v41  ;;  %v8801_v41 = vld [vmem:[#allocation9 + $0x1c8] sm:$0xff]  ;;  %v8803_v38 = vld [vmem:[#allocation9 + $0x1d8] sm:$0xff] }
 0xcfc   : > { %9873 = vmatpush1.bf16.msra.mxu1 %v9872_v45  ;;  %v8363_v45 = vld [vmem:[%s13300_s16] sm:$0x3]  ;;  %v8507_v40 = vld [vmem:[%s13298_s2 + $0x1d8] sm:$0xff] }
 0xcfd   : > { %9773 = vmatpush1.bf16.msra.mxu0 %v9772_v14  ;;  %v8762_v14 = vld [vmem:[#allocation9 + $0x90] sm:$0xff]  ;;  %9875 = vmatprep.subr.bf16.mxu1 %v9874_v58  ;;  %v13109_v58 = vsub.s32 1, %v11039_v51 }
 0xcfe   : > { %9775 = vmatprep.subr.bf16.mxu0 %v9774_v54  ;;  %v8765_v54 = vld [vmem:[#allocation9 + $0xa8] sm:$0xff]  ;;  %v9876_v33 = vpack.c.bf16 %v8762_v14, %v8760_v25  ;;  %v9912_v25 = vpack.c.bf16 %v8798_v24, %v8796_v60  ;;  %v9914_v14 = vpack.c.bf16 %v8803_v38, %v8801_v41 }
 0xcff   : > { %v9878_v1 = vpack.c.bf16 %v8767_v3, %v8765_v54  ;;  %v8800_v54 = vld [vmem:[#allocation9 + $0x1c0] sm:$0xff]  ;;  %v8802_v3 = vld [vmem:[#allocation9 + $0x1d0] sm:$0xff] }
 0xd00   : > { %9877 = vmatpush1.bf16.msra.mxu1 %v9876_v33  ;;  %v8368_v33 = vrot.slane %v8363_v45, %v12980_v50  ;;  %v8506_v24 = vld [vmem:[%s13298_s2 + $0x1d0] sm:$0xff]  ;;  %v8515_v38 = vld [vmem:[%s13298_s2 + $0x218] sm:$0xff] }
 0xd01   : > { %9777 = vmatpush1.bf16.msra.mxu0 %v9776_v34  ;;  %v8766_v34 = vld [vmem:[#allocation9 + $0xb0] sm:$0xff]  ;;  %9879 = vmatprep.subr.bf16.mxu1 %v9878_v1  ;;  %v8372_v1 = vrot.slane %v8363_v45, %v13109_v58  ;;  %v8510_v41 = vld [vmem:[%s13298_s2 + $0x1f0] sm:$0xff] }
 0xd02   : > { %9779 = vmatprep.subr.bf16.mxu0 %v9778_v55  ;;  %v8769_v55 = vld [vmem:[#allocation9 + $0xc8] sm:$0xff]  ;;  %v9880_v61 = vpack.c.bf16 %v8766_v34, %v8764_v7  ;;  %v9916_v7 = vpack.c.bf16 %v8802_v3, %v8800_v54 }
 0xd03   : > { %v9882_v11 = vpack.c.bf16 %v8771_v63, %v8769_v55  ;;  %v8519_v45 = vld [vmem:[%s13298_s2 + $0x238] sm:$0xff]  ;;  %v8514_v54 = vld [vmem:[%s13298_s2 + $0x210] sm:$0xff] }
 0xd04   : > { %9881 = vmatpush1.bf16.msra.mxu1 %v9880_v61  ;;  %v8450_v61 = vld [vmem:[%s13298_s2 + $0x10] sm:$0xff] }
 0xd05   : > { %9781 = vmatpush1.bf16.msra.mxu0 %v9780_v5  ;;  %v8770_v5 = vld [vmem:[#allocation9 + $0xd0] sm:$0xff]  ;;  %9883 = vmatprep.subr.bf16.mxu1 %v9882_v11  ;;  %v8454_v11 = vld [vmem:[%s13298_s2 + $0x30] sm:$0xff] }
 0xd06   : > { %9783 = vmatprep.subr.bf16.mxu0 %v9782_v56  ;;  %v8773_v56 = vld [vmem:[#allocation9 + $0xe8] sm:$0xff]  ;;  %v9884_v29 = vpack.c.bf16 %v8770_v5, %v8768_v52 }
 0xd07   : > { %v9886_v59 = vpack.c.bf16 %v8775_v57, %v8773_v56  ;;  %v8459_v5 = vld [vmem:[%s13298_s2 + $0x58] sm:$0xff]  ;;  %v8518_v3 = vld [vmem:[%s13298_s2 + $0x230] sm:$0xff] }
 0xd08   : > { %9885 = vmatpush1.bf16.msra.mxu1 %v9884_v29  ;;  %v8463_v56 = vld [vmem:[%s13298_s2 + $0x78] sm:$0xff]  ;;  %v9796_v29 = vpack.c.bf16 %v8454_v11, %v8450_v61  ;;  %v8526_v61 = vld [vmem:[%s13298_s2 + $0x270] sm:$0xff] }
 0xd09   : > { %9785 = vmatpush1.bf16.msra.mxu0 %v9784_v31  ;;  %v8774_v31 = vld [vmem:[#allocation9 + $0xf0] sm:$0xff]  ;;  %9887 = vmatprep.subr.bf16.mxu1 %v9886_v59 }
 0xd0a   : > { %9787 = vmatprep.subr.bf16.mxu0 %v9786_v28  ;;  %v8777_v28 = vld [vmem:[#allocation9 + $0x108] sm:$0xff]  ;;  %v9888_v37 = vpack.c.bf16 %v8774_v31, %v8772_v22  ;;  %v9798_v22 = vpack.c.bf16 %v8463_v56, %v8459_v5 }
 0xd0b   : > { %v8458_v31 = vld [vmem:[%s13298_s2 + $0x50] sm:$0xff]  ;;  %v8531_v11 = vld [vmem:[%s13298_s2 + $0x298] sm:$0xff] }
 0xd0c   : > { %9889 = vmatpush1.bf16.msra.mxu1 %v9888_v37  ;;  %v8471_v37 = vld [vmem:[%s13298_s2 + $0xb8] sm:$0xff] }
 0xd0d   : > { %9789 = vmatpush1.bf16.msra.mxu0 %v9788_v62  ;;  %v9890_v62 = vpack.c.bf16 %v8779_v46, %v8777_v28  ;;  %v8462_v28 = vld [vmem:[%s13298_s2 + $0x70] sm:$0xff]  ;;  %v8467_v46 = vld [vmem:[%s13298_s2 + $0x98] sm:$0xff] }
 0xd0e   : > { %9791 = vmatprep.subr.bf16.mxu0 %v9790_v4  ;;  %v8783_v4 = vld [vmem:[#allocation9 + $0x138] sm:$0xff]  ;;  %v9802_v9 = vpack.c.bf16 %v8471_v37, %v8467_v46  ;;  %v8538_v37 = vld [vmem:[%s13298_s2 + $0x2d0] sm:$0xff] }
 0xd0f   : > { %9891 = vmatprep.subr.bf16.mxu1 %v9890_v62  ;;  %v9800_v62 = vpack.c.bf16 %v8462_v28, %v8458_v31  ;;  %v8543_v31 = vld [vmem:[%s13298_s2 + $0x2f8] sm:$0xff] }
 0xd10   : > { %9893 = vmatpush1.bf16.msra.mxu1 %v9892_v26  ;;  %v8479_v26 = vld [vmem:[%s13298_s2 + $0xf8] sm:$0xff] }
 0xd11   : > { %9793 = vmatpush1.bf16.msra.mxu0 %v9792_v30  ;;  %v9894_v30 = vpack.c.bf16 %v8783_v4, %v8781_v0  ;;  %v8470_v0 = vld [vmem:[%s13298_s2 + $0xb0] sm:$0xff]  ;;  %v8475_v4 = vld [vmem:[%s13298_s2 + $0xd8] sm:$0xff] }
 0xd12   : > { %9795 = vmatprep.subr.bf16.mxu0 %v9794_v35  ;;  %v8785_v35 = vld [vmem:[#allocation9 + $0x148] sm:$0xff]  ;;  %v9806_v32 = vpack.c.bf16 %v8479_v26, %v8475_v4 }
 0xd13   : > { %9895 = vmatprep.subr.bf16.mxu1 %v9894_v30  ;;  %v9898_v10 = vpack.c.bf16 %v8787_v21, %v8785_v35  ;;  %v9804_v30 = vpack.c.bf16 %v8470_v0, %v8466_v39  ;;  %v8478_v35 = vld [vmem:[%s13298_s2 + $0xf0] sm:$0xff]  ;;  %v8483_v21 = vld [vmem:[%s13298_s2 + $0x118] sm:$0xff] }
 0xd14   : > { %9897 = vmatpush1.bf16.msra.mxu1 %v9896_v43  ;;  %v8487_v43 = vld [vmem:[%s13298_s2 + $0x138] sm:$0xff]  ;;  %v8546_v26 = vld [vmem:[%s13298_s2 + $0x310] sm:$0xff] }
 0xd15   : > { %9899 = vmatprep.subr.bf16.mxu1 %v9898_v10  ;;  %v9808_v10 = vpack.c.bf16 %v8478_v35, %v8474_v42  ;;  %v9810_v20 = vpack.c.bf16 %v8487_v43, %v8483_v21  ;;  %v8551_v39 = vld [vmem:[%s13298_s2 + $0x338] sm:$0xff]  ;;  %v8554_v43 = vld [vmem:[%s13298_s2 + $0x350] sm:$0xff] }
 0xd16   : > { %v8559_v42 = vld [vmem:[%s13298_s2 + $0x378] sm:$0xff] }
 0xd18   : > { %9901 = vmatpush1.bf16.msra.mxu1 %v9900_v53  ;;  %v8495_v53 = vld [vmem:[%s13298_s2 + $0x178] sm:$0xff] }
 0xd19   : > { %9903 = vmatprep.subr.bf16.mxu1 %v9902_v12  ;;  %v9812_v12 = vpack.c.bf16 %v8486_v18, %v8482_v8  ;;  %v9814_v47 = vpack.c.bf16 %v8495_v53, %v8491_v19  ;;  %v8567_v8 = vld [vmem:[%s13298_s2 + $0x3b8] sm:$0xff]  ;;  %v8562_v53 = vld [vmem:[%s13298_s2 + $0x390] sm:$0xff] }
 0xd1c   : > { %9905 = vmatpush1.bf16.msra.mxu1 %v9904_v13  ;;  %v8503_v13 = vld [vmem:[%s13298_s2 + $0x1b8] sm:$0xff] }
 0xd1d   : > { %9907 = vmatprep.subr.bf16.mxu1 %v9906_v49  ;;  %v9816_v49 = vpack.c.bf16 %v8494_v48, %v8490_v17  ;;  %v9818_v15 = vpack.c.bf16 %v8503_v13, %v8499_v6  ;;  %v8575_v17 = vld [vmem:[%s13298_s2 + $0x3f8] sm:$0xff]  ;;  %v8570_v13 = vld [vmem:[%s13298_s2 + $0x3d0] sm:$0xff] }
 0xd20   : > { %9909 = vmatpush1.bf16.msra.mxu1 %v9908_v2  ;;  %v8511_v2 = vld [vmem:[%s13298_s2 + $0x1f8] sm:$0xff] }
 0xd21   : > { %9911 = vmatprep.subr.bf16.mxu1 %v9910_v27  ;;  %v9820_v27 = vpack.c.bf16 %v8502_v23, %v8498_v36  ;;  %v9822_v60 = vpack.c.bf16 %v8511_v2, %v8507_v40  ;;  %v8805_v36 = vld [vmem:[#allocation9 + $0x1e8] sm:$0xff]  ;;  %v8807_v23 = vld [vmem:[#allocation9 + $0x1f8] sm:$0xff]  ;;  %v8804_v40 = vld [vmem:[#allocation9 + $0x1e0] sm:$0xff] }
 0xd22   : > { %v9918_v2 = vpack.c.bf16 %v8807_v23, %v8805_v36  ;;  %v8836_v23 = vld [vmem:[#allocation9 + $0x2e0] sm:$0xff] }
 0xd24   : > { %9913 = vmatpush1.bf16.msra.mxu1 %v9912_v25  ;;  %v9824_v25 = vpack.c.bf16 %v8510_v41, %v8506_v24  ;;  %v8809_v24 = vld [vmem:[#allocation9 + $0x208] sm:$0xff]  ;;  %v8811_v41 = vld [vmem:[#allocation9 + $0x218] sm:$0xff] }
 0xd25   : > { %9915 = vmatprep.subr.bf16.mxu1 %v9914_v14  ;;  %v9826_v14 = vpack.c.bf16 %v8519_v45, %v8515_v38  ;;  %v9922_v38 = vpack.c.bf16 %v8811_v41, %v8809_v24  ;;  %v13183_v45 = vld [vmem:[%s13301_s23] sm:$0xf]  ;;  %v8840_v41 = vld [vmem:[#allocation9 + $0x300] sm:$0xff] }
 0xd28   : > { %9917 = vmatpush1.bf16.msra.mxu1 %v9916_v7  ;;  %v9828_v7 = vpack.c.bf16 %v8518_v3, %v8514_v54  ;;  %v8808_v3 = vld [vmem:[#allocation9 + $0x200] sm:$0xff] }
 0xd29   : > { %9919 = vmatprep.subr.bf16.mxu1 %v9918_v2  ;;  %v8841_v2 = vld [vmem:[#allocation9 + $0x308] sm:$0xff] }
 0xda7   : > { %v8441_v34 = vpop.f32.mrb[38].mxu0 }
 0xda8   : > { %v13113_v55 = vadd.f32 %v8441_v34, %v8368_v33  ;;  %v8443_v63 = vpop.f32.mrb[39].mxu0  ;;  %v8523_v33 = vld [vmem:[%s13298_s2 + $0x258] sm:$0xff] }
 0xda9   : > { %v8444_v52 = vadd.f32 %v8443_v63, %v8372_v1  ;;  %v8527_v1 = vld [vmem:[%s13298_s2 + $0x278] sm:$0xff]  ;;  %v8522_v63 = vld [vmem:[%s13298_s2 + $0x250] sm:$0xff] }
 0xdaa   : > { %v8446_v59 = vmax.f32 %v13113_v55, 0.0  ;;  %v9830_v34 = vpack.c.bf16 %v8527_v1, %v8523_v33  ;;  %v9832_v5 = vpack.c.bf16 %v8526_v61, %v8522_v63  ;;  %v8585_v55 = vrot.slane %v13183_v45, %v13109_v58  ;;  %v8810_v33 = vld [vmem:[#allocation9 + $0x210] sm:$0xff] }
 0xdab   : > { %v8447_v57 = vmax.f32 %v8444_v52, 0.0  ;;  %v8535_v52 = vld [vmem:[%s13298_s2 + $0x2b8] sm:$0xff]  ;;  %v9924_v61 = vpack.c.bf16 %v8810_v33, %v8808_v3 }
 0xdac   : > { %v9834_v56 = vpack.c.bf16 %v8535_v52, %v8531_v11  ;;  %v8846_v3 = vld [vmem:[#allocation9 + $0x330] sm:$0xff]  ;;  %v8849_v33 = vld [vmem:[#allocation9 + $0x348] sm:$0xff] }
 0xdad   : > { %8662 = vmatprep.mubr.f32.mxu0 %v8447_v57 }
 0xdae   : > { %8663 = vmatmul.mubr.f32.vlgmr.msra.gmra.mrb[40].mxu0 %v8446_v59 }
 0xdaf   : > { %9797 = vmatpush1.bf16.msra.mxu0 %v9796_v29  ;;  %8733 = vmatprep.mubr.f32.mxu0 %v8447_v57  ;;  %v8530_v57 = vld [vmem:[%s13298_s2 + $0x290] sm:$0xff] }
 0xdb0   : > { %9799 = vmatprep.subr.bf16.mxu0 %v9798_v22  ;;  %v8534_v29 = vld [vmem:[%s13298_s2 + $0x2b0] sm:$0xff]  ;;  %v8539_v22 = vld [vmem:[%s13298_s2 + $0x2d8] sm:$0xff] }
 0xdb1   : > { %v9836_v28 = vpack.c.bf16 %v8534_v29, %v8530_v57  ;;  %v9838_v46 = vpack.c.bf16 %v8543_v31, %v8539_v22  ;;  %v8817_v57 = vld [vmem:[#allocation9 + $0x248] sm:$0xff]  ;;  %v8819_v29 = vld [vmem:[#allocation9 + $0x258] sm:$0xff] }
 0xdb2   : > { %v9930_v31 = vpack.c.bf16 %v8819_v29, %v8817_v57  ;;  %v8852_v57 = vld [vmem:[#allocation9 + $0x360] sm:$0xff]  ;;  %v8854_v29 = vld [vmem:[#allocation9 + $0x370] sm:$0xff] }
 0xdb3   : > { %9801 = vmatpush1.bf16.msra.mxu0 %v9800_v62  ;;  %v8542_v62 = vld [vmem:[%s13298_s2 + $0x2f0] sm:$0xff] }
 0xdb4   : > { %9803 = vmatprep.subr.bf16.mxu0 %v9802_v9  ;;  %v8547_v9 = vld [vmem:[%s13298_s2 + $0x318] sm:$0xff]  ;;  %v9840_v0 = vpack.c.bf16 %v8542_v62, %v8538_v37  ;;  %v8823_v62 = vld [vmem:[#allocation9 + $0x278] sm:$0xff] }
 0xdb5   : > { %v9842_v4 = vpack.c.bf16 %v8551_v39, %v8547_v9  ;;  %v8821_v37 = vld [vmem:[#allocation9 + $0x268] sm:$0xff] }
 0xdb6   : > { %v9934_v39 = vpack.c.bf16 %v8823_v62, %v8821_v37  ;;  %v8856_v37 = vld [vmem:[#allocation9 + $0x380] sm:$0xff]  ;;  %v8858_v62 = vld [vmem:[#allocation9 + $0x390] sm:$0xff] }
 0xdb7   : > { %9805 = vmatpush1.bf16.msra.mxu0 %v9804_v30  ;;  %v8550_v30 = vld [vmem:[%s13298_s2 + $0x330] sm:$0xff] }
 0xdb8   : > { %9807 = vmatprep.subr.bf16.mxu0 %v9806_v32  ;;  %v8555_v32 = vld [vmem:[%s13298_s2 + $0x358] sm:$0xff]  ;;  %v9844_v35 = vpack.c.bf16 %v8550_v30, %v8546_v26  ;;  %v8827_v30 = vld [vmem:[#allocation9 + $0x298] sm:$0xff] }
 0xdb9   : > { %v9846_v21 = vpack.c.bf16 %v8559_v42, %v8555_v32  ;;  %v8825_v26 = vld [vmem:[#allocation9 + $0x288] sm:$0xff] }
 0xdba   : > { %v9938_v42 = vpack.c.bf16 %v8827_v30, %v8825_v26  ;;  %v8860_v26 = vld [vmem:[#allocation9 + $0x3a0] sm:$0xff]  ;;  %v8862_v30 = vld [vmem:[#allocation9 + $0x3b0] sm:$0xff] }
 0xdbb   : > { %9809 = vmatpush1.bf16.msra.mxu0 %v9808_v10  ;;  %v8558_v10 = vld [vmem:[%s13298_s2 + $0x370] sm:$0xff] }
 0xdbc   : > { %9811 = vmatprep.subr.bf16.mxu0 %v9810_v20  ;;  %v8563_v20 = vld [vmem:[%s13298_s2 + $0x398] sm:$0xff]  ;;  %v9848_v18 = vpack.c.bf16 %v8558_v10, %v8554_v43  ;;  %v8831_v10 = vld [vmem:[#allocation9 + $0x2b8] sm:$0xff] }
 0xdbd   : > { %v9850_v19 = vpack.c.bf16 %v8567_v8, %v8563_v20  ;;  %v8829_v43 = vld [vmem:[#allocation9 + $0x2a8] sm:$0xff] }
 0xdbe   : > { %v9942_v8 = vpack.c.bf16 %v8831_v10, %v8829_v43  ;;  %v8588_v43 = vsub.s32 2, %v11039_v51  ;;  %v8864_v10 = vld [vmem:[#allocation9 + $0x3c0] sm:$0xff] }
 0xdbf   : > { %9813 = vmatpush1.bf16.msra.mxu0 %v9812_v12  ;;  %v8566_v12 = vld [vmem:[%s13298_s2 + $0x3b0] sm:$0xff] }
 0xdc0   : > { %9815 = vmatprep.subr.bf16.mxu0 %v9814_v47  ;;  %v8571_v47 = vld [vmem:[%s13298_s2 + $0x3d8] sm:$0xff]  ;;  %v9852_v48 = vpack.c.bf16 %v8566_v12, %v8562_v53  ;;  %v8835_v12 = vld [vmem:[#allocation9 + $0x2d8] sm:$0xff] }
 0xdc1   : > { %v9854_v6 = vpack.c.bf16 %v8575_v17, %v8571_v47  ;;  %v8833_v53 = vld [vmem:[#allocation9 + $0x2c8] sm:$0xff] }
 0xdc2   : > { %v9946_v17 = vpack.c.bf16 %v8835_v12, %v8833_v53  ;;  %v8589_v12 = vrot.slane %v13183_v45, %v8588_v43 }
 0xdc3   : > { %9817 = vmatpush1.bf16.msra.mxu0 %v9816_v49  ;;  %v8574_v49 = vld [vmem:[%s13298_s2 + $0x3f0] sm:$0xff] }
 0xdc4   : > { %9819 = vmatprep.subr.bf16.mxu0 %v9818_v15  ;;  %v9856_v15 = vpack.c.bf16 %v8574_v49, %v8570_v13  ;;  %v8837_v13 = vld [vmem:[#allocation9 + $0x2e8] sm:$0xff]  ;;  %v8839_v49 = vld [vmem:[#allocation9 + $0x2f8] sm:$0xff] }
 0xdc5   : > { %v9950_v36 = vpack.c.bf16 %v8839_v49, %v8837_v13 }
 0xdc7   : > { %9821 = vmatpush1.bf16.msra.mxu0 %v9820_v27  ;;  %v8806_v27 = vld [vmem:[#allocation9 + $0x1f0] sm:$0xff] }
 0xdc8   : > { %9823 = vmatprep.subr.bf16.mxu0 %v9822_v60  ;;  %v9920_v60 = vpack.c.bf16 %v8806_v27, %v8804_v40  ;;  %v8838_v40 = vld [vmem:[#allocation9 + $0x2f0] sm:$0xff]  ;;  %v8843_v27 = vld [vmem:[#allocation9 + $0x318] sm:$0xff] }
 0xdc9   : > { %v9954_v24 = vpack.c.bf16 %v8843_v27, %v8841_v2  ;;  %v8872_v2 = vld [vmem:[%s10347_s22] sm:$0x3] }
 0xdca   : > { %9921 = vmatpush1.bf16.msra.mxu1 %v9920_v60  ;;  %v9952_v60 = vpack.c.bf16 %v8838_v40, %v8836_v23  ;;  %v8877_v27 = vrot.slane %v8872_v2, %v12980_v50 }
 0xdcb   : > { %9825 = vmatpush1.bf16.msra.mxu0 %v9824_v25  ;;  %9923 = vmatprep.subr.bf16.mxu1 %v9922_v38  ;;  %v8581_v25 = vrot.slane %v13183_v45, %v12980_v50  ;;  %v8842_v38 = vld [vmem:[#allocation9 + $0x310] sm:$0xff] }
 0xdcc   : > { %9827 = vmatprep.subr.bf16.mxu0 %v9826_v14 }
 0xdcf   : > { %9829 = vmatpush1.bf16.msra.mxu0 %v9828_v7  ;;  %v8813_v7 = vld [vmem:[#allocation9 + $0x228] sm:$0xff] }
 0xdd0   : > { %9831 = vmatprep.subr.bf16.mxu0 %v9830_v34  ;;  %v8815_v34 = vld [vmem:[#allocation9 + $0x238] sm:$0xff] }
 0xdd1   : > { %v9926_v52 = vpack.c.bf16 %v8815_v34, %v8813_v7 }
 0xdd3   : > { %9833 = vmatpush1.bf16.msra.mxu0 %v9832_v5  ;;  %v8812_v5 = vld [vmem:[#allocation9 + $0x220] sm:$0xff] }
 0xdd4   : > { %9835 = vmatprep.subr.bf16.mxu0 %v9834_v56  ;;  %v8814_v56 = vld [vmem:[#allocation9 + $0x230] sm:$0xff] }
 0xdd5   : > { %v9928_v22 = vpack.c.bf16 %v8814_v56, %v8812_v5 }
 0xdd7   : > { %9837 = vmatpush1.bf16.msra.mxu0 %v9836_v28  ;;  %v8816_v28 = vld [vmem:[#allocation9 + $0x240] sm:$0xff] }
 0xdd8   : > { %9839 = vmatprep.subr.bf16.mxu0 %v9838_v46  ;;  %v8818_v46 = vld [vmem:[#allocation9 + $0x250] sm:$0xff] }
 0xdd9   : > { %v9932_v9 = vpack.c.bf16 %v8818_v46, %v8816_v28  ;;  %v9968_v28 = vpack.c.bf16 %v8854_v29, %v8852_v57 }
 0xddb   : > { %9841 = vmatpush1.bf16.msra.mxu0 %v9840_v0  ;;  %v8820_v0 = vld [vmem:[#allocation9 + $0x260] sm:$0xff] }
 0xddc   : > { %9843 = vmatprep.subr.bf16.mxu0 %v9842_v4  ;;  %v8822_v4 = vld [vmem:[#allocation9 + $0x270] sm:$0xff] }
 0xddd   : > { %v9936_v32 = vpack.c.bf16 %v8822_v4, %v8820_v0  ;;  %v9972_v0 = vpack.c.bf16 %v8858_v62, %v8856_v37 }
 0xddf   : > { %9845 = vmatpush1.bf16.msra.mxu0 %v9844_v35  ;;  %v8824_v35 = vld [vmem:[#allocation9 + $0x280] sm:$0xff] }
 0xde0   : > { %9847 = vmatprep.subr.bf16.mxu0 %v9846_v21  ;;  %v8826_v21 = vld [vmem:[#allocation9 + $0x290] sm:$0xff] }
 0xde1   : > { %v9940_v20 = vpack.c.bf16 %v8826_v21, %v8824_v35  ;;  %v9976_v35 = vpack.c.bf16 %v8862_v30, %v8860_v26 }
 0xde3   : > { %9849 = vmatpush1.bf16.msra.mxu0 %v9848_v18  ;;  %v8828_v18 = vld [vmem:[#allocation9 + $0x2a0] sm:$0xff] }
 0xde4   : > { %9851 = vmatprep.subr.bf16.mxu0 %v9850_v19  ;;  %v8830_v19 = vld [vmem:[#allocation9 + $0x2b0] sm:$0xff] }
 0xde5   : > { %v9944_v47 = vpack.c.bf16 %v8830_v19, %v8828_v18  ;;  %v8869_v18 = vld [vmem:[#allocation9 + $0x3e8] sm:$0xff]  ;;  %v8871_v19 = vld [vmem:[#allocation9 + $0x3f8] sm:$0xff] }
 0xde7   : > { %9853 = vmatpush1.bf16.msra.mxu0 %v9852_v48  ;;  %v8832_v48 = vld [vmem:[#allocation9 + $0x2c0] sm:$0xff] }
 0xde8   : > { %9855 = vmatprep.subr.bf16.mxu0 %v9854_v6  ;;  %v8834_v6 = vld [vmem:[#allocation9 + $0x2d0] sm:$0xff] }
 0xdeb   : > { %9857 = vmatpush1.bf16.msra.mxu0 %v9856_v15  ;;  %v9948_v15 = vpack.c.bf16 %v8834_v6, %v8832_v48  ;;  %v8870_v48 = vld [vmem:[#allocation9 + $0x3f0] sm:$0xff] }
 0xdee   : > { %8734 = vmatmul.mubr.f32.vlgmr.msra.gmra.mrb[42].mxu0 %v8446_v59 }
 0xe81   : > { %v8664_v59 = vpop.f32.mrb[40].mxu0 }
 0xe82   : > { %v8665_v14 = vadd.f32 %v8664_v59, %v8581_v25  ;;  %v8666_v54 = vpop.f32.mrb[41].mxu0  ;;  %v8845_v25 = vld [vmem:[#allocation9 + $0x328] sm:$0xff]  ;;  %v9956_v59 = vpack.c.bf16 %v8842_v38, %v8840_v41 }
 0xe83   : > { %v8667_v1 = vadd.f32 %v8666_v54, %v8585_v55  ;;  %v8847_v55 = vld [vmem:[#allocation9 + $0x338] sm:$0xff]  ;;  %v8844_v54 = vld [vmem:[#allocation9 + $0x320] sm:$0xff] }
 0xe84   : > { %v8740_v11 = vmax.f32 %v8665_v14, 0.0  ;;  %v9958_v14 = vpack.c.bf16 %v8847_v55, %v8845_v25  ;;  %v9960_v7 = vpack.c.bf16 %v8846_v3, %v8844_v54 }
 0xe85   : > { %v8741_v63 = vmax.f32 %v8667_v1, 0.0  ;;  %v8851_v1 = vld [vmem:[#allocation9 + $0x358] sm:$0xff] }
 0xe86   : > { %v9962_v34 = vpack.c.bf16 %v8851_v1, %v8849_v33 }
 0xe87   : > { %8948 = vmatprep.mubr.f32.mxu1 %v8741_v63  ;;  %v8848_v63 = vld [vmem:[#allocation9 + $0x340] sm:$0xff] }
 0xe88   : > { %8949 = vmatmul.mubr.f32.vlgmr.msra.gmra.mrb[34].mxu1 %v8740_v11  ;;  %v8853_v11 = vld [vmem:[#allocation9 + $0x368] sm:$0xff] }
 0xe89   : > { %9925 = vmatpush1.bf16.msra.mxu1 %v9924_v61  ;;  %v8850_v61 = vld [vmem:[#allocation9 + $0x350] sm:$0xff] }
 0xe8a   : > { %9927 = vmatprep.subr.bf16.mxu1 %v9926_v52  ;;  %v8855_v52 = vld [vmem:[#allocation9 + $0x378] sm:$0xff]  ;;  %v9964_v5 = vpack.c.bf16 %v8850_v61, %v8848_v63 }
 0xe8b   : > { %v9966_v56 = vpack.c.bf16 %v8855_v52, %v8853_v11 }
 0xe8d   : > { %9929 = vmatpush1.bf16.msra.mxu1 %v9928_v22  ;;  %v8857_v22 = vld [vmem:[#allocation9 + $0x388] sm:$0xff] }
 0xe8e   : > { %9931 = vmatprep.subr.bf16.mxu1 %v9930_v31  ;;  %v8859_v31 = vld [vmem:[#allocation9 + $0x398] sm:$0xff] }
 0xe8f   : > { %v9970_v46 = vpack.c.bf16 %v8859_v31, %v8857_v22 }
 0xe91   : > { %9933 = vmatpush1.bf16.msra.mxu1 %v9932_v9  ;;  %v8861_v9 = vld [vmem:[#allocation9 + $0x3a8] sm:$0xff] }
 0xe92   : > { %9935 = vmatprep.subr.bf16.mxu1 %v9934_v39  ;;  %v8863_v39 = vld [vmem:[#allocation9 + $0x3b8] sm:$0xff] }
 0xe93   : > { %v9974_v4 = vpack.c.bf16 %v8863_v39, %v8861_v9 }
 0xe95   : > { %9937 = vmatpush1.bf16.msra.mxu1 %v9936_v32  ;;  %v8865_v32 = vld [vmem:[#allocation9 + $0x3c8] sm:$0xff] }
 0xe96   : > { %9939 = vmatprep.subr.bf16.mxu1 %v9938_v42  ;;  %v8867_v42 = vld [vmem:[#allocation9 + $0x3d8] sm:$0xff] }
 0xe97   : > { %v9978_v21 = vpack.c.bf16 %v8867_v42, %v8865_v32 }
 0xe99   : > { %9941 = vmatpush1.bf16.msra.mxu1 %v9940_v20  ;;  %v8866_v20 = vld [vmem:[#allocation9 + $0x3d0] sm:$0xff] }
 0xe9a   : > { %9943 = vmatprep.subr.bf16.mxu1 %v9942_v8  ;;  %v8592_v8 = vsub.s32 3, %v11039_v51  ;;  %v9980_v53 = vpack.c.bf16 %v8866_v20, %v8864_v10 }
 0xe9c   : > { %v8593_v6 = vrot.slane %v13183_v45, %v8592_v8 }
 0xe9d   : > { %9945 = vmatpush1.bf16.msra.mxu1 %v9944_v47  ;;  %v9982_v47 = vpack.c.bf16 %v8871_v19, %v8869_v18 }
 0xe9e   : > { %9947 = vmatprep.subr.bf16.mxu1 %v9946_v17  ;;  %v8868_v17 = vld [vmem:[#allocation9 + $0x3e0] sm:$0xff] }
 0xe9f   : > { %v9984_v49 = vpack.c.bf16 %v8870_v48, %v8868_v17 }
 0xea1   : > { %9949 = vmatpush1.bf16.msra.mxu1 %v9948_v15 }
 0xea2   : > { %9951 = vmatprep.subr.bf16.mxu1 %v9950_v36 }
 0xea5   : > { %9953 = vmatpush1.bf16.msra.mxu1 %v9952_v60  ;;  %v8881_v60 = vrot.slane %v8872_v2, %v13109_v58 }
 0xea6   : > { %9955 = vmatprep.subr.bf16.mxu1 %v9954_v24 }
 0xea9   : > { %9957 = vmatpush1.bf16.msra.mxu1 %v9956_v59 }
 0xeaa   : > { %9959 = vmatprep.subr.bf16.mxu1 %v9958_v14 }
 0xead   : > { %9961 = vmatpush1.bf16.msra.mxu1 %v9960_v7 }
 0xeae   : > { %9963 = vmatprep.subr.bf16.mxu1 %v9962_v34 }
 0xeb1   : > { %9965 = vmatpush1.bf16.msra.mxu1 %v9964_v5 }
 0xeb2   : > { %9967 = vmatprep.subr.bf16.mxu1 %v9966_v56 }
 0xeb5   : > { %9969 = vmatpush1.bf16.msra.mxu1 %v9968_v28 }
 0xeb6   : > { %9971 = vmatprep.subr.bf16.mxu1 %v9970_v46 }
 0xeb9   : > { %9973 = vmatpush1.bf16.msra.mxu1 %v9972_v0 }
 0xeba   : > { %9975 = vmatprep.subr.bf16.mxu1 %v9974_v4 }
 0xebd   : > { %9977 = vmatpush1.bf16.msra.mxu1 %v9976_v35 }
 0xebe   : > { %9979 = vmatprep.subr.bf16.mxu1 %v9978_v21 }
 0xec1   : > { %v8735_v13 = vpop.f32.mrb[42].mxu0  ;;  %9981 = vmatpush1.bf16.msra.mxu1 %v9980_v53 }
 0xec2   : > { %v8736_v15 = vadd.f32 %v8735_v13, %v8589_v12  ;;  %v8737_v36 = vpop.f32.mrb[43].mxu0  ;;  %9983 = vmatprep.subr.bf16.mxu1 %v9982_v47 }
 0xec3   : > { %v8738_v51 = vadd.f32 %v8737_v36, %v8593_v6 }
 0xec4   : > { %v8742_v40 = vmax.f32 %v8736_v15, 0.0 }
 0xec5   : > { %v8743_v23 = vmax.f32 %v8738_v51, 0.0  ;;  %9985 = vmatpush1.bf16.msra.mxu1 %v9984_v49 }
 0xec7   : > { %9019 = vmatprep.mubr.f32.mxu1 %v8743_v23 }
 0xec8   : > { %9020 = vmatmul.mubr.f32.vlgmr.msra.gmra.mrb[34].mxu1 %v8742_v40 }
 0xf9b   : > { %v9021_v24 = vpop.f32.mrb[34].mxu1 }
 0xf9c   : > { %v9989_v45 = vadd.f32 %v9021_v24, %v8877_v27  ;;  %v9023_v41 = vpop.f32.mrb[35].mxu1 }
 0xf9d   : > { %v9990_v38 = vadd.f32 %v9023_v41, %v8881_v60 }
 0xf9e   : > { %v9026_v25 = vmul.f32 0.5, %v9989_v45 }
 0xf9f   : > { %v9027_v55 = vmul.f32 0.5, %v9990_v38 }
 0xfa0   : > { %10100 = vtanh.f32 %v9026_v25 }
 0xfa1   : > { %10102 = vtanh.f32 %v9027_v55 }
 0xfaa   : > { %v10101_v59 = vpop.eup %10100 }
 0xfab   : > { %v10103_v14 = vpop.eup %10102  ;;  %v9030_v54 = vadd.f32 1.0, %v10101_v59 }
 0xfac   : > { %v9031_v3 = vadd.f32 1.0, %v10103_v14 }
 0xfad   : > { %v9032_v33 = vmul.f32 0.5, %v9030_v54 }
 0xfae   : > { %v9033_v1 = vmul.f32 0.5, %v9031_v3 }
 0xfb0   : > { %v9036_v50 = vcombine.low %v9032_v33, %v9033_v1 }
 0xfb2   : > { %v9043_v7 = vrot.slane %v9036_v50, %v12963_v16 }
 0xfb4   : > { %v9050_v58 = vrot.slane %v9043_v7, %v12963_v16 }
 0xfb6   : > { %9056 = vst.msk [vmem:[%s968_s26] sm:$0x3] %vm9054_vm15, %v9050_v58 }
 0xfb7 PF: > { %s73_s4 = sadd.s32 1, %s10145_s4  }
 0xfb8   : > { %p70_p3 = scmp.ge.s32.totalorder %s73_s4, 4  }
 0xfba   :  { %72 = sbr.rel (!%p70_p3) target bundleno = 44 (0x2c), region = 220 }
 0xfc1   :  { %9088 = vsyncpa [#allocation10], 1 }
 0xfc2   :  { %9090 = vsyncpa [#allocation10 + $0x1], 1 }

</bundles_post_ra>
